<compile_context>
chip_gen: v6e
topology: v6e:2x2x1
jax: 0.10.0
libtpu: 0.0.40
codegen_flags: <defaults>
</compile_context>

<pallas_src>
import functools

import jax
import jax.numpy as jnp
from jax.experimental import pallas as pl
from jax.experimental.pallas import tpu as pltpu


# ----------------------------------------------------------------------------------
# Kernel
# ----------------------------------------------------------------------------------
def _window_attn_kernel(*refs, bblk, num_heads, head_dim, n_mask_windows,
                        compute_dtype):
    """One grid step processes `bblk` windows."""
    if n_mask_windows > 0:
        (x_ref, k1_ref, bias_ref, mask_ref,
         wqkv_ref, bqkv_ref, wproj_ref, bproj_ref, y_ref, k2_ref) = refs
    else:
        (x_ref, k1_ref, bias_ref,
         wqkv_ref, bqkv_ref, wproj_ref, bproj_ref, y_ref, k2_ref) = refs
        mask_ref = None

    H, D = num_heads, head_dim
    N = x_ref.shape[1]
    C = H * D
    BH = bblk * H
    cd = compute_dtype

    # ---- fused qkv projection: one (bblk*N, C) @ (C, 3C) MXU matmul -------------
    # (the q columns of wqkv / bqkv are pre-scaled by head_dim**-0.5 in the wrapper)
    x2d = x_ref[...].reshape(bblk * N, C).astype(cd)
    qkv = jnp.dot(x2d, wqkv_ref[...], preferred_element_type=jnp.float32)
    qkv = qkv + bqkv_ref[...]                                     # (bblk*N, 3C) f32

    # ---- k2: one contiguous lane-dense slab store (no per-head stores) ----------
    k2_ref[...] = qkv[:, C:2 * C].reshape(bblk, N, C).astype(k2_ref.dtype)

    # ---- batched attention over all (window, head) pairs at once ----------------
    # Head split via static lane slices + leading-dim stack (no minor-dim transposes).
    # The f32 qkv value is fully consumed here, so its live range ends before the
    # attention matmuls start.
    q = jnp.stack(
        [qkv[:, h * D:(h + 1) * D].reshape(bblk, N, D) for h in range(H)],
        axis=1).reshape(BH, N, D).astype(cd)
    v = jnp.stack(
        [qkv[:, 2 * C + h * D:2 * C + (h + 1) * D].reshape(bblk, N, D)
         for h in range(H)],
        axis=1).reshape(BH, N, D).astype(cd)
    # k1 arrives head-major (bblk, H, N, D): merging the leading dims is free.
    k = k1_ref[...].reshape(BH, N, D).astype(cd)

    # scores: one batched (BH, N, D) x (BH, N, D)^T contraction, f32 accumulation
    s = jnp.einsum("bnd,bmd->bnm", q, k,
                   preferred_element_type=jnp.float32)            # (BH, N, N)
    s = s.reshape(bblk, H, N, N) + bias_ref[...][None]
    if mask_ref is not None:
        base = pl.program_id(0) * bblk
        m = jnp.stack([mask_ref[(base + w) % n_mask_windows] for w in range(bblk)],
                      axis=0)                                     # (bblk, N, N)
        s = s + m[:, None]

    # one numerically-stable softmax over the whole (bblk, H, N, N) slab
    s = s - jnp.max(s, axis=-1, keepdims=True)
    p = jnp.exp(s)
    inv = pl.reciprocal(jnp.sum(p, axis=-1, keepdims=True), approx=True)  # EUP vrcp
    p = (p * inv).reshape(BH, N, N).astype(cd)

    # attention output: one batched (BH, N, N) x (BH, N, D) matmul
    o = jnp.einsum("bnm,bmd->bnd", p, v,
                   preferred_element_type=jnp.float32)            # (BH, N, D)
    o = o.reshape(bblk, H, N, D)
    # lane-dense head re-assembly -> (bblk, N, C); feeds a single dense store path
    o = jnp.concatenate([o[:, h] for h in range(H)], axis=-1)

    # ---- output projection: one (bblk*N, C) @ (C, C) MXU matmul -----------------
    y = jnp.dot(o.reshape(bblk * N, C).astype(cd), wproj_ref[...],
                preferred_element_type=jnp.float32)
    y = y + bproj_ref[...]
    y_ref[...] = y.reshape(bblk, N, C).astype(y_ref.dtype)


# ----------------------------------------------------------------------------------
# VMEM / grid policy helpers
# ----------------------------------------------------------------------------------
def _rup(n, m):
    return -(-int(n) // m) * m


def _padded_bytes(shape, itemsize):
    """Approx VMEM footprint: minor dim -> 128 lanes, second-minor -> 8 sublanes."""
    s = [int(d) for d in shape]
    s[-1] = _rup(s[-1], 128)
    if len(s) >= 2:
        s[-2] = _rup(s[-2], 8)
    n = 1
    for d in s:
        n *= d
    return n * itemsize


def _step_vmem_bytes(bblk, N, C, H, D, n_mask, in_isz, w_isz, cd_isz):
    """Per-grid-step VMEM: double-buffered I/O tiles, resident params (counted 2x,
    the pipeline still double-buffers constant-index inputs) and the large in-kernel
    intermediates the old estimate ignored."""
    b = 0
    # streamed, double-buffered I/O tiles
    b += 2 * _padded_bytes((bblk * N, C), in_isz)               # x
    b += 2 * _padded_bytes((bblk * H * N, D), in_isz)           # k1 (D-minor, lane-padded)
    b += 2 * 2 * _padded_bytes((bblk * N, C), in_isz)           # y + k2 outputs
    # constant-index inputs
    b += 2 * _padded_bytes((H * N, N), 4)                       # relative-position bias
    if n_mask:
        b += 2 * _padded_bytes((n_mask * N, N), 4)              # additive window mask
    b += 2 * (_padded_bytes((C, 3 * C), w_isz) + _padded_bytes((1, 3 * C), 4)
              + _padded_bytes((C, C), w_isz) + _padded_bytes((1, C), 4))
    # large in-kernel intermediates (compiler-managed VMEM / spills)
    b += _padded_bytes((bblk * N, 3 * C), 4)                    # qkv (f32)
    b += 3 * _padded_bytes((bblk * H * N, D), max(cd_isz, 2))   # q, k, v operands
    b += 2 * _padded_bytes((bblk * H * N, N), 4)                # scores + probabilities
    b += _padded_bytes((bblk * N, C), 4)                        # pre-projection output
    return b


def _vmem_policy():
    """Returns (budget for picking bblk, scoped vmem limit, dual-TensorCore chip)."""
    kind = ""
    try:
        kind = jax.devices()[0].device_kind.lower()
    except Exception:
        pass
    if "v7" in kind:                                  # 64 MiB physical VMEM, 2 TCs
        return 36 << 20, 56 << 20, True
    if "v5 lite" in kind or "v5e" in kind or "v6" in kind:   # 128 MiB physical VMEM
        return 72 << 20, 110 << 20, False
    return 36 << 20, 56 << 20, False                  # unknown: conservative (v7x-safe)


# ----------------------------------------------------------------------------------
# Wrapper
# ----------------------------------------------------------------------------------
def window_attention_two(x, k1, params, window_size, num_heads, mask=None,
                         block_windows=8, use_bf16_matmul=None):
    """Pallas TPU implementation of WindowAttention_Two.forward (eval mode).

    x: (B_, N, C)   k1: (B_, H, N, D)   mask: (nW, N, N) or None
    returns (y, k2) with y (B_, N, C), k2 (B_, H, N, D)
    """
    B_, N, C = x.shape
    H = num_heads
    assert C % H == 0
    D = C // H
    scale = D ** (-0.5)
    Wh, Ww = window_size
    assert N == Wh * Ww
    assert k1.shape == (B_, H, N, D)

    out_dtype = x.dtype
    if use_bf16_matmul is None:
        use_bf16 = (x.dtype == jnp.bfloat16)
    else:
        use_bf16 = bool(use_bf16_matmul)
    compute_dtype = jnp.bfloat16 if use_bf16 else jnp.float32
    if use_bf16:
        x = x.astype(jnp.bfloat16)
        k1 = k1.astype(jnp.bfloat16)

    # ---- relative position bias gather (parameter glue, done once in XLA) -------
    coords = jnp.stack(jnp.meshgrid(jnp.arange(Wh), jnp.arange(Ww), indexing="ij"))
    cf = coords.reshape(2, -1)
    rel = (cf[:, :, None] - cf[:, None, :]).transpose(1, 2, 0)
    rel = rel.at[:, :, 0].add(Wh - 1)
    rel = rel.at[:, :, 1].add(Ww - 1)
    rel = rel.at[:, :, 0].multiply(2 * Ww - 1)
    rel_index = rel.sum(-1)
    bias = params["rel_pos_bias_table"][rel_index.reshape(-1)]
    bias = bias.reshape(N, N, H).transpose(2, 0, 1).astype(jnp.float32)    # (H, N, N)

    # ---- weights: fold the qk scale into the q columns, cast matmul weights -----
    wqkv = params["wqkv"].astype(jnp.float32)
    bqkv = params["bqkv"].astype(jnp.float32)
    wqkv = wqkv.at[:, :C].multiply(scale)       # only the q projection is scaled
    bqkv = bqkv.at[:C].multiply(scale)
    wqkv_k = wqkv.astype(compute_dtype)                                    # (C, 3C)
    wproj_k = params["wproj"].astype(jnp.float32).astype(compute_dtype)    # (C, C)
    bqkv_k = bqkv.reshape(1, 3 * C)             # biases stay f32 (added post-accum)
    bproj_k = params["bproj"].astype(jnp.float32).reshape(1, C)

    n_mask_windows = 0 if mask is None else int(mask.shape[0])

    # ---- pick windows-per-step against an honest per-generation VMEM budget -----
    in_isz = jnp.dtype(x.dtype).itemsize
    w_isz = jnp.dtype(compute_dtype).itemsize
    vmem_budget, vmem_cap, dual_tc = _vmem_policy()
    target = max(1, int(block_windows))
    bblk = 1
    for cand in range(1, min(target, B_) + 1):
        if _step_vmem_bytes(cand, N, C, H, D, n_mask_windows,
                            in_isz, w_isz, w_isz) <= vmem_budget:
            bblk = cand
    steps = -(-B_ // bblk)
    if dual_tc:
        # keep the parallel grid even (>= 2) so both TensorCores stay busy
        steps = max(2, steps)
        if steps % 2:
            steps += 1
    # rebalance: smallest bblk that still gives `steps` steps (minimizes padding)
    bblk = -(-B_ // steps)
    steps = -(-B_ // bblk)
    if dual_tc and steps % 2:
        steps += 1
    B_pad = steps * bblk

    # pad awkward B_ up to a whole number of blocks (keeps big fused MXU shapes)
    if B_pad != B_:
        x = jnp.concatenate([x, jnp.zeros((B_pad - B_, N, C), x.dtype)], axis=0)
        k1 = jnp.concatenate([k1, jnp.zeros((B_pad - B_, H, N, D), k1.dtype)], axis=0)

    est = _step_vmem_bytes(bblk, N, C, H, D, n_mask_windows, in_isz, w_isz, w_isz)
    vmem_limit = int(min(vmem_cap, max(32 << 20, int(est * 1.3))))

    kernel = functools.partial(
        _window_attn_kernel, bblk=bblk, num_heads=H, head_dim=D,
        n_mask_windows=n_mask_windows, compute_dtype=compute_dtype)

    in_specs = [
        pl.BlockSpec((bblk, N, C), lambda b: (b, 0, 0)),                   # x
        pl.BlockSpec((bblk, H, N, D), lambda b: (b, 0, 0, 0)),             # k1 (head-major)
        pl.BlockSpec((H, N, N), lambda b: (0, 0, 0)),                      # bias (resident)
    ]
    inputs = [x, k1, bias]
    if mask is not None:
        in_specs.append(pl.BlockSpec((n_mask_windows, N, N), lambda b: (0, 0, 0)))
        inputs.append(mask.astype(jnp.float32))
    in_specs += [
        pl.BlockSpec((C, 3 * C), lambda b: (0, 0)),                        # wqkv
        pl.BlockSpec((1, 3 * C), lambda b: (0, 0)),                        # bqkv
        pl.BlockSpec((C, C), lambda b: (0, 0)),                            # wproj
        pl.BlockSpec((1, C), lambda b: (0, 0)),                            # bproj
    ]
    inputs += [wqkv_k, bqkv_k, wproj_k, bproj_k]

    out_specs = [
        pl.BlockSpec((bblk, N, C), lambda b: (b, 0, 0)),                   # y
        pl.BlockSpec((bblk, N, C), lambda b: (b, 0, 0)),                   # k2 slab
    ]
    out_shape = (jax.ShapeDtypeStruct((B_pad, N, C), out_dtype),
                 jax.ShapeDtypeStruct((B_pad, N, C), out_dtype))

    flops = B_pad * (2 * N * C * 3 * C + 4 * H * N * N * D + 2 * N * C * C)
    bytes_accessed = (
        (int(x.size) + int(k1.size) + 2 * B_pad * N * C) * in_isz
        + int(bias.size) * 4
        + (0 if mask is None else int(mask.size) * 4)
        + (int(wqkv_k.size) + int(wproj_k.size)) * w_isz
        + (int(bqkv_k.size) + int(bproj_k.size)) * 4)
    cost = pl.CostEstimate(flops=int(flops),
                           transcendentals=int(B_pad * H * N * N),
                           bytes_accessed=int(bytes_accessed))

    grid_spec = pltpu.PrefetchScalarGridSpec(
        num_scalar_prefetch=0, grid=(steps,),
        in_specs=in_specs, out_specs=out_specs)

    y, k2_slab = pl.pallas_call(
        kernel,
        out_shape=out_shape,
        grid_spec=grid_spec,
        compiler_params=pltpu.CompilerParams(
            dimension_semantics=("parallel",),
            vmem_limit_bytes=vmem_limit),
        cost_estimate=cost,
    )(*inputs)

    y = y[:B_]
    # TODO(synk): if the consumer can take k2 as (B_, N, H, D) (free reshape of the
    # slab), this transpose -- an extra HBM round trip -- can be dropped entirely.
    k2 = k2_slab[:B_].reshape(B_, N, H, D).transpose(0, 2, 1, 3)
    return y, k2


# ----------------------------------------------------------------------------------
# Pure-JAX reference mirroring the PyTorch forward exactly
# ----------------------------------------------------------------------------------
def window_attention_two_ref(x, k1, params, window_size, num_heads, mask=None):
    B_, N, C = x.shape
    head_dim = C // num_heads
    scale = head_dim ** (-0.5)
    Wh, Ww = window_size

    coords = jnp.stack(jnp.meshgrid(jnp.arange(Wh), jnp.arange(Ww), indexing="ij"))
    cf = coords.reshape(2, -1)
    rel = (cf[:, :, None] - cf[:, None, :]).transpose(1, 2, 0)
    rel = rel.at[:, :, 0].add(Wh - 1)
    rel = rel.at[:, :, 1].add(Ww - 1)
    rel = rel.at[:, :, 0].multiply(2 * Ww - 1)
    rel_index = rel.sum(-1)
    bias = params["rel_pos_bias_table"][rel_index.reshape(-1)].reshape(N, N, num_heads)
    bias = bias.transpose(2, 0, 1)

    qkv = x @ params["wqkv"] + params["bqkv"]                              # (B_, N, 3C)
    qkv = qkv.reshape(B_, N, 3, num_heads, head_dim).transpose(2, 0, 3, 1, 4)
    q, k2, v = qkv[0], qkv[1], qkv[2]
    q = q * scale
    attn = jnp.einsum("bhnd,bhmd->bhnm", q, k1)
    attn = attn + bias[None]
    if mask is not None:
        nW = mask.shape[0]
        attn = attn.reshape(B_ // nW, nW, num_heads, N, N) + mask[None, :, None]
        attn = attn.reshape(B_, num_heads, N, N)
    attn = jax.nn.softmax(attn, axis=-1)
    out = jnp.einsum("bhnm,bhmd->bhnd", attn, v)
    out = out.transpose(0, 2, 1, 3).reshape(B_, N, C)
    out = out @ params["wproj"] + params["bproj"]
    return out, k2


# ----------------------------------------------------------------------------------
if __name__ == "__main__":
    dim = 32
    num_heads = 4
    window_size = (8, 8)
    N = window_size[0] * window_size[1]          # 64
    head_dim = dim // num_heads

    key = jax.random.PRNGKey(0)
    ks = jax.random.split(key, 12)

    params = {
        "rel_pos_bias_table": 0.02 * jax.random.normal(
            ks[0], ((2 * window_size[0] - 1) * (2 * window_size[1] - 1), num_heads),
            dtype=jnp.float32),
        "wqkv": 0.05 * jax.random.normal(ks[1], (dim, 3 * dim), dtype=jnp.float32),
        "bqkv": 0.01 * jax.random.normal(ks[2], (3 * dim,), dtype=jnp.float32),
        "wproj": 0.05 * jax.random.normal(ks[3], (dim, dim), dtype=jnp.float32),
        "bproj": 0.01 * jax.random.normal(ks[4], (dim,), dtype=jnp.float32),
    }

    # TODO(synk): attn_drop / proj_drop are identity in eval mode; dropout not implemented.

    # --- (a) no-mask, f32 ---
    B1 = 4
    x = jax.random.normal(ks[5], (B1, N, dim), dtype=jnp.float32)
    k1 = jax.random.normal(ks[6], (B1, num_heads, N, head_dim), dtype=jnp.float32)
    y, k2 = window_attention_two(x, k1, params, window_size, num_heads, mask=None)
    jax.block_until_ready((y, k2))
    y_r, k2_r = window_attention_two_ref(x, k1, params, window_size, num_heads)
    assert y.shape == y_r.shape and k2.shape == k2_r.shape
    assert jnp.allclose(y, y_r, atol=3e-3, rtol=3e-3), "output mismatch (no mask)"
    assert jnp.allclose(k2, k2_r, atol=3e-3, rtol=3e-3), "k2 mismatch (no mask)"

    # --- (b) shifted-window mask, f32, block size not dividing nW alignment ---
    B2, nW = 6, 2
    x2 = jax.random.normal(ks[7], (B2, N, dim), dtype=jnp.float32)
    k1b = jax.random.normal(ks[8], (B2, num_heads, N, head_dim), dtype=jnp.float32)
    mask = jnp.where(jax.random.uniform(ks[9], (nW, N, N)) > 0.8, -100.0, 0.0)
    mask = mask.astype(jnp.float32)
    ym, k2m = window_attention_two(x2, k1b, params, window_size, num_heads,
                                   mask=mask, block_windows=4)
    jax.block_until_ready((ym, k2m))
    ym_r, k2m_r = window_attention_two_ref(x2, k1b, params, window_size, num_heads,
                                           mask=mask)
    assert jnp.allclose(ym, ym_r, atol=3e-3, rtol=3e-3), "output mismatch (mask)"
    assert jnp.allclose(k2m, k2m_r, atol=3e-3, rtol=3e-3), "k2 mismatch (mask)"

    # --- (c) awkward B_ (padding path), f32, multi-step grid ---
    B3 = 5
    x3 = jax.random.normal(ks[10], (B3, N, dim), dtype=jnp.float32)
    k1c = jax.random.normal(ks[11], (B3, num_heads, N, head_dim), dtype=jnp.float32)
    yp, k2p = window_attention_two(x3, k1c, params, window_size, num_heads,
                                   block_windows=2)
    jax.block_until_ready((yp, k2p))
    yp_r, k2p_r = window_attention_two_ref(x3, k1c, params, window_size, num_heads)
    assert jnp.allclose(yp, yp_r, atol=3e-3, rtol=3e-3), "output mismatch (padded B_)"
    assert jnp.allclose(k2p, k2p_r, atol=3e-3, rtol=3e-3), "k2 mismatch (padded B_)"

    # --- (d) bf16 MXU path (auto-selected from input dtype) ---
    xb = x.astype(jnp.bfloat16)
    k1bf = k1.astype(jnp.bfloat16)
    yb, k2b = window_attention_two(xb, k1bf, params, window_size, num_heads)
    jax.block_until_ready((yb, k2b))
    yb_r, k2b_r = window_attention_two_ref(xb.astype(jnp.float32),
                                           k1bf.astype(jnp.float32),
                                           params, window_size, num_heads)
    assert jnp.allclose(yb.astype(jnp.float32), yb_r, atol=4e-2, rtol=4e-2), \
        "output mismatch (bf16)"
    assert jnp.allclose(k2b.astype(jnp.float32), k2b_r, atol=4e-2, rtol=4e-2), \
        "k2 mismatch (bf16)"

    print("KERNEL_OK")
</pallas_src>

<mosaic_0001>
module attributes {stable_mosaic.version = 11 : i64} {
  func.func @_window_attn_kernel(%arg0: i32, %arg1: memref<4x64x32xf32, #tpu.memory_space<vmem>>, %arg2: memref<4x4x64x8xf32, #tpu.memory_space<vmem>>, %arg3: memref<4x64x64xf32, #tpu.memory_space<vmem>>, %arg4: memref<32x96xf32, #tpu.memory_space<vmem>>, %arg5: memref<1x96xf32, #tpu.memory_space<vmem>>, %arg6: memref<32x32xf32, #tpu.memory_space<vmem>>, %arg7: memref<1x32xf32, #tpu.memory_space<vmem>>, %arg8: memref<4x64x32xf32, #tpu.memory_space<vmem>>, %arg9: memref<4x64x32xf32, #tpu.memory_space<vmem>>) attributes {dimension_semantics = [#tpu.dimension_semantics<parallel>], iteration_bounds = array<i64: 1>, scalar_prefetch = 0 : i64, scratch_operands = 0 : i64, tpu.core_type = #tpu.core_type<tc>, window_params = [{transform_indices = @transform_0, window_bounds = array<i64: 4, 64, 32>}, {transform_indices = @transform_1, window_bounds = array<i64: 4, 4, 64, 8>}, {pipeline_mode = #tpu.pipeline_mode<synchronous>, transform_indices = @transform_2, window_bounds = array<i64: 4, 64, 64>}, {pipeline_mode = #tpu.pipeline_mode<synchronous>, transform_indices = @transform_3, window_bounds = array<i64: 32, 96>}, {pipeline_mode = #tpu.pipeline_mode<synchronous>, transform_indices = @transform_4, window_bounds = array<i64: 1, 96>}, {pipeline_mode = #tpu.pipeline_mode<synchronous>, transform_indices = @transform_5, window_bounds = array<i64: 32, 32>}, {pipeline_mode = #tpu.pipeline_mode<synchronous>, transform_indices = @transform_6, window_bounds = array<i64: 1, 32>}, {transform_indices = @transform_7, window_bounds = array<i64: 4, 64, 32>}, {transform_indices = @transform_8, window_bounds = array<i64: 4, 64, 32>}]} {
    %c0 = arith.constant 0 : index
    %c0_0 = arith.constant 0 : index
    %c0_1 = arith.constant 0 : index
    %0 = vector.load %arg1[%c0, %c0_0, %c0_1] : memref<4x64x32xf32, #tpu.memory_space<vmem>>, vector<4x64x32xf32>
    %1 = vector.shape_cast %0 : vector<4x64x32xf32> to vector<256x32xf32>
    %c0_2 = arith.constant 0 : index
    %c0_3 = arith.constant 0 : index
    %2 = vector.load %arg4[%c0_2, %c0_3] : memref<32x96xf32, #tpu.memory_space<vmem>>, vector<32x96xf32>
    %cst = arith.constant dense<0.000000e+00> : vector<256x96xf32>
    %3 = tpu.matmul %1, %2, %cst {dimension_numbers = #tpu.dot_dimension_numbers<[1], [0], [0], [1], [0, 0, 1, 1], [], []>} : vector<256x32xf32>, vector<32x96xf32>, vector<256x96xf32> -> vector<256x96xf32>
    %c0_4 = arith.constant 0 : index
    %c0_5 = arith.constant 0 : index
    %4 = vector.load %arg5[%c0_4, %c0_5] : memref<1x96xf32, #tpu.memory_space<vmem>>, vector<1x96xf32>
    %5 = vector.broadcast %4 : vector<1x96xf32> to vector<256x96xf32>
    %6 = arith.addf %3, %5 : vector<256x96xf32>
    %7 = vector.extract_strided_slice %6 {offsets = [0, 32], sizes = [256, 32], strides = [1, 1]} : vector<256x96xf32> to vector<256x32xf32>
    %8 = vector.shape_cast %7 : vector<256x32xf32> to vector<4x64x32xf32>
    %c0_6 = arith.constant 0 : index
    %c0_7 = arith.constant 0 : index
    %c0_8 = arith.constant 0 : index
    %9 = vector.load %arg9[%c0_6, %c0_7, %c0_8] : memref<4x64x32xf32, #tpu.memory_space<vmem>>, vector<4x64x32xf32>
    tpu.vector_store %arg9[%c0_6, %c0_7, %c0_8], %8 {strides = array<i32>} : memref<4x64x32xf32, #tpu.memory_space<vmem>>, vector<4x64x32xf32>,
    %10 = vector.extract_strided_slice %6 {offsets = [0, 0], sizes = [256, 8], strides = [1, 1]} : vector<256x96xf32> to vector<256x8xf32>
    %11 = vector.shape_cast %10 : vector<256x8xf32> to vector<4x64x8xf32>
    %12 = vector.extract_strided_slice %6 {offsets = [0, 8], sizes = [256, 8], strides = [1, 1]} : vector<256x96xf32> to vector<256x8xf32>
    %13 = vector.shape_cast %12 : vector<256x8xf32> to vector<4x64x8xf32>
    %14 = vector.extract_strided_slice %6 {offsets = [0, 16], sizes = [256, 8], strides = [1, 1]} : vector<256x96xf32> to vector<256x8xf32>
    %15 = vector.shape_cast %14 : vector<256x8xf32> to vector<4x64x8xf32>
    %16 = vector.extract_strided_slice %6 {offsets = [0, 24], sizes = [256, 8], strides = [1, 1]} : vector<256x96xf32> to vector<256x8xf32>
    %17 = vector.shape_cast %16 : vector<256x8xf32> to vector<4x64x8xf32>
    %18 = vector.shape_cast %11 : vector<4x64x8xf32> to vector<4x1x64x8xf32>
    %19 = vector.shape_cast %13 : vector<4x64x8xf32> to vector<4x1x64x8xf32>
    %20 = vector.shape_cast %15 : vector<4x64x8xf32> to vector<4x1x64x8xf32>
    %21 = vector.shape_cast %17 : vector<4x64x8xf32> to vector<4x1x64x8xf32>
    %22 = tpu.concatenate %18, %19, %20, %21 in 1 : vector<4x1x64x8xf32>, vector<4x1x64x8xf32>, vector<4x1x64x8xf32>, vector<4x1x64x8xf32> -> vector<4x4x64x8xf32>
    %23 = vector.shape_cast %22 : vector<4x4x64x8xf32> to vector<16x64x8xf32>
    %24 = vector.extract_strided_slice %6 {offsets = [0, 64], sizes = [256, 8], strides = [1, 1]} : vector<256x96xf32> to vector<256x8xf32>
    %25 = vector.shape_cast %24 : vector<256x8xf32> to vector<4x64x8xf32>
    %26 = vector.extract_strided_slice %6 {offsets = [0, 72], sizes = [256, 8], strides = [1, 1]} : vector<256x96xf32> to vector<256x8xf32>
    %27 = vector.shape_cast %26 : vector<256x8xf32> to vector<4x64x8xf32>
    %28 = vector.extract_strided_slice %6 {offsets = [0, 80], sizes = [256, 8], strides = [1, 1]} : vector<256x96xf32> to vector<256x8xf32>
    %29 = vector.shape_cast %28 : vector<256x8xf32> to vector<4x64x8xf32>
    %30 = vector.extract_strided_slice %6 {offsets = [0, 88], sizes = [256, 8], strides = [1, 1]} : vector<256x96xf32> to vector<256x8xf32>
    %31 = vector.shape_cast %30 : vector<256x8xf32> to vector<4x64x8xf32>
    %32 = vector.shape_cast %25 : vector<4x64x8xf32> to vector<4x1x64x8xf32>
    %33 = vector.shape_cast %27 : vector<4x64x8xf32> to vector<4x1x64x8xf32>
    %34 = vector.shape_cast %29 : vector<4x64x8xf32> to vector<4x1x64x8xf32>
    %35 = vector.shape_cast %31 : vector<4x64x8xf32> to vector<4x1x64x8xf32>
    %36 = tpu.concatenate %32, %33, %34, %35 in 1 : vector<4x1x64x8xf32>, vector<4x1x64x8xf32>, vector<4x1x64x8xf32>, vector<4x1x64x8xf32> -> vector<4x4x64x8xf32>
    %37 = vector.shape_cast %36 : vector<4x4x64x8xf32> to vector<16x64x8xf32>
    %c0_9 = arith.constant 0 : index
    %c0_10 = arith.constant 0 : index
    %c0_11 = arith.constant 0 : index
    %c0_12 = arith.constant 0 : index
    %38 = vector.load %arg2[%c0_9, %c0_10, %c0_11, %c0_12] : memref<4x4x64x8xf32, #tpu.memory_space<vmem>>, vector<4x4x64x8xf32>
    %39 = vector.shape_cast %38 : vector<4x4x64x8xf32> to vector<16x64x8xf32>
    "tpu.trace_start"() <{level = 10 : i32, message = "bnd,bmd->bnm"}> : () -> ()
    %cst_13 = arith.constant dense<0.000000e+00> : vector<16x64x64xf32>
    %40 = tpu.matmul %23, %39, %cst_13 {dimension_numbers = #tpu.dot_dimension_numbers<[2], [2], [1], [1], [0, 0, 0, 1, 1, 1], [0], [0]>} : vector<16x64x8xf32>, vector<16x64x8xf32>, vector<16x64x64xf32> -> vector<16x64x64xf32>
    "tpu.trace_stop"() : () -> ()
    %41 = vector.shape_cast %40 : vector<16x64x64xf32> to vector<4x4x64x64xf32>
    %c0_14 = arith.constant 0 : index
    %c0_15 = arith.constant 0 : index
    %c0_16 = arith.constant 0 : index
    %42 = vector.load %arg3[%c0_14, %c0_15, %c0_16] : memref<4x64x64xf32, #tpu.memory_space<vmem>>, vector<4x64x64xf32>
    %43 = vector.shape_cast %42 : vector<4x64x64xf32> to vector<1x4x64x64xf32>
    %44 = vector.broadcast %43 : vector<1x4x64x64xf32> to vector<4x4x64x64xf32>
    %45 = arith.addf %41, %44 : vector<4x4x64x64xf32>
    %cst_17 = arith.constant dense<0xFF800000> : vector<4x4x64xf32>
    %46 = vector.multi_reduction <maximumf>, %45, %cst_17 [3] : vector<4x4x64x64xf32> to vector<4x4x64xf32>
    %47 = vector.shape_cast %46 : vector<4x4x64xf32> to vector<4x4x64x1xf32>
    %48 = vector.broadcast %47 : vector<4x4x64x1xf32> to vector<4x4x64x64xf32>
    %49 = arith.subf %45, %48 : vector<4x4x64x64xf32>
    %50 = math.exp %49 : vector<4x4x64x64xf32>
    %cst_18 = arith.constant dense<0.000000e+00> : vector<4x4x64xf32>
    %51 = vector.multi_reduction <add>, %50, %cst_18 [3] : vector<4x4x64x64xf32> to vector<4x4x64xf32>
    %52 = vector.shape_cast %51 : vector<4x4x64xf32> to vector<4x4x64x1xf32>
    %53 = tpu.reciprocal %52 {approx = true} : vector<4x4x64x1xf32> -> vector<4x4x64x1xf32>
    %54 = vector.broadcast %53 : vector<4x4x64x1xf32> to vector<4x4x64x64xf32>
    %55 = arith.mulf %50, %54 : vector<4x4x64x64xf32>
    %56 = vector.shape_cast %55 : vector<4x4x64x64xf32> to vector<16x64x64xf32>
    "tpu.trace_start"() <{level = 10 : i32, message = "bnm,bmd->bnd"}> : () -> ()
    %cst_19 = arith.constant dense<0.000000e+00> : vector<16x64x8xf32>
    %57 = tpu.matmul %56, %37, %cst_19 {dimension_numbers = #tpu.dot_dimension_numbers<[2], [1], [1], [2], [0, 0, 0, 1, 1, 2], [0], [0]>} : vector<16x64x64xf32>, vector<16x64x8xf32>, vector<16x64x8xf32> -> vector<16x64x8xf32>
    "tpu.trace_stop"() : () -> ()
    %58 = vector.shape_cast %57 : vector<16x64x8xf32> to vector<4x4x64x8xf32>
    %59 = vector.extract_strided_slice %58 {offsets = [0, 0, 0, 0], sizes = [4, 1, 64, 8], strides = [1, 1, 1, 1]} : vector<4x4x64x8xf32> to vector<4x1x64x8xf32>
    %60 = vector.shape_cast %59 : vector<4x1x64x8xf32> to vector<4x64x8xf32>
    %61 = vector.extract_strided_slice %58 {offsets = [0, 1, 0, 0], sizes = [4, 1, 64, 8], strides = [1, 1, 1, 1]} : vector<4x4x64x8xf32> to vector<4x1x64x8xf32>
    %62 = vector.shape_cast %61 : vector<4x1x64x8xf32> to vector<4x64x8xf32>
    %63 = vector.extract_strided_slice %58 {offsets = [0, 2, 0, 0], sizes = [4, 1, 64, 8], strides = [1, 1, 1, 1]} : vector<4x4x64x8xf32> to vector<4x1x64x8xf32>
    %64 = vector.shape_cast %63 : vector<4x1x64x8xf32> to vector<4x64x8xf32>
    %65 = vector.extract_strided_slice %58 {offsets = [0, 3, 0, 0], sizes = [4, 1, 64, 8], strides = [1, 1, 1, 1]} : vector<4x4x64x8xf32> to vector<4x1x64x8xf32>
    %66 = vector.shape_cast %65 : vector<4x1x64x8xf32> to vector<4x64x8xf32>
    %67 = tpu.concatenate %60, %62, %64, %66 in 2 : vector<4x64x8xf32>, vector<4x64x8xf32>, vector<4x64x8xf32>, vector<4x64x8xf32> -> vector<4x64x32xf32>
    %68 = vector.shape_cast %67 : vector<4x64x32xf32> to vector<256x32xf32>
    %c0_20 = arith.constant 0 : index
    %c0_21 = arith.constant 0 : index
    %69 = vector.load %arg6[%c0_20, %c0_21] : memref<32x32xf32, #tpu.memory_space<vmem>>, vector<32x32xf32>
    %cst_22 = arith.constant dense<0.000000e+00> : vector<256x32xf32>
    %70 = tpu.matmul %68, %69, %cst_22 {dimension_numbers = #tpu.dot_dimension_numbers<[1], [0], [0], [1], [0, 0, 1, 1], [], []>} : vector<256x32xf32>, vector<32x32xf32>, vector<256x32xf32> -> vector<256x32xf32>
    %c0_23 = arith.constant 0 : index
    %c0_24 = arith.constant 0 : index
    %71 = vector.load %arg7[%c0_23, %c0_24] : memref<1x32xf32, #tpu.memory_space<vmem>>, vector<1x32xf32>
    %72 = vector.broadcast %71 : vector<1x32xf32> to vector<256x32xf32>
    %73 = arith.addf %70, %72 : vector<256x32xf32>
    %74 = vector.shape_cast %73 : vector<256x32xf32> to vector<4x64x32xf32>
    %c0_25 = arith.constant 0 : index
    %c0_26 = arith.constant 0 : index
    %c0_27 = arith.constant 0 : index
    %75 = vector.load %arg8[%c0_25, %c0_26, %c0_27] : memref<4x64x32xf32, #tpu.memory_space<vmem>>, vector<4x64x32xf32>
    tpu.vector_store %arg8[%c0_25, %c0_26, %c0_27], %74 {strides = array<i32>} : memref<4x64x32xf32, #tpu.memory_space<vmem>>, vector<4x64x32xf32>,
    return
  }
  func.func @transform_0(%arg0: i32) -> (i32, i32, i32) {
    %c0_i32 = arith.constant 0 : i32
    %c0_i32_0 = arith.constant 0 : i32
    %c0_i32_1 = arith.constant 0 : i32
    return %arg0, %c0_i32, %c0_i32_0 : i32, i32, i32
  }
  func.func @transform_1(%arg0: i32) -> (i32, i32, i32, i32) {
    %c0_i32 = arith.constant 0 : i32
    %c0_i32_0 = arith.constant 0 : i32
    %c0_i32_1 = arith.constant 0 : i32
    %c0_i32_2 = arith.constant 0 : i32
    return %arg0, %c0_i32, %c0_i32_0, %c0_i32_1 : i32, i32, i32, i32
  }
  func.func @transform_2(%arg0: i32) -> (i32, i32, i32) {
    %c0_i32 = arith.constant 0 : i32
    %c0_i32_0 = arith.constant 0 : i32
    %c0_i32_1 = arith.constant 0 : i32
    %c0_i32_2 = arith.constant 0 : i32
    return %c0_i32, %c0_i32_0, %c0_i32_1 : i32, i32, i32
  }
  func.func @transform_3(%arg0: i32) -> (i32, i32) {
    %c0_i32 = arith.constant 0 : i32
    %c0_i32_0 = arith.constant 0 : i32
    %c0_i32_1 = arith.constant 0 : i32
    return %c0_i32, %c0_i32_0 : i32, i32
  }
  func.func @transform_4(%arg0: i32) -> (i32, i32) {
    %c0_i32 = arith.constant 0 : i32
    %c0_i32_0 = arith.constant 0 : i32
    %c0_i32_1 = arith.constant 0 : i32
    return %c0_i32, %c0_i32_0 : i32, i32
  }
  func.func @transform_5(%arg0: i32) -> (i32, i32) {
    %c0_i32 = arith.constant 0 : i32
    %c0_i32_0 = arith.constant 0 : i32
    %c0_i32_1 = arith.constant 0 : i32
    return %c0_i32, %c0_i32_0 : i32, i32
  }
  func.func @transform_6(%arg0: i32) -> (i32, i32) {
    %c0_i32 = arith.constant 0 : i32
    %c0_i32_0 = arith.constant 0 : i32
    %c0_i32_1 = arith.constant 0 : i32
    return %c0_i32, %c0_i32_0 : i32, i32
  }
  func.func @transform_7(%arg0: i32) -> (i32, i32, i32) {
    %c0_i32 = arith.constant 0 : i32
    %c0_i32_0 = arith.constant 0 : i32
    %c0_i32_1 = arith.constant 0 : i32
    return %arg0, %c0_i32, %c0_i32_0 : i32, i32, i32
  }
  func.func @transform_8(%arg0: i32) -> (i32, i32, i32) {
    %c0_i32 = arith.constant 0 : i32
    %c0_i32_0 = arith.constant 0 : i32
    %c0_i32_1 = arith.constant 0 : i32
    return %arg0, %c0_i32, %c0_i32_0 : i32, i32, i32
  }
}

</mosaic_0001>

<bundles_post_ra>
// kernel: tpu_custom_call.1
= control target key start
LH: loop header
LB: loop body
LE: loop exit
PB: predicated region body
PF: predicated region fallthrough
CT: control target
= control target key end

     0   :  { %vm71_vm0 = vcmask 261120   ;;  %vm873_vm1 = vcmask 64512   ;;  %s10667_s20 = smov 120   ;;  %s10669_s22 = smov 112   ;;  %vm3354_vm2 = vcmask 523264   ;;  %vm7627_vm3 = vcmask 130048   ;;  %s15881_s3 = inlined_call_operand.vmem [shape: f32[32,96], index: 3, kind: input, shape index: {}]   ;;  %s15882_s0 = inlined_call_operand.vmem [shape: f32[4,64,32], index: 0, kind: input, shape index: {}]   ;;  %s15883_s1 = inlined_call_operand.vmem [shape: f32[4,4,64,8], index: 1, kind: input, shape index: {}]   ;;  %s15884_s4 = inlined_call_operand.vmem [shape: f32[1,96], index: 4, kind: input, shape index: {}]   ;;  %s15885_s8 = inlined_call_operand.vmem [shape: f32[4,64,32], index: 8, kind: output, shape index: {1}]   ;;  %s15886_s2 = inlined_call_operand.vmem [shape: f32[4,64,64], index: 2, kind: input, shape index: {}]   ;;  %s15887_s5 = inlined_call_operand.vmem [shape: f32[32,32], index: 5, kind: input, shape index: {}]   ;;  %s15888_s6 = inlined_call_operand.vmem [shape: f32[1,32], index: 6, kind: input, shape index: {}]   ;;  %s15889_s7 = inlined_call_operand.vmem [shape: f32[4,64,32], index: 7, kind: output, shape index: {0}]  }
   0x1   :  { %v63_v0 = vld [vmem:[%s15881_s3 + $0x18] sm:$0xff]  ;;  %v62_v1 = vld [vmem:[%s15881_s3 + $0x10] sm:$0xff]  ;;  %v28_v2 = vld [vmem:[%s15882_s0] sm:$0xff]  ;;  %s10670_s25 = smov 104   ;;  %s10671_s23 = smov 64   ;;  %vm7660_vm4 = vcmask 195584  }
   0x2   :  { %9099 = vmatprep.subr.mxu0 %v63_v0  ;;  %v61_v3 = vld [vmem:[%s15881_s3 + $0x8] sm:$0xff]  ;;  %9107 = vmatprep.mubr.msk.f32.mxu0 %vm71_vm0, %v28_v2  ;;  %v60_v4 = vld [vmem:[%s15881_s3] sm:$0xff]  ;;  %v30_v6 = vld [vmem:[%s15882_s0 + $0x10] sm:$0xff]  ;;  %s10673_s16 = smov 16  }
   0x3   :  { %9100 = vmatpush3.msra.mxu0 %v63_v0  ;;  %v29_v5 = vld [vmem:[%s15882_s0 + $0x8] sm:$0xff]  ;;  %v752_v7 = vld [vmem:[%s15883_s1 + $0x38] sm:$0xff]  ;;  %v751_v8 = vld [vmem:[%s15883_s1 + $0x30] sm:$0xff] }
   0x4   :  { %9101 = vmatprep.subr.mxu0 %v62_v1  ;;  %9155 = vmatprep.subr.msk.mxu1 %vm873_vm1, %v752_v7  ;;  %v31_v9 = vld [vmem:[%s15882_s0 + $0x18] sm:$0xff]  ;;  %v32_v10 = vld [vmem:[%s15882_s0 + $0x20] sm:$0xff]  ;;  %v750_v11 = vld [vmem:[%s15883_s1 + $0x28] sm:$0xff] }
   0x5   :  { %9102 = vmatpush3.msra.mxu0 %v62_v1  ;;  %9156 = vmatpush3.xpose.msk.msra.mxu1 %vm873_vm1, %v752_v7  ;;  %v33_v12 = vld [vmem:[%s15882_s0 + $0x28] sm:$0xff]  ;;  %v34_v13 = vld [vmem:[%s15882_s0 + $0x30] sm:$0xff]  ;;  %v749_v14 = vld [vmem:[%s15883_s1 + $0x20] sm:$0xff] }
   0x6   :  { %9103 = vmatprep.subr.mxu0 %v61_v3  ;;  %9157 = vmatprep.subr.msk.mxu1 %vm873_vm1, %v751_v8  ;;  %v35_v15 = vld [vmem:[%s15882_s0 + $0x38] sm:$0xff]  ;;  %v36_v16 = vld [vmem:[%s15882_s0 + $0x40] sm:$0xff]  ;;  %v37_v18 = vld [vmem:[%s15882_s0 + $0x48] sm:$0xff] }
   0x7   :  { %9104 = vmatpush3.msra.mxu0 %v61_v3  ;;  %v748_v17 = vld [vmem:[%s15883_s1 + $0x18] sm:$0xff]  ;;  %v38_v19 = vld [vmem:[%s15882_s0 + $0x50] sm:$0xff]  ;;  %v40_v22 = vld [vmem:[%s15882_s0 + $0x60] sm:$0xff] }
   0x8   :  { %9105 = vmatprep.subr.mxu0 %v60_v4  ;;  %v747_v20 = vld [vmem:[%s15883_s1 + $0x10] sm:$0xff]  ;;  %v39_v21 = vld [vmem:[%s15882_s0 + $0x58] sm:$0xff]  ;;  %v746_v23 = vld [vmem:[%s15883_s1 + $0x8] sm:$0xff] }
   0x9   :  { %9106 = vmatpush3.msra.mxu0 %v60_v4  ;;  %9158 = vmatpush3.xpose.msk.msra.mxu1 %vm873_vm1, %v751_v8  ;;  %v41_v24 = vld [vmem:[%s15882_s0 + $0x68] sm:$0xff]  ;;  %v42_v25 = vld [vmem:[%s15882_s0 + $0x70] sm:$0xff]  ;;  %v43_v26 = vld [vmem:[%s15882_s0 + $0x78] sm:$0xff] }
   0xa   :  { %9108 = vmatmul.mubr.msk.f32.vlgmr.msra.gmra.mxu0 %vm71_vm0, %v29_v5  ;;  %9159 = vmatprep.subr.msk.mxu1 %vm873_vm1, %v750_v11  ;;  %v44_v27 = vld [vmem:[%s15882_s0 + $0x80] sm:$0xff]  ;;  %v45_v28 = vld [vmem:[%s15882_s0 + $0x88] sm:$0xff]  ;;  %v46_v29 = vld [vmem:[%s15882_s0 + $0x90] sm:$0xff] }
   0xb   :  { %9110 = vmatprep.mubr.msk.f32.mxu0 %vm71_vm0, %v30_v6  ;;  %v47_v30 = vld [vmem:[%s15882_s0 + $0x98] sm:$0xff]  ;;  %v48_v31 = vld [vmem:[%s15882_s0 + $0xa0] sm:$0xff]  ;;  %v49_v32 = vld [vmem:[%s15882_s0 + $0xa8] sm:$0xff] }
   0xc   :  { %v50_v33 = vld [vmem:[%s15882_s0 + $0xb0] sm:$0xff]  ;;  %v51_v34 = vld [vmem:[%s15882_s0 + $0xb8] sm:$0xff]  ;;  %v52_v35 = vld [vmem:[%s15882_s0 + $0xc0] sm:$0xff] }
   0xd   :  { %9160 = vmatpush3.xpose.msk.msra.mxu1 %vm873_vm1, %v750_v11  ;;  %v53_v36 = vld [vmem:[%s15882_s0 + $0xc8] sm:$0xff]  ;;  %v745_v37 = vld [vmem:[%s15883_s1] sm:$0xff]  ;;  %v54_v38 = vld [vmem:[%s15882_s0 + $0xd0] sm:$0xff] }
   0xe   :  { %9111 = vmatmul.mubr.msk.f32.gmra.mxu0 %vm71_vm0, %v31_v9  ;;  %9161 = vmatprep.subr.msk.mxu1 %vm873_vm1, %v749_v14  ;;  %v55_v39 = vld [vmem:[%s15882_s0 + $0xd8] sm:$0xff]  ;;  %v56_v40 = vld [vmem:[%s15882_s0 + $0xe0] sm:$0xff]  ;;  %v57_v41 = vld [vmem:[%s15882_s0 + $0xe8] sm:$0xff] }
   0xf   :  { %9113 = vmatprep.mubr.msk.f32.mxu0 %vm71_vm0, %v32_v10  ;;  %v58_v42 = vld [vmem:[%s15882_s0 + $0xf0] sm:$0xff]  ;;  %v59_v43 = vld [vmem:[%s15882_s0 + $0xf8] sm:$0xff]  ;;  %v766_v47 = vld [vmem:[%s15883_s1 + $0xa8] sm:$0xff] }
  0x10   :  { %v760_v44 = vld [vmem:[%s15883_s1 + $0x78] sm:$0xff]  ;;  %v767_v46 = vld [vmem:[%s15883_s1 + $0xb0] sm:$0xff]  ;;  %v765_v48 = vld [vmem:[%s15883_s1 + $0xa0] sm:$0xff] }
  0x11   :  { %9162 = vmatpush3.xpose.msk.msra.mxu1 %vm873_vm1, %v749_v14  ;;  %v768_v45 = vld [vmem:[%s15883_s1 + $0xb8] sm:$0xff]  ;;  %v763_v50 = vld [vmem:[%s15883_s1 + $0x90] sm:$0xff]  ;;  %v762_v51 = vld [vmem:[%s15883_s1 + $0x88] sm:$0xff] }
  0x12   :  { %9114 = vmatmul.mubr.msk.f32.gmra.mxu0 %vm71_vm0, %v33_v12  ;;  %9163 = vmatprep.subr.msk.mxu1 %vm873_vm1, %v748_v17  ;;  %v764_v49 = vld [vmem:[%s15883_s1 + $0x98] sm:$0xff]  ;;  %v10942_v52 = vld [vmem:[%s15884_s4] ss:$0 sm:$0xff]  ;;  %s10668_s4 = smov 96   ;;  %v759_v61 = vld [vmem:[%s15883_s1 + $0x70] sm:$0xff] }
  0x13   :  { %9116 = vmatprep.mubr.msk.f32.mxu0 %vm71_vm0, %v34_v13  ;;  %9211 = vmatprep.subr.msk.mxu0 %vm873_vm1, %v768_v45  ;;  %v761_v53 = vld [vmem:[%s15883_s1 + $0x80] sm:$0xff]  ;;  %v758_v2 = vld [vmem:[%s15883_s1 + $0x68] sm:$0xff]  ;;  %v756_v9 = vld [vmem:[%s15883_s1 + $0x58] sm:$0xff] }
  0x14   :  { %9212 = vmatpush3.xpose.msk.msra.mxu0 %vm873_vm1, %v768_v45  ;;  %v757_v7 = vld [vmem:[%s15883_s1 + $0x60] sm:$0xff]  ;;  %v11026_v10 = vld [vmem:[%s15883_s1 + $0x138] sm:$0xff]  ;;  %v755_v11 = vld [vmem:[%s15883_s1 + $0x50] sm:$0xff] }
  0x15   :  { %9164 = vmatpush3.xpose.msk.msra.mxu1 %vm873_vm1, %v748_v17  ;;  %9213 = vmatprep.subr.msk.mxu0 %vm873_vm1, %v767_v46  ;;  %v754_v12 = vld [vmem:[%s15883_s1 + $0x48] sm:$0xff]  ;;  %v753_v13 = vld [vmem:[%s15883_s1 + $0x40] sm:$0xff]  ;;  %v11066_v14 = vld [vmem:[%s15883_s1 + $0xf8] sm:$0xff] }
  0x16   :  { %9117 = vmatmul.mubr.msk.f32.gmra.mxu0 %vm71_vm0, %v35_v15  ;;  %9165 = vmatprep.subr.msk.mxu1 %vm873_vm1, %v747_v20  ;;  %v783_v45 = vld [vmem:[%s15883_s1 + $0x130] sm:$0xff] }
  0x17   :  { %9119 = vmatprep.mubr.msk.f32.mxu0 %vm71_vm0, %v36_v16 }
  0x18   :  { %9214 = vmatpush3.xpose.msk.msra.mxu0 %vm873_vm1, %v767_v46 }
  0x19   :  { %9166 = vmatpush3.xpose.msk.msra.mxu1 %vm873_vm1, %v747_v20  ;;  %9215 = vmatprep.subr.msk.mxu0 %vm873_vm1, %v766_v47 }
  0x1a   :  { %9120 = vmatmul.mubr.msk.f32.gmra.mxu0 %vm71_vm0, %v37_v18  ;;  %9167 = vmatprep.subr.msk.mxu1 %vm873_vm1, %v746_v23 }
  0x1b   :  { %9122 = vmatprep.mubr.msk.f32.mxu0 %vm71_vm0, %v38_v19 }
  0x1c   :  { %9216 = vmatpush3.xpose.msk.msra.mxu0 %vm873_vm1, %v766_v47 }
  0x1d   :  { %9168 = vmatpush3.xpose.msk.msra.mxu1 %vm873_vm1, %v746_v23  ;;  %9217 = vmatprep.subr.msk.mxu0 %vm873_vm1, %v765_v48 }
  0x1e   :  { %9123 = vmatmul.mubr.msk.f32.gmra.mxu0 %vm71_vm0, %v39_v21  ;;  %9169 = vmatprep.subr.msk.mxu1 %vm873_vm1, %v745_v37 }
  0x1f   :  { %9125 = vmatprep.mubr.msk.f32.mxu0 %vm71_vm0, %v40_v22 }
  0x20   :  { %9218 = vmatpush3.xpose.msk.msra.mxu0 %vm873_vm1, %v765_v48  ;;  %v773_v48 = vld [vmem:[%s15883_s1 + $0xe0] sm:$0xff] }
  0x21   :  { %9170 = vmatpush3.xpose.msk.msra.mxu1 %vm873_vm1, %v745_v37  ;;  %9219 = vmatprep.subr.msk.mxu0 %vm873_vm1, %v764_v49 }
  0x22   :  { %9126 = vmatmul.mubr.msk.f32.gmra.mxu0 %vm71_vm0, %v41_v24  ;;  %9183 = vmatprep.subr.msk.mxu1 %vm873_vm1, %v760_v44 }
  0x23   :  { %9128 = vmatprep.mubr.msk.f32.mxu0 %vm71_vm0, %v42_v25 }
  0x24   :  { %9220 = vmatpush3.xpose.msk.msra.mxu0 %vm873_vm1, %v764_v49 }
  0x25   :  { %9221 = vmatprep.subr.msk.mxu0 %vm873_vm1, %v763_v50 }
  0x26   :  { %9129 = vmatmul.mubr.msk.f32.gmra.mxu0 %vm71_vm0, %v43_v26 }
  0x27   :  { %9131 = vmatprep.mubr.msk.f32.mxu0 %vm71_vm0, %v44_v27 }
  0x28   :  { %9222 = vmatpush3.xpose.msk.msra.mxu0 %vm873_vm1, %v763_v50 }
  0x29   :  { %9223 = vmatprep.subr.msk.mxu0 %vm873_vm1, %v762_v51 }
  0x2a   :  { %9132 = vmatmul.mubr.msk.f32.gmra.mxu0 %vm71_vm0, %v45_v28 }
  0x2b   :  { %9134 = vmatprep.mubr.msk.f32.mxu0 %vm71_vm0, %v46_v29 }
  0x2c   :  { %9224 = vmatpush3.xpose.msk.msra.mxu0 %vm873_vm1, %v762_v51 }
  0x2d   :  { %9225 = vmatprep.subr.msk.mxu0 %vm873_vm1, %v761_v53 }
  0x2e   :  { %9135 = vmatmul.mubr.msk.f32.gmra.mxu0 %vm71_vm0, %v47_v30 }
  0x2f   :  { %9137 = vmatprep.mubr.msk.f32.mxu0 %vm71_vm0, %v48_v31 }
  0x30   :  { %9226 = vmatpush3.xpose.msk.msra.mxu0 %vm873_vm1, %v761_v53  ;;  %v782_v53 = vld [vmem:[%s15883_s1 + $0x128] sm:$0xff] }
  0x31   :  { %9267 = vmatprep.subr.msk.mxu0 %vm873_vm1, %v11026_v10 }
  0x32   :  { %9138 = vmatmul.mubr.msk.f32.gmra.mxu0 %vm71_vm0, %v49_v32 }
  0x33   :  { %9140 = vmatprep.mubr.msk.f32.mxu0 %vm71_vm0, %v50_v33 }
  0x36   :  { %9141 = vmatmul.mubr.msk.f32.gmra.mxu0 %vm71_vm0, %v51_v34 }
  0x37   :  { %9143 = vmatprep.mubr.msk.f32.mxu0 %vm71_vm0, %v52_v35 }
  0x3a   :  { %9144 = vmatmul.mubr.msk.f32.gmra.mxu0 %vm71_vm0, %v53_v36 }
  0x3b   :  { %9146 = vmatprep.mubr.msk.f32.mxu0 %vm71_vm0, %v54_v38 }
  0x3e   :  { %9147 = vmatmul.mubr.msk.f32.gmra.mxu0 %vm71_vm0, %v55_v39 }
  0x3f   :  { %9149 = vmatprep.mubr.msk.f32.mxu0 %vm71_vm0, %v56_v40 }
  0x42   :  { %9150 = vmatmul.mubr.msk.f32.gmra.mxu0 %vm71_vm0, %v57_v41  ;;  %v775_v41 = vld [vmem:[%s15883_s1 + $0xf0] sm:$0xff] }
  0x43   :  { %9152 = vmatprep.mubr.msk.f32.mxu0 %vm71_vm0, %v58_v42 }
  0x46   :  { %9153 = vmatmul.mubr.msk.f32.gmra.mxu0 %vm71_vm0, %v59_v43 }
  0xca   :  { %v9109_v54 = vpop.f32.mrf.mxu0 }
  0xcb   :  { %v10950_v55 = vadd.f32 %v9109_v54, %v10942_v52  ;;  %v772_v54 = vld [vmem:[%s15883_s1 + $0xd8] sm:$0xff] }
  0xcc   :  { %v234_v56 = vpop.f32.mrf.mxu0 }
  0xcd   :  { %v10953_v57 = vadd.f32 %v10942_v52, %v234_v56  ;;  %555 = vrot.lane.b32.xlu1 %v10950_v55, %s10667_s20  ;;  %427 = vrot.lane.b32.xlu0 %v10950_v55, %s10668_s4 }
  0xce   :  { %v9112_v58 = vpop.f32.mrf.mxu0 }
  0xcf   :  { %9171 = vmatprep.mubr.msk.f32.mxu1 %vm873_vm1, %v10953_v57  ;;  %v10964_v59 = vadd.f32 %v9112_v58, %v10942_v52 }
  0xd0   :  { %9172 = vmatmul.mubr.msk.f32.vlgmr.msra.gmra.mxu1 %vm873_vm1, %v10950_v55  ;;  %v244_v60 = vpop.f32.mrf.mxu0 }
  0xd1   :  { %619 = vrot.lane.b32.xlu1 %v10950_v55, %s10669_s22  ;;  %425 = vrot.lane.b32.xlu0 %v10953_v57, %s10668_s4  ;;  %v10974_v62 = vadd.f32 %v10942_v52, %v244_v60 }
  0xd2   :  { %v9115_v63 = vpop.f32.mrf.mxu0  ;;  %9184 = vmatpush3.xpose.msk.msra.mxu1 %vm873_vm1, %v760_v44  ;;  %v774_v44 = vld [vmem:[%s15883_s1 + $0xe8] sm:$0xff] }
  0xd3   :  { %9174 = vmatprep.mubr.msk.f32.mxu1 %vm873_vm1, %v10974_v62  ;;  %9185 = vmatprep.subr.msk.mxu1 %vm873_vm1, %v759_v61  ;;  %v10983_v0 = vadd.f32 %v9115_v63, %v10942_v52 }
  0xd4   :  { %9175 = vmatmul.mubr.msk.f32.gmra.mxu1 %vm873_vm1, %v10964_v59  ;;  %v254_v1 = vpop.f32.mrf.mxu0 }
  0xd5   :  { %683 = vrot.lane.b32.xlu1 %v10950_v55, %s10670_s25  ;;  %553 = vrot.lane.b32.xlu0 %v10953_v57, %s10667_s20  ;;  %v10993_v3 = vadd.f32 %v10942_v52, %v254_v1 }
  0xd6   :  { %v9118_v4 = vpop.f32.mrf.mxu0  ;;  %9186 = vmatpush3.xpose.msk.msra.mxu1 %vm873_vm1, %v759_v61  ;;  %v781_v61 = vld [vmem:[%s15883_s1 + $0x120] sm:$0xff] }
  0xd7   :  { %9177 = vmatprep.mubr.msk.f32.mxu1 %vm873_vm1, %v10993_v3  ;;  %9187 = vmatprep.subr.msk.mxu1 %vm873_vm1, %v758_v2  ;;  %v11002_v5 = vadd.f32 %v9118_v4, %v10942_v52  ;;  %v780_v4 = vld [vmem:[%s15883_s1 + $0x118] sm:$0xff] }
  0xd8   :  { %9178 = vmatmul.mubr.msk.f32.gmra.mxu1 %vm873_vm1, %v10983_v0  ;;  %v264_v6 = vpop.f32.mrf.mxu0 }
  0xd9   :  { %431 = vrot.lane.b32.xlu1 %v10964_v59, %s10668_s4  ;;  %617 = vrot.lane.b32.xlu0 %v10953_v57, %s10669_s22  ;;  %v11012_v8 = vadd.f32 %v10942_v52, %v264_v6 }
  0xda   :  { %9188 = vmatpush3.xpose.msk.msra.mxu1 %vm873_vm1, %v758_v2  ;;  %v9121_v15 = vpop.f32.mrf.mxu0  ;;  %v771_v2 = vld [vmem:[%s15883_s1 + $0xd0] sm:$0xff] }
  0xdb   :  { %9180 = vmatprep.mubr.msk.f32.mxu1 %vm873_vm1, %v11012_v8  ;;  %9189 = vmatprep.subr.msk.mxu1 %vm873_vm1, %v757_v7  ;;  %v11100_v17 = vadd.f32 %v9121_v15, %v10942_v52 }
  0xdc   :  { %9181 = vmatmul.mubr.msk.f32.gmra.mxu1 %vm873_vm1, %v11002_v5  ;;  %v274_v16 = vpop.f32.mrf.mxu0 }
  0xdd   :  { %559 = vrot.lane.b32.xlu1 %v10964_v59, %s10667_s20  ;;  %681 = vrot.lane.b32.xlu0 %v10953_v57, %s10670_s25  ;;  %16157 = vst [vmem:[#allocation2_spill] sm:$0xff] %v11100_v17  ;;  %v11107_v18 = vadd.f32 %v10942_v52, %v274_v16 }
  0xde   :  { %9190 = vmatpush3.xpose.msk.msra.mxu1 %vm873_vm1, %v757_v7  ;;  %v9124_v19 = vpop.f32.mrf.mxu0 }
  0xdf   :  { %9191 = vmatprep.subr.msk.mxu1 %vm873_vm1, %v756_v9  ;;  %16158 = vst [vmem:[#allocation3_spill] sm:$0xff] %v11107_v18  ;;  %v11122_v21 = vadd.f32 %v9124_v19, %v10942_v52  ;;  %v778_v19 = vld [vmem:[%s15883_s1 + $0x108] sm:$0xff] }
  0xe0   :  { %v284_v20 = vpop.f32.mrf.mxu0 }
  0xe1   :  { %623 = vrot.lane.b32.xlu1 %v10964_v59, %s10669_s22  ;;  %557 = vrot.lane.b32.xlu0 %v10974_v62, %s10667_s20  ;;  %16159 = vst [vmem:[#allocation4_spill] sm:$0xff] %v11122_v21  ;;  %v11129_v22 = vadd.f32 %v10942_v52, %v284_v20  ;;  %v777_v20 = vld [vmem:[%s15883_s1 + $0x100] sm:$0xff] }
  0xe2   :  { %9192 = vmatpush3.xpose.msk.msra.mxu1 %vm873_vm1, %v756_v9  ;;  %v9127_v23 = vpop.f32.mrf.mxu0  ;;  %v770_v9 = vld [vmem:[%s15883_s1 + $0xc8] sm:$0xff] }
  0xe3   :  { %9193 = vmatprep.subr.msk.mxu1 %vm873_vm1, %v755_v11  ;;  %16160 = vst [vmem:[#allocation5_spill] sm:$0xff] %v11129_v22  ;;  %v11144_v25 = vadd.f32 %v9127_v23, %v10942_v52 }
  0xe4   :  { %v294_v24 = vpop.f32.mrf.mxu0 }
  0xe5   :  { %687 = vrot.lane.b32.xlu1 %v10964_v59, %s10670_s25  ;;  %621 = vrot.lane.b32.xlu0 %v10974_v62, %s10669_s22  ;;  %16161 = vst [vmem:[#allocation6_spill] sm:$0xff] %v11144_v25  ;;  %v11151_v26 = vadd.f32 %v10942_v52, %v294_v24 }
  0xe6   :  { %9194 = vmatpush3.xpose.msk.msra.mxu1 %vm873_vm1, %v755_v11  ;;  %v9130_v27 = vpop.f32.mrf.mxu0 }
  0xe7   :  { %9195 = vmatprep.subr.msk.mxu1 %vm873_vm1, %v754_v12  ;;  %16162 = vst [vmem:[#allocation7_spill] sm:$0xff] %v11151_v26  ;;  %v11166_v29 = vadd.f32 %v9130_v27, %v10942_v52 }
  0xe8   :  { %v304_v28 = vpop.f32.mrf.mxu0 }
  0xe9   :  { %429 = vrot.lane.b32.xlu1 %v10974_v62, %s10668_s4  ;;  %685 = vrot.lane.b32.xlu0 %v10974_v62, %s10670_s25  ;;  %16163 = vst [vmem:[#allocation8_spill] sm:$0xff] %v11166_v29  ;;  %v11173_v30 = vadd.f32 %v10942_v52, %v304_v28  ;;  %v792_v28 = vld [vmem:[%s15883_s1 + $0x178] sm:$0xff] }
  0xea   :  { %9196 = vmatpush3.xpose.msk.msra.mxu1 %vm873_vm1, %v754_v12  ;;  %v9133_v33 = vpop.f32.mrf.mxu0 }
  0xeb   :  { %9197 = vmatprep.subr.msk.mxu1 %vm873_vm1, %v753_v13  ;;  %16164 = vst [vmem:[#allocation9_spill] sm:$0xff] %v11173_v30  ;;  %v11206_v39 = vadd.f32 %v9133_v33, %v10942_v52 }
  0xec   :  { %v314_v36 = vpop.f32.mrf.mxu0 }
  0xed   :  { %435 = vrot.lane.b32.xlu1 %v10983_v0, %s10668_s4  ;;  %433 = vrot.lane.b32.xlu0 %v10993_v3, %s10668_s4  ;;  %16169 = vst [vmem:[#allocation14_spill] sm:$0xff] %v11206_v39  ;;  %v11213_v40 = vadd.f32 %v10942_v52, %v314_v36 }
  0xee   :  { %9198 = vmatpush3.xpose.msk.msra.mxu1 %vm873_vm1, %v753_v13  ;;  %v9136_v49 = vpop.f32.mrf.mxu0  ;;  %v769_v13 = vld [vmem:[%s15883_s1 + $0xc0] sm:$0xff] }
  0xef   :  { %9239 = vmatprep.subr.msk.mxu1 %vm873_vm1, %v11066_v14  ;;  %16170 = vst [vmem:[#allocation15_spill] sm:$0xff] %v11213_v40  ;;  %v11294_v63 = vadd.f32 %v9136_v49, %v10942_v52 }
  0xf0   :  { %v324_v56 = vpop.f32.mrf.mxu0 }
  0xf1   :  { %563 = vrot.lane.b32.xlu1 %v10983_v0, %s10667_s20  ;;  %561 = vrot.lane.b32.xlu0 %v10993_v3, %s10667_s20  ;;  %16176 = vst [vmem:[#allocation21_spill] sm:$0xff] %v11294_v63  ;;  %v11301_v1 = vadd.f32 %v10942_v52, %v324_v56 }
  0xf3   :  { %16177 = vst [vmem:[#allocation22_spill] sm:$0xff] %v11301_v1 }
  0xf5   :  { %627 = vrot.lane.b32.xlu1 %v10983_v0, %s10669_s22  ;;  %625 = vrot.lane.b32.xlu0 %v10993_v3, %s10669_s22 }
  0xf9   :  { %691 = vrot.lane.b32.xlu1 %v10983_v0, %s10670_s25  ;;  %689 = vrot.lane.b32.xlu0 %v10993_v3, %s10670_s25 }
  0xfd   :  { %439 = vrot.lane.b32.xlu1 %v11002_v5, %s10668_s4  ;;  %437 = vrot.lane.b32.xlu0 %v11012_v8, %s10668_s4 }
 0x101   :  { %567 = vrot.lane.b32.xlu1 %v11002_v5, %s10667_s20  ;;  %565 = vrot.lane.b32.xlu0 %v11012_v8, %s10667_s20 }
 0x105   :  { %631 = vrot.lane.b32.xlu1 %v11002_v5, %s10669_s22  ;;  %629 = vrot.lane.b32.xlu0 %v11012_v8, %s10669_s22 }
 0x109   :  { %695 = vrot.lane.b32.xlu1 %v11002_v5, %s10670_s25  ;;  %693 = vrot.lane.b32.xlu0 %v11012_v8, %s10670_s25 }
 0x10d   :  { %443 = vrot.lane.b32.xlu1 %v11100_v17, %s10668_s4  ;;  %441 = vrot.lane.b32.xlu0 %v11107_v18, %s10668_s4 }
 0x111   :  { %571 = vrot.lane.b32.xlu1 %v11100_v17, %s10667_s20  ;;  %569 = vrot.lane.b32.xlu0 %v11107_v18, %s10667_s20 }
 0x115   :  { %635 = vrot.lane.b32.xlu1 %v11100_v17, %s10669_s22  ;;  %633 = vrot.lane.b32.xlu0 %v11107_v18, %s10669_s22 }
 0x119   :  { %699 = vrot.lane.b32.xlu1 %v11100_v17, %s10670_s25  ;;  %697 = vrot.lane.b32.xlu0 %v11107_v18, %s10670_s25 }
 0x11d   :  { %447 = vrot.lane.b32.xlu1 %v11122_v21, %s10668_s4  ;;  %445 = vrot.lane.b32.xlu0 %v11129_v22, %s10668_s4 }
 0x121   :  { %575 = vrot.lane.b32.xlu1 %v11122_v21, %s10667_s20  ;;  %573 = vrot.lane.b32.xlu0 %v11129_v22, %s10667_s20 }
 0x125   :  { %639 = vrot.lane.b32.xlu1 %v11122_v21, %s10669_s22  ;;  %637 = vrot.lane.b32.xlu0 %v11129_v22, %s10669_s22 }
 0x129   :  { %703 = vrot.lane.b32.xlu1 %v11122_v21, %s10670_s25  ;;  %701 = vrot.lane.b32.xlu0 %v11129_v22, %s10670_s25 }
 0x12d   :  { %451 = vrot.lane.b32.xlu1 %v11144_v25, %s10668_s4  ;;  %449 = vrot.lane.b32.xlu0 %v11151_v26, %s10668_s4 }
 0x131   :  { %579 = vrot.lane.b32.xlu1 %v11144_v25, %s10667_s20  ;;  %577 = vrot.lane.b32.xlu0 %v11151_v26, %s10667_s20 }
 0x135   :  { %643 = vrot.lane.b32.xlu1 %v11144_v25, %s10669_s22  ;;  %641 = vrot.lane.b32.xlu0 %v11151_v26, %s10669_s22 }
 0x139   :  { %707 = vrot.lane.b32.xlu1 %v11144_v25, %s10670_s25  ;;  %705 = vrot.lane.b32.xlu0 %v11151_v26, %s10670_s25 }
 0x13d   :  { %455 = vrot.lane.b32.xlu1 %v11166_v29, %s10668_s4  ;;  %453 = vrot.lane.b32.xlu0 %v11173_v30, %s10668_s4 }
 0x13f   :  { %v11179_v31 = vpop.permute.xlu1 %555  ;;  %v428_v32 = vpop.permute.xlu0 %427 }
 0x140   :  { %16165 = vst [vmem:[#allocation10_spill] sm:$0xff] %v11179_v31  ;;  %522 = vst.msk [vmem:[%s15885_s8 + $0x8] sm:$0xff] %vm71_vm0, %v428_v32 }
 0x141   :  { %583 = vrot.lane.b32.xlu1 %v11166_v29, %s10667_s20  ;;  %581 = vrot.lane.b32.xlu0 %v11173_v30, %s10667_s20 }
 0x143   :  { %v11189_v34 = vpop.permute.xlu1 %619  ;;  %v426_v35 = vpop.permute.xlu0 %425 }
 0x144   :  { %16166 = vst [vmem:[#allocation11_spill] sm:$0xff] %v11189_v34  ;;  %521 = vst.msk [vmem:[%s15885_s8] sm:$0xff] %vm71_vm0, %v426_v35  ;;  %v800_v35 = vld [vmem:[%s15883_s1 + $0x1b8] sm:$0xff] }
 0x145   :  { %647 = vrot.lane.b32.xlu1 %v11166_v29, %s10669_s22  ;;  %645 = vrot.lane.b32.xlu0 %v11173_v30, %s10669_s22 }
 0x147   :  { %v11199_v37 = vpop.permute.xlu1 %683  ;;  %v11201_v38 = vpop.permute.xlu0 %553 }
 0x148   :  { %16167 = vst [vmem:[#allocation12_spill] sm:$0xff] %v11199_v37  ;;  %16168 = vst [vmem:[#allocation13_spill] sm:$0xff] %v11201_v38  ;;  %9199 = vmatprep.mubr.msk.f32.mxu1 %vm873_vm1, %v11201_v38 }
 0x149   :  { %711 = vrot.lane.b32.xlu1 %v11166_v29, %s10670_s25  ;;  %709 = vrot.lane.b32.xlu0 %v11173_v30, %s10670_s25 }
 0x14a   :  { %9200 = vmatmul.mubr.msk.f32.vlgmr.msra.gmra.mxu1 %vm873_vm1, %v11179_v31 }
 0x14b   :  { %v432_v42 = vpop.permute.xlu1 %431  ;;  %v11220_v43 = vpop.permute.xlu0 %617  ;;  %9240 = vmatpush3.xpose.msk.msra.mxu1 %vm873_vm1, %v11066_v14 }
 0x14c   :  { %16171 = vst [vmem:[#allocation16_spill] sm:$0xff] %v11220_v43  ;;  %524 = vst.msk [vmem:[%s15885_s8 + $0x18] sm:$0xff] %vm71_vm0, %v432_v42  ;;  %9227 = vmatprep.mubr.msk.f32.mxu0 %vm873_vm1, %v11220_v43  ;;  %9241 = vmatprep.subr.msk.mxu1 %vm873_vm1, %v775_v41  ;;  %v9139_v14 = vpop.f32.mrf.mxu0 }
 0x14d   :  { %459 = vrot.lane.b32.xlu1 %v11206_v39, %s10668_s4  ;;  %457 = vrot.lane.b32.xlu0 %v11213_v40, %s10668_s4  ;;  %v11386_v32 = vadd.f32 %v9139_v14, %v10942_v52 }
 0x14e   :  { %9228 = vmatmul.mubr.msk.f32.vlgmr.msra.gmra.mxu0 %vm873_vm1, %v11189_v34  ;;  %v334_v23 = vpop.f32.mrf.mxu0 }
 0x14f   :  { %v11243_v46 = vpop.permute.xlu1 %559  ;;  %v11245_v47 = vpop.permute.xlu0 %681  ;;  %9242 = vmatpush3.xpose.msk.msra.mxu1 %vm873_vm1, %v775_v41  ;;  %9268 = vmatpush3.xpose.msk.msra.mxu0 %vm873_vm1, %v11026_v10  ;;  %v779_v10 = vld [vmem:[%s15883_s1 + $0x110] sm:$0xff]  ;;  %16181 = vst [vmem:[#allocation26_spill] sm:$0xff] %v11386_v32  ;;  %v11393_v33 = vadd.f32 %v10942_v52, %v334_v23  ;;  %v798_v23 = vld [vmem:[%s15883_s1 + $0x1a8] sm:$0xff] }
 0x150   :  { %16172 = vst [vmem:[#allocation17_spill] sm:$0xff] %v11245_v47  ;;  %9243 = vmatprep.subr.msk.mxu1 %vm873_vm1, %v774_v44  ;;  %9269 = vmatprep.subr.msk.mxu0 %vm873_vm1, %v783_v45 }
 0x151   :  { %587 = vrot.lane.b32.xlu1 %v11206_v39, %s10667_s20  ;;  %585 = vrot.lane.b32.xlu0 %v11213_v40, %s10667_s20  ;;  %16182 = vst [vmem:[#allocation27_spill] sm:$0xff] %v11393_v33 }
 0x153   :  { %v11259_v50 = vpop.permute.xlu1 %623  ;;  %v11261_v51 = vpop.permute.xlu0 %557  ;;  %9244 = vmatpush3.xpose.msk.msra.mxu1 %vm873_vm1, %v774_v44  ;;  %9270 = vmatpush3.xpose.msk.msra.mxu0 %vm873_vm1, %v783_v45 }
 0x154   :  { %16173 = vst [vmem:[#allocation18_spill] sm:$0xff] %v11259_v50  ;;  %9202 = vmatprep.mubr.msk.f32.mxu1 %vm873_vm1, %v11261_v51  ;;  %9245 = vmatprep.subr.msk.mxu1 %vm873_vm1, %v773_v48  ;;  %v9142_v45 = vpop.f32.mrf.mxu0 }
 0x155   :  { %651 = vrot.lane.b32.xlu1 %v11206_v39, %s10669_s22  ;;  %649 = vrot.lane.b32.xlu0 %v11213_v40, %s10669_s22 }
 0x156   :  { %9203 = vmatmul.mubr.msk.f32.gmra.mxu1 %vm873_vm1, %v11243_v46  ;;  %9271 = vmatprep.subr.msk.mxu0 %vm873_vm1, %v782_v53 }
 0x157   :  { %v11281_v58 = vpop.permute.xlu1 %687  ;;  %v11283_v60 = vpop.permute.xlu0 %621  ;;  %9246 = vmatpush3.xpose.msk.msra.mxu1 %vm873_vm1, %v773_v48  ;;  %9272 = vmatpush3.xpose.msk.msra.mxu0 %vm873_vm1, %v782_v53 }
 0x158   :  { %16174 = vst [vmem:[#allocation19_spill] sm:$0xff] %v11281_v58  ;;  %16175 = vst [vmem:[#allocation20_spill] sm:$0xff] %v11283_v60  ;;  %9230 = vmatprep.mubr.msk.f32.mxu0 %vm873_vm1, %v11283_v60  ;;  %9247 = vmatprep.subr.msk.mxu1 %vm873_vm1, %v772_v54  ;;  %v344_v53 = vpop.f32.mrf.mxu0 }
 0x159   :  { %715 = vrot.lane.b32.xlu1 %v11206_v39, %s10670_s25  ;;  %713 = vrot.lane.b32.xlu0 %v11213_v40, %s10670_s25 }
 0x15a   :  { %9231 = vmatmul.mubr.msk.f32.gmra.mxu0 %vm873_vm1, %v11259_v50  ;;  %9273 = vmatprep.subr.msk.mxu0 %vm873_vm1, %v781_v61 }
 0x15b   :  { %v430_v6 = vpop.permute.xlu1 %429  ;;  %v11312_v7 = vpop.permute.xlu0 %685  ;;  %9248 = vmatpush3.xpose.msk.msra.mxu1 %vm873_vm1, %v772_v54  ;;  %9274 = vmatpush3.xpose.msk.msra.mxu0 %vm873_vm1, %v781_v61  ;;  %v11444_v61 = vadd.f32 %v9142_v45, %v10942_v52  ;;  %v797_v45 = vld [vmem:[%s15883_s1 + $0x1a0] sm:$0xff] }
 0x15c   :  { %16178 = vst [vmem:[#allocation23_spill] sm:$0xff] %v11312_v7  ;;  %523 = vst.msk [vmem:[%s15885_s8 + $0x10] sm:$0xff] %vm71_vm0, %v430_v6  ;;  %9249 = vmatprep.subr.msk.mxu1 %vm873_vm1, %v771_v2  ;;  %9275 = vmatprep.subr.msk.mxu0 %vm873_vm1, %v780_v4 }
 0x15d   :  { %463 = vrot.lane.b32.xlu1 %v11294_v63, %s10668_s4  ;;  %461 = vrot.lane.b32.xlu0 %v11301_v1, %s10668_s4  ;;  %16187 = vst [vmem:[#allocation32_spill] sm:$0xff] %v11444_v61 }
 0x15f   :  { %v436_v11 = vpop.permute.xlu1 %435  ;;  %v434_v12 = vpop.permute.xlu0 %433  ;;  %9250 = vmatpush3.xpose.msk.msra.mxu1 %vm873_vm1, %v771_v2  ;;  %9276 = vmatpush3.xpose.msk.msra.mxu0 %vm873_vm1, %v780_v4  ;;  %v11451_v2 = vadd.f32 %v10942_v52, %v344_v53  ;;  %v791_v4 = vld [vmem:[%s15883_s1 + $0x170] sm:$0xff] }
 0x160   :  { %526 = vst.msk [vmem:[%s15885_s8 + $0x28] sm:$0xff] %vm71_vm0, %v436_v11  ;;  %525 = vst.msk [vmem:[%s15885_s8 + $0x20] sm:$0xff] %vm71_vm0, %v434_v12  ;;  %9251 = vmatprep.subr.msk.mxu1 %vm873_vm1, %v770_v9  ;;  %9277 = vmatprep.subr.msk.mxu0 %vm873_vm1, %v779_v10  ;;  %v799_v11 = vld [vmem:[%s15883_s1 + $0x1b0] sm:$0xff] }
 0x161   :  { %591 = vrot.lane.b32.xlu1 %v11294_v63, %s10667_s20  ;;  %589 = vrot.lane.b32.xlu0 %v11301_v1, %s10667_s20  ;;  %16188 = vst [vmem:[#allocation33_spill] sm:$0xff] %v11451_v2 }
 0x163   :  { %v11351_v15 = vpop.permute.xlu1 %563  ;;  %v11353_v16 = vpop.permute.xlu0 %561  ;;  %9252 = vmatpush3.xpose.msk.msra.mxu1 %vm873_vm1, %v770_v9  ;;  %9278 = vmatpush3.xpose.msk.msra.mxu0 %vm873_vm1, %v779_v10  ;;  %v790_v10 = vld [vmem:[%s15883_s1 + $0x168] sm:$0xff] }
 0x164   :  { %9205 = vmatprep.mubr.msk.f32.mxu1 %vm873_vm1, %v11353_v16  ;;  %9253 = vmatprep.subr.msk.mxu1 %vm873_vm1, %v769_v13 }
 0x165   :  { %655 = vrot.lane.b32.xlu1 %v11294_v63, %s10669_s22  ;;  %653 = vrot.lane.b32.xlu0 %v11301_v1, %s10669_s22 }
 0x166   :  { %9206 = vmatmul.mubr.msk.f32.gmra.mxu1 %vm873_vm1, %v11351_v15  ;;  %9279 = vmatprep.subr.msk.mxu0 %vm873_vm1, %v778_v19 }
 0x167   :  { %v11373_v24 = vpop.permute.xlu1 %627  ;;  %v11375_v27 = vpop.permute.xlu0 %625  ;;  %9254 = vmatpush3.xpose.msk.msra.mxu1 %vm873_vm1, %v769_v13  ;;  %9280 = vmatpush3.xpose.msk.msra.mxu0 %vm873_vm1, %v778_v19 }
 0x168   :  { %16179 = vst [vmem:[#allocation24_spill] sm:$0xff] %v11373_v24  ;;  %16180 = vst [vmem:[#allocation25_spill] sm:$0xff] %v11375_v27  ;;  %9233 = vmatprep.mubr.msk.f32.mxu0 %vm873_vm1, %v11375_v27  ;;  %9281 = vmatprep.subr.msk.mxu0 %vm873_vm1, %v777_v20  ;;  %v12644_v27 = vld [vmem:[%s15886_s2 + $0xb8] sm:$0xff] }
 0x169   :  { %719 = vrot.lane.b32.xlu1 %v11294_v63, %s10670_s25  ;;  %717 = vrot.lane.b32.xlu0 %v11301_v1, %s10670_s25 }
 0x16a   :  { %9234 = vmatmul.mubr.msk.f32.gmra.mxu0 %vm873_vm1, %v11373_v24  ;;  %9295 = vmatprep.subr.msk.mxu1 %vm873_vm1, %v792_v28 }
 0x16b   :  { %v11401_v36 = vpop.permute.xlu1 %691  ;;  %v11403_v41 = vpop.permute.xlu0 %689  ;;  %9282 = vmatpush3.xpose.msk.msra.mxu0 %vm873_vm1, %v777_v20  ;;  %v789_v20 = vld [vmem:[%s15883_s1 + $0x160] sm:$0xff] }
 0x16c   :  { %16183 = vst [vmem:[#allocation28_spill] sm:$0xff] %v11401_v36  ;;  %16184 = vst [vmem:[#allocation29_spill] sm:$0xff] %v11403_v41  ;;  %9323 = vmatprep.subr.msk.mxu0 %vm873_vm1, %v800_v35 }
 0x16d   :  { %467 = vrot.lane.b32.xlu1 %v11386_v32, %s10668_s4  ;;  %465 = vrot.lane.b32.xlu0 %v11393_v33, %s10668_s4 }
 0x16f   :  { %v440_v42 = vpop.permute.xlu1 %439  ;;  %v438_v44 = vpop.permute.xlu0 %437 }
 0x170   :  { %528 = vst.msk [vmem:[%s15885_s8 + $0x38] sm:$0xff] %vm71_vm0, %v440_v42  ;;  %527 = vst.msk [vmem:[%s15885_s8 + $0x30] sm:$0xff] %vm71_vm0, %v438_v44  ;;  %v788_v44 = vld [vmem:[%s15883_s1 + $0x158] sm:$0xff] }
 0x171   :  { %595 = vrot.lane.b32.xlu1 %v11386_v32, %s10667_s20  ;;  %593 = vrot.lane.b32.xlu0 %v11393_v33, %s10667_s20 }
 0x173   :  { %v11423_v48 = vpop.permute.xlu1 %567  ;;  %v11425_v49 = vpop.permute.xlu0 %565 }
 0x174   :  { %9208 = vmatprep.mubr.msk.f32.mxu1 %vm873_vm1, %v11425_v49 }
 0x175   :  { %659 = vrot.lane.b32.xlu1 %v11386_v32, %s10669_s22  ;;  %657 = vrot.lane.b32.xlu0 %v11393_v33, %s10669_s22 }
 0x176   :  { %9209 = vmatmul.mubr.msk.f32.gmra.mxu1 %vm873_vm1, %v11423_v48 }
 0x177   :  { %9255 = vmatprep.mubr.msk.f32.mxu1 %vm873_vm1, %v11245_v47  ;;  %v11437_v54 = vpop.permute.xlu1 %631  ;;  %v11439_v56 = vpop.permute.xlu0 %629  ;;  %v12532_v47 = vld [vmem:[%s15886_s2 + $0x90] sm:$0xff] }
 0x178   :  { %16185 = vst [vmem:[#allocation30_spill] sm:$0xff] %v11437_v54  ;;  %16186 = vst [vmem:[#allocation31_spill] sm:$0xff] %v11439_v56  ;;  %9236 = vmatprep.mubr.msk.f32.mxu0 %vm873_vm1, %v11439_v56 }
 0x179   :  { %723 = vrot.lane.b32.xlu1 %v11386_v32, %s10670_s25  ;;  %721 = vrot.lane.b32.xlu0 %v11393_v33, %s10670_s25 }
 0x17a   :  { %9237 = vmatmul.mubr.msk.f32.gmra.mxu0 %vm873_vm1, %v11437_v54  ;;  %9256 = vmatmul.mubr.msk.f32.vlgmr.msra.gmra.mxu1 %vm873_vm1, %v11199_v37 }
 0x17b   :  { %9296 = vmatpush3.xpose.msk.msra.mxu1 %vm873_vm1, %v792_v28  ;;  %9258 = vmatprep.mubr.msk.f32.mxu1 %vm873_vm1, %v11312_v7  ;;  %v11463_v6 = vpop.permute.xlu1 %695  ;;  %v11465_v9 = vpop.permute.xlu0 %693 }
 0x17c   :  { %16189 = vst [vmem:[#allocation34_spill] sm:$0xff] %v11463_v6  ;;  %16190 = vst [vmem:[#allocation35_spill] sm:$0xff] %v11465_v9  ;;  %9283 = vmatprep.mubr.msk.f32.mxu0 %vm873_vm1, %v11107_v18  ;;  %9297 = vmatprep.subr.msk.mxu1 %vm873_vm1, %v791_v4  ;;  %v9145_v28 = vpop.f32.mrf.mxu0 }
 0x17d   :  { %471 = vrot.lane.b32.xlu1 %v11444_v61, %s10668_s4  ;;  %469 = vrot.lane.b32.xlu0 %v11451_v2, %s10668_s4 }
 0x17e   :  { %9259 = vmatmul.mubr.msk.f32.gmra.mxu1 %vm873_vm1, %v11281_v58  ;;  %9284 = vmatmul.mubr.msk.f32.vlgmr.msra.gmra.mxu0 %vm873_vm1, %v11100_v17  ;;  %v354_v53 = vpop.f32.mrf.mxu0  ;;  %v808_v17 = vld [vmem:[%s15883_s1 + $0x1f8] sm:$0xff] }
 0x17f   :  { %9298 = vmatpush3.xpose.msk.msra.mxu1 %vm873_vm1, %v791_v4  ;;  %9324 = vmatpush3.xpose.msk.msra.mxu0 %vm873_vm1, %v800_v35  ;;  %v444_v12 = vpop.permute.xlu1 %443  ;;  %v442_v13 = vpop.permute.xlu0 %441 }
 0x180   :  { %9261 = vmatprep.mubr.msk.f32.mxu1 %vm873_vm1, %v11403_v41  ;;  %9286 = vmatprep.mubr.msk.f32.mxu0 %vm873_vm1, %v11129_v22  ;;  %530 = vst.msk [vmem:[%s15885_s8 + $0x48] sm:$0xff] %vm71_vm0, %v444_v12  ;;  %529 = vst.msk [vmem:[%s15885_s8 + $0x40] sm:$0xff] %vm71_vm0, %v442_v13  ;;  %v11564_v12 = vadd.f32 %v10942_v52, %v354_v53  ;;  %v787_v13 = vld [vmem:[%s15883_s1 + $0x150] sm:$0xff]  ;;  %v786_v53 = vld [vmem:[%s15883_s1 + $0x148] sm:$0xff] }
 0x181   :  { %9299 = vmatprep.subr.msk.mxu1 %vm873_vm1, %v790_v10  ;;  %9325 = vmatprep.subr.msk.mxu0 %vm873_vm1, %v799_v11 }
 0x182   :  { %599 = vrot.lane.b32.xlu1 %v11444_v61, %s10667_s20  ;;  %597 = vrot.lane.b32.xlu0 %v11451_v2, %s10667_s20  ;;  %16198 = vst [vmem:[#allocation43_spill] sm:$0xff] %v11564_v12 }
 0x183   :  { %9262 = vmatmul.mubr.msk.f32.gmra.mxu1 %vm873_vm1, %v11401_v36  ;;  %9287 = vmatmul.mubr.msk.f32.gmra.mxu0 %vm873_vm1, %v11122_v21  ;;  %v11508_v14 = vpop.permute.xlu1 %571  ;;  %v11510_v19 = vpop.permute.xlu0 %569 }
 0x184   :  { %16191 = vst [vmem:[#allocation36_spill] sm:$0xff] %v11508_v14  ;;  %16192 = vst [vmem:[#allocation37_spill] sm:$0xff] %v11510_v19  ;;  %9300 = vmatpush3.xpose.msk.msra.mxu1 %vm873_vm1, %v790_v10  ;;  %9326 = vmatpush3.xpose.msk.msra.mxu0 %vm873_vm1, %v799_v11  ;;  %v11557_v11 = vadd.f32 %v9145_v28, %v10942_v52 }
 0x185   :  { %9264 = vmatprep.mubr.msk.f32.mxu1 %vm873_vm1, %v11465_v9  ;;  %9289 = vmatprep.mubr.msk.f32.mxu0 %vm873_vm1, %v11151_v26 }
 0x186   :  { %9301 = vmatprep.subr.msk.mxu1 %vm873_vm1, %v789_v20  ;;  %9327 = vmatprep.subr.msk.mxu0 %vm873_vm1, %v798_v23  ;;  %16197 = vst [vmem:[#allocation42_spill] sm:$0xff] %v11557_v11 }
 0x187   :  { %663 = vrot.lane.b32.xlu1 %v11444_v61, %s10669_s22  ;;  %661 = vrot.lane.b32.xlu0 %v11451_v2, %s10669_s22  ;;  %v11530_v35 = vpop.permute.xlu1 %635  ;;  %v11532_v42 = vpop.permute.xlu0 %633 }
 0x188   :  { %16193 = vst [vmem:[#allocation38_spill] sm:$0xff] %v11530_v35  ;;  %16194 = vst [vmem:[#allocation39_spill] sm:$0xff] %v11532_v42  ;;  %9265 = vmatmul.mubr.msk.f32.gmra.mxu1 %vm873_vm1, %v11463_v6  ;;  %9290 = vmatmul.mubr.msk.f32.gmra.mxu0 %vm873_vm1, %v11144_v25 }
 0x189   :  { %9302 = vmatpush3.xpose.msk.msra.mxu1 %vm873_vm1, %v789_v20  ;;  %9328 = vmatpush3.xpose.msk.msra.mxu0 %vm873_vm1, %v798_v23  ;;  %v796_v20 = vld [vmem:[%s15883_s1 + $0x198] sm:$0xff] }
 0x18a   :  { %9292 = vmatprep.mubr.msk.f32.mxu0 %vm873_vm1, %v11173_v30  ;;  %9311 = vmatprep.mubr.msk.f32.mxu1 %vm873_vm1, %v11510_v19 }
 0x18b   :  { %9303 = vmatprep.subr.msk.mxu1 %vm873_vm1, %v788_v44  ;;  %9329 = vmatprep.subr.msk.mxu0 %vm873_vm1, %v797_v45  ;;  %v11552_v4 = vpop.permute.xlu1 %699  ;;  %v11554_v10 = vpop.permute.xlu0 %697 }
 0x18c   :  { %16195 = vst [vmem:[#allocation40_spill] sm:$0xff] %v11552_v4  ;;  %16196 = vst [vmem:[#allocation41_spill] sm:$0xff] %v11554_v10  ;;  %727 = vrot.lane.b32.xlu1 %v11444_v61, %s10670_s25  ;;  %725 = vrot.lane.b32.xlu0 %v11451_v2, %s10670_s25 }
 0x18d   :  { %9293 = vmatmul.mubr.msk.f32.gmra.mxu0 %vm873_vm1, %v11166_v29  ;;  %9304 = vmatpush3.xpose.msk.msra.mxu1 %vm873_vm1, %v788_v44  ;;  %v795_v44 = vld [vmem:[%s15883_s1 + $0x190] sm:$0xff] }
 0x18e   :  { %9330 = vmatpush3.xpose.msk.msra.mxu0 %vm873_vm1, %v797_v45  ;;  %9339 = vmatprep.mubr.msk.f32.mxu0 %vm873_vm1, %v11532_v42 }
 0x18f   :  { %9305 = vmatprep.subr.msk.mxu1 %vm873_vm1, %v787_v13  ;;  %9331 = vmatprep.subr.msk.mxu0 %vm873_vm1, %v796_v20  ;;  %v448_v23 = vpop.permute.xlu1 %447  ;;  %v446_v28 = vpop.permute.xlu0 %445 }
 0x190   :  { %475 = vrot.lane.b32.xlu1 %v11557_v11, %s10668_s4  ;;  %473 = vrot.lane.b32.xlu0 %v11564_v12, %s10668_s4  ;;  %532 = vst.msk [vmem:[%s15885_s8 + $0x58] sm:$0xff] %vm71_vm0, %v448_v23  ;;  %531 = vst.msk [vmem:[%s15885_s8 + $0x50] sm:$0xff] %vm71_vm0, %v446_v28 }
 0x191   :  { %9306 = vmatpush3.xpose.msk.msra.mxu1 %vm873_vm1, %v787_v13  ;;  %v785_v28 = vld [vmem:[%s15883_s1 + $0x140] sm:$0xff]  ;;  %v794_v13 = vld [vmem:[%s15883_s1 + $0x188] sm:$0xff] }
 0x192   :  { %9332 = vmatpush3.xpose.msk.msra.mxu0 %vm873_vm1, %v796_v20  ;;  %9307 = vmatprep.subr.msk.mxu1 %vm873_vm1, %v786_v53  ;;  %v9148_v20 = vpop.f32.mrf.mxu0 }
 0x193   :  { %9333 = vmatprep.subr.msk.mxu0 %vm873_vm1, %v795_v44  ;;  %v11602_v45 = vpop.permute.xlu1 %575  ;;  %v11604_v23 = vpop.permute.xlu0 %573  ;;  %v11643_v21 = vadd.f32 %v9148_v20, %v10942_v52 }
 0x194   :  { %16199 = vst [vmem:[#allocation44_spill] sm:$0xff] %v11602_v45  ;;  %16200 = vst [vmem:[#allocation45_spill] sm:$0xff] %v11604_v23  ;;  %603 = vrot.lane.b32.xlu1 %v11557_v11, %s10667_s20  ;;  %601 = vrot.lane.b32.xlu0 %v11564_v12, %s10667_s20 }
 0x195   :  { %9308 = vmatpush3.xpose.msk.msra.mxu1 %vm873_vm1, %v786_v53  ;;  %v793_v53 = vld [vmem:[%s15883_s1 + $0x180] sm:$0xff]  ;;  %16205 = vst [vmem:[#allocation50_spill] sm:$0xff] %v11643_v21 }
 0x196   :  { %9334 = vmatpush3.xpose.msk.msra.mxu0 %vm873_vm1, %v795_v44  ;;  %9309 = vmatprep.subr.msk.mxu1 %vm873_vm1, %v785_v28  ;;  %v364_v44 = vpop.f32.mrf.mxu0 }
 0x197   :  { %9335 = vmatprep.subr.msk.mxu0 %vm873_vm1, %v794_v13  ;;  %v11620_v42 = vpop.permute.xlu1 %639  ;;  %v11622_v18 = vpop.permute.xlu0 %637  ;;  %v11660_v20 = vadd.f32 %v10942_v52, %v364_v44  ;;  %v805_v44 = vld [vmem:[%s15883_s1 + $0x1e0] sm:$0xff] }
 0x198   :  { %16201 = vst [vmem:[#allocation46_spill] sm:$0xff] %v11620_v42  ;;  %16202 = vst [vmem:[#allocation47_spill] sm:$0xff] %v11622_v18  ;;  %667 = vrot.lane.b32.xlu1 %v11557_v11, %s10669_s22  ;;  %665 = vrot.lane.b32.xlu0 %v11564_v12, %s10669_s22 }
 0x199   :  { %9310 = vmatpush3.xpose.msk.msra.mxu1 %vm873_vm1, %v785_v28  ;;  %v807_v28 = vld [vmem:[%s15883_s1 + $0x1f0] sm:$0xff]  ;;  %16206 = vst [vmem:[#allocation51_spill] sm:$0xff] %v11660_v20 }
 0x19a   :  { %9336 = vmatpush3.xpose.msk.msra.mxu0 %vm873_vm1, %v794_v13  ;;  %9351 = vmatprep.subr.msk.mxu1 %vm873_vm1, %v808_v17  ;;  %v816_v13 = vld [vmem:[%s15883_s1 + $0x238] sm:$0xff] }
 0x19b   :  { %9337 = vmatprep.subr.msk.mxu0 %vm873_vm1, %v793_v53  ;;  %v11638_v19 = vpop.permute.xlu1 %703  ;;  %v11640_v22 = vpop.permute.xlu0 %701 }
 0x19c   :  { %16203 = vst [vmem:[#allocation48_spill] sm:$0xff] %v11638_v19  ;;  %16204 = vst [vmem:[#allocation49_spill] sm:$0xff] %v11640_v22  ;;  %9312 = vmatmul.mubr.msk.f32.vlgmr.msra.gmra.mxu1 %vm873_vm1, %v11508_v14  ;;  %731 = vrot.lane.b32.xlu1 %v11557_v11, %s10670_s25 }
 0x19d   :  { %729 = vrot.lane.b32.xlu0 %v11564_v12, %s10670_s25  ;;  %9314 = vmatprep.mubr.msk.f32.mxu1 %vm873_vm1, %v11604_v23 }
 0x19e   :  { %9338 = vmatpush3.xpose.msk.msra.mxu0 %vm873_vm1, %v793_v53  ;;  %9352 = vmatpush3.xpose.msk.msra.mxu1 %vm873_vm1, %v808_v17  ;;  %v806_v17 = vld [vmem:[%s15883_s1 + $0x1e8] sm:$0xff]  ;;  %v815_v53 = vld [vmem:[%s15883_s1 + $0x230] sm:$0xff] }
 0x19f   :  { %9353 = vmatprep.subr.msk.mxu1 %vm873_vm1, %v807_v28  ;;  %9379 = vmatprep.subr.msk.mxu0 %vm873_vm1, %v816_v13  ;;  %v452_v14 = vpop.permute.xlu1 %451  ;;  %v450_v26 = vpop.permute.xlu0 %449 }
 0x1a0   :  { %9315 = vmatmul.mubr.msk.f32.gmra.mxu1 %vm873_vm1, %v11602_v45  ;;  %479 = vrot.lane.b32.xlu1 %v11643_v21, %s10668_s4  ;;  %534 = vst.msk [vmem:[%s15885_s8 + $0x68] sm:$0xff] %vm71_vm0, %v452_v14  ;;  %533 = vst.msk [vmem:[%s15885_s8 + $0x60] sm:$0xff] %vm71_vm0, %v450_v26 }
 0x1a1   :  { %9340 = vmatmul.mubr.msk.f32.vlgmr.msra.gmra.mxu0 %vm873_vm1, %v11530_v35  ;;  %477 = vrot.lane.b32.xlu0 %v11660_v20, %s10668_s4 }
 0x1a2   :  { %9342 = vmatprep.mubr.msk.f32.mxu0 %vm873_vm1, %v11622_v18  ;;  %9354 = vmatpush3.xpose.msk.msra.mxu1 %vm873_vm1, %v807_v28  ;;  %v814_v28 = vld [vmem:[%s15883_s1 + $0x228] sm:$0xff] }
 0x1a3   :  { %9380 = vmatpush3.xpose.msk.msra.mxu0 %vm873_vm1, %v816_v13  ;;  %9355 = vmatprep.subr.msk.mxu1 %vm873_vm1, %v806_v17  ;;  %v11693_v26 = vpop.permute.xlu1 %579  ;;  %v11695_v14 = vpop.permute.xlu0 %577 }
 0x1a4   :  { %16207 = vst [vmem:[#allocation52_spill] sm:$0xff] %v11693_v26  ;;  %16208 = vst [vmem:[#allocation53_spill] sm:$0xff] %v11695_v14  ;;  %9381 = vmatprep.subr.msk.mxu0 %vm873_vm1, %v815_v53  ;;  %607 = vrot.lane.b32.xlu1 %v11643_v21, %s10667_s20  ;;  %v9151_v13 = vpop.f32.mrf.mxu0 }
 0x1a5   :  { %9343 = vmatmul.mubr.msk.f32.gmra.mxu0 %vm873_vm1, %v11620_v42  ;;  %605 = vrot.lane.b32.xlu0 %v11660_v20, %s10667_s20  ;;  %v11742_v25 = vadd.f32 %v9151_v13, %v10942_v52  ;;  %v812_v13 = vld [vmem:[%s15883_s1 + $0x218] sm:$0xff] }
 0x1a6   :  { %9356 = vmatpush3.xpose.msk.msra.mxu1 %vm873_vm1, %v806_v17  ;;  %9317 = vmatprep.mubr.msk.f32.mxu1 %vm873_vm1, %v11695_v14  ;;  %v804_v17 = vld [vmem:[%s15883_s1 + $0x1d8] sm:$0xff]  ;;  %v374_v42 = vpop.f32.mrf.mxu0 }
 0x1a7   :  { %9382 = vmatpush3.xpose.msk.msra.mxu0 %vm873_vm1, %v815_v53  ;;  %9357 = vmatprep.subr.msk.mxu1 %vm873_vm1, %v805_v44  ;;  %v11715_v35 = vpop.permute.xlu1 %643  ;;  %v11717_v18 = vpop.permute.xlu0 %641  ;;  %v813_v53 = vld [vmem:[%s15883_s1 + $0x220] sm:$0xff]  ;;  %16213 = vst [vmem:[#allocation58_spill] sm:$0xff] %v11742_v25 }
 0x1a8   :  { %16209 = vst [vmem:[#allocation54_spill] sm:$0xff] %v11715_v35  ;;  %16210 = vst [vmem:[#allocation55_spill] sm:$0xff] %v11717_v18  ;;  %9383 = vmatprep.subr.msk.mxu0 %vm873_vm1, %v814_v28  ;;  %671 = vrot.lane.b32.xlu1 %v11643_v21, %s10669_s22 }
 0x1a9   :  { %669 = vrot.lane.b32.xlu0 %v11660_v20, %s10669_s22  ;;  %9318 = vmatmul.mubr.msk.f32.gmra.mxu1 %vm873_vm1, %v11693_v26 }
 0x1aa   :  { %9358 = vmatpush3.xpose.msk.msra.mxu1 %vm873_vm1, %v805_v44  ;;  %9345 = vmatprep.mubr.msk.f32.mxu0 %vm873_vm1, %v11717_v18  ;;  %v803_v44 = vld [vmem:[%s15883_s1 + $0x1d0] sm:$0xff] }
 0x1ab   :  { %9384 = vmatpush3.xpose.msk.msra.mxu0 %vm873_vm1, %v814_v28  ;;  %9359 = vmatprep.subr.msk.mxu1 %vm873_vm1, %v804_v17  ;;  %v11737_v23 = vpop.permute.xlu1 %707  ;;  %v11739_v45 = vpop.permute.xlu0 %705  ;;  %v11755_v28 = vadd.f32 %v10942_v52, %v374_v42  ;;  %v802_v42 = vld [vmem:[%s15883_s1 + $0x1c8] sm:$0xff] }
 0x1ac   :  { %16211 = vst [vmem:[#allocation56_spill] sm:$0xff] %v11737_v23  ;;  %16212 = vst [vmem:[#allocation57_spill] sm:$0xff] %v11739_v45  ;;  %9385 = vmatprep.subr.msk.mxu0 %vm873_vm1, %v813_v53  ;;  %735 = vrot.lane.b32.xlu1 %v11643_v21, %s10670_s25 }
 0x1ad   :  { %733 = vrot.lane.b32.xlu0 %v11660_v20, %s10670_s25  ;;  %9346 = vmatmul.mubr.msk.f32.gmra.mxu0 %vm873_vm1, %v11715_v35  ;;  %16214 = vst [vmem:[#allocation59_spill] sm:$0xff] %v11755_v28 }
 0x1ae   :  { %9360 = vmatpush3.xpose.msk.msra.mxu1 %vm873_vm1, %v804_v17  ;;  %v811_v17 = vld [vmem:[%s15883_s1 + $0x210] sm:$0xff] }
 0x1af   :  { %9386 = vmatpush3.xpose.msk.msra.mxu0 %vm873_vm1, %v813_v53  ;;  %9361 = vmatprep.subr.msk.mxu1 %vm873_vm1, %v803_v44  ;;  %v456_v18 = vpop.permute.xlu1 %455  ;;  %v454_v14 = vpop.permute.xlu0 %453  ;;  %v801_v53 = vld [vmem:[%s15883_s1 + $0x1c0] sm:$0xff] }
 0x1b0   :  { %9387 = vmatprep.subr.msk.mxu0 %vm873_vm1, %v812_v13  ;;  %483 = vrot.lane.b32.xlu1 %v11742_v25, %s10668_s4  ;;  %536 = vst.msk [vmem:[%s15885_s8 + $0x78] sm:$0xff] %vm71_vm0, %v456_v18  ;;  %535 = vst.msk [vmem:[%s15885_s8 + $0x70] sm:$0xff] %vm71_vm0, %v454_v14 }
 0x1b1   :  { %481 = vrot.lane.b32.xlu0 %v11755_v28, %s10668_s4 }
 0x1b2   :  { %9362 = vmatpush3.xpose.msk.msra.mxu1 %vm873_vm1, %v803_v44  ;;  %v810_v44 = vld [vmem:[%s15883_s1 + $0x208] sm:$0xff] }
 0x1b3   :  { %9388 = vmatpush3.xpose.msk.msra.mxu0 %vm873_vm1, %v812_v13  ;;  %9363 = vmatprep.subr.msk.mxu1 %vm873_vm1, %v802_v42  ;;  %v11785_v18 = vpop.permute.xlu1 %583  ;;  %v11787_v14 = vpop.permute.xlu0 %581 }
 0x1b4   :  { %16215 = vst [vmem:[#allocation60_spill] sm:$0xff] %v11785_v18  ;;  %16216 = vst [vmem:[#allocation61_spill] sm:$0xff] %v11787_v14  ;;  %9389 = vmatprep.subr.msk.mxu0 %vm873_vm1, %v811_v17  ;;  %611 = vrot.lane.b32.xlu1 %v11742_v25, %s10667_s20  ;;  %v9154_v13 = vpop.f32.mrf.mxu0 }
 0x1b5   :  { %609 = vrot.lane.b32.xlu0 %v11755_v28, %s10667_s20  ;;  %9320 = vmatprep.mubr.msk.f32.mxu1 %vm873_vm1, %v11787_v14 }
 0x1b6   :  { %9364 = vmatpush3.xpose.msk.msra.mxu1 %vm873_vm1, %v802_v42  ;;  %v809_v42 = vld [vmem:[%s15883_s1 + $0x200] sm:$0xff]  ;;  %v384_v30 = vpop.f32.mrf.mxu0 }
 0x1b7   :  { %9390 = vmatpush3.xpose.msk.msra.mxu0 %vm873_vm1, %v811_v17  ;;  %9365 = vmatprep.subr.msk.mxu1 %vm873_vm1, %v801_v53  ;;  %v11805_v35 = vpop.permute.xlu1 %647  ;;  %v11807_v26 = vpop.permute.xlu0 %645  ;;  %v824_v17 = vld [vmem:[%s15883_s1 + $0x278] sm:$0xff] }
 0x1b8   :  { %16217 = vst [vmem:[#allocation62_spill] sm:$0xff] %v11805_v35  ;;  %16218 = vst [vmem:[#allocation63_spill] sm:$0xff] %v11807_v26  ;;  %9391 = vmatprep.subr.msk.mxu0 %vm873_vm1, %v810_v44  ;;  %675 = vrot.lane.b32.xlu1 %v11742_v25, %s10669_s22 }
 0x1b9   :  { %673 = vrot.lane.b32.xlu0 %v11755_v28, %s10669_s22  ;;  %9321 = vmatmul.mubr.msk.f32.gmra.mxu1 %vm873_vm1, %v11785_v18 }
 0x1ba   :  { %9366 = vmatpush3.xpose.msk.msra.mxu1 %vm873_vm1, %v801_v53  ;;  %9367 = vmatprep.mubr.msk.f32.mxu1 %vm873_vm1, %v11554_v10  ;;  %v11839_v53 = vadd.f32 %v9154_v13, %v10942_v52  ;;  %v823_v10 = vld [vmem:[%s15883_s1 + $0x270] sm:$0xff] }
 0x1bb   :  { %9392 = vmatpush3.xpose.msk.msra.mxu0 %vm873_vm1, %v810_v44  ;;  %9348 = vmatprep.mubr.msk.f32.mxu0 %vm873_vm1, %v11807_v26  ;;  %v11828_v29 = vpop.permute.xlu1 %711  ;;  %v11830_v14 = vpop.permute.xlu0 %709  ;;  %v11846_v44 = vadd.f32 %v10942_v52, %v384_v30  ;;  %v832_v26 = vld [vmem:[%s15883_s1 + $0x2b8] sm:$0xff]  ;;  %v822_v52 = vld [vmem:[%s15883_s1 + $0x268] sm:$0xff]  ;;  %v831_v30 = vld [vmem:[%s15883_s1 + $0x2b0] sm:$0xff] }
 0x1bc   :  { %16219 = vst [vmem:[#allocation64_spill] sm:$0xff] %v11828_v29  ;;  %16220 = vst [vmem:[#allocation65_spill] sm:$0xff] %v11830_v14  ;;  %9393 = vmatprep.subr.msk.mxu0 %vm873_vm1, %v809_v42  ;;  %9407 = vmatprep.subr.msk.mxu1 %vm873_vm1, %v824_v17 }
 0x1bd   :  { %739 = vrot.lane.b32.xlu1 %v11742_v25, %s10670_s25  ;;  %737 = vrot.lane.b32.xlu0 %v11755_v28, %s10670_s25  ;;  %16221 = vst [vmem:[#allocation66_spill] sm:$0xff] %v11839_v53  ;;  %16222 = vst [vmem:[#allocation67_spill] sm:$0xff] %v11846_v44 }
 0x1be   :  { %9349 = vmatmul.mubr.msk.f32.gmra.mxu0 %vm873_vm1, %v11805_v35  ;;  %9368 = vmatmul.mubr.msk.f32.vlgmr.msra.gmra.mxu1 %vm873_vm1, %v11552_v4  ;;  %v12451_v4 = vld [vmem:[%s15886_s2 + $0x58] sm:$0xff] }
 0x1bf   :  { %9394 = vmatpush3.xpose.msk.msra.mxu0 %vm873_vm1, %v809_v42  ;;  %9408 = vmatpush3.xpose.msk.msra.mxu1 %vm873_vm1, %v824_v17  ;;  %v460_v13 = vpop.permute.xlu1 %459  ;;  %v458_v35 = vpop.permute.xlu0 %457 }
 0x1c0   :  { %9370 = vmatprep.mubr.msk.f32.mxu1 %vm873_vm1, %v11640_v22  ;;  %9395 = vmatprep.mubr.msk.f32.mxu0 %vm873_vm1, %v11213_v40  ;;  %538 = vst.msk [vmem:[%s15885_s8 + $0x88] sm:$0xff] %vm71_vm0, %v460_v13  ;;  %537 = vst.msk [vmem:[%s15885_s8 + $0x80] sm:$0xff] %vm71_vm0, %v458_v35  ;;  %v830_v13 = vld [vmem:[%s15883_s1 + $0x2a8] sm:$0xff]  ;;  %v857_v22 = vld [vmem:[%s15883_s1 + $0x380] sm:$0xff] }
 0x1c1   :  { %9409 = vmatprep.subr.msk.mxu1 %vm873_vm1, %v823_v10  ;;  %9435 = vmatprep.subr.msk.mxu0 %vm873_vm1, %v832_v26 }
 0x1c2   :  { %487 = vrot.lane.b32.xlu1 %v11839_v53, %s10668_s4  ;;  %485 = vrot.lane.b32.xlu0 %v11846_v44, %s10668_s4 }
 0x1c3   :  { %9371 = vmatmul.mubr.msk.f32.gmra.mxu1 %vm873_vm1, %v11638_v19  ;;  %9396 = vmatmul.mubr.msk.f32.vlgmr.msra.gmra.mxu0 %vm873_vm1, %v11206_v39  ;;  %v11884_v35 = vpop.permute.xlu1 %587  ;;  %v11886_v42 = vpop.permute.xlu0 %585 }
 0x1c4   :  { %16223 = vst [vmem:[#allocation68_spill] sm:$0xff] %v11884_v35  ;;  %16224 = vst [vmem:[#allocation69_spill] sm:$0xff] %v11886_v42  ;;  %9410 = vmatpush3.xpose.msk.msra.mxu1 %vm873_vm1, %v823_v10  ;;  %9436 = vmatpush3.xpose.msk.msra.mxu0 %vm873_vm1, %v832_v26  ;;  %v821_v26 = vld [vmem:[%s15883_s1 + $0x260] sm:$0xff] }
 0x1c5   :  { %9373 = vmatprep.mubr.msk.f32.mxu1 %vm873_vm1, %v11739_v45  ;;  %9398 = vmatprep.mubr.msk.f32.mxu0 %vm873_vm1, %v11301_v1 }
 0x1c6   :  { %9411 = vmatprep.subr.msk.mxu1 %vm873_vm1, %v822_v52  ;;  %9437 = vmatprep.subr.msk.mxu0 %vm873_vm1, %v831_v30 }
 0x1c7   :  { %615 = vrot.lane.b32.xlu1 %v11839_v53, %s10667_s20  ;;  %613 = vrot.lane.b32.xlu0 %v11846_v44, %s10667_s20  ;;  %v11900_v17 = vpop.permute.xlu1 %651  ;;  %v11902_v10 = vpop.permute.xlu0 %649 }
 0x1c8   :  { %16225 = vst [vmem:[#allocation70_spill] sm:$0xff] %v11900_v17  ;;  %16226 = vst [vmem:[#allocation71_spill] sm:$0xff] %v11902_v10  ;;  %9374 = vmatmul.mubr.msk.f32.gmra.mxu1 %vm873_vm1, %v11737_v23  ;;  %9399 = vmatmul.mubr.msk.f32.gmra.mxu0 %vm873_vm1, %v11294_v63 }
 0x1c9   :  { %9412 = vmatpush3.xpose.msk.msra.mxu1 %vm873_vm1, %v822_v52  ;;  %9438 = vmatpush3.xpose.msk.msra.mxu0 %vm873_vm1, %v831_v30  ;;  %v820_v52 = vld [vmem:[%s15883_s1 + $0x258] sm:$0xff]  ;;  %v829_v30 = vld [vmem:[%s15883_s1 + $0x2a0] sm:$0xff] }
 0x1ca   :  { %9376 = vmatprep.mubr.msk.f32.mxu1 %vm873_vm1, %v11830_v14  ;;  %9401 = vmatprep.mubr.msk.f32.mxu0 %vm873_vm1, %v11393_v33 }
 0x1cb   :  { %9413 = vmatprep.subr.msk.mxu1 %vm873_vm1, %v821_v26  ;;  %9439 = vmatprep.subr.msk.mxu0 %vm873_vm1, %v830_v13  ;;  %v11922_v40 = vpop.permute.xlu1 %715  ;;  %v11924_v39 = vpop.permute.xlu0 %713 }
 0x1cc   :  { %16227 = vst [vmem:[#allocation72_spill] sm:$0xff] %v11922_v40  ;;  %16228 = vst [vmem:[#allocation73_spill] sm:$0xff] %v11924_v39  ;;  %679 = vrot.lane.b32.xlu1 %v11839_v53, %s10669_s22  ;;  %677 = vrot.lane.b32.xlu0 %v11846_v44, %s10669_s22 }
 0x1cd   :  { %9377 = vmatmul.mubr.msk.f32.gmra.mxu1 %vm873_vm1, %v11828_v29  ;;  %9402 = vmatmul.mubr.msk.f32.gmra.mxu0 %vm873_vm1, %v11386_v32  ;;  %v871_v29 = vld [vmem:[%s15883_s1 + $0x3f0] sm:$0xff] }
 0x1ce   :  { %9414 = vmatpush3.xpose.msk.msra.mxu1 %vm873_vm1, %v821_v26  ;;  %9440 = vmatpush3.xpose.msk.msra.mxu0 %vm873_vm1, %v830_v13  ;;  %v819_v26 = vld [vmem:[%s15883_s1 + $0x250] sm:$0xff]  ;;  %v828_v13 = vld [vmem:[%s15883_s1 + $0x298] sm:$0xff] }
 0x1cf   :  { %9404 = vmatprep.mubr.msk.f32.mxu0 %vm873_vm1, %v11451_v2  ;;  %9423 = vmatprep.mubr.msk.f32.mxu1 %vm873_vm1, %v11886_v42  ;;  %v464_v1 = vpop.permute.xlu1 %463  ;;  %v462_v63 = vpop.permute.xlu0 %461  ;;  %v818_v42 = vld [vmem:[%s15883_s1 + $0x248] sm:$0xff] }
 0x1d0   :  { %9415 = vmatprep.subr.msk.mxu1 %vm873_vm1, %v820_v52  ;;  %9441 = vmatprep.subr.msk.mxu0 %vm873_vm1, %v829_v30  ;;  %540 = vst.msk [vmem:[%s15885_s8 + $0x98] sm:$0xff] %vm71_vm0, %v464_v1  ;;  %539 = vst.msk [vmem:[%s15885_s8 + $0x90] sm:$0xff] %vm71_vm0, %v462_v63 }
 0x1d1   :  { %743 = vrot.lane.b32.xlu1 %v11839_v53, %s10670_s25  ;;  %741 = vrot.lane.b32.xlu0 %v11846_v44, %s10670_s25 }
 0x1d2   :  { %9405 = vmatmul.mubr.msk.f32.gmra.mxu0 %vm873_vm1, %v11444_v61  ;;  %9416 = vmatpush3.xpose.msk.msra.mxu1 %vm873_vm1, %v820_v52  ;;  %v827_v52 = vld [vmem:[%s15883_s1 + $0x290] sm:$0xff]  ;;  %v12427_v61 = vld [vmem:[%s15886_s2 + $0x40] sm:$0xff] }
 0x1d3   :  { %9442 = vmatpush3.xpose.msk.msra.mxu0 %vm873_vm1, %v829_v30  ;;  %9451 = vmatprep.mubr.msk.f32.mxu0 %vm873_vm1, %v11902_v10  ;;  %v11972_v63 = vpop.permute.xlu1 %591  ;;  %v11974_v1 = vpop.permute.xlu0 %589 }
 0x1d4   :  { %16229 = vst [vmem:[#allocation74_spill] sm:$0xff] %v11972_v63  ;;  %16230 = vst [vmem:[#allocation75_spill] sm:$0xff] %v11974_v1  ;;  %9417 = vmatprep.subr.msk.mxu1 %vm873_vm1, %v819_v26  ;;  %9443 = vmatprep.subr.msk.mxu0 %vm873_vm1, %v828_v13 }
 0x1d5   :  { %4777 = vrot.lane.b32.xlu1 %v11002_v5, %s10671_s23  ;;  %4775 = vrot.lane.b32.xlu0 %v11012_v8, %s10671_s23  ;;  %v817_v5 = vld [vmem:[%s15883_s1 + $0x240] sm:$0xff]  ;;  %v826_v8 = vld [vmem:[%s15883_s1 + $0x288] sm:$0xff] }
 0x1d6   :  { %9418 = vmatpush3.xpose.msk.msra.mxu1 %vm873_vm1, %v819_v26 }
 0x1d7   :  { %9444 = vmatpush3.xpose.msk.msra.mxu0 %vm873_vm1, %v828_v13  ;;  %9419 = vmatprep.subr.msk.mxu1 %vm873_vm1, %v818_v42  ;;  %v11991_v30 = vpop.permute.xlu1 %655  ;;  %v11993_v10 = vpop.permute.xlu0 %653 }
 0x1d8   :  { %16231 = vst [vmem:[#allocation76_spill] sm:$0xff] %v11991_v30  ;;  %16232 = vst [vmem:[#allocation77_spill] sm:$0xff] %v11993_v10  ;;  %9445 = vmatprep.subr.msk.mxu0 %vm873_vm1, %v827_v52 }
 0x1d9   :  { %4773 = vrot.lane.b32.xlu1 %v10983_v0, %s10671_s23  ;;  %4769 = vrot.lane.b32.xlu0 %v10964_v59, %s10671_s23  ;;  %v840_v59 = vld [vmem:[%s15883_s1 + $0x2f8] sm:$0xff]  ;;  %v825_v0 = vld [vmem:[%s15883_s1 + $0x280] sm:$0xff] }
 0x1da   :  { %9420 = vmatpush3.xpose.msk.msra.mxu1 %vm873_vm1, %v818_v42 }
 0x1db   :  { %9446 = vmatpush3.xpose.msk.msra.mxu0 %vm873_vm1, %v827_v52  ;;  %9421 = vmatprep.subr.msk.mxu1 %vm873_vm1, %v817_v5  ;;  %v12009_v26 = vpop.permute.xlu1 %719  ;;  %v12011_v13 = vpop.permute.xlu0 %717 }
 0x1dc   :  { %16233 = vst [vmem:[#allocation78_spill] sm:$0xff] %v12009_v26  ;;  %16234 = vst [vmem:[#allocation79_spill] sm:$0xff] %v12011_v13  ;;  %9447 = vmatprep.subr.msk.mxu0 %vm873_vm1, %v826_v8 }
 0x1dd   :  { %4771 = vrot.lane.b32.xlu1 %v10993_v3, %s10671_s23  ;;  %4765 = vrot.lane.b32.xlu0 %v10950_v55, %s10671_s23  ;;  %v839_v55 = vld [vmem:[%s15883_s1 + $0x2f0] sm:$0xff]  ;;  %v848_v3 = vld [vmem:[%s15883_s1 + $0x338] sm:$0xff] }
 0x1de   :  { %9422 = vmatpush3.xpose.msk.msra.mxu1 %vm873_vm1, %v817_v5 }
 0x1df   :  { %9448 = vmatpush3.xpose.msk.msra.mxu0 %vm873_vm1, %v826_v8  ;;  %9463 = vmatprep.subr.msk.mxu1 %vm873_vm1, %v840_v59  ;;  %v468_v42 = vpop.permute.xlu1 %467  ;;  %v466_v52 = vpop.permute.xlu0 %465  ;;  %v847_v8 = vld [vmem:[%s15883_s1 + $0x330] sm:$0xff] }
 0x1e0   :  { %9449 = vmatprep.subr.msk.mxu0 %vm873_vm1, %v825_v0  ;;  %542 = vst.msk [vmem:[%s15885_s8 + $0xa8] sm:$0xff] %vm71_vm0, %v468_v42  ;;  %541 = vst.msk [vmem:[%s15885_s8 + $0xa0] sm:$0xff] %vm71_vm0, %v466_v52  ;;  %v845_v52 = vld [vmem:[%s15883_s1 + $0x320] sm:$0xff] }
 0x1e1   :  { %9424 = vmatmul.mubr.msk.f32.vlgmr.msra.gmra.mxu1 %vm873_vm1, %v11884_v35  ;;  %4767 = vrot.lane.b32.xlu1 %v10974_v62, %s10671_s23 }
 0x1e2   :  { %4922 = vrot.lane.b32.xlu0 %v11243_v46, %s10671_s23  ;;  %9426 = vmatprep.mubr.msk.f32.mxu1 %vm873_vm1, %v11974_v1  ;;  %v838_v46 = vld [vmem:[%s15883_s1 + $0x2e8] sm:$0xff]  ;;  %v859_v1 = vld [vmem:[%s15883_s1 + $0x390] sm:$0xff] }
 0x1e3   :  { %9450 = vmatpush3.xpose.msk.msra.mxu0 %vm873_vm1, %v825_v0  ;;  %9464 = vmatpush3.xpose.msk.msra.mxu1 %vm873_vm1, %v840_v59  ;;  %v12052_v5 = vpop.permute.xlu1 %595  ;;  %v12054_v62 = vpop.permute.xlu0 %593  ;;  %v846_v0 = vld [vmem:[%s15883_s1 + $0x328] sm:$0xff] }
 0x1e4   :  { %16235 = vst [vmem:[#allocation80_spill] sm:$0xff] %v12052_v5  ;;  %16236 = vst [vmem:[#allocation81_spill] sm:$0xff] %v12054_v62  ;;  %9465 = vmatprep.subr.msk.mxu1 %vm873_vm1, %v839_v55  ;;  %9491 = vmatprep.subr.msk.mxu0 %vm873_vm1, %v848_v3 }
 0x1e5   :  { %9427 = vmatmul.mubr.msk.f32.gmra.mxu1 %vm873_vm1, %v11972_v63  ;;  %4763 = vrot.lane.b32.xlu1 %v10953_v57, %s10671_s23 }
 0x1e6   :  { %9452 = vmatmul.mubr.msk.f32.vlgmr.msra.gmra.mxu0 %vm873_vm1, %v11900_v17  ;;  %4926 = vrot.lane.b32.xlu0 %v11351_v15, %s10671_s23  ;;  %v837_v15 = vld [vmem:[%s15883_s1 + $0x2e0] sm:$0xff] }
 0x1e7   :  { %9454 = vmatprep.mubr.msk.f32.mxu0 %vm873_vm1, %v11993_v10  ;;  %9466 = vmatpush3.xpose.msk.msra.mxu1 %vm873_vm1, %v839_v55  ;;  %v12075_v57 = vpop.permute.xlu1 %659  ;;  %v12077_v59 = vpop.permute.xlu0 %657  ;;  %v12204_v10 = vld [vmem:[%s15886_s2] sm:$0xff] }
 0x1e8   :  { %16237 = vst [vmem:[#allocation82_spill] sm:$0xff] %v12075_v57  ;;  %16238 = vst [vmem:[#allocation83_spill] sm:$0xff] %v12077_v59  ;;  %9492 = vmatpush3.xpose.msk.msra.mxu0 %vm873_vm1, %v848_v3  ;;  %9467 = vmatprep.subr.msk.mxu1 %vm873_vm1, %v838_v46  ;;  %v835_v3 = vld [vmem:[%s15883_s1 + $0x2d0] sm:$0xff] }
 0x1e9   :  { %9493 = vmatprep.subr.msk.mxu0 %vm873_vm1, %v847_v8  ;;  %4920 = vrot.lane.b32.xlu1 %v11261_v51, %s10671_s23 }
 0x1ea   :  { %9455 = vmatmul.mubr.msk.f32.gmra.mxu0 %vm873_vm1, %v11991_v30  ;;  %4930 = vrot.lane.b32.xlu0 %v11423_v48, %s10671_s23  ;;  %v836_v48 = vld [vmem:[%s15883_s1 + $0x2d8] sm:$0xff] }
 0x1eb   :  { %9468 = vmatpush3.xpose.msk.msra.mxu1 %vm873_vm1, %v838_v46  ;;  %9429 = vmatprep.mubr.msk.f32.mxu1 %vm873_vm1, %v12054_v62  ;;  %v12097_v51 = vpop.permute.xlu1 %723  ;;  %v12099_v42 = vpop.permute.xlu0 %721  ;;  %v844_v46 = vld [vmem:[%s15883_s1 + $0x318] sm:$0xff] }
 0x1ec   :  { %16239 = vst [vmem:[#allocation84_spill] sm:$0xff] %v12097_v51  ;;  %16240 = vst [vmem:[#allocation85_spill] sm:$0xff] %v12099_v42  ;;  %9494 = vmatpush3.xpose.msk.msra.mxu0 %vm873_vm1, %v847_v8  ;;  %9469 = vmatprep.subr.msk.mxu1 %vm873_vm1, %v837_v15 }
 0x1ed   :  { %9495 = vmatprep.subr.msk.mxu0 %vm873_vm1, %v846_v0  ;;  %4924 = vrot.lane.b32.xlu1 %v11353_v16, %s10671_s23 }
 0x1ee   :  { %9430 = vmatmul.mubr.msk.f32.gmra.mxu1 %vm873_vm1, %v12052_v5  ;;  %9457 = vmatprep.mubr.msk.f32.mxu0 %vm873_vm1, %v12077_v59 }
 0x1ef   :  { %9470 = vmatpush3.xpose.msk.msra.mxu1 %vm873_vm1, %v837_v15  ;;  %9458 = vmatmul.mubr.msk.f32.gmra.mxu0 %vm873_vm1, %v12075_v57  ;;  %v472_v16 = vpop.permute.xlu1 %471  ;;  %v470_v55 = vpop.permute.xlu0 %469  ;;  %v12267_v57 = vld [vmem:[%s15886_s2 + $0x10] sm:$0xff] }
 0x1f0   :  { %9496 = vmatpush3.xpose.msk.msra.mxu0 %vm873_vm1, %v846_v0  ;;  %9471 = vmatprep.subr.msk.mxu1 %vm873_vm1, %v836_v48  ;;  %544 = vst.msk [vmem:[%s15885_s8 + $0xb8] sm:$0xff] %vm71_vm0, %v472_v16  ;;  %543 = vst.msk [vmem:[%s15885_s8 + $0xb0] sm:$0xff] %vm71_vm0, %v470_v55  ;;  %v843_v0 = vld [vmem:[%s15883_s1 + $0x310] sm:$0xff]  ;;  %v842_v55 = vld [vmem:[%s15883_s1 + $0x308] sm:$0xff] }
 0x1f1   :  { %9497 = vmatprep.subr.msk.mxu0 %vm873_vm1, %v845_v52  ;;  %4928 = vrot.lane.b32.xlu1 %v11425_v49, %s10671_s23  ;;  %v834_v49 = vld [vmem:[%s15883_s1 + $0x2c8] sm:$0xff] }
 0x1f3   :  { %9472 = vmatpush3.xpose.msk.msra.mxu1 %vm873_vm1, %v836_v48  ;;  %v833_v48 = vld [vmem:[%s15883_s1 + $0x2c0] sm:$0xff] }
 0x1f4   :  { %9498 = vmatpush3.xpose.msk.msra.mxu0 %vm873_vm1, %v845_v52  ;;  %9473 = vmatprep.subr.msk.mxu1 %vm873_vm1, %v835_v3  ;;  %v12141_v8 = vpop.permute.xlu1 %599  ;;  %v12143_v15 = vpop.permute.xlu0 %597 }
 0x1f5   :  { %16241 = vst [vmem:[#allocation86_spill] sm:$0xff] %v12141_v8  ;;  %16242 = vst [vmem:[#allocation87_spill] sm:$0xff] %v12143_v15  ;;  %9499 = vmatprep.subr.msk.mxu0 %vm873_vm1, %v844_v46  ;;  %9432 = vmatprep.mubr.msk.f32.mxu1 %vm873_vm1, %v12143_v15 }
 0x1f6   :  { %9433 = vmatmul.mubr.msk.f32.gmra.mxu1 %vm873_vm1, %v12141_v8  ;;  %v872_v8 = vld [vmem:[%s15883_s1 + $0x3f8] sm:$0xff] }
 0x1f7   :  { %9474 = vmatpush3.xpose.msk.msra.mxu1 %vm873_vm1, %v835_v3  ;;  %9479 = vmatprep.mubr.msk.f32.mxu1 %vm873_vm1, %v11924_v39  ;;  %v12179_v3 = vpop.f32.mrf.mxu1 }
 0x1f8   :  { %9500 = vmatpush3.xpose.msk.msra.mxu0 %vm873_vm1, %v844_v46  ;;  %9475 = vmatprep.subr.msk.mxu1 %vm873_vm1, %v834_v49  ;;  %v856_v46 = vld [vmem:[%s15883_s1 + $0x378] sm:$0xff] }
 0x1f9   :  { %9501 = vmatprep.subr.msk.mxu0 %vm873_vm1, %v843_v0  ;;  %v12165_v52 = vpop.permute.xlu1 %663  ;;  %v12167_v16 = vpop.permute.xlu0 %661 }
 0x1fa   :  { %16243 = vst [vmem:[#allocation88_spill] sm:$0xff] %v12165_v52  ;;  %16244 = vst [vmem:[#allocation89_spill] sm:$0xff] %v12167_v16  ;;  %9460 = vmatprep.mubr.msk.f32.mxu0 %vm873_vm1, %v12167_v16  ;;  %v980_v39 = vpop.f32.mrf.mxu1 }
 0x1fb   :  { %9476 = vmatpush3.xpose.msk.msra.mxu1 %vm873_vm1, %v834_v49  ;;  %9461 = vmatmul.mubr.msk.f32.gmra.mxu0 %vm873_vm1, %v12165_v52  ;;  %v841_v49 = vld [vmem:[%s15883_s1 + $0x300] sm:$0xff] }
 0x1fc   :  { %9502 = vmatpush3.xpose.msk.msra.mxu0 %vm873_vm1, %v843_v0  ;;  %9477 = vmatprep.subr.msk.mxu1 %vm873_vm1, %v833_v48  ;;  %v861_v52 = vld [vmem:[%s15883_s1 + $0x3a0] sm:$0xff] }
 0x1fd   :  { %9503 = vmatprep.subr.msk.mxu0 %vm873_vm1, %v842_v55  ;;  %9507 = vmatprep.mubr.msk.f32.mxu0 %vm873_vm1, %v11564_v12  ;;  %v855_v12 = vld [vmem:[%s15883_s1 + $0x370] sm:$0xff] }
 0x1fe   :  { %v12190_v17 = vpop.permute.xlu1 %727  ;;  %v12192_v0 = vpop.permute.xlu0 %725 }
 0x1ff   :  { %16245 = vst [vmem:[#allocation90_spill] sm:$0xff] %v12190_v17  ;;  %16246 = vst [vmem:[#allocation91_spill] sm:$0xff] %v12192_v0  ;;  %9478 = vmatpush3.xpose.msk.msra.mxu1 %vm873_vm1, %v833_v48  ;;  %v864_v48 = vld [vmem:[%s15883_s1 + $0x3b8] sm:$0xff] }
 0x200   :  { %9504 = vmatpush3.xpose.msk.msra.mxu0 %vm873_vm1, %v842_v55  ;;  %9519 = vmatprep.subr.msk.mxu1 %vm873_vm1, %v856_v46 }
 0x201   :  { %9505 = vmatprep.subr.msk.mxu0 %vm873_vm1, %v841_v49 }
 0x202   :  { %9480 = vmatmul.mubr.msk.f32.vlgmr.msra.gmra.mxu1 %vm873_vm1, %v11922_v40  ;;  %v476_v55 = vpop.permute.xlu1 %475  ;;  %v474_v30 = vpop.permute.xlu0 %473  ;;  %v12225_v40 = vadd.f32 %v12204_v10, %v980_v39  ;;  %v863_v39 = vld [vmem:[%s15883_s1 + $0x3b0] sm:$0xff] }
 0x203   :  { %9520 = vmatpush3.xpose.msk.msra.mxu1 %vm873_vm1, %v856_v46  ;;  %9482 = vmatprep.mubr.msk.f32.mxu1 %vm873_vm1, %v12011_v13  ;;  %546 = vst.msk [vmem:[%s15885_s8 + $0xc8] sm:$0xff] %vm71_vm0, %v476_v55  ;;  %545 = vst.msk [vmem:[%s15885_s8 + $0xc0] sm:$0xff] %vm71_vm0, %v474_v30  ;;  %v9176_v46 = vpop.f32.mrf.mxu1  ;;  %v854_v55 = vld [vmem:[%s15883_s1 + $0x368] sm:$0xff] }
 0x204   :  { %9506 = vmatpush3.xpose.msk.msra.mxu0 %vm873_vm1, %v841_v49  ;;  %9521 = vmatprep.subr.msk.mxu1 %vm873_vm1, %v855_v12  ;;  %v12240_v49 = vld [vmem:[%s15886_s2 + $0x18] sm:$0xff] }
 0x205   :  { %9547 = vmatprep.subr.msk.mxu0 %vm873_vm1, %v864_v48 }
 0x206   :  { %9483 = vmatmul.mubr.msk.f32.gmra.mxu1 %vm873_vm1, %v12009_v26  ;;  %v12233_v13 = vpop.permute.xlu1 %603  ;;  %v12235_v30 = vpop.permute.xlu0 %601 }
 0x207   :  { %16247 = vst [vmem:[#allocation92_spill] sm:$0xff] %v12233_v13  ;;  %16248 = vst [vmem:[#allocation93_spill] sm:$0xff] %v12235_v30  ;;  %9508 = vmatmul.mubr.msk.f32.vlgmr.msra.gmra.mxu0 %vm873_vm1, %v11557_v11  ;;  %9522 = vmatpush3.xpose.msk.msra.mxu1 %vm873_vm1, %v855_v12  ;;  %v990_v26 = vpop.f32.mrf.mxu1  ;;  %v3355_v11 = vsel %vm3354_vm2, %v12225_v40, -inf  ;;  %v12257_v12 = vadd.f32 %v9176_v46, %v12240_v49  ;;  %v862_v46 = vld [vmem:[%s15883_s1 + $0x3a8] sm:$0xff] }
 0x208   :  { %9548 = vmatpush3.xpose.msk.msra.mxu0 %vm873_vm1, %v864_v48  ;;  %9485 = vmatprep.mubr.msk.f32.mxu1 %vm873_vm1, %v12099_v42 }
 0x209   :  { %9510 = vmatprep.mubr.msk.f32.mxu0 %vm873_vm1, %v11660_v20  ;;  %9523 = vmatprep.subr.msk.mxu1 %vm873_vm1, %v854_v55  ;;  %v9179_v20 = vpop.f32.mrf.mxu1  ;;  %v3364_v42 = vsel %vm3354_vm2, %v12257_v12, -inf }
 0x20a   :  { %9549 = vmatprep.subr.msk.mxu0 %vm873_vm1, %v863_v39  ;;  %3356 = vmax.xlane.f32.xlu0 %v3355_v11  ;;  %v12260_v48 = vpop.permute.xlu1 %667  ;;  %v12262_v59 = vpop.permute.xlu0 %665  ;;  %v853_v11 = vld [vmem:[%s15883_s1 + $0x360] sm:$0xff] }
 0x20b   :  { %16249 = vst [vmem:[#allocation94_spill] sm:$0xff] %v12260_v48  ;;  %16250 = vst [vmem:[#allocation95_spill] sm:$0xff] %v12262_v59  ;;  %9486 = vmatmul.mubr.msk.f32.gmra.mxu1 %vm873_vm1, %v12097_v51  ;;  %9511 = vmatmul.mubr.msk.f32.gmra.mxu0 %vm873_vm1, %v11643_v21  ;;  %v12286_v21 = vadd.f32 %v12267_v57, %v990_v26  ;;  %v1000_v26 = vpop.f32.mrf.mxu1 }
 0x20c   :  { %9524 = vmatpush3.xpose.msk.msra.mxu1 %vm873_vm1, %v854_v55  ;;  %9550 = vmatpush3.xpose.msk.msra.mxu0 %vm873_vm1, %v863_v39  ;;  %v12297_v55 = vld [vmem:[%s15886_s2 + $0x8] sm:$0xff] }
 0x20d   :  { %9488 = vmatprep.mubr.msk.f32.mxu1 %vm873_vm1, %v12192_v0  ;;  %9513 = vmatprep.mubr.msk.f32.mxu0 %vm873_vm1, %v11755_v28  ;;  %v12302_v39 = vld [vmem:[%s15886_s2 + $0x28] sm:$0xff]  ;;  %v852_v28 = vld [vmem:[%s15883_s1 + $0x358] sm:$0xff]  ;;  %v9182_v0 = vpop.f32.mrf.mxu1 }
 0x20e   :  { %9525 = vmatprep.subr.msk.mxu1 %vm873_vm1, %v853_v11  ;;  %9551 = vmatprep.subr.msk.mxu0 %vm873_vm1, %v862_v46  ;;  %v12292_v51 = vpop.permute.xlu1 %731  ;;  %v9229_v62 = vpop.f32.mrf.mxu0 }
 0x20f   :  { %16251 = vst [vmem:[#allocation96_spill] sm:$0xff] %v12292_v51  ;;  %3365 = vmax.xlane.f32.xlu0 %v3364_v42  ;;  %9489 = vmatmul.mubr.msk.f32.gmra.mxu1 %vm873_vm1, %v12190_v17  ;;  %v12309_v16 = vpop.permute.xlu0 %729  ;;  %v12322_v42 = vadd.f32 %v12179_v3, %v12297_v55  ;;  %v12325_v17 = vadd.f32 %v9179_v20, %v12302_v39  ;;  %v12340_v3 = vld [vmem:[%s15886_s2 + $0x38] sm:$0xff]  ;;  %v851_v20 = vld [vmem:[%s15883_s1 + $0x350] sm:$0xff] }
 0x210   :  { %16252 = vst [vmem:[#allocation97_spill] sm:$0xff] %v12309_v16  ;;  %9514 = vmatmul.mubr.msk.f32.gmra.mxu0 %vm873_vm1, %v11742_v25  ;;  %9526 = vmatpush3.xpose.msk.msra.mxu1 %vm873_vm1, %v853_v11  ;;  %v12330_v11 = vld [vmem:[%s15886_s2 + $0x20] sm:$0xff]  ;;  %v1270_v45 = vpop.f32.mrf.mxu0 }
 0x211   :  { %9552 = vmatpush3.xpose.msk.msra.mxu0 %vm873_vm1, %v862_v46  ;;  %9516 = vmatprep.mubr.msk.f32.mxu0 %vm873_vm1, %v11846_v44  ;;  %v3361_v46 = vsel %vm3354_vm2, %v12286_v21, -inf  ;;  %v12364_v35 = vadd.f32 %v12330_v11, %v1000_v26 }
 0x212   :  { %9535 = vmatprep.mubr.msk.f32.mxu1 %vm873_vm1, %v12235_v30  ;;  %9527 = vmatprep.subr.msk.mxu1 %vm873_vm1, %v852_v28  ;;  %v480_v25 = vpop.permute.xlu1 %479  ;;  %v860_v30 = vld [vmem:[%s15883_s1 + $0x398] sm:$0xff] }
 0x213   :  { %9553 = vmatprep.subr.msk.mxu0 %vm873_vm1, %v861_v52  ;;  %3362 = vmax.xlane.f32.xlu0 %v3361_v46  ;;  %548 = vst.msk [vmem:[%s15885_s8 + $0xd8] sm:$0xff] %vm71_vm0, %v480_v25  ;;  %v478_v44 = vpop.permute.xlu0 %477  ;;  %v1010_v46 = vpop.f32.mrf.mxu1  ;;  %v12367_v25 = vadd.f32 %v9182_v0, %v12340_v3  ;;  %v12383_v0 = vld [vmem:[%s15886_s2 + $0x30] sm:$0xff] }
 0x214   :  { %9517 = vmatmul.mubr.msk.f32.gmra.mxu0 %vm873_vm1, %v11839_v53  ;;  %9528 = vmatpush3.xpose.msk.msra.mxu1 %vm873_vm1, %v852_v28  ;;  %547 = vst.msk [vmem:[%s15885_s8 + $0xd0] sm:$0xff] %vm71_vm0, %v478_v44  ;;  %v3370_v28 = vsel %vm3354_vm2, %v12325_v17, -inf  ;;  %v3358_v44 = vsel %vm3354_vm2, %v12322_v42, -inf  ;;  %v12388_v53 = vld [vmem:[%s15886_s2 + $0x48] sm:$0xff]  ;;  %v12399_v33 = vadd.f32 %v12383_v0, %v1010_v46 }
 0x215   :  { %9554 = vmatpush3.xpose.msk.msra.mxu0 %vm873_vm1, %v861_v52  ;;  %9563 = vmatprep.mubr.msk.f32.mxu0 %vm873_vm1, %v12262_v59  ;;  %v850_v52 = vld [vmem:[%s15883_s1 + $0x348] sm:$0xff]  ;;  %v9201_v26 = vpop.f32.mrf.mxu1 }
 0x216   :  { %9529 = vmatprep.subr.msk.mxu1 %vm873_vm1, %v851_v20  ;;  %9555 = vmatprep.subr.msk.mxu0 %vm873_vm1, %v860_v30  ;;  %v12378_v59 = vpop.permute.xlu1 %607  ;;  %v12402_v32 = vadd.f32 %v9201_v26, %v12388_v53  ;;  %v12417_v46 = vld [vmem:[%s15886_s2 + $0x88] sm:$0xff]  ;;  %v3373_v15 = vsel %vm3354_vm2, %v12399_v33, -inf }
 0x217   :  { %16253 = vst [vmem:[#allocation98_spill] sm:$0xff] %v12378_v59  ;;  %3371 = vmax.xlane.f32.xlu0 %v3370_v28  ;;  %3359 = vmax.xlane.f32.xlu1 %v3358_v44  ;;  %v12393_v63 = vpop.permute.xlu0 %605  ;;  %v3376_v28 = vsel %vm3354_vm2, %v12367_v25, -inf  ;;  %v3367_v44 = vsel %vm3354_vm2, %v12364_v35, -inf  ;;  %v858_v26 = vld [vmem:[%s15883_s1 + $0x388] sm:$0xff]  ;;  %v1125_v2 = vpop.f32.mrf.mxu1 }
 0x218   :  { %16254 = vst [vmem:[#allocation99_spill] sm:$0xff] %v12393_v63  ;;  %9530 = vmatpush3.xpose.msk.msra.mxu1 %vm873_vm1, %v851_v20 }
 0x219   :  { %9556 = vmatpush3.xpose.msk.msra.mxu0 %vm873_vm1, %v860_v30  ;;  %9531 = vmatprep.subr.msk.mxu1 %vm873_vm1, %v850_v52  ;;  %v849_v30 = vld [vmem:[%s15883_s1 + $0x340] sm:$0xff] }
 0x21a   :  { %9557 = vmatprep.subr.msk.mxu0 %vm873_vm1, %v859_v1  ;;  %v12412_v20 = vpop.permute.xlu1 %671 }
 0x21b   :  { %16255 = vst [vmem:[#allocation100_spill] sm:$0xff] %v12412_v20  ;;  %3377 = vmax.xlane.f32.xlu0 %v3376_v28  ;;  %3368 = vmax.xlane.f32.xlu1 %v3367_v44  ;;  %v12422_v5 = vpop.permute.xlu0 %669  ;;  %v12433_v28 = vadd.f32 %v9229_v62, %v12417_v46  ;;  %v3382_v44 = vsel %vm3354_vm2, %v12402_v32, -inf  ;;  %v9204_v62 = vpop.f32.mrf.mxu1 }
 0x21c   :  { %16256 = vst [vmem:[#allocation101_spill] sm:$0xff] %v12422_v5  ;;  %9532 = vmatpush3.xpose.msk.msra.mxu1 %vm873_vm1, %v850_v52 }
 0x21d   :  { %9558 = vmatpush3.xpose.msk.msra.mxu0 %vm873_vm1, %v859_v1  ;;  %9533 = vmatprep.subr.msk.mxu1 %vm873_vm1, %v849_v30  ;;  %v12446_v1 = vadd.f32 %v12427_v61, %v1125_v2  ;;  %v12461_v2 = vld [vmem:[%s15886_s2 + $0x80] sm:$0xff] }
 0x21e   :  { %9559 = vmatprep.subr.msk.mxu0 %vm873_vm1, %v858_v26  ;;  %v12443_v52 = vpop.permute.xlu1 %735  ;;  %v12473_v14 = vadd.f32 %v12461_v2, %v1270_v45 }
 0x21f   :  { %16257 = vst [vmem:[#allocation102_spill] sm:$0xff] %v12443_v52  ;;  %3383 = vmax.xlane.f32.xlu0 %v3382_v44  ;;  %3374 = vmax.xlane.f32.xlu1 %v3373_v15  ;;  %v12456_v19 = vpop.permute.xlu0 %733  ;;  %v12467_v15 = vadd.f32 %v9204_v62, %v12451_v4  ;;  %v3406_v44 = vsel %vm3354_vm2, %v12433_v28, -inf  ;;  %v3379_v62 = vsel %vm3354_vm2, %v12446_v1, -inf }
 0x220   :  { %16258 = vst [vmem:[#allocation103_spill] sm:$0xff] %v12456_v19  ;;  %9534 = vmatpush3.xpose.msk.msra.mxu1 %vm873_vm1, %v849_v30  ;;  %v9232_v30 = vpop.f32.mrf.mxu0 }
 0x221   :  { %9560 = vmatpush3.xpose.msk.msra.mxu0 %vm873_vm1, %v858_v26  ;;  %9575 = vmatprep.subr.msk.mxu1 %vm873_vm1, %v872_v8  ;;  %v12480_v26 = vld [vmem:[%s15886_s2 + $0x98] sm:$0xff] }
 0x222   :  { %9561 = vmatprep.subr.msk.mxu0 %vm873_vm1, %v857_v22  ;;  %v484_v23 = vpop.permute.xlu1 %483  ;;  %v12510_v18 = vadd.f32 %v9232_v30, %v12480_v26  ;;  %v870_v30 = vld [vmem:[%s15883_s1 + $0x3e8] sm:$0xff]  ;;  %v1280_v34 = vpop.f32.mrf.mxu0 }
 0x223   :  { %9536 = vmatmul.mubr.msk.f32.vlgmr.msra.gmra.mxu1 %vm873_vm1, %v12233_v13  ;;  %3407 = vmax.xlane.f32.xlu0 %v3406_v44  ;;  %550 = vst.msk [vmem:[%s15885_s8 + $0xe8] sm:$0xff] %vm71_vm0, %v484_v23  ;;  %v482_v45 = vpop.permute.xlu0 %481  ;;  %v1135_v44 = vpop.f32.mrf.mxu1  ;;  %v12494_v13 = vld [vmem:[%s15886_s2 + $0x50] sm:$0xff]  ;;  %v12507_v23 = vld [vmem:[%s15886_s2 + $0x68] sm:$0xff] }
 0x224   :  { %9538 = vmatprep.mubr.msk.f32.mxu1 %vm873_vm1, %v12393_v63  ;;  %3380 = vmax.xlane.f32.xlu1 %v3379_v62  ;;  %549 = vst.msk [vmem:[%s15885_s8 + $0xe0] sm:$0xff] %vm71_vm0, %v482_v45  ;;  %v3388_v62 = vsel %vm3354_vm2, %v12467_v15, -inf  ;;  %v3412_v37 = vsel %vm3354_vm2, %v12510_v18, -inf }
 0x225   :  { %9562 = vmatpush3.xpose.msk.msra.mxu0 %vm873_vm1, %v857_v22  ;;  %9576 = vmatpush3.xpose.msk.msra.mxu1 %vm873_vm1, %v872_v8  ;;  %v12518_v22 = vadd.f32 %v12494_v13, %v1135_v44  ;;  %v3403_v8 = vsel %vm3354_vm2, %v12473_v14, -inf }
 0x226   :  { %9577 = vmatprep.subr.msk.mxu1 %vm873_vm1, %v871_v29  ;;  %v12515_v63 = vpop.permute.xlu1 %611  ;;  %v9207_v45 = vpop.f32.mrf.mxu1 }
 0x227   :  { %16259 = vst [vmem:[#allocation104_spill] sm:$0xff] %v12515_v63  ;;  %9539 = vmatmul.mubr.msk.f32.gmra.mxu1 %vm873_vm1, %v12378_v59  ;;  %3389 = vmax.xlane.f32.xlu0 %v3388_v62  ;;  %v12527_v43 = vpop.permute.xlu0 %609  ;;  %v12537_v44 = vadd.f32 %v9207_v45, %v12507_v23  ;;  %v12545_v59 = vld [vmem:[%s15886_s2 + $0xa8] sm:$0xff] }
 0x228   :  { %16260 = vst [vmem:[#allocation105_spill] sm:$0xff] %v12527_v43  ;;  %9564 = vmatmul.mubr.msk.f32.vlgmr.msra.gmra.mxu0 %vm873_vm1, %v12260_v48  ;;  %3404 = vmax.xlane.f32.xlu1 %v3403_v8  ;;  %v1145_v62 = vpop.f32.mrf.mxu1  ;;  %v12560_v48 = vadd.f32 %v12532_v47, %v1280_v34 }
 0x229   :  { %9566 = vmatprep.mubr.msk.f32.mxu0 %vm873_vm1, %v12422_v5  ;;  %9578 = vmatpush3.xpose.msk.msra.mxu1 %vm873_vm1, %v871_v29  ;;  %v12557_v29 = vld [vmem:[%s15886_s2 + $0x60] sm:$0xff]  ;;  %v3385_v5 = vsel %vm3354_vm2, %v12518_v22, -inf }
 0x22a   :  { %9579 = vmatprep.subr.msk.mxu1 %vm873_vm1, %v870_v30  ;;  %9541 = vmatprep.mubr.msk.f32.mxu1 %vm873_vm1, %v12527_v43  ;;  %v12552_v45 = vpop.permute.xlu1 %675  ;;  %v9235_v8 = vpop.f32.mrf.mxu0  ;;  %v869_v43 = vld [vmem:[%s15883_s1 + $0x3e0] sm:$0xff] }
 0x22b   :  { %16261 = vst [vmem:[#allocation106_spill] sm:$0xff] %v12552_v45  ;;  %3413 = vmax.xlane.f32.xlu0 %v3412_v37  ;;  %9542 = vmatmul.mubr.msk.f32.gmra.mxu1 %vm873_vm1, %v12515_v63  ;;  %v12569_v60 = vpop.permute.xlu0 %673  ;;  %v12574_v34 = vadd.f32 %v9235_v8, %v12545_v59  ;;  %v3394_v37 = vsel %vm3354_vm2, %v12537_v44, -inf  ;;  %v12580_v63 = vadd.f32 %v12557_v29, %v1145_v62  ;;  %v3409_v8 = vsel %vm3354_vm2, %v12560_v48, -inf }
 0x22c   :  { %16262 = vst [vmem:[#allocation107_spill] sm:$0xff] %v12569_v60  ;;  %9567 = vmatmul.mubr.msk.f32.gmra.mxu0 %vm873_vm1, %v12412_v20  ;;  %3386 = vmax.xlane.f32.xlu1 %v3385_v5  ;;  %v1290_v50 = vpop.f32.mrf.mxu0  ;;  %v12588_v5 = vld [vmem:[%s15886_s2 + $0xa0] sm:$0xff] }
 0x22d   :  { %9580 = vmatpush3.xpose.msk.msra.mxu1 %vm873_vm1, %v870_v30  ;;  %9569 = vmatprep.mubr.msk.f32.mxu0 %vm873_vm1, %v12569_v60  ;;  %v868_v30 = vld [vmem:[%s15883_s1 + $0x3d8] sm:$0xff]  ;;  %v3418_v60 = vsel %vm3354_vm2, %v12574_v34, -inf  ;;  %v12605_v7 = vadd.f32 %v12588_v5, %v1290_v50  ;;  %v3391_v58 = vsel %vm3354_vm2, %v12580_v63, -inf }
 0x22e   :  { %9581 = vmatprep.subr.msk.mxu1 %vm873_vm1, %v869_v43 }
 0x22f   :  { %3395 = vmax.xlane.f32.xlu0 %v3394_v37  ;;  %v12595_v62 = vpop.permute.xlu1 %739  ;;  %v12597_v20 = vpop.permute.xlu0 %737  ;;  %v867_v37 = vld [vmem:[%s15883_s1 + $0x3d0] sm:$0xff]  ;;  %v3415_v50 = vsel %vm3354_vm2, %v12605_v7, -inf }
 0x230   :  { %16263 = vst [vmem:[#allocation108_spill] sm:$0xff] %v12595_v62  ;;  %16264 = vst [vmem:[#allocation109_spill] sm:$0xff] %v12597_v20  ;;  %3410 = vmax.xlane.f32.xlu1 %v3409_v8  ;;  %9570 = vmatmul.mubr.msk.f32.gmra.mxu0 %vm873_vm1, %v12552_v45 }
 0x231   :  { %9582 = vmatpush3.xpose.msk.msra.mxu1 %vm873_vm1, %v869_v43  ;;  %v12616_v43 = vld [vmem:[%s15886_s2 + $0x78] sm:$0xff] }
 0x232   :  { %9583 = vmatprep.subr.msk.mxu1 %vm873_vm1, %v868_v30 }
 0x233   :  { %3419 = vmax.xlane.f32.xlu0 %v3418_v60  ;;  %v12633_v60 = vld [vmem:[%s15886_s2 + $0x70] sm:$0xff] }
 0x234   :  { %3392 = vmax.xlane.f32.xlu1 %v3391_v58  ;;  %v488_v8 = vpop.permute.xlu1 %487  ;;  %v486_v45 = vpop.permute.xlu0 %485 }
 0x235   :  { %9584 = vmatpush3.xpose.msk.msra.mxu1 %vm873_vm1, %v868_v30  ;;  %552 = vst.msk [vmem:[%s15885_s8 + $0xf8] sm:$0xff] %vm71_vm0, %v488_v8  ;;  %551 = vst.msk [vmem:[%s15885_s8 + $0xf0] sm:$0xff] %vm71_vm0, %v486_v45  ;;  %v866_v30 = vld [vmem:[%s15883_s1 + $0x3c8] sm:$0xff] }
 0x236   :  { %9585 = vmatprep.subr.msk.mxu1 %vm873_vm1, %v867_v37  ;;  %v9210_v58 = vpop.f32.mrf.mxu1 }
 0x237   :  { %v12639_v8 = vadd.f32 %v9210_v58, %v12616_v43 }
 0x238   :  { %3416 = vmax.xlane.f32.xlu1 %v3415_v50  ;;  %v1155_v45 = vpop.f32.mrf.mxu1 }
 0x239   :  { %16265 = vst [vmem:[#allocation110_spill] sm:$0xff] %v12639_v8  ;;  %9586 = vmatpush3.xpose.msk.msra.mxu1 %vm873_vm1, %v867_v37  ;;  %v12647_v24 = vpop.permute.xlu1 %615  ;;  %v12649_v41 = vpop.permute.xlu0 %613  ;;  %v12652_v36 = vadd.f32 %v12633_v60, %v1155_v45  ;;  %v3400_v58 = vsel %vm3354_vm2, %v12639_v8, -inf  ;;  %v12662_v37 = vld [vmem:[%s15886_s2 + $0xb0] sm:$0xff]  ;;  %v865_v45 = vld [vmem:[%s15883_s1 + $0x3c0] sm:$0xff]  ;;  %s10674_s1 = smov 24  }
 0x23a   :  { %16266 = vst [vmem:[#allocation111_spill] sm:$0xff] %v12647_v24  ;;  %16267 = vst [vmem:[#allocation112_spill] sm:$0xff] %v12649_v41  ;;  %9587 = vmatprep.subr.msk.mxu1 %vm873_vm1, %v866_v30  ;;  %9544 = vmatprep.mubr.msk.f32.mxu1 %vm873_vm1, %v12649_v41  ;;  %v9238_v50 = vpop.f32.mrf.mxu0  ;;  %v9257_v6 = vpop.f32.mrf.mxu1  ;;  %v12675_v41 = vld [vmem:[%s15886_s2 + $0xc8] sm:$0xff] }
 0x23b   :  { %16268 = vst [vmem:[#allocation113_spill] sm:$0xff] %v12652_v36  ;;  %9545 = vmatmul.mubr.msk.f32.gmra.mxu1 %vm873_vm1, %v12647_v24  ;;  %v12670_v9 = vadd.f32 %v9238_v50, %v12644_v27  ;;  %3401 = vmax.xlane.f32.xlu0 %v3400_v58  ;;  %v3397_v56 = vsel %vm3354_vm2, %v12652_v36, -inf  ;;  %v12684_v50 = vld [vmem:[%s15886_s2 + $0xc0] sm:$0xff] }
 0x23c   :  { %9591 = vmatprep.mubr.msk.f32.mxu1 %vm873_vm1, %v12309_v16  ;;  %v1300_v24 = vpop.f32.mrf.mxu0  ;;  %3398 = vmax.xlane.f32.xlu1 %v3397_v56  ;;  %v1415_v31 = vpop.f32.mrf.mxu1  ;;  %v12698_v56 = vadd.f32 %v9257_v6, %v12675_v41 }
 0x23d   :  { %16269 = vst [vmem:[#allocation114_spill] sm:$0xff] %v12670_v9  ;;  %9588 = vmatpush3.xpose.msk.msra.mxu1 %vm873_vm1, %v866_v30  ;;  %v12688_v58 = vadd.f32 %v12662_v37, %v1300_v24  ;;  %v3424_v54 = vsel %vm3354_vm2, %v12670_v9, -inf  ;;  %v12703_v30 = vadd.f32 %v12684_v50, %v1415_v31 }
 0x23e   :  { %9589 = vmatprep.subr.msk.mxu1 %vm873_vm1, %v865_v45  ;;  %v12693_v38 = vpop.permute.xlu1 %679  ;;  %v12695_v16 = vpop.permute.xlu0 %677  ;;  %16273 = vst [vmem:[#allocation118_spill] sm:$0xff] %v12698_v56  ;;  %v3430_v31 = vsel %vm3354_vm2, %v12698_v56, -inf }
 0x23f   :  { %16270 = vst [vmem:[#allocation115_spill] sm:$0xff] %v12688_v58  ;;  %16271 = vst [vmem:[#allocation116_spill] sm:$0xff] %v12693_v38  ;;  %9572 = vmatprep.mubr.msk.f32.mxu0 %vm873_vm1, %v12695_v16  ;;  %v9285_v24 = vpop.f32.mrf.mxu0  ;;  %3425 = vmax.xlane.f32.xlu0 %v3424_v54  ;;  %v3421_v9 = vsel %vm3354_vm2, %v12688_v58, -inf  ;;  %v9260_v8 = vpop.f32.mrf.mxu1  ;;  %v12722_v58 = vld [vmem:[%s15886_s2 + $0xd8] sm:$0xff] }
 0x240   :  { %16272 = vst [vmem:[#allocation117_spill] sm:$0xff] %v12695_v16  ;;  %16274 = vst [vmem:[#allocation119_spill] sm:$0xff] %v12703_v30  ;;  %9573 = vmatmul.mubr.msk.f32.gmra.mxu0 %vm873_vm1, %v12693_v38  ;;  %3422 = vmax.xlane.f32.xlu1 %v3421_v9  ;;  %v12711_v6 = vadd.f32 %v9285_v24, %v12297_v55  ;;  %v3427_v9 = vsel %vm3354_vm2, %v12703_v30, -inf  ;;  %v12734_v24 = vadd.f32 %v9260_v8, %v12722_v58 }
 0x241   :  { %9590 = vmatpush3.xpose.msk.msra.mxu1 %vm873_vm1, %v865_v45  ;;  %v1560_v36 = vpop.f32.mrf.mxu0  ;;  %v1425_v38 = vpop.f32.mrf.mxu1 }
 0x242   :  { %16275 = vst [vmem:[#allocation120_spill] sm:$0xff] %v12711_v6  ;;  %v12731_v45 = vadd.f32 %v12204_v10, %v1560_v36  ;;  %16279 = vst [vmem:[#allocation124_spill] sm:$0xff] %v12734_v24 }
 0x243   :  { %v12715_v16 = vpop.permute.xlu1 %743  ;;  %v12717_v54 = vpop.permute.xlu0 %741  ;;  %3431 = vmax.xlane.f32.xlu0 %v3430_v31  ;;  %v12739_v31 = vld [vmem:[%s15886_s2 + $0xd0] sm:$0xff] }
 0x244   :  { %16276 = vst [vmem:[#allocation121_spill] sm:$0xff] %v12715_v16  ;;  %16277 = vst [vmem:[#allocation122_spill] sm:$0xff] %v12717_v54  ;;  %9592 = vmatmul.mubr.msk.f32.vlgmr.msra.gmra.mxu1 %vm873_vm1, %v12292_v51  ;;  %3428 = vmax.xlane.f32.xlu1 %v3427_v9  ;;  %v9288_v30 = vpop.f32.mrf.mxu0  ;;  %v3454_v51 = vsel %vm3354_vm2, %v12711_v6, -inf  ;;  %v12748_v36 = vadd.f32 %v12739_v31, %v1425_v38  ;;  %v3451_v8 = vsel %vm3354_vm2, %v12731_v45, -inf  ;;  %v9263_v6 = vpop.f32.mrf.mxu1 }
 0x245   :  { %9594 = vmatprep.mubr.msk.f32.mxu1 %vm873_vm1, %v12456_v19  ;;  %16278 = vst [vmem:[#allocation123_spill] sm:$0xff] %v12731_v45  ;;  %v12753_v19 = vadd.f32 %v9288_v30, %v12240_v49 }
 0x246   :  { %16280 = vst [vmem:[#allocation125_spill] sm:$0xff] %v12748_v36  ;;  %v3433_v30 = vsel %vm3354_vm2, %v12748_v36, -inf }
 0x247   :  { %v4778_v9 = vpop.permute.xlu1 %4777  ;;  %v4776_v56 = vpop.permute.xlu0 %4775  ;;  %3455 = vmax.xlane.f32.xlu0 %v3454_v51  ;;  %16281 = vst [vmem:[#allocation126_spill] sm:$0xff] %v12753_v19 }
 0x248   :  { %9595 = vmatmul.mubr.msk.f32.gmra.mxu1 %vm873_vm1, %v12443_v52  ;;  %9603 = vmatprep.subr.mxu0 %v4778_v9  ;;  %v1570_v51 = vpop.f32.mrf.mxu0  ;;  %v3436_v52 = vsel %vm3354_vm2, %v12734_v24, -inf }
 0x249   :  { %9597 = vmatprep.mubr.msk.f32.mxu1 %vm873_vm1, %v12597_v20  ;;  %9604 = vmatpush3.msra.mxu0 %v4778_v9  ;;  %v12760_v20 = vld [vmem:[%s15886_s2 + $0xe8] sm:$0xff]  ;;  %v12767_v49 = vadd.f32 %v12267_v57, %v1570_v51 }
 0x24a   :  { %9605 = vmatprep.subr.mxu0 %v4776_v56  ;;  %3452 = vmax.xlane.f32.xlu1 %v3451_v8  ;;  %v12772_v8 = vadd.f32 %v9263_v6, %v12760_v20 }
 0x24b   :  { %v4774_v38 = vpop.permute.xlu1 %4773  ;;  %9606 = vmatpush3.msra.mxu0 %v4776_v56  ;;  %v4770_v9 = vpop.permute.xlu0 %4769  ;;  %3437 = vmax.xlane.f32.xlu0 %v3436_v52  ;;  %16282 = vst [vmem:[#allocation127_spill] sm:$0xff] %v12767_v49  ;;  %v12777_v52 = vld [vmem:[%s15886_s2 + $0xe0] sm:$0xff] }
 0x24c   :  { %9598 = vmatmul.mubr.msk.f32.gmra.mxu1 %vm873_vm1, %v12595_v62  ;;  %9607 = vmatprep.subr.mxu0 %v4774_v38  ;;  %16283 = vst [vmem:[#allocation128_spill] sm:$0xff] %v12772_v8  ;;  %v1435_v56 = vpop.f32.mrf.mxu1  ;;  %v9291_v62 = vpop.f32.mrf.mxu0 }
 0x24d   :  { %9600 = vmatprep.mubr.msk.f32.mxu1 %vm873_vm1, %v12717_v54  ;;  %9608 = vmatpush3.msra.mxu0 %v4774_v38  ;;  %v3460_v54 = vsel %vm3354_vm2, %v12753_v19, -inf  ;;  %v12784_v6 = vadd.f32 %v12777_v52, %v1435_v56  ;;  %v3457_v38 = vsel %vm3354_vm2, %v12767_v49, -inf  ;;  %v12789_v36 = vadd.f32 %v9291_v62, %v12302_v39 }
 0x24e   :  { %3434 = vmax.xlane.f32.xlu1 %v3433_v30  ;;  %v1580_v30 = vpop.f32.mrf.mxu0 }
 0x24f   :  { %v4772_v51 = vpop.permute.xlu1 %4771  ;;  %v4766_v45 = vpop.permute.xlu0 %4765  ;;  %3461 = vmax.xlane.f32.xlu0 %v3460_v54  ;;  %16284 = vst [vmem:[#allocation129_spill] sm:$0xff] %v12784_v6  ;;  %16285 = vst [vmem:[#allocation130_spill] sm:$0xff] %v12789_v36  ;;  %v3442_v54 = vsel %vm3354_vm2, %v12772_v8, -inf  ;;  %v12796_v56 = vadd.f32 %v12330_v11, %v1580_v30  ;;  %v3439_v62 = vsel %vm3354_vm2, %v12784_v6, -inf }
 0x250   :  { %9601 = vmatmul.mubr.msk.f32.gmra.mxu1 %vm873_vm1, %v12715_v16  ;;  %9609 = vmatprep.subr.mxu0 %v4772_v51 }
 0x251   :  { %9610 = vmatpush3.msra.mxu0 %v4772_v51  ;;  %16287 = vst [vmem:[#allocation132_spill] sm:$0xff] %v12796_v56  ;;  %v3466_v51 = vsel %vm3354_vm2, %v12789_v36, -inf  ;;  %v3463_v30 = vsel %vm3354_vm2, %v12796_v56, -inf }
 0x252   :  { %9611 = vmatprep.subr.mxu0 %v4770_v9  ;;  %3458 = vmax.xlane.f32.xlu1 %v3457_v38 }
 0x253   :  { %v4768_v19 = vpop.permute.xlu1 %4767  ;;  %9612 = vmatpush3.msra.mxu0 %v4770_v9  ;;  %3443 = vmax.xlane.f32.xlu0 %v3442_v54 }
 0x254   :  { %v12793_v16 = vpop.permute.xlu0 %4922  ;;  %9613 = vmatprep.subr.mxu0 %v4768_v19 }
 0x255   :  { %16286 = vst [vmem:[#allocation131_spill] sm:$0xff] %v12793_v16  ;;  %9614 = vmatpush3.msra.mxu0 %v4768_v19 }
 0x256   :  { %9615 = vmatprep.subr.mxu0 %v4766_v45  ;;  %3440 = vmax.xlane.f32.xlu1 %v3439_v62 }
 0x257   :  { %v4764_v38 = vpop.permute.xlu1 %4763  ;;  %9616 = vmatpush3.msra.mxu0 %v4766_v45  ;;  %3467 = vmax.xlane.f32.xlu0 %v3466_v51 }
 0x258   :  { %v12802_v9 = vpop.permute.xlu0 %4926  ;;  %9617 = vmatprep.subr.mxu0 %v4764_v38 }
 0x259   :  { %16288 = vst [vmem:[#allocation133_spill] sm:$0xff] %v12802_v9  ;;  %9618 = vmatpush3.msra.mxu0 %v4764_v38 }
 0x25a   :  { %3464 = vmax.xlane.f32.xlu1 %v3463_v30  ;;  %v9266_v30 = vpop.f32.mrf.mxu1 }
 0x25b   :  { %v12809_v54 = vpop.permute.xlu1 %4920 }
 0x25c   :  { %v12806_v19 = vpop.permute.xlu0 %4930  ;;  %16290 = vst [vmem:[#allocation135_spill] sm:$0xff] %v12809_v54  ;;  %v1445_v54 = vpop.f32.mrf.mxu1 }
 0x25d   :  { %16289 = vst [vmem:[#allocation134_spill] sm:$0xff] %v12806_v19  ;;  %9631 = vmatprep.subr.mxu0 %v12806_v19 }
 0x25f   :  { %v12812_v49 = vpop.permute.xlu1 %4924 }
 0x260   :  { %16291 = vst [vmem:[#allocation136_spill] sm:$0xff] %v12812_v49 }
 0x263   :  { %v12814_v6 = vpop.permute.xlu1 %4928 }
 0x264   :  { %16292 = vst [vmem:[#allocation137_spill] sm:$0xff] %v12814_v6 }
 0x293   :  { %v3357_v62 = vpop.xlane.xlu0 %3356 }
 0x294   :  { %v3739_v36 = vsub.f32 %v12225_v40, %v3357_v62  ;;  %v12821_v40 = vld [vmem:[%s15886_s2 + $0xf0] sm:$0xff] }
 0x295   :  { %16293 = vst [vmem:[#allocation138_spill] sm:$0xff] %v12821_v40 }
 0x296   :  { %v3867_v45 = vmul.f32 1.442695, %v3739_v36  ;;  %v9294_v36 = vpop.f32.mrf.mxu0 }
 0x298   :  { %10123 = vpow2.f32 %v3867_v45  ;;  %v3366_v51 = vpop.xlane.xlu0 %3365 }
 0x29c   :  { %v3363_v38 = vpop.xlane.xlu0 %3362 }
 0x29d   :  { %v3741_v56 = vsub.f32 %v12286_v21, %v3363_v38  ;;  %v12827_v21 = vadd.f32 %v12821_v40, %v1445_v54  ;;  %v3742_v38 = vsub.f32 %v12257_v12, %v3366_v51 }
 0x29f   :  { %v3871_v8 = vmul.f32 1.442695, %v3741_v56  ;;  %16295 = vst [vmem:[#allocation140_spill] sm:$0xff] %v12827_v21  ;;  %v3445_v54 = vsel %vm3354_vm2, %v12827_v21, -inf }
 0x2a0   :  { %v3360_v16 = vpop.xlane.xlu1 %3359 }
 0x2a1   :  { %v3740_v9 = vsub.f32 %v12322_v42, %v3360_v16  ;;  %10125 = vpow2.f32 %v3871_v8  ;;  %v1590_v42 = vpop.f32.mrf.mxu0  ;;  %v3372_v8 = vpop.xlane.xlu0 %3371 }
 0x2a3   :  { %v3869_v62 = vmul.f32 1.442695, %v3740_v9  ;;  %v12833_v9 = vadd.f32 %v12383_v0, %v1590_v42 }
 0x2a4   :  { %v3369_v45 = vpop.xlane.xlu1 %3368 }
 0x2a5   :  { %v12823_v49 = vpop.eup %10123  ;;  %v3743_v6 = vsub.f32 %v12364_v35, %v3369_v45  ;;  %10127 = vpow2.f32 %v3869_v62  ;;  %16296 = vst [vmem:[#allocation141_spill] sm:$0xff] %v12833_v9  ;;  %v3873_v62 = vmul.f32 1.442695, %v3742_v38  ;;  %v3744_v45 = vsub.f32 %v12325_v17, %v3372_v8 }
 0x2a6   :  { %16294 = vst [vmem:[#allocation139_spill] sm:$0xff] %v12823_v49  ;;  %v4123_v16 = vsel %vm3354_vm2, %v12823_v49, 0.0  ;;  %v3378_v49 = vpop.xlane.xlu0 %3377  ;;  %v3469_v12 = vsel %vm3354_vm2, %v12833_v9, -inf }
 0x2a7   :  { %v3875_v56 = vmul.f32 1.442695, %v3743_v6  ;;  %4124 = vadd.xlane.f32.xlu1 %v4123_v16  ;;  %v3877_v51 = vmul.f32 1.442695, %v3744_v45 }
 0x2a8   :  { %v3375_v19 = vpop.xlane.xlu1 %3374 }
 0x2a9   :  { %10129 = vpow2.f32 %v3875_v56  ;;  %v3745_v35 = vsub.f32 %v12399_v33, %v3375_v19  ;;  %v3746_v33 = vsub.f32 %v12367_v25, %v3378_v49  ;;  %v12847_v19 = vld [vmem:[%s15886_s2 + $0xf8] sm:$0xff]  ;;  %v9313_v25 = vpop.f32.mrf.mxu1  ;;  %v12861_v56 = vadd.f32 %v9294_v36, %v12340_v3 }
 0x2ab   :  { %3446 = vmax.xlane.f32.xlu1 %v3445_v54  ;;  %v3879_v24 = vmul.f32 1.442695, %v3745_v35  ;;  %v3881_v42 = vmul.f32 1.442695, %v3746_v33  ;;  %16299 = vst [vmem:[#allocation144_spill] sm:$0xff] %v12861_v56  ;;  %v1705_v35 = vpop.f32.mrf.mxu1  ;;  %v9341_v54 = vpop.f32.mrf.mxu0  ;;  %v3472_v36 = vsel %vm3354_vm2, %v12861_v56, -inf }
 0x2ac   :  { %v12870_v45 = vadd.f32 %v12427_v61, %v1705_v35 }
 0x2ad   :  { %10131 = vpow2.f32 %v3879_v24  ;;  %v12854_v24 = vadd.f32 %v9266_v30, %v12847_v19  ;;  %v9316_v33 = vpop.f32.mrf.mxu1 }
 0x2ae   :  { %v12841_v6 = vpop.eup %10125  ;;  %10133 = vpow2.f32 %v3873_v62  ;;  %16301 = vst [vmem:[#allocation146_spill] sm:$0xff] %v12870_v45 }
 0x2af   :  { %3470 = vmax.xlane.f32.xlu1 %v3469_v12  ;;  %v4129_v17 = vsel %vm3354_vm2, %v12841_v6, 0.0  ;;  %16297 = vst [vmem:[#allocation142_spill] sm:$0xff] %v12854_v24  ;;  %10135 = vpow2.f32 %v3877_v51  ;;  %v3448_v38 = vsel %vm3354_vm2, %v12854_v24, -inf  ;;  %v1715_v35 = vpop.f32.mrf.mxu1 }
 0x2b0   :  { %10137 = vpow2.f32 %v3881_v42  ;;  %v12888_v56 = vadd.f32 %v12494_v13, %v1715_v35 }
 0x2b1   :  { %v9319_v24 = vpop.f32.mrf.mxu1 }
 0x2b2   :  { %v12851_v16 = vpop.eup %10127  ;;  %16305 = vst [vmem:[#allocation150_spill] sm:$0xff] %v12888_v56  ;;  %v3481_v35 = vsel %vm3354_vm2, %v12888_v56, -inf  ;;  %v12917_v56 = vadd.f32 %v9316_v33, %v12451_v4 }
 0x2b3   :  { %4130 = vadd.xlane.f32.xlu1 %v4129_v17  ;;  %v4126_v8 = vsel %vm3354_vm2, %v12851_v16, 0.0  ;;  %v1850_v17 = vpop.f32.mrf.mxu0 }
 0x2b4   :  { %4127 = vadd.xlane.f32.xlu0 %v4126_v8  ;;  %v12879_v42 = vadd.f32 %v12461_v2, %v1850_v17  ;;  %16311 = vst [vmem:[#allocation156_spill] sm:$0xff] %v12917_v56  ;;  %v3484_v33 = vsel %vm3354_vm2, %v12917_v56, -inf }
 0x2b5   :  { %v9344_v9 = vpop.f32.mrf.mxu0 }
 0x2b6   :  { %v12858_v49 = vpop.eup %10129  ;;  %16303 = vst [vmem:[#allocation148_spill] sm:$0xff] %v12879_v42 }
 0x2b7   :  { %16298 = vst [vmem:[#allocation143_spill] sm:$0xff] %v12858_v49  ;;  %v4135_v30 = vsel %vm3354_vm2, %v12858_v49, 0.0  ;;  %v1860_v21 = vpop.f32.mrf.mxu0 }
 0x2b8   :  { %3449 = vmax.xlane.f32.xlu0 %v3448_v38  ;;  %4136 = vadd.xlane.f32.xlu1 %v4135_v30  ;;  %v3475_v38 = vsel %vm3354_vm2, %v12870_v45, -inf  ;;  %v12897_v45 = vadd.f32 %v9313_v25, %v12388_v53 }
 0x2ba   :  { %v12867_v62 = vpop.eup %10131  ;;  %16307 = vst [vmem:[#allocation152_spill] sm:$0xff] %v12897_v45 }
 0x2bb   :  { %16300 = vst [vmem:[#allocation145_spill] sm:$0xff] %v12867_v62  ;;  %v4141_v12 = vsel %vm3354_vm2, %v12867_v62, 0.0  ;;  %v12876_v51 = vpop.eup %10133  ;;  %v1725_v62 = vpop.f32.mrf.mxu1 }
 0x2bc   :  { %16302 = vst [vmem:[#allocation147_spill] sm:$0xff] %v12876_v51  ;;  %3473 = vmax.xlane.f32.xlu0 %v3472_v36  ;;  %4142 = vadd.xlane.f32.xlu1 %v4141_v12  ;;  %v4132_v8 = vsel %vm3354_vm2, %v12876_v51, 0.0  ;;  %v12885_v30 = vpop.eup %10135  ;;  %v3499_v12 = vsel %vm3354_vm2, %v12879_v42, -inf  ;;  %v9347_v42 = vpop.f32.mrf.mxu0 }
 0x2bd   :  { %16304 = vst [vmem:[#allocation149_spill] sm:$0xff] %v12885_v30  ;;  %v4138_v36 = vsel %vm3354_vm2, %v12885_v30, 0.0  ;;  %v12894_v17 = vpop.eup %10137  ;;  %v12907_v30 = vadd.f32 %v9341_v54, %v12417_v46 }
 0x2be   :  { %16306 = vst [vmem:[#allocation151_spill] sm:$0xff] %v12894_v17 }
 0x2bf   :  { %16309 = vst [vmem:[#allocation154_spill] sm:$0xff] %v12907_v30  ;;  %v3502_v54 = vsel %vm3354_vm2, %v12907_v30, -inf }
 0x2c0   :  { %4133 = vadd.xlane.f32.xlu0 %v4132_v8  ;;  %3476 = vmax.xlane.f32.xlu1 %v3475_v38  ;;  %v12900_v8 = vadd.f32 %v12532_v47, %v1860_v21  ;;  %v4144_v38 = vsel %vm3354_vm2, %v12894_v17, 0.0  ;;  %v3478_v21 = vsel %vm3354_vm2, %v12897_v45, -inf  ;;  %v9322_v17 = vpop.f32.mrf.mxu1 }
 0x2c2   :  { %16308 = vst [vmem:[#allocation153_spill] sm:$0xff] %v12900_v8  ;;  %v3505_v25 = vsel %vm3354_vm2, %v12900_v8, -inf  ;;  %v12927_v8 = vadd.f32 %v9344_v9, %v12480_v26 }
 0x2c4   :  { %4139 = vadd.xlane.f32.xlu0 %v4138_v36  ;;  %3500 = vmax.xlane.f32.xlu1 %v3499_v12  ;;  %v12910_v36 = vadd.f32 %v12557_v29, %v1725_v62  ;;  %v1870_v12 = vpop.f32.mrf.mxu0  ;;  %16313 = vst [vmem:[#allocation158_spill] sm:$0xff] %v12927_v8  ;;  %v3508_v9 = vsel %vm3354_vm2, %v12927_v8, -inf }
 0x2c6   :  { %16310 = vst [vmem:[#allocation155_spill] sm:$0xff] %v12910_v36  ;;  %v3487_v62 = vsel %vm3354_vm2, %v12910_v36, -inf  ;;  %v9350_v45 = vpop.f32.mrf.mxu0  ;;  %v12937_v36 = vadd.f32 %v9319_v24, %v12507_v23 }
 0x2c8   :  { %4145 = vadd.xlane.f32.xlu0 %v4144_v38  ;;  %3482 = vmax.xlane.f32.xlu1 %v3481_v35  ;;  %v12920_v38 = vadd.f32 %v12588_v5, %v1870_v12  ;;  %v1735_v35 = vpop.f32.mrf.mxu1  ;;  %v1880_v30 = vpop.f32.mrf.mxu0  ;;  %16315 = vst [vmem:[#allocation160_spill] sm:$0xff] %v12937_v36  ;;  %v3490_v24 = vsel %vm3354_vm2, %v12937_v36, -inf }
 0x2ca   :  { %16312 = vst [vmem:[#allocation157_spill] sm:$0xff] %v12920_v38  ;;  %v9369_v12 = vpop.f32.mrf.mxu1  ;;  %v9397_v56 = vpop.f32.mrf.mxu0 }
 0x2cc   :  { %3479 = vmax.xlane.f32.xlu0 %v3478_v21  ;;  %3506 = vmax.xlane.f32.xlu1 %v3505_v25  ;;  %v12930_v21 = vadd.f32 %v12633_v60, %v1735_v35  ;;  %v3511_v25 = vsel %vm3354_vm2, %v12920_v38, -inf  ;;  %v1995_v35 = vpop.f32.mrf.mxu1  ;;  %v12947_v38 = vadd.f32 %v9347_v42, %v12545_v59  ;;  %v2140_v8 = vpop.f32.mrf.mxu0 }
 0x2ce   :  { %16314 = vst [vmem:[#allocation159_spill] sm:$0xff] %v12930_v21  ;;  %16317 = vst [vmem:[#allocation162_spill] sm:$0xff] %v12947_v38  ;;  %v3514_v42 = vsel %vm3354_vm2, %v12947_v38, -inf  ;;  %v9400_v36 = vpop.f32.mrf.mxu0 }
 0x2d0   :  { %3503 = vmax.xlane.f32.xlu0 %v3502_v54  ;;  %3488 = vmax.xlane.f32.xlu1 %v3487_v62  ;;  %v12940_v54 = vadd.f32 %v12662_v37, %v1880_v30  ;;  %v3493_v62 = vsel %vm3354_vm2, %v12930_v21, -inf  ;;  %v12957_v21 = vadd.f32 %v9322_v17, %v12616_v43  ;;  %v2150_v38 = vpop.f32.mrf.mxu0 }
 0x2d2   :  { %16316 = vst [vmem:[#allocation161_spill] sm:$0xff] %v12940_v54  ;;  %v3517_v30 = vsel %vm3354_vm2, %v12940_v54, -inf  ;;  %16319 = vst [vmem:[#allocation164_spill] sm:$0xff] %v12957_v21  ;;  %v12966_v54 = vpop.xlane.xlu1 %3380 }
 0x2d4   :  { %3485 = vmax.xlane.f32.xlu0 %v3484_v33  ;;  %3512 = vmax.xlane.f32.xlu1 %v3511_v25  ;;  %v12950_v33 = vadd.f32 %v12684_v50, %v1995_v35  ;;  %v9372_v25 = vpop.f32.mrf.mxu1 }
 0x2d6   :  { %16318 = vst [vmem:[#allocation163_spill] sm:$0xff] %v12950_v33  ;;  %v2005_v35 = vpop.f32.mrf.mxu1 }
 0x2d7   :  { %v12972_v17 = vadd.f32 %v12739_v31, %v2005_v35 }
 0x2d8   :  { %3509 = vmax.xlane.f32.xlu0 %v3508_v9  ;;  %3494 = vmax.xlane.f32.xlu1 %v3493_v62  ;;  %v12960_v9 = vadd.f32 %v12204_v10, %v2140_v8  ;;  %v3523_v62 = vsel %vm3354_vm2, %v12950_v33, -inf  ;;  %v3496_v10 = vsel %vm3354_vm2, %v12957_v21, -inf }
 0x2d9   :  { %16322 = vst [vmem:[#allocation167_spill] sm:$0xff] %v12972_v17  ;;  %v3529_v33 = vsel %vm3354_vm2, %v12972_v17, -inf }
 0x2da   :  { %16320 = vst [vmem:[#allocation165_spill] sm:$0xff] %v12960_v9  ;;  %v3547_v8 = vsel %vm3354_vm2, %v12960_v9, -inf  ;;  %v9403_v9 = vpop.f32.mrf.mxu0 }
 0x2dc   :  { %3491 = vmax.xlane.f32.xlu0 %v3490_v24  ;;  %3518 = vmax.xlane.f32.xlu1 %v3517_v30  ;;  %v12969_v24 = vadd.f32 %v9350_v45, %v12644_v27  ;;  %v9375_v30 = vpop.f32.mrf.mxu1  ;;  %v12984_v45 = vpop.xlane.xlu1 %3404 }
 0x2de   :  { %16321 = vst [vmem:[#allocation166_spill] sm:$0xff] %v12969_v24  ;;  %v3520_v35 = vsel %vm3354_vm2, %v12969_v24, -inf  ;;  %v2015_v21 = vpop.f32.mrf.mxu1  ;;  %v2160_v24 = vpop.f32.mrf.mxu0 }
 0x2e0   :  { %3515 = vmax.xlane.f32.xlu0 %v3514_v42  ;;  %3524 = vmax.xlane.f32.xlu1 %v3523_v62  ;;  %v12979_v42 = vadd.f32 %v9369_v12, %v12675_v41  ;;  %v12982_v62 = vadd.f32 %v12267_v57, %v2150_v38  ;;  %v12994_v12 = vadd.f32 %v12777_v52, %v2015_v21  ;;  %v13000_v17 = vpop.xlane.xlu1 %3386 }
 0x2e2   :  { %16323 = vst [vmem:[#allocation168_spill] sm:$0xff] %v12979_v42  ;;  %16324 = vst [vmem:[#allocation169_spill] sm:$0xff] %v12982_v62  ;;  %v3526_v57 = vsel %vm3354_vm2, %v12979_v42, -inf  ;;  %v3553_v38 = vsel %vm3354_vm2, %v12982_v62, -inf  ;;  %v9406_v42 = vpop.f32.mrf.mxu0 }
 0x2e3   :  { %16326 = vst [vmem:[#allocation171_spill] sm:$0xff] %v12994_v12 }
 0x2e4   :  { %3497 = vmax.xlane.f32.xlu0 %v3496_v10  ;;  %3548 = vmax.xlane.f32.xlu1 %v3547_v8  ;;  %v12991_v10 = vadd.f32 %v9397_v56, %v12297_v55  ;;  %v9378_v8 = vpop.f32.mrf.mxu1  ;;  %v13006_v55 = vadd.f32 %v12330_v11, %v2160_v24  ;;  %v13008_v56 = vpop.xlane.xlu0 %3383 }
 0x2e6   :  { %16325 = vst [vmem:[#allocation170_spill] sm:$0xff] %v12991_v10  ;;  %16328 = vst [vmem:[#allocation173_spill] sm:$0xff] %v13006_v55  ;;  %v3550_v21 = vsel %vm3354_vm2, %v12991_v10, -inf  ;;  %v2025_v62 = vpop.f32.mrf.mxu1 }
 0x2e7   :  { %v13023_v24 = vadd.f32 %v12821_v40, %v2025_v62 }
 0x2e8   :  { %3521 = vmax.xlane.f32.xlu0 %v3520_v35  ;;  %3530 = vmax.xlane.f32.xlu1 %v3529_v33  ;;  %v13003_v33 = vadd.f32 %v9372_v25, %v12722_v58  ;;  %v3535_v35 = vsel %vm3354_vm2, %v12994_v12, -inf  ;;  %v13017_v25 = vld [vmem:[%s15886_s2 + $0x18] sm:$0xff]  ;;  %v9425_v10 = vpop.f32.mrf.mxu1  ;;  %v13031_v12 = vpop.xlane.xlu0 %3407 }
 0x2e9   :  { %v13020_v11 = vadd.f32 %v13017_v25, %v9400_v36  ;;  %16330 = vst [vmem:[#allocation175_spill] sm:$0xff] %v13023_v24  ;;  %v13034_v36 = vadd.f32 %v9375_v30, %v12760_v20 }
 0x2ea   :  { %16327 = vst [vmem:[#allocation172_spill] sm:$0xff] %v13003_v33  ;;  %v2285_v51 = vpop.f32.mrf.mxu1 }
 0x2eb   :  { %16329 = vst [vmem:[#allocation174_spill] sm:$0xff] %v13020_v11  ;;  %16331 = vst [vmem:[#allocation176_spill] sm:$0xff] %v13034_v36  ;;  %v13049_v30 = vadd.f32 %v12427_v61, %v2285_v51 }
 0x2ec   :  { %3527 = vmax.xlane.f32.xlu0 %v3526_v57  ;;  %3554 = vmax.xlane.f32.xlu1 %v3553_v38  ;;  %v13025_v57 = vpop.xlane.xlu1 %3410  ;;  %v3532_v38 = vsel %vm3354_vm2, %v13003_v33, -inf  ;;  %v3556_v33 = vsel %vm3354_vm2, %v13020_v11, -inf  ;;  %v9428_v11 = vpop.f32.mrf.mxu1 }
 0x2ed   :  { %16334 = vst [vmem:[#allocation179_spill] sm:$0xff] %v13049_v30 }
 0x2f0   :  { %3551 = vmax.xlane.f32.xlu0 %v3550_v21  ;;  %3536 = vmax.xlane.f32.xlu1 %v3535_v35  ;;  %v3559_v21 = vsel %vm3354_vm2, %v13006_v55, -inf  ;;  %v2170_v35 = vpop.f32.mrf.mxu0  ;;  %v13039_v49 = vpop.xlane.xlu1 %3392  ;;  %v3541_v55 = vsel %vm3354_vm2, %v13023_v24, -inf }
 0x2f1   :  { %v13037_v62 = vadd.f32 %v12383_v0, %v2170_v35  ;;  %v13051_v0 = vpop.xlane.xlu0 %3389 }
 0x2f2   :  { %v9453_v40 = vpop.f32.mrf.mxu0 }
 0x2f3   :  { %16332 = vst [vmem:[#allocation177_spill] sm:$0xff] %v13037_v62  ;;  %v3565_v35 = vsel %vm3354_vm2, %v13037_v62, -inf }
 0x2f4   :  { %3533 = vmax.xlane.f32.xlu0 %v3532_v38  ;;  %3560 = vmax.xlane.f32.xlu1 %v3559_v21  ;;  %v13046_v38 = vadd.f32 %v9403_v9, %v12302_v39  ;;  %v3538_v21 = vsel %vm3354_vm2, %v13034_v36, -inf  ;;  %v2430_v24 = vpop.f32.mrf.mxu0  ;;  %v13060_v39 = vadd.f32 %v9378_v8, %v12847_v19  ;;  %v3571_v9 = vsel %vm3354_vm2, %v13049_v30, -inf }
 0x2f5   :  { %v13063_v61 = vadd.f32 %v12461_v2, %v2430_v24  ;;  %v13074_v8 = vadd.f32 %v9406_v42, %v12340_v3 }
 0x2f6   :  { %16333 = vst [vmem:[#allocation178_spill] sm:$0xff] %v13046_v38  ;;  %16335 = vst [vmem:[#allocation180_spill] sm:$0xff] %v13060_v39  ;;  %v3562_v51 = vsel %vm3354_vm2, %v13046_v38, -inf  ;;  %v9456_v62 = vpop.f32.mrf.mxu0  ;;  %v3544_v24 = vsel %vm3354_vm2, %v13060_v39, -inf }
 0x2f7   :  { %16336 = vst [vmem:[#allocation181_spill] sm:$0xff] %v13063_v61  ;;  %16337 = vst [vmem:[#allocation182_spill] sm:$0xff] %v13074_v8  ;;  %v3595_v38 = vsel %vm3354_vm2, %v13063_v61, -inf }
 0x2f8   :  { %3557 = vmax.xlane.f32.xlu0 %v3556_v33  ;;  %3542 = vmax.xlane.f32.xlu1 %v3541_v55  ;;  %v13057_v33 = vpop.xlane.xlu1 %3416  ;;  %v2295_v55 = vpop.f32.mrf.mxu1 }
 0x2f9   :  { %v13077_v2 = vadd.f32 %v12494_v13, %v2295_v55  ;;  %v2440_v30 = vpop.f32.mrf.mxu0  ;;  %v3747_v13 = vsub.f32 %v12446_v1, %v12966_v54  ;;  %v3568_v55 = vsel %vm3354_vm2, %v13074_v8, -inf  ;;  %v3755_v1 = vsub.f32 %v12473_v14, %v12984_v45 }
 0x2fa   :  { %v9431_v36 = vpop.f32.mrf.mxu1  ;;  %v13089_v3 = vadd.f32 %v12532_v47, %v2440_v30 }
 0x2fb   :  { %16338 = vst [vmem:[#allocation183_spill] sm:$0xff] %v13077_v2  ;;  %v9459_v61 = vpop.f32.mrf.mxu0 }
 0x2fc   :  { %3539 = vmax.xlane.f32.xlu0 %v3538_v21  ;;  %3566 = vmax.xlane.f32.xlu1 %v3565_v35  ;;  %v13069_v21 = vpop.xlane.xlu0 %3413  ;;  %v13071_v35 = vpop.xlane.xlu1 %3398  ;;  %16340 = vst [vmem:[#allocation185_spill] sm:$0xff] %v13089_v3  ;;  %v3601_v8 = vsel %vm3354_vm2, %v13089_v3, -inf }
 0x300   :  { %3563 = vmax.xlane.f32.xlu0 %v3562_v51  ;;  %3572 = vmax.xlane.f32.xlu1 %v3571_v9  ;;  %v13083_v51 = vpop.xlane.xlu0 %3395  ;;  %v13086_v9 = vadd.f32 %v9425_v10, %v12388_v53  ;;  %v13093_v42 = vpop.xlane.xlu1 %3422  ;;  %v13100_v53 = vadd.f32 %v9453_v40, %v12417_v46  ;;  %v3883_v10 = vmul.f32 1.442695, %v3747_v13  ;;  %v13116_v40 = vadd.f32 %v9428_v11, %v12451_v4 }
 0x301   :  { %v3748_v4 = vsub.f32 %v12402_v32, %v13008_v56  ;;  %v13130_v11 = vadd.f32 %v9456_v62, %v12480_v26  ;;  %v3756_v26 = vsub.f32 %v12433_v28, %v13031_v12  ;;  %v13148_v56 = vadd.f32 %v9431_v36, %v12507_v23 }
 0x302   :  { %16339 = vst [vmem:[#allocation184_spill] sm:$0xff] %v13086_v9  ;;  %16341 = vst [vmem:[#allocation186_spill] sm:$0xff] %v13100_v53  ;;  %v3574_v47 = vsel %vm3354_vm2, %v13086_v9, -inf  ;;  %v3598_v14 = vsel %vm3354_vm2, %v13100_v53, -inf  ;;  %10139 = vpow2.f32 %v3883_v10  ;;  %v3749_v62 = vsub.f32 %v12518_v22, %v13000_v17 }
 0x303   :  { %16343 = vst [vmem:[#allocation188_spill] sm:$0xff] %v13116_v40  ;;  %16345 = vst [vmem:[#allocation190_spill] sm:$0xff] %v13130_v11  ;;  %v3885_v32 = vmul.f32 1.442695, %v3748_v4  ;;  %v3901_v28 = vmul.f32 1.442695, %v3756_v26  ;;  %v13160_v12 = vadd.f32 %v9459_v61, %v12545_v59  ;;  %v3757_v36 = vsub.f32 %v12560_v48, %v13025_v57 }
 0x304   :  { %3545 = vmax.xlane.f32.xlu0 %v3544_v24  ;;  %3596 = vmax.xlane.f32.xlu1 %v3595_v38  ;;  %v3577_v24 = vsel %vm3354_vm2, %v13077_v2, -inf  ;;  %v2305_v38 = vpop.f32.mrf.mxu1  ;;  %v13109_v30 = vpop.xlane.xlu0 %3419  ;;  %16347 = vst [vmem:[#allocation192_spill] sm:$0xff] %v13148_v56  ;;  %v3887_v23 = vmul.f32 1.442695, %v3749_v62 }
 0x305   :  { %v13107_v54 = vadd.f32 %v12557_v29, %v2305_v38  ;;  %v13113_v46 = vpop.xlane.xlu1 %3428  ;;  %v3899_v29 = vmul.f32 1.442695, %v3755_v1  ;;  %v3580_v1 = vsel %vm3354_vm2, %v13116_v40, -inf  ;;  %16349 = vst [vmem:[#allocation194_spill] sm:$0xff] %v13160_v12  ;;  %v3903_v61 = vmul.f32 1.442695, %v3757_v36 }
 0x306   :  { %v3610_v57 = vsel %vm3354_vm2, %v13160_v12, -inf }
 0x307   :  { %16342 = vst [vmem:[#allocation187_spill] sm:$0xff] %v13107_v54  ;;  %v3583_v38 = vsel %vm3354_vm2, %v13107_v54, -inf  ;;  %10141 = vpow2.f32 %v3899_v29 }
 0x308   :  { %3569 = vmax.xlane.f32.xlu0 %v3568_v55  ;;  %3578 = vmax.xlane.f32.xlu1 %v3577_v24  ;;  %v2450_v55 = vpop.f32.mrf.mxu0  ;;  %v9434_v24 = vpop.f32.mrf.mxu1  ;;  %10143 = vpow2.f32 %v3885_v32 }
 0x309   :  { %v13121_v45 = vadd.f32 %v12588_v5, %v2450_v55  ;;  %v13123_v13 = vpop.xlane.xlu0 %3401  ;;  %v13135_v5 = vpop.xlane.xlu1 %3452  ;;  %10145 = vpow2.f32 %v3901_v28  ;;  %v13173_v59 = vadd.f32 %v9434_v24, %v12616_v43  ;;  %v3750_v43 = vsub.f32 %v12467_v15, %v13051_v0 }
 0x30a   :  { %10147 = vpow2.f32 %v3887_v23  ;;  %v3758_v15 = vsub.f32 %v12510_v18, %v13069_v21 }
 0x30b   :  { %16344 = vst [vmem:[#allocation189_spill] sm:$0xff] %v13121_v45  ;;  %v3607_v55 = vsel %vm3354_vm2, %v13121_v45, -inf  ;;  %16350 = vst [vmem:[#allocation195_spill] sm:$0xff] %v13173_v59  ;;  %v3592_v24 = vsel %vm3354_vm2, %v13173_v59, -inf  ;;  %10149 = vpow2.f32 %v3903_v61 }
 0x30c   :  { %3575 = vmax.xlane.f32.xlu0 %v3574_v47  ;;  %3602 = vmax.xlane.f32.xlu1 %v3601_v8  ;;  %v2315_v47 = vpop.f32.mrf.mxu1  ;;  %v9462_v8 = vpop.f32.mrf.mxu0  ;;  %v3905_v18 = vmul.f32 1.442695, %v3758_v15 }
 0x30d   :  { %v13133_v10 = vadd.f32 %v12633_v60, %v2315_v47  ;;  %v3604_v60 = vsel %vm3354_vm2, %v13130_v11, -inf  ;;  %v13157_v4 = vpop.xlane.xlu1 %3434 }
 0x30f   :  { %16346 = vst [vmem:[#allocation191_spill] sm:$0xff] %v13133_v10  ;;  %v3589_v47 = vsel %vm3354_vm2, %v13133_v10, -inf }
 0x310   :  { %3599 = vmax.xlane.f32.xlu0 %v3598_v14  ;;  %3584 = vmax.xlane.f32.xlu1 %v3583_v38  ;;  %v2460_v14 = vpop.f32.mrf.mxu0  ;;  %v13141_v38 = vpop.xlane.xlu0 %3425 }
 0x311   :  { %v13153_v29 = vadd.f32 %v12662_v37, %v2460_v14  ;;  %v3586_v37 = vsel %vm3354_vm2, %v13148_v56, -inf  ;;  %v13175_v48 = vpop.xlane.xlu1 %3458 }
 0x313   :  { %16348 = vst [vmem:[#allocation193_spill] sm:$0xff] %v13153_v29  ;;  %v3613_v17 = vsel %vm3354_vm2, %v13153_v29, -inf }
 0x314   :  { %3581 = vmax.xlane.f32.xlu0 %v3580_v1  ;;  %3608 = vmax.xlane.f32.xlu1 %v3607_v55  ;;  %v13164_v22 = vpop.xlane.xlu0 %3431  ;;  %v13170_v1 = vpop.eup %10139 }
 0x315   :  { %v9481_v55 = vpop.f32.mrf.mxu1  ;;  %v4147_v14 = vsel %vm3354_vm2, %v13170_v1, 0.0  ;;  %v13181_v32 = vpop.eup %10141 }
 0x316   :  { %v4171_v23 = vsel %vm3354_vm2, %v13181_v32, 0.0  ;;  %v13201_v0 = vpop.eup %10143  ;;  %v13231_v15 = vadd.f32 %v9481_v55, %v12675_v41  ;;  %v3752_v41 = vsub.f32 %v12537_v44, %v13083_v51 }
 0x317   :  { %v2575_v26 = vpop.f32.mrf.mxu1  ;;  %v13216_v21 = vpop.eup %10145 }
 0x318   :  { %3605 = vmax.xlane.f32.xlu0 %v3604_v60  ;;  %3590 = vmax.xlane.f32.xlu1 %v3589_v47  ;;  %v9509_v60 = vpop.f32.mrf.mxu0  ;;  %v13183_v62 = vpop.xlane.xlu0 %3455  ;;  %v13190_v47 = vadd.f32 %v9462_v8, %v12644_v27  ;;  %v13193_v28 = vadd.f32 %v12684_v50, %v2575_v26  ;;  %v3751_v27 = vsub.f32 %v12580_v63, %v13039_v49  ;;  %v10636_v50 = vld [vmem:[%s15886_s2] sm:$0xff]  ;;  %v3622_v55 = vsel %vm3354_vm2, %v13231_v15, -inf }
 0x319   :  { %v3759_v49 = vsub.f32 %v12605_v7, %v13057_v33  ;;  %16354 = vst [vmem:[#allocation199_spill] sm:$0xff] %v13231_v15 }
 0x31a   :  { %16351 = vst [vmem:[#allocation196_spill] sm:$0xff] %v13190_v47  ;;  %16352 = vst [vmem:[#allocation197_spill] sm:$0xff] %v13193_v28  ;;  %v2720_v36 = vpop.f32.mrf.mxu0  ;;  %v3891_v63 = vmul.f32 1.442695, %v3751_v27  ;;  %v4174_v27 = vsel %vm3354_vm2, %v13216_v21, 0.0 }
 0x31b   :  { %v13208_v8 = vadd.f32 %v10636_v50, %v2720_v36  ;;  %v9484_v36 = vpop.f32.mrf.mxu1  ;;  %v3907_v7 = vmul.f32 1.442695, %v3759_v49 }
 0x31c   :  { %3587 = vmax.xlane.f32.xlu0 %v3586_v37  ;;  %3614 = vmax.xlane.f32.xlu1 %v3613_v17  ;;  %v13197_v37 = vpop.xlane.xlu1 %3440  ;;  %v3889_v17 = vmul.f32 1.442695, %v3750_v43  ;;  %v13210_v61 = vpop.xlane.xlu0 %3437  ;;  %v4150_v43 = vsel %vm3354_vm2, %v13201_v0, 0.0  ;;  %v13290_v12 = vadd.f32 %v9484_v36, %v12722_v58 }
 0x31d   :  { %16353 = vst [vmem:[#allocation198_spill] sm:$0xff] %v13208_v8 }
 0x31e   :  { %10151 = vpow2.f32 %v3889_v17 }
 0x31f   :  { %10153 = vpow2.f32 %v3905_v18  ;;  %v10637_v18 = vld [vmem:[%s15886_s2 + $0x8] sm:$0xff] }
 0x320   :  { %3611 = vmax.xlane.f32.xlu0 %v3610_v57  ;;  %4148 = vadd.xlane.f32.xlu1 %v4147_v14  ;;  %v3616_v57 = vsel %vm3354_vm2, %v13190_v47, -inf  ;;  %v3619_v14 = vsel %vm3354_vm2, %v13193_v28, -inf  ;;  %v13220_v26 = vpop.xlane.xlu1 %3464  ;;  %v13228_v17 = vpop.xlane.xlu0 %3461  ;;  %10155 = vpow2.f32 %v3891_v63  ;;  %v13246_v63 = vadd.f32 %v10637_v18, %v9509_v60 }
 0x321   :  { %v3760_v60 = vsub.f32 %v12574_v34, %v13109_v30 }
 0x322   :  { %16355 = vst [vmem:[#allocation200_spill] sm:$0xff] %v13246_v63  ;;  %v3646_v18 = vsel %vm3354_vm2, %v13246_v63, -inf }
 0x324   :  { %3593 = vmax.xlane.f32.xlu0 %v3592_v24  ;;  %4172 = vadd.xlane.f32.xlu1 %v4171_v23  ;;  %v3643_v24 = vsel %vm3354_vm2, %v13208_v8, -inf  ;;  %v13226_v23 = vpop.eup %10147 }
 0x325   :  { %v4153_v50 = vsel %vm3354_vm2, %v13226_v23, 0.0 }
 0x328   :  { %3617 = vmax.xlane.f32.xlu0 %v3616_v57  ;;  %3620 = vmax.xlane.f32.xlu1 %v3619_v14  ;;  %v13237_v57 = vpop.eup %10149  ;;  %v2585_v14 = vpop.f32.mrf.mxu1 }
 0x329   :  { %v13249_v49 = vadd.f32 %v12739_v31, %v2585_v14  ;;  %v4177_v44 = vsel %vm3354_vm2, %v13237_v57, 0.0  ;;  %v10638_v31 = vld [vmem:[%s15886_s2 + $0x10] sm:$0xff] }
 0x32a   :  { %v13284_v47 = vpop.f32.mrf.mxu1 }
 0x32b   :  { %16356 = vst [vmem:[#allocation201_spill] sm:$0xff] %v13249_v49 }
 0x32c   :  { %4151 = vadd.xlane.f32.xlu0 %v4150_v43  ;;  %3644 = vmax.xlane.f32.xlu1 %v3643_v24  ;;  %v9512_v43 = vpop.f32.mrf.mxu0  ;;  %v13251_v24 = vpop.xlane.xlu0 %3443 }
 0x32e   :  { %v2730_v51 = vpop.f32.mrf.mxu0 }
 0x330   :  { %v4125_v33 = vpop.xlane.xlu1 %4124  ;;  %4175 = vadd.xlane.f32.xlu0 %v4174_v27  ;;  %4154 = vadd.xlane.f32.xlu1 %v4153_v50  ;;  %v13257_v27 = vpop.eup %10151  ;;  %v13264_v50 = vadd.f32 %v10638_v31, %v2730_v51  ;;  %v3909_v51 = vmul.f32 1.442695, %v3760_v60  ;;  %v16361_v60 = vld [vmem:[#allocation139_spill] sm:$0xff] }
 0x331   :  { %10157 = vrcp.f32 %v4125_v33  ;;  %v13274_v34 = vpop.xlane.xlu0 %3467  ;;  %v13276_v30 = vpop.eup %10153  ;;  %v4156_v8 = vsel %vm3354_vm2, %v13257_v27, 0.0 }
 0x332   :  { %10159 = vpow2.f32 %v3907_v7  ;;  %v3893_v7 = vmul.f32 1.442695, %v3752_v41  ;;  %16357 = vst [vmem:[#allocation202_spill] sm:$0xff] %v13264_v50  ;;  %v16358_v41 = vld [vmem:[#allocation113_spill] sm:$0xff]  ;;  %v3649_v63 = vsel %vm3354_vm2, %v13264_v50, -inf  ;;  %v13282_v29 = vpop.eup %10155  ;;  %v4180_v50 = vsel %vm3354_vm2, %v13276_v30, 0.0 }
 0x333   :  { %16359 = vst [vmem:[#allocation113_spill] sm:$0xff] %v13276_v30 }
 0x334   :  { %v13253_v33 = vpop.xlane.xlu1 %3446  ;;  %3623 = vmax.xlane.f32.xlu0 %v3622_v55  ;;  %4178 = vadd.xlane.f32.xlu1 %v4177_v44  ;;  %v3625_v55 = vsel %vm3354_vm2, %v13249_v49, -inf  ;;  %v3753_v44 = vsub.f32 %v16358_v41, %v13071_v35  ;;  %10161 = vpow2.f32 %v3893_v7 }
 0x336   :  { %v3895_v35 = vmul.f32 1.442695, %v3753_v44  ;;  %v4159_v44 = vsel %vm3354_vm2, %v13282_v29, 0.0 }
 0x338   :  { %v13266_v14 = vpop.xlane.xlu1 %3470  ;;  %3647 = vmax.xlane.f32.xlu0 %v3646_v18  ;;  %3626 = vmax.xlane.f32.xlu1 %v3625_v55  ;;  %v16360_v18 = vld [vmem:[#allocation115_spill] sm:$0xff] }
 0x339   :  { %v3761_v55 = vsub.f32 %v16360_v18, %v13093_v42  ;;  %16362 = vst [vmem:[#allocation115_spill] sm:$0xff] %v13290_v12  ;;  %v2595_v42 = vpop.f32.mrf.mxu1  ;;  %v13306_v18 = vadd.f32 %v13017_v25, %v9512_v43 }
 0x33c   :  { %v4131_v31 = vpop.xlane.xlu1 %4130  ;;  %4157 = vadd.xlane.f32.xlu0 %v4156_v8  ;;  %3650 = vmax.xlane.f32.xlu1 %v3649_v63  ;;  %v13298_v8 = vpop.f32.mrf.mxu0  ;;  %v3911_v63 = vmul.f32 1.442695, %v3761_v55 }
 0x33d   :  { %10163 = vrcp.f32 %v4131_v31  ;;  %v4128_v7 = vpop.xlane.xlu0 %4127 }
 0x33e   :  { %v10158_v41 = vpop.eup %10157  ;;  %10165 = vrcp.f32 %v4128_v7  ;;  %v2740_v55 = vpop.f32.mrf.mxu0 }
 0x33f   :  { %v4635_v45 = vmul.f32 %v10158_v41, %v16361_v60  ;;  %10167 = vpow2.f32 %v3909_v51  ;;  %v13296_v49 = vpop.eup %10159  ;;  %v16364_v51 = vld [vmem:[#allocation110_spill] sm:$0xff]  ;;  %v13309_v41 = vadd.f32 %v12777_v52, %v2595_v42 }
 0x340   :  { %16363 = vst [vmem:[#allocation139_spill] sm:$0xff] %v13296_v49  ;;  %10169 = vpow2.f32 %v3895_v35  ;;  %4181 = vadd.xlane.f32.xlu0 %v4180_v50  ;;  %4160 = vadd.xlane.f32.xlu1 %v4159_v44  ;;  %v3754_v31 = vsub.f32 %v16364_v51, %v13123_v13  ;;  %16365 = vst [vmem:[#allocation110_spill] sm:$0xff] %v13306_v18  ;;  %v3628_v35 = vsel %vm3354_vm2, %v13290_v12, -inf  ;;  %v4183_v50 = vsel %vm3354_vm2, %v13296_v49, 0.0  ;;  %v16367_v13 = vld [vmem:[#allocation114_spill] sm:$0xff] }
 0x341   :  { %9619 = vmatprep.mubr.msk.f32.mxu0 %vm3354_vm2, %v4635_v45  ;;  %v13303_v58 = vpop.xlane.xlu0 %3449  ;;  %v4137_v36 = vpop.xlane.xlu1 %4136  ;;  %16366 = vst [vmem:[#allocation203_spill] sm:$0xff] %v13309_v41  ;;  %10171 = vpow2.f32 %v3911_v63  ;;  %v3762_v7 = vsub.f32 %v16367_v13, %v13141_v38  ;;  %v10639_v52 = vld [vmem:[%s15886_s2 + $0x20] sm:$0xff]  ;;  %v3652_v44 = vsel %vm3354_vm2, %v13306_v18, -inf  ;;  %v3631_v42 = vsel %vm3354_vm2, %v13309_v41, -inf }
 0x342   :  { %v3897_v45 = vmul.f32 1.442695, %v3754_v31  ;;  %v13322_v43 = vadd.f32 %v10639_v52, %v2740_v55  ;;  %v13328_v63 = vpop.eup %10161  ;;  %v16369_v51 = vld [vmem:[#allocation118_spill] sm:$0xff] }
 0x343   :  { %v3764_v38 = vsub.f32 %v16369_v51, %v13164_v22  ;;  %v3913_v31 = vmul.f32 1.442695, %v3762_v7  ;;  %v4162_v52 = vsel %vm3354_vm2, %v13328_v63, 0.0  ;;  %v13340_v22 = vpop.f32.mrf.mxu1 }
 0x344   :  { %3629 = vmax.xlane.f32.xlu0 %v3628_v35  ;;  %4184 = vadd.xlane.f32.xlu1 %v4183_v50  ;;  %16368 = vst [vmem:[#allocation114_spill] sm:$0xff] %v13322_v43  ;;  %10173 = vpow2.f32 %v3897_v45  ;;  %v3655_v18 = vsel %vm3354_vm2, %v13322_v43, -inf  ;;  %v16371_v45 = vld [vmem:[#allocation124_spill] sm:$0xff]  ;;  %v13435_v53 = vadd.f32 %v13340_v22, %v12847_v19  ;;  %v16395_v22 = vld [vmem:[#allocation151_spill] sm:$0xff] }
 0x345   :  { %v13317_v60 = vpop.xlane.xlu0 %3473  ;;  %v4143_v25 = vpop.xlane.xlu1 %4142  ;;  %10175 = vrcp.f32 %v4137_v36  ;;  %v3766_v7 = vsub.f32 %v16371_v45, %v13210_v61  ;;  %v16373_v61 = vld [vmem:[#allocation134_spill] sm:$0xff]  ;;  %v16378_v45 = vld [vmem:[#allocation119_spill] sm:$0xff] }
 0x348   :  { %3653 = vmax.xlane.f32.xlu0 %v3652_v44  ;;  %3632 = vmax.xlane.f32.xlu1 %v3631_v42  ;;  %v3917_v44 = vmul.f32 1.442695, %v3764_v38  ;;  %v13353_v38 = vadd.f32 %v13284_v47, %v12760_v20 }
 0x349   :  { %v4134_v35 = vpop.xlane.xlu0 %4133  ;;  %v13332_v50 = vpop.xlane.xlu1 %3476 }
 0x34a   :  { %v10164_v55 = vpop.eup %10163  ;;  %10177 = vrcp.f32 %v4134_v35  ;;  %16372 = vst [vmem:[#allocation124_spill] sm:$0xff] %v13353_v38 }
 0x34b   :  { %v10166_v13 = vpop.eup %10165  ;;  %10179 = vpow2.f32 %v3913_v31  ;;  %v4637_v43 = vmul.f32 %v10164_v55, %v12841_v6  ;;  %v13359_v31 = vpop.f32.mrf.mxu0  ;;  %v3921_v6 = vmul.f32 1.442695, %v3766_v7  ;;  %v3763_v7 = vsub.f32 %v16378_v45, %v13113_v46 }
 0x34c   :  { %v13338_v41 = vpop.eup %10167  ;;  %v4636_v42 = vmul.f32 %v10166_v13, %v12851_v16  ;;  %4163 = vadd.xlane.f32.xlu0 %v4162_v52  ;;  %3656 = vmax.xlane.f32.xlu1 %v3655_v18  ;;  %10181 = vrcp.f32 %v4143_v25  ;;  %v2605_v18 = vpop.f32.mrf.mxu1  ;;  %v16374_v25 = vld [vmem:[#allocation137_spill] sm:$0xff]  ;;  %v10640_v52 = vld [vmem:[%s15886_s2 + $0x28] sm:$0xff] }
 0x34d   :  { %16370 = vst [vmem:[#allocation118_spill] sm:$0xff] %v13338_v41  ;;  %v13345_v36 = vpop.eup %10169  ;;  %v4140_v51 = vpop.xlane.xlu0 %4139  ;;  %v4186_v16 = vsel %vm3354_vm2, %v13338_v41, 0.0  ;;  %v16376_v13 = vld [vmem:[#allocation133_spill] sm:$0xff] }
 0x34e   :  { %v13347_v35 = vpop.xlane.xlu1 %3500  ;;  %9620 = vmatmul.mubr.msk.f32.vlgmr.msra.gmra.mxu0 %vm3354_vm2, %v4636_v42  ;;  %10183 = vrcp.f32 %v4140_v51  ;;  %v4165_v20 = vsel %vm3354_vm2, %v13345_v36, 0.0  ;;  %v13364_v47 = vpop.eup %10171  ;;  %v3634_v42 = vsel %vm3354_vm2, %v13353_v38, -inf  ;;  %v16379_v51 = vld [vmem:[#allocation138_spill] sm:$0xff]  ;;  %v16385_v38 = vld [vmem:[#allocation135_spill] sm:$0xff] }
 0x34f   :  { %9632 = vmatpush3.msra.mxu0 %v16373_v61  ;;  %9622 = vmatprep.mubr.msk.f32.mxu0 %vm3354_vm2, %v4637_v43  ;;  %10185 = vpow2.f32 %v3917_v44  ;;  %16375 = vst [vmem:[#allocation134_spill] sm:$0xff] %v13364_v47  ;;  %v13374_v44 = vadd.f32 %v10640_v52, %v13298_v8  ;;  %v13382_v61 = vadd.f32 %v16379_v51, %v2605_v18  ;;  %v4189_v8 = vsel %vm3354_vm2, %v13364_v47, 0.0  ;;  %v16383_v18 = vld [vmem:[#allocation131_spill] sm:$0xff]  ;;  %v10641_v51 = vld [vmem:[%s15886_s2 + $0x30] sm:$0xff] }
 0x350   :  { %9633 = vmatprep.subr.mxu0 %v16374_v25  ;;  %4187 = vadd.xlane.f32.xlu0 %v4186_v16  ;;  %v2750_v16 = vpop.f32.mrf.mxu0  ;;  %v3915_v52 = vmul.f32 1.442695, %v3763_v7  ;;  %16392 = vst [vmem:[#allocation135_spill] sm:$0xff] %v13435_v53 }
 0x351   :  { %9634 = vmatpush3.msra.mxu0 %v16374_v25  ;;  %4166 = vadd.xlane.f32.xlu1 %v4165_v20  ;;  %v4146_v43 = vpop.xlane.xlu0 %4145  ;;  %16377 = vst [vmem:[#allocation137_spill] sm:$0xff] %v13374_v44  ;;  %16380 = vst [vmem:[#allocation133_spill] sm:$0xff] %v13382_v61  ;;  %v13384_v25 = vpop.f32.mrf.mxu1  ;;  %v16381_v20 = vld [vmem:[#allocation136_spill] sm:$0xff]  ;;  %v3658_v45 = vsel %vm3354_vm2, %v13374_v44, -inf  ;;  %v3637_v12 = vsel %vm3354_vm2, %v13382_v61, -inf  ;;  %v16386_v44 = vld [vmem:[#allocation147_spill] sm:$0xff] }
 0x352   :  { %v13367_v55 = vpop.xlane.xlu1 %3482  ;;  %9635 = vmatprep.subr.mxu0 %v16376_v13  ;;  %10187 = vrcp.f32 %v4146_v43  ;;  %v9565_v10 = vpop.f32.mrf.mxu0 }
 0x353   :  { %9636 = vmatpush3.msra.mxu0 %v16376_v13  ;;  %10189 = vpow2.f32 %v3921_v6  ;;  %v13394_v13 = vpop.eup %10173 }
 0x354   :  { %9637 = vmatprep.subr.mxu0 %v16381_v20  ;;  %3635 = vmax.xlane.f32.xlu0 %v3634_v42  ;;  %v10176_v6 = vpop.eup %10175  ;;  %10191 = vpow2.f32 %v3915_v52 }
 0x355   :  { %9638 = vmatpush3.msra.mxu0 %v16381_v20  ;;  %4190 = vadd.xlane.f32.xlu1 %v4189_v8  ;;  %v13390_v46 = vpop.xlane.xlu0 %3479  ;;  %v13403_v20 = vadd.f32 %v10641_v51, %v2750_v16  ;;  %v2865_v8 = vpop.f32.mrf.mxu1  ;;  %v16388_v16 = vld [vmem:[#allocation143_spill] sm:$0xff] }
 0x356   :  { %v13392_v43 = vpop.xlane.xlu1 %3506  ;;  %9639 = vmatprep.subr.mxu0 %v16383_v18  ;;  %v4639_v51 = vmul.f32 %v10176_v6, %v16388_v16  ;;  %v16391_v16 = vld [vmem:[#allocation145_spill] sm:$0xff] }
 0x357   :  { %16382 = vst [vmem:[#allocation119_spill] sm:$0xff] %v13392_v43  ;;  %9640 = vmatpush3.msra.mxu0 %v16383_v18  ;;  %v10178_v42 = vpop.eup %10177  ;;  %16384 = vst [vmem:[#allocation138_spill] sm:$0xff] %v13403_v20 }
 0x358   :  { %9641 = vmatprep.subr.mxu0 %v16385_v38  ;;  %3659 = vmax.xlane.f32.xlu0 %v3658_v45  ;;  %v4638_v3 = vmul.f32 %v10178_v42, %v16386_v44  ;;  %v13414_v11 = vpop.eup %10179  ;;  %v4168_v45 = vsel %vm3354_vm2, %v13394_v13, 0.0 }
 0x359   :  { %9642 = vmatpush3.msra.mxu0 %v16385_v38  ;;  %3638 = vmax.xlane.f32.xlu1 %v3637_v12  ;;  %v13409_v7 = vpop.xlane.xlu0 %3503  ;;  %16387 = vst [vmem:[#allocation136_spill] sm:$0xff] %v13414_v11  ;;  %v10182_v28 = vpop.eup %10181  ;;  %v3661_v12 = vsel %vm3354_vm2, %v13403_v20, -inf }
 0x35a   :  { %v13411_v18 = vpop.xlane.xlu1 %3488  ;;  %9623 = vmatmul.mubr.msk.f32.gmra.mxu0 %vm3354_vm2, %v4638_v3  ;;  %v13420_v38 = vpop.f32.mrf.mxu1  ;;  %v16390_v3 = vld [vmem:[#allocation149_spill] sm:$0xff]  ;;  %v4641_v15 = vmul.f32 %v10182_v28, %v16391_v16 }
 0x35b   :  { %v10184_v61 = vpop.eup %10183  ;;  %9625 = vmatprep.mubr.msk.f32.mxu0 %vm3354_vm2, %v4639_v51  ;;  %v16393_v51 = vld [vmem:[#allocation125_spill] sm:$0xff] }
 0x35c   :  { %4169 = vadd.xlane.f32.xlu0 %v4168_v45  ;;  %v13425_v44 = vpop.eup %10185  ;;  %v4640_v42 = vmul.f32 %v10184_v61, %v16390_v3  ;;  %v3765_v45 = vsub.f32 %v16393_v51, %v13157_v4  ;;  %v2875_v59 = vpop.f32.mrf.mxu1  ;;  %v10642_v16 = vld [vmem:[%s15886_s2 + $0x38] sm:$0xff] }
 0x35d   :  { %3662 = vmax.xlane.f32.xlu1 %v3661_v12  ;;  %v13427_v6 = vpop.xlane.xlu0 %3485  ;;  %v4192_v12 = vsel %vm3354_vm2, %v13414_v11, 0.0  ;;  %v4198_v28 = vsel %vm3354_vm2, %v13425_v44, 0.0 }
 0x35e   :  { %v13429_v52 = vpop.xlane.xlu1 %3512  ;;  %9626 = vmatmul.mubr.msk.f32.gmra.mxu0 %vm3354_vm2, %v4640_v42  ;;  %v13452_v42 = vpop.f32.mrf.mxu1  ;;  %v3919_v51 = vmul.f32 1.442695, %v3765_v45 }
 0x35f   :  { %16389 = vst [vmem:[#allocation131_spill] sm:$0xff] %v13429_v52  ;;  %v10188_v20 = vpop.eup %10187  ;;  %9628 = vmatprep.mubr.msk.f32.mxu0 %vm3354_vm2, %v4641_v15  ;;  %v13458_v15 = vadd.f32 %v10642_v16, %v13359_v31 }
 0x360   :  { %4193 = vadd.xlane.f32.xlu0 %v4192_v12  ;;  %v13445_v61 = vpop.eup %10189  ;;  %v4642_v3 = vmul.f32 %v10188_v20, %v16395_v22  ;;  %v3640_v12 = vsel %vm3354_vm2, %v13435_v53, -inf  ;;  %v3010_v22 = vpop.f32.mrf.mxu0  ;;  %10193 = vpow2.f32 %v3919_v51 }
 0x361   :  { %4199 = vadd.xlane.f32.xlu1 %v4198_v28  ;;  %v13447_v19 = vpop.xlane.xlu0 %3509  ;;  %16396 = vst [vmem:[#allocation143_spill] sm:$0xff] %v13458_v15  ;;  %v10643_v28 = vld [vmem:[%s15886_s2 + $0x40] sm:$0xff]  ;;  %v4204_v54 = vsel %vm3354_vm2, %v13445_v61, 0.0  ;;  %v3664_v16 = vsel %vm3354_vm2, %v13458_v15, -inf  ;;  %v13476_v53 = vpop.eup %10191  ;;  %v10645_v15 = vld [vmem:[%s15886_s2 + $0x48] sm:$0xff] }
 0x362   :  { %16394 = vst [vmem:[#allocation147_spill] sm:$0xff] %v13447_v19  ;;  %v13449_v4 = vpop.xlane.xlu1 %3494  ;;  %9629 = vmatmul.mubr.msk.f32.gmra.mxu0 %vm3354_vm2, %v4642_v3  ;;  %v13466_v20 = vadd.f32 %v10643_v28, %v2865_v8  ;;  %v2885_v3 = vpop.f32.mrf.mxu1  ;;  %v10644_v8 = vld [vmem:[%s15886_s2 + $0x80] sm:$0xff]  ;;  %v13495_v40 = vadd.f32 %v10645_v15, %v13384_v25  ;;  %v10647_v15 = vld [vmem:[%s15886_s2 + $0x88] sm:$0xff] }
 0x363   :  { %v9568_v28 = vpop.f32.mrf.mxu0 }
 0x364   :  { %16397 = vst [vmem:[#allocation149_spill] sm:$0xff] %v13466_v20  ;;  %3641 = vmax.xlane.f32.xlu0 %v3640_v12  ;;  %v13481_v12 = vadd.f32 %v10644_v8, %v3010_v22  ;;  %v13483_v56 = vpop.f32.mrf.mxu1  ;;  %16401 = vst [vmem:[#allocation204_spill] sm:$0xff] %v13495_v40  ;;  %v4195_v22 = vsel %vm3354_vm2, %v13476_v53, 0.0 }
 0x365   :  { %4205 = vadd.xlane.f32.xlu1 %v4204_v54  ;;  %v13470_v31 = vpop.xlane.xlu0 %3491  ;;  %v3667_v54 = vsel %vm3354_vm2, %v13466_v20, -inf }
 0x366   :  { %v13472_v45 = vpop.xlane.xlu1 %3518  ;;  %16399 = vst [vmem:[#allocation125_spill] sm:$0xff] %v13481_v12  ;;  %v2895_v20 = vpop.f32.mrf.mxu1  ;;  %v3691_v9 = vsel %vm3354_vm2, %v13481_v12, -inf }
 0x367   :  { %16398 = vst [vmem:[#allocation145_spill] sm:$0xff] %v13472_v45  ;;  %v13513_v45 = vadd.f32 %v10647_v15, %v9565_v10 }
 0x368   :  { %3665 = vmax.xlane.f32.xlu0 %v3664_v16  ;;  %v10646_v16 = vld [vmem:[%s15886_s2 + $0x50] sm:$0xff]  ;;  %v13522_v12 = vpop.f32.mrf.mxu1 }
 0x369   :  { %3668 = vmax.xlane.f32.xlu1 %v3667_v54  ;;  %v13487_v51 = vpop.xlane.xlu0 %3515  ;;  %v13502_v8 = vadd.f32 %v10646_v16, %v2875_v59  ;;  %v3020_v54 = vpop.f32.mrf.mxu0  ;;  %16404 = vst [vmem:[#allocation207_spill] sm:$0xff] %v13513_v45  ;;  %v3670_v59 = vsel %vm3354_vm2, %v13495_v40, -inf  ;;  %v3694_v15 = vsel %vm3354_vm2, %v13513_v45, -inf  ;;  %v10650_v45 = vld [vmem:[%s15886_s2 + $0x58] sm:$0xff] }
 0x36a   :  { %16400 = vst [vmem:[#allocation151_spill] sm:$0xff] %v13487_v51  ;;  %v13489_v2 = vpop.xlane.xlu1 %3524  ;;  %v3155_v51 = vpop.f32.mrf.mxu1  ;;  %v13549_v11 = vadd.f32 %v10650_v45, %v13420_v38  ;;  %v10652_v45 = vld [vmem:[%s15886_s2 + $0x98] sm:$0xff] }
 0x36b   :  { %16402 = vst [vmem:[#allocation205_spill] sm:$0xff] %v13502_v8  ;;  %v13569_v47 = vadd.f32 %v10652_v45, %v9568_v28  ;;  %v10654_v45 = vld [vmem:[%s15886_s2 + $0x68] sm:$0xff] }
 0x36c   :  { %4196 = vadd.xlane.f32.xlu0 %v4195_v22  ;;  %v10648_v22 = vld [vmem:[%s15886_s2 + $0x90] sm:$0xff]  ;;  %16410 = vst [vmem:[#allocation213_spill] sm:$0xff] %v13549_v11 }
 0x36d   :  { %3692 = vmax.xlane.f32.xlu1 %v3691_v9  ;;  %v13506_v39 = vpop.xlane.xlu0 %3497  ;;  %v13520_v16 = vadd.f32 %v10648_v22, %v3020_v54  ;;  %v9571_v9 = vpop.f32.mrf.mxu0  ;;  %v10649_v54 = vld [vmem:[%s15886_s2 + $0x60] sm:$0xff]  ;;  %16414 = vst [vmem:[#allocation217_spill] sm:$0xff] %v13569_v47 }
 0x36e   :  { %v13508_v25 = vpop.xlane.xlu1 %3548  ;;  %v13532_v40 = vpop.eup %10193  ;;  %v13537_v22 = vadd.f32 %v10649_v54, %v2885_v3 }
 0x36f   :  { %16403 = vst [vmem:[#allocation206_spill] sm:$0xff] %v13508_v25  ;;  %16405 = vst [vmem:[#allocation208_spill] sm:$0xff] %v13520_v16  ;;  %v3673_v25 = vsel %vm3354_vm2, %v13502_v8, -inf  ;;  %v4201_v3 = vsel %vm3354_vm2, %v13532_v40, 0.0 }
 0x370   :  { %3671 = vmax.xlane.f32.xlu0 %v3670_v59  ;;  %16408 = vst [vmem:[#allocation211_spill] sm:$0xff] %v13537_v22  ;;  %v3030_v59 = vpop.f32.mrf.mxu0 }
 0x371   :  { %3674 = vmax.xlane.f32.xlu1 %v3673_v25  ;;  %v13526_v52 = vpop.xlane.xlu0 %3521  ;;  %v3697_v25 = vsel %vm3354_vm2, %v13520_v16, -inf  ;;  %v13558_v16 = vpop.f32.mrf.mxu1 }
 0x372   :  { %16406 = vst [vmem:[#allocation209_spill] sm:$0xff] %v13526_v52  ;;  %v13528_v10 = vpop.xlane.xlu1 %3530 }
 0x373   :  { %16407 = vst [vmem:[#allocation210_spill] sm:$0xff] %v13528_v10 }
 0x374   :  { %3695 = vmax.xlane.f32.xlu0 %v3694_v15  ;;  %v10651_v15 = vld [vmem:[%s15886_s2 + $0xa0] sm:$0xff] }
 0x375   :  { %3698 = vmax.xlane.f32.xlu1 %v3697_v25  ;;  %v13541_v8 = vpop.xlane.xlu0 %3527  ;;  %v13556_v54 = vadd.f32 %v10651_v15, %v3030_v59  ;;  %v9574_v25 = vpop.f32.mrf.mxu0  ;;  %v3676_v59 = vsel %vm3354_vm2, %v13549_v11, -inf  ;;  %v13588_v11 = vadd.f32 %v10654_v45, %v13452_v42 }
 0x376   :  { %v13543_v52 = vpop.xlane.xlu1 %3554 }
 0x377   :  { %16409 = vst [vmem:[#allocation212_spill] sm:$0xff] %v13543_v52  ;;  %16411 = vst [vmem:[#allocation214_spill] sm:$0xff] %v13556_v54  ;;  %v3679_v52 = vsel %vm3354_vm2, %v13537_v22, -inf  ;;  %v3165_v22 = vpop.f32.mrf.mxu1 }
 0x378   :  { %4202 = vadd.xlane.f32.xlu0 %v4201_v3  ;;  %v10653_v3 = vld [vmem:[%s15886_s2 + $0x70] sm:$0xff]  ;;  %16418 = vst [vmem:[#allocation221_spill] sm:$0xff] %v13588_v11 }
 0x379   :  { %3680 = vmax.xlane.f32.xlu1 %v3679_v52  ;;  %v13562_v10 = vpop.xlane.xlu0 %3551  ;;  %v13576_v15 = vadd.f32 %v10653_v3, %v2895_v20  ;;  %v3040_v52 = vpop.f32.mrf.mxu0  ;;  %v3700_v20 = vsel %vm3354_vm2, %v13569_v47, -inf }
 0x37a   :  { %16412 = vst [vmem:[#allocation215_spill] sm:$0xff] %v13562_v10  ;;  %v13564_v38 = vpop.xlane.xlu1 %3536  ;;  %v3703_v10 = vsel %vm3354_vm2, %v13556_v54, -inf }
 0x37b   :  { %16413 = vst [vmem:[#allocation216_spill] sm:$0xff] %v13564_v38  ;;  %16415 = vst [vmem:[#allocation218_spill] sm:$0xff] %v13576_v15 }
 0x37c   :  { %3677 = vmax.xlane.f32.xlu0 %v3676_v59  ;;  %v16419_v59 = vld [vmem:[#allocation128_spill] sm:$0xff] }
 0x37d   :  { %3704 = vmax.xlane.f32.xlu1 %v3703_v10  ;;  %v13580_v38 = vpop.xlane.xlu0 %3533  ;;  %v3768_v3 = vsub.f32 %v16419_v59, %v13251_v24  ;;  %v10655_v10 = vld [vmem:[%s15886_s2 + $0xb0] sm:$0xff]  ;;  %v10656_v24 = vld [vmem:[%s15886_s2 + $0xa8] sm:$0xff] }
 0x37e   :  { %16416 = vst [vmem:[#allocation219_spill] sm:$0xff] %v13580_v38  ;;  %v13582_v28 = vpop.xlane.xlu1 %3560  ;;  %v13597_v54 = vadd.f32 %v10655_v10, %v3040_v52  ;;  %v3685_v38 = vsel %vm3354_vm2, %v13576_v15, -inf  ;;  %v13610_v59 = vadd.f32 %v10656_v24, %v9571_v9  ;;  %v3682_v52 = vsel %vm3354_vm2, %v13588_v11, -inf }
 0x37f   :  { %16417 = vst [vmem:[#allocation220_spill] sm:$0xff] %v13582_v28  ;;  %v13599_v28 = vpop.f32.mrf.mxu1  ;;  %v3925_v10 = vmul.f32 1.442695, %v3768_v3  ;;  %v10658_v3 = vld [vmem:[%s15886_s2 + $0x78] sm:$0xff] }
 0x380   :  { %16420 = vst [vmem:[#allocation128_spill] sm:$0xff] %v13597_v54  ;;  %3701 = vmax.xlane.f32.xlu0 %v3700_v20  ;;  %16423 = vst [vmem:[#allocation224_spill] sm:$0xff] %v13610_v59  ;;  %v10657_v20 = vld [vmem:[%s15886_s2 + $0xc0] sm:$0xff]  ;;  %v3709_v15 = vsel %vm3354_vm2, %v13597_v54, -inf  ;;  %v13629_v24 = vadd.f32 %v10658_v3, %v13483_v56  ;;  %v16431_v3 = vld [vmem:[#allocation129_spill] sm:$0xff] }
 0x381   :  { %3686 = vmax.xlane.f32.xlu1 %v3685_v38  ;;  %v13603_v42 = vpop.xlane.xlu0 %3557  ;;  %v13617_v47 = vadd.f32 %v10657_v20, %v3155_v51  ;;  %v3175_v38 = vpop.f32.mrf.mxu1  ;;  %v3706_v51 = vsel %vm3354_vm2, %v13610_v59, -inf  ;;  %10195 = vpow2.f32 %v3925_v10  ;;  %v3767_v59 = vsub.f32 %v16431_v3, %v13197_v37  ;;  %v10660_v10 = vld [vmem:[%s15886_s2 + $0xb8] sm:$0xff] }
 0x382   :  { %16421 = vst [vmem:[#allocation222_spill] sm:$0xff] %v13603_v42  ;;  %v13605_v45 = vpop.xlane.xlu1 %3542  ;;  %16427 = vst [vmem:[#allocation228_spill] sm:$0xff] %v13629_v24 }
 0x383   :  { %16422 = vst [vmem:[#allocation223_spill] sm:$0xff] %v13605_v45  ;;  %16424 = vst [vmem:[#allocation225_spill] sm:$0xff] %v13617_v47  ;;  %v9602_v20 = vpop.f32.mrf.mxu1  ;;  %v3715_v54 = vsel %vm3354_vm2, %v13617_v47, -inf  ;;  %v16479_v45 = vld [vmem:[#allocation35_spill] sm:$0xff] }
 0x384   :  { %3683 = vmax.xlane.f32.xlu0 %v3682_v52  ;;  %v10659_v52 = vld [vmem:[%s15886_s2 + $0xd0] sm:$0xff] }
 0x385   :  { %3710 = vmax.xlane.f32.xlu1 %v3709_v15  ;;  %v13621_v42 = vpop.xlane.xlu0 %3539  ;;  %v13636_v15 = vadd.f32 %v10659_v52, %v3165_v22  ;;  %v3688_v22 = vsel %vm3354_vm2, %v13629_v24, -inf  ;;  %v3185_v52 = vpop.f32.mrf.mxu1 }
 0x386   :  { %16425 = vst [vmem:[#allocation226_spill] sm:$0xff] %v13621_v42  ;;  %v13623_v9 = vpop.xlane.xlu1 %3566 }
 0x387   :  { %16426 = vst [vmem:[#allocation227_spill] sm:$0xff] %v13623_v9  ;;  %16428 = vst [vmem:[#allocation229_spill] sm:$0xff] %v13636_v15  ;;  %v13649_v9 = vadd.f32 %v10660_v10, %v9574_v25  ;;  %v3721_v37 = vsel %vm3354_vm2, %v13636_v15, -inf  ;;  %v3923_v25 = vmul.f32 1.442695, %v3767_v59  ;;  %v10662_v10 = vld [vmem:[%s15886_s2 + $0xc8] sm:$0xff] }
 0x388   :  { %3707 = vmax.xlane.f32.xlu0 %v3706_v51  ;;  %v13668_v24 = vadd.f32 %v10662_v10, %v13522_v12  ;;  %v10664_v12 = vld [vmem:[%s15886_s2 + $0xd8] sm:$0xff] }
 0x389   :  { %3716 = vmax.xlane.f32.xlu1 %v3715_v54  ;;  %v13640_v11 = vpop.xlane.xlu0 %3563  ;;  %16432 = vst [vmem:[#allocation129_spill] sm:$0xff] %v13649_v9  ;;  %v10661_v54 = vld [vmem:[%s15886_s2 + $0xe0] sm:$0xff]  ;;  %10197 = vpow2.f32 %v3923_v25  ;;  %v13687_v10 = vadd.f32 %v10664_v12, %v13558_v16 }
 0x38a   :  { %16429 = vst [vmem:[#allocation230_spill] sm:$0xff] %v13640_v11  ;;  %v13642_v56 = vpop.xlane.xlu1 %3572  ;;  %v13656_v51 = vadd.f32 %v10661_v54, %v3175_v38  ;;  %16436 = vst [vmem:[#allocation235_spill] sm:$0xff] %v13668_v24  ;;  %v3712_v38 = vsel %vm3354_vm2, %v13649_v9, -inf  ;;  %v10665_v9 = vld [vmem:[%s15886_s2 + $0xe8] sm:$0xff] }
 0x38b   :  { %16430 = vst [vmem:[#allocation231_spill] sm:$0xff] %v13642_v56  ;;  %16440 = vst [vmem:[#allocation239_spill] sm:$0xff] %v13687_v10  ;;  %v13703_v16 = vadd.f32 %v10665_v9, %v13599_v28  ;;  %v3724_v12 = vsel %vm3354_vm2, %v13687_v10, -inf  ;;  %v16477_v56 = vld [vmem:[#allocation31_spill] sm:$0xff] }
 0x38c   :  { %16433 = vst [vmem:[#allocation232_spill] sm:$0xff] %v13656_v51  ;;  %3689 = vmax.xlane.f32.xlu0 %v3688_v22  ;;  %v10663_v22 = vld [vmem:[%s15886_s2 + $0xf0] sm:$0xff]  ;;  %v3727_v59 = vsel %vm3354_vm2, %v13656_v51, -inf  ;;  %v10666_v51 = vld [vmem:[%s15886_s2 + $0xf8] sm:$0xff]  ;;  %s10672_s2 = smov 8  }
 0x38d   :  { %3722 = vmax.xlane.f32.xlu1 %v3721_v37  ;;  %v13660_v3 = vpop.xlane.xlu0 %3545  ;;  %v13675_v54 = vadd.f32 %v10663_v22, %v3185_v52  ;;  %v3718_v52 = vsel %vm3354_vm2, %v13668_v24, -inf  ;;  %16444 = vst [vmem:[#allocation243_spill] sm:$0xff] %v13703_v16  ;;  %v13716_v24 = vadd.f32 %v10666_v51, %v9602_v20  ;;  %v3730_v28 = vsel %vm3354_vm2, %v13703_v16, -inf }
 0x38e   :  { %16434 = vst [vmem:[#allocation233_spill] sm:$0xff] %v13660_v3  ;;  %v13662_v47 = vpop.xlane.xlu1 %3596  ;;  %v13693_v22 = vpop.eup %10195 }
 0x38f   :  { %16435 = vst [vmem:[#allocation234_spill] sm:$0xff] %v13662_v47  ;;  %16437 = vst [vmem:[#allocation236_spill] sm:$0xff] %v13675_v54 }
 0x390   :  { %3713 = vmax.xlane.f32.xlu0 %v3712_v38  ;;  %v3733_v38 = vsel %vm3354_vm2, %v13675_v54, -inf  ;;  %16441 = vst [vmem:[#allocation240_spill] sm:$0xff] %v13693_v22  ;;  %16447 = vst [vmem:[#allocation246_spill] sm:$0xff] %v13716_v24 }
 0x391   :  { %3728 = vmax.xlane.f32.xlu1 %v3727_v59  ;;  %v13679_v37 = vpop.xlane.xlu0 %3569 }
 0x392   :  { %16438 = vst [vmem:[#allocation237_spill] sm:$0xff] %v13679_v37  ;;  %v13681_v15 = vpop.xlane.xlu1 %3578 }
 0x393   :  { %16439 = vst [vmem:[#allocation238_spill] sm:$0xff] %v13681_v15 }
 0x394   :  { %3719 = vmax.xlane.f32.xlu0 %v3718_v52  ;;  %v4210_v52 = vsel %vm3354_vm2, %v13693_v22, 0.0 }
 0x395   :  { %3734 = vmax.xlane.f32.xlu1 %v3733_v38  ;;  %v13695_v59 = vpop.xlane.xlu0 %3575 }
 0x396   :  { %16442 = vst [vmem:[#allocation241_spill] sm:$0xff] %v13695_v59  ;;  %v13697_v25 = vpop.xlane.xlu1 %3602  ;;  %v13726_v10 = vpop.eup %10197 }
 0x397   :  { %16443 = vst [vmem:[#allocation242_spill] sm:$0xff] %v13697_v25  ;;  %v4207_v20 = vsel %vm3354_vm2, %v13726_v10, 0.0 }
 0x398   :  { %3725 = vmax.xlane.f32.xlu0 %v3724_v12 }
 0x399   :  { %4211 = vadd.xlane.f32.xlu1 %v4210_v52  ;;  %v13709_v38 = vpop.xlane.xlu0 %3599  ;;  %v3736_v52 = vsel %vm3354_vm2, %v13716_v24, -inf  ;;  %v16455_v24 = vld [vmem:[#allocation13_spill] sm:$0xff] }
 0x39a   :  { %16445 = vst [vmem:[#allocation244_spill] sm:$0xff] %v13709_v38  ;;  %v13711_v54 = vpop.xlane.xlu1 %3584  ;;  %v16457_v38 = vld [vmem:[#allocation30_spill] sm:$0xff] }
 0x39b   :  { %16446 = vst [vmem:[#allocation245_spill] sm:$0xff] %v13711_v54  ;;  %v16461_v54 = vld [vmem:[#allocation142_spill] sm:$0xff] }
 0x39c   :  { %3731 = vmax.xlane.f32.xlu0 %v3730_v28 }
 0x39d   :  { %v13720_v9 = vpop.xlane.xlu0 %3581 }
 0x39e   :  { %16448 = vst [vmem:[#allocation247_spill] sm:$0xff] %v13720_v9  ;;  %v13722_v12 = vpop.xlane.xlu1 %3608 }
 0x39f   :  { %16449 = vst [vmem:[#allocation248_spill] sm:$0xff] %v13722_v12 }
 0x3a0   :  { %3737 = vmax.xlane.f32.xlu0 %v3736_v52 }
 0x3a1   :  { %v13728_v25 = vpop.xlane.xlu0 %3605 }
 0x3a2   :  { %16450 = vst [vmem:[#allocation249_spill] sm:$0xff] %v13728_v25  ;;  %v13730_v47 = vpop.xlane.xlu1 %3590 }
 0x3a3   :  { %16451 = vst [vmem:[#allocation250_spill] sm:$0xff] %v13730_v47 }
 0x3a4   :  { %4208 = vadd.xlane.f32.xlu0 %v4207_v20 }
 0x3a5   :  { %v13734_v51 = vpop.xlane.xlu0 %3587 }
 0x3a6   :  { %16452 = vst [vmem:[#allocation251_spill] sm:$0xff] %v13734_v51  ;;  %v13736_v28 = vpop.xlane.xlu1 %3614 }
 0x3a7   :  { %16453 = vst [vmem:[#allocation252_spill] sm:$0xff] %v13736_v28 }
 0x3a9   :  { %v13738_v16 = vpop.xlane.xlu0 %3611 }
 0x3aa   :  { %16454 = vst [vmem:[#allocation253_spill] sm:$0xff] %v13738_v16  ;;  %v4149_v12 = vpop.xlane.xlu1 %4148  ;;  %4916 = vrot.lane.b32.xlu1 %v16455_v24, %s10671_s23  ;;  %v3770_v24 = vsub.f32 %v16461_v54, %v13303_v58  ;;  %v16464_v58 = vld [vmem:[#allocation140_spill] sm:$0xff] }
 0x3ab   :  { %10199 = vrcp.f32 %v4149_v12  ;;  %v3769_v54 = vsub.f32 %v16464_v58, %v13253_v33 }
 0x3ad   :  { %v13742_v52 = vpop.xlane.xlu0 %3593 }
 0x3ae   :  { %16456 = vst [vmem:[#allocation13_spill] sm:$0xff] %v13742_v52  ;;  %v4173_v25 = vpop.xlane.xlu1 %4172  ;;  %5083 = vrot.lane.b32.xlu1 %v16457_v38, %s10671_s23 }
 0x3af   :  { %10201 = vrcp.f32 %v4173_v25  ;;  %v16462_v25 = vld [vmem:[#allocation10_spill] sm:$0xff] }
 0x3b1   :  { %v13746_v47 = vpop.xlane.xlu0 %3617 }
 0x3b2   :  { %16458 = vst [vmem:[#allocation30_spill] sm:$0xff] %v13746_v47  ;;  %v13748_v20 = vpop.xlane.xlu1 %3620  ;;  %v3929_v47 = vmul.f32 1.442695, %v3770_v24 }
 0x3b3   :  { %16459 = vst [vmem:[#allocation254_spill] sm:$0xff] %v13748_v20 }
 0x3b4   :  { %10203 = vpow2.f32 %v3929_v47 }
 0x3b5   :  { %v13750_v37 = vpop.xlane.xlu0 %4151 }
 0x3b6   :  { %v13752_v28 = vpop.xlane.xlu1 %3644 }
 0x3b7   :  { %16460 = vst [vmem:[#allocation255_spill] sm:$0xff] %v13752_v28 }
 0x3b8   :  { %v10200_v16 = vpop.eup %10199 }
 0x3b9   :  { %v13756_v12 = vpop.xlane.xlu0 %4175  ;;  %v4643_v51 = vmul.f32 %v10200_v16, %v13170_v1 }
 0x3ba   :  { %v13758_v52 = vpop.xlane.xlu1 %4154  ;;  %4918 = vrot.lane.b32.xlu0 %v16462_v25, %s10671_s23  ;;  %v3927_v25 = vmul.f32 1.442695, %v3769_v54 }
 0x3bb   :  { %9647 = vmatprep.mubr.msk.f32.mxu0 %vm3354_vm2, %v4643_v51 }
 0x3bc   :  { %v10202_v38 = vpop.eup %10201  ;;  %10205 = vpow2.f32 %v3927_v25 }
 0x3bd   :  { %v13764_v20 = vpop.xlane.xlu0 %3623  ;;  %v4651_v11 = vmul.f32 %v10202_v38, %v13181_v32 }
 0x3be   :  { %16463 = vst [vmem:[#allocation142_spill] sm:$0xff] %v13764_v20  ;;  %v13766_v28 = vpop.xlane.xlu1 %4178 }
 0x3bf   :  { %9675 = vmatprep.mubr.msk.f32.mxu1 %vm3354_vm2, %v4651_v11 }
 0x3c1   :  { %v13772_v1 = vpop.xlane.xlu0 %3647  ;;  %v13788_v33 = vpop.eup %10203 }
 0x3c2   :  { %16465 = vst [vmem:[#allocation10_spill] sm:$0xff] %v13772_v1  ;;  %v13774_v16 = vpop.xlane.xlu1 %3626  ;;  %16469 = vst [vmem:[#allocation258_spill] sm:$0xff] %v13788_v33  ;;  %v4216_v58 = vsel %vm3354_vm2, %v13788_v33, 0.0 }
 0x3c3   :  { %16466 = vst [vmem:[#allocation140_spill] sm:$0xff] %v13774_v16 }
 0x3c5   :  { %v13776_v15 = vpop.xlane.xlu0 %4157 }
 0x3c6   :  { %v13778_v51 = vpop.xlane.xlu1 %3650 }
 0x3c7   :  { %16467 = vst [vmem:[#allocation256_spill] sm:$0xff] %v13778_v51 }
 0x3c9   :  { %v13780_v24 = vpop.xlane.xlu0 %4181  ;;  %v13796_v54 = vpop.eup %10205 }
 0x3ca   :  { %v13782_v20 = vpop.xlane.xlu1 %4160  ;;  %16472 = vst [vmem:[#allocation261_spill] sm:$0xff] %v13796_v54  ;;  %v4213_v1 = vsel %vm3354_vm2, %v13796_v54, 0.0 }
 0x3cd   :  { %v13784_v32 = vpop.xlane.xlu0 %3629 }
 0x3ce   :  { %16468 = vst [vmem:[#allocation257_spill] sm:$0xff] %v13784_v32  ;;  %v13786_v11 = vpop.xlane.xlu1 %4184 }
 0x3d1   :  { %v13790_v47 = vpop.xlane.xlu0 %3653 }
 0x3d2   :  { %16470 = vst [vmem:[#allocation259_spill] sm:$0xff] %v13790_v47  ;;  %v13792_v38 = vpop.xlane.xlu1 %3632  ;;  %4217 = vadd.xlane.f32.xlu1 %v4216_v58 }
 0x3d3   :  { %16471 = vst [vmem:[#allocation260_spill] sm:$0xff] %v13792_v38 }
 0x3d5   :  { %v13798_v25 = vpop.xlane.xlu0 %4163 }
 0x3d6   :  { %v13800_v51 = vpop.xlane.xlu1 %3656 }
 0x3d7   :  { %16473 = vst [vmem:[#allocation262_spill] sm:$0xff] %v13800_v51 }
 0x3d9   :  { %v13804_v16 = vpop.xlane.xlu0 %4187  ;;  %4214 = vadd.xlane.f32.xlu0 %v4213_v1 }
 0x3da   :  { %v13806_v32 = vpop.xlane.xlu1 %4166 }
 0x3dd   :  { %v13808_v47 = vpop.xlane.xlu0 %3635 }
 0x3de   :  { %16474 = vst [vmem:[#allocation263_spill] sm:$0xff] %v13808_v47  ;;  %v13810_v38 = vpop.xlane.xlu1 %4190 }
 0x3e1   :  { %v13812_v9 = vpop.xlane.xlu0 %3659 }
 0x3e2   :  { %16475 = vst [vmem:[#allocation264_spill] sm:$0xff] %v13812_v9  ;;  %v13814_v58 = vpop.xlane.xlu1 %3638  ;;  %v16481_v9 = vld [vmem:[#allocation34_spill] sm:$0xff] }
 0x3e3   :  { %16476 = vst [vmem:[#allocation265_spill] sm:$0xff] %v13814_v58  ;;  %5081 = vrot.lane.b32.xlu1 %v16477_v56, %s10671_s23  ;;  %v16483_v56 = vld [vmem:[#allocation120_spill] sm:$0xff] }
 0x3e4   :  { %v3772_v33 = vsub.f32 %v16483_v56, %v13183_v62 }
 0x3e5   :  { %v13818_v51 = vpop.xlane.xlu0 %4169 }
 0x3e6   :  { %v13820_v59 = vpop.xlane.xlu1 %3662  ;;  %v3933_v54 = vmul.f32 1.442695, %v3772_v33 }
 0x3e7   :  { %16478 = vst [vmem:[#allocation31_spill] sm:$0xff] %v13820_v59  ;;  %5234 = vrot.lane.b32.xlu1 %v16479_v45, %s10671_s23  ;;  %v16485_v45 = vld [vmem:[#allocation123_spill] sm:$0xff] }
 0x3e8   :  { %v3771_v41 = vsub.f32 %v16485_v45, %v13135_v5  ;;  %10207 = vpow2.f32 %v3933_v54 }
 0x3e9   :  { %v13824_v1 = vpop.xlane.xlu0 %4193 }
 0x3ea   :  { %v13826_v3 = vpop.xlane.xlu1 %4199  ;;  %v3931_v19 = vmul.f32 1.442695, %v3771_v41 }
 0x3ec   :  { %10209 = vpow2.f32 %v3931_v19 }
 0x3ed   :  { %v13828_v47 = vpop.xlane.xlu0 %3641 }
 0x3ee   :  { %16480 = vst [vmem:[#allocation35_spill] sm:$0xff] %v13828_v47  ;;  %v13830_v42 = vpop.xlane.xlu1 %4205  ;;  %v16486_v47 = vld [vmem:[#allocation152_spill] sm:$0xff] }
 0x3ef   :  { %5236 = vrot.lane.b32.xlu0 %v16481_v9, %s10671_s23  ;;  %v3780_v49 = vsub.f32 %v16486_v47, %v13390_v46  ;;  %v16488_v9 = vld [vmem:[#allocation146_spill] sm:$0xff] }
 0x3f1   :  { %v13834_v58 = vpop.xlane.xlu0 %3665  ;;  %v3949_v62 = vmul.f32 1.442695, %v3780_v49 }
 0x3f2   :  { %16482 = vst [vmem:[#allocation34_spill] sm:$0xff] %v13834_v58  ;;  %v13838_v59 = vpop.xlane.xlu1 %3668  ;;  %v3779_v58 = vsub.f32 %v16488_v9, %v13332_v50 }
 0x3f3   :  { %16484 = vst [vmem:[#allocation120_spill] sm:$0xff] %v13838_v59  ;;  %10211 = vpow2.f32 %v3949_v62 }
 0x3f4   :  { %v3947_v5 = vmul.f32 1.442695, %v3779_v58 }
 0x3f5   :  { %v13842_v43 = vpop.xlane.xlu0 %4196  ;;  %v13866_v54 = vpop.eup %10207 }
 0x3f6   :  { %v13846_v22 = vpop.xlane.xlu1 %3692  ;;  %10213 = vpow2.f32 %v3947_v5  ;;  %v4222_v9 = vsel %vm3354_vm2, %v13866_v54, 0.0 }
 0x3f7   :  { %16487 = vst [vmem:[#allocation123_spill] sm:$0xff] %v13846_v22  ;;  %10215 = vrcp.f32 %v13750_v37  ;;  %v16514_v37 = vld [vmem:[#allocation25_spill] sm:$0xff] }
 0x3f8   :  { %10217 = vrcp.f32 %v13758_v52 }
 0x3f9   :  { %v13850_v30 = vpop.xlane.xlu0 %3671  ;;  %v13870_v19 = vpop.eup %10209  ;;  %10219 = vrcp.f32 %v13776_v15  ;;  %v16515_v15 = vld [vmem:[#allocation126_spill] sm:$0xff] }
 0x3fa   :  { %16489 = vst [vmem:[#allocation152_spill] sm:$0xff] %v13850_v30  ;;  %v13852_v56 = vpop.xlane.xlu1 %3674  ;;  %10221 = vrcp.f32 %v13782_v20 }
 0x3fb   :  { %16490 = vst [vmem:[#allocation146_spill] sm:$0xff] %v13852_v56  ;;  %10223 = vrcp.f32 %v13798_v25  ;;  %v16516_v25 = vld [vmem:[#allocation127_spill] sm:$0xff] }
 0x3fc   :  { %10225 = vrcp.f32 %v13806_v32 }
 0x3fd   :  { %v13854_v45 = vpop.xlane.xlu0 %3695  ;;  %10227 = vrcp.f32 %v13818_v51 }
 0x3fe   :  { %16491 = vst [vmem:[#allocation266_spill] sm:$0xff] %v13854_v45  ;;  %v13856_v33 = vpop.xlane.xlu1 %3698  ;;  %10229 = vrcp.f32 %v13842_v43 }
 0x3ff   :  { %16492 = vst [vmem:[#allocation267_spill] sm:$0xff] %v13856_v33  ;;  %v4219_v33 = vsel %vm3354_vm2, %v13870_v19, 0.0 }
 0x400   :  { %v13876_v62 = vpop.eup %10211 }
 0x401   :  { %v13858_v46 = vpop.xlane.xlu0 %4202 }
 0x402   :  { %v13860_v41 = vpop.xlane.xlu1 %3680 }
 0x403   :  { %16493 = vst [vmem:[#allocation268_spill] sm:$0xff] %v13860_v41 }
 0x405   :  { %v13862_v47 = vpop.xlane.xlu0 %3677 }
 0x406   :  { %16494 = vst [vmem:[#allocation269_spill] sm:$0xff] %v13862_v47  ;;  %v13864_v50 = vpop.xlane.xlu1 %3704 }
 0x407   :  { %16495 = vst [vmem:[#allocation270_spill] sm:$0xff] %v13864_v50  ;;  %v13882_v50 = vpop.eup %10213 }
 0x408   :  { %v10216_v20 = vpop.eup %10215 }
 0x409   :  { %v13868_v49 = vpop.xlane.xlu0 %3701 }
 0x40a   :  { %16496 = vst [vmem:[#allocation271_spill] sm:$0xff] %v13868_v49  ;;  %v13872_v58 = vpop.xlane.xlu1 %3686  ;;  %v4246_v49 = vsel %vm3354_vm2, %v13876_v62, 0.0 }
 0x40b   :  { %16497 = vst [vmem:[#allocation272_spill] sm:$0xff] %v13872_v58  ;;  %4223 = vadd.xlane.f32.xlu1 %v4222_v9  ;;  %v4243_v58 = vsel %vm3354_vm2, %v13882_v50, 0.0 }
 0x40d   :  { %v13878_v5 = vpop.xlane.xlu0 %3683 }
 0x40e   :  { %16498 = vst [vmem:[#allocation273_spill] sm:$0xff] %v13878_v5  ;;  %v13884_v22 = vpop.xlane.xlu1 %3710  ;;  %4220 = vadd.xlane.f32.xlu0 %v4219_v33 }
 0x40f   :  { %16499 = vst [vmem:[#allocation274_spill] sm:$0xff] %v13884_v22  ;;  %4247 = vadd.xlane.f32.xlu1 %v4246_v49  ;;  %v16508_v49 = vld [vmem:[#allocation28_spill] sm:$0xff] }
 0x411   :  { %v13888_v45 = vpop.xlane.xlu0 %3707 }
 0x412   :  { %16500 = vst [vmem:[#allocation275_spill] sm:$0xff] %v13888_v45  ;;  %v13892_v9 = vpop.xlane.xlu1 %3716  ;;  %4244 = vadd.xlane.f32.xlu0 %v4243_v58  ;;  %v16510_v58 = vld [vmem:[#allocation29_spill] sm:$0xff] }
 0x413   :  { %16501 = vst [vmem:[#allocation276_spill] sm:$0xff] %v13892_v9  ;;  %v16518_v9 = vld [vmem:[#allocation150_spill] sm:$0xff] }
 0x415   :  { %v13894_v41 = vpop.xlane.xlu0 %3689 }
 0x416   :  { %16502 = vst [vmem:[#allocation277_spill] sm:$0xff] %v13894_v41  ;;  %v13896_v5 = vpop.xlane.xlu1 %3722 }
 0x417   :  { %16503 = vst [vmem:[#allocation278_spill] sm:$0xff] %v13896_v5 }
 0x419   :  { %v13898_v56 = vpop.xlane.xlu0 %3713 }
 0x41a   :  { %16504 = vst [vmem:[#allocation279_spill] sm:$0xff] %v13898_v56  ;;  %v13900_v22 = vpop.xlane.xlu1 %3728 }
 0x41b   :  { %16505 = vst [vmem:[#allocation280_spill] sm:$0xff] %v13900_v22 }
 0x41d   :  { %v13902_v33 = vpop.xlane.xlu0 %3719 }
 0x41e   :  { %16506 = vst [vmem:[#allocation281_spill] sm:$0xff] %v13902_v33  ;;  %v13904_v47 = vpop.xlane.xlu1 %3734  ;;  %v3781_v33 = vsub.f32 %v16518_v9, %v13367_v55 }
 0x41f   :  { %16507 = vst [vmem:[#allocation282_spill] sm:$0xff] %v13904_v47  ;;  %v16512_v47 = vld [vmem:[#allocation24_spill] sm:$0xff] }
 0x420   :  { %5232 = vrot.lane.b32.xlu1 %v16508_v49, %s10671_s23 }
 0x421   :  { %v13908_v45 = vpop.xlane.xlu0 %3725 }
 0x422   :  { %16509 = vst [vmem:[#allocation28_spill] sm:$0xff] %v13908_v45  ;;  %v13910_v59 = vpop.xlane.xlu1 %4211  ;;  %v4644_v45 = vmul.f32 %v10216_v20, %v13201_v0 }
 0x424   :  { %5230 = vrot.lane.b32.xlu1 %v16510_v58, %s10671_s23  ;;  %v3774_v58 = vsub.f32 %v16515_v15, %v13228_v17 }
 0x425   :  { %v13916_v56 = vpop.xlane.xlu0 %3731 }
 0x426   :  { %16511 = vst [vmem:[#allocation29_spill] sm:$0xff] %v13916_v56  ;;  %v4917_v22 = vpop.permute.xlu1 %4916  ;;  %v3937_v56 = vmul.f32 1.442695, %v3774_v58 }
 0x428   :  { %5079 = vrot.lane.b32.xlu0 %v16512_v47, %s10671_s23  ;;  %10231 = vpow2.f32 %v3937_v56 }
 0x429   :  { %v13922_v49 = vpop.xlane.xlu0 %3737 }
 0x42a   :  { %16513 = vst [vmem:[#allocation24_spill] sm:$0xff] %v13922_v49  ;;  %v5084_v5 = vpop.permute.xlu1 %5083  ;;  %v10218_v49 = vpop.eup %10217 }
 0x42b   :  { %9659 = vmatprep.subr.mxu1 %v5084_v5  ;;  %v10220_v17 = vpop.eup %10219  ;;  %v4645_v51 = vmul.f32 %v10218_v49, %v13226_v23 }
 0x42c   :  { %9660 = vmatpush3.msra.mxu1 %v5084_v5  ;;  %5077 = vrot.lane.b32.xlu0 %v16514_v37, %s10671_s23  ;;  %v3773_v5 = vsub.f32 %v16516_v25, %v13175_v48  ;;  %v16517_v37 = vld [vmem:[#allocation156_spill] sm:$0xff]  ;;  %v10222_v15 = vpop.eup %10221 }
 0x42d   :  { %v13928_v52 = vpop.xlane.xlu0 %4208  ;;  %v3782_v32 = vsub.f32 %v16517_v37, %v13427_v6  ;;  %v4646_v6 = vmul.f32 %v10220_v17, %v13257_v27  ;;  %v10224_v58 = vpop.eup %10223  ;;  %v4647_v0 = vmul.f32 %v10222_v15, %v13282_v29 }
 0x42e   :  { %v3935_v43 = vmul.f32 1.442695, %v3773_v5  ;;  %v10226_v20 = vpop.eup %10225  ;;  %v4648_v23 = vmul.f32 %v10224_v58, %v13328_v63  ;;  %v16519_v5 = vld [vmem:[#allocation19_spill] sm:$0xff] }
 0x42f   :  { %v3953_v48 = vmul.f32 1.442695, %v3782_v32  ;;  %v10228_v55 = vpop.eup %10227  ;;  %v4649_v56 = vmul.f32 %v10226_v20, %v13345_v36  ;;  %v16520_v32 = vld [vmem:[#allocation23_spill] sm:$0xff] }
 0x430   :  { %10233 = vpow2.f32 %v3935_v43  ;;  %v4650_v29 = vmul.f32 %v10228_v55, %v13394_v13 }
 0x431   :  { %v4919_v47 = vpop.permute.xlu0 %4918  ;;  %10235 = vpow2.f32 %v3953_v48  ;;  %v16522_v48 = vld [vmem:[#allocation20_spill] sm:$0xff] }
 0x432   :  { %9643 = vmatprep.subr.mxu0 %v4919_v47 }
 0x433   :  { %9644 = vmatpush3.msra.mxu0 %v4919_v47 }
 0x434   :  { %9645 = vmatprep.subr.mxu0 %v4917_v22 }
 0x435   :  { %9646 = vmatpush3.msra.mxu0 %v4917_v22  ;;  %v3951_v22 = vmul.f32 1.442695, %v3781_v33 }
 0x436   :  { %9648 = vmatmul.mubr.msk.f32.vlgmr.msra.gmra.mxu0 %vm3354_vm2, %v4644_v45  ;;  %v10230_v45 = vpop.eup %10229 }
 0x437   :  { %9650 = vmatprep.mubr.msk.f32.mxu0 %vm3354_vm2, %v4645_v51  ;;  %10237 = vpow2.f32 %v3951_v22  ;;  %v4659_v27 = vmul.f32 %v10230_v45, %v13476_v53  ;;  %v13956_v9 = vpop.eup %10231  ;;  %v16521_v51 = vld [vmem:[#allocation18_spill] sm:$0xff]  ;;  %v16526_v45 = vld [vmem:[#allocation155_spill] sm:$0xff] }
 0x438   :  { %v4228_v36 = vsel %vm3354_vm2, %v13956_v9, 0.0 }
 0x43a   :  { %9651 = vmatmul.mubr.msk.f32.gmra.mxu0 %vm3354_vm2, %v4646_v6  ;;  %v16523_v6 = vld [vmem:[#allocation130_spill] sm:$0xff] }
 0x43b   :  { %9653 = vmatprep.mubr.msk.f32.mxu0 %vm3354_vm2, %v4647_v0  ;;  %v3776_v58 = vsub.f32 %v16523_v6, %v13274_v34  ;;  %v16524_v0 = vld [vmem:[#allocation132_spill] sm:$0xff]  ;;  %v16528_v6 = vld [vmem:[#allocation17_spill] sm:$0xff] }
 0x43c   :  { %v3775_v20 = vsub.f32 %v16524_v0, %v13220_v26 }
 0x43d   :  { %v13958_v63 = vpop.eup %10233  ;;  %v3941_v22 = vmul.f32 1.442695, %v3776_v58 }
 0x43e   :  { %9654 = vmatmul.mubr.msk.f32.gmra.mxu0 %vm3354_vm2, %v4648_v23  ;;  %v13962_v33 = vpop.eup %10235  ;;  %v4225_v49 = vsel %vm3354_vm2, %v13958_v63, 0.0  ;;  %v16525_v23 = vld [vmem:[#allocation160_spill] sm:$0xff] }
 0x43f   :  { %9656 = vmatprep.mubr.msk.f32.mxu0 %vm3354_vm2, %v4649_v56  ;;  %v4252_v53 = vsel %vm3354_vm2, %v13962_v33, 0.0  ;;  %v3784_v55 = vsub.f32 %v16525_v23, %v13470_v31  ;;  %v3939_v56 = vmul.f32 1.442695, %v3775_v20  ;;  %10239 = vpow2.f32 %v3941_v22  ;;  %v16529_v20 = vld [vmem:[#allocation11_spill] sm:$0xff]  ;;  %v16530_v23 = vld [vmem:[#allocation16_spill] sm:$0xff] }
 0x441   :  { %10241 = vpow2.f32 %v3939_v56 }
 0x442   :  { %9657 = vmatmul.mubr.msk.f32.gmra.mxu0 %vm3354_vm2, %v4650_v29  ;;  %v3783_v29 = vsub.f32 %v16526_v45, %v13411_v18  ;;  %v16532_v45 = vld [vmem:[#allocation141_spill] sm:$0xff] }
 0x443   :  { %9703 = vmatprep.mubr.msk.f32.mxu0 %vm3354_vm2, %v4659_v27  ;;  %v3957_v27 = vmul.f32 1.442695, %v3784_v55  ;;  %v16531_v55 = vld [vmem:[#allocation144_spill] sm:$0xff] }
 0x444   :  { %v13966_v13 = vpop.eup %10237  ;;  %v3778_v56 = vsub.f32 %v16531_v55, %v13317_v60 }
 0x445   :  { %v4249_v47 = vsel %vm3354_vm2, %v13966_v13, 0.0  ;;  %10243 = vpow2.f32 %v3957_v27 }
 0x446   :  { %v3945_v27 = vmul.f32 1.442695, %v3778_v56  ;;  %v16535_v56 = vld [vmem:[#allocation60_spill] sm:$0xff] }
 0x448   :  { %4229 = vadd.xlane.f32.xlu1 %v4228_v36  ;;  %v3955_v36 = vmul.f32 1.442695, %v3783_v29  ;;  %v3777_v29 = vsub.f32 %v16532_v45, %v13266_v14 }
 0x44a   :  { %10245 = vpow2.f32 %v3955_v36  ;;  %v16533_v36 = vld [vmem:[#allocation164_spill] sm:$0xff] }
 0x44b   :  { %4226 = vadd.xlane.f32.xlu0 %v4225_v49  ;;  %10247 = vpow2.f32 %v3945_v27  ;;  %v16536_v27 = vld [vmem:[#allocation61_spill] sm:$0xff] }
 0x44c   :  { %4253 = vadd.xlane.f32.xlu1 %v4252_v53  ;;  %v13992_v49 = vpop.eup %10239 }
 0x44d   :  { %v4234_v26 = vsel %vm3354_vm2, %v13992_v49, 0.0 }
 0x44e   :  { %v13994_v34 = vpop.eup %10241 }
 0x44f   :  { %4250 = vadd.xlane.f32.xlu0 %v4249_v47  ;;  %v4231_v31 = vsel %vm3354_vm2, %v13994_v34, 0.0 }
 0x452   :  { %v13998_v53 = vpop.eup %10243 }
 0x453   :  { %v4258_v47 = vsel %vm3354_vm2, %v13998_v53, 0.0 }
 0x457   :  { %v14002_v18 = vpop.eup %10245 }
 0x45b   :  { %v13972_v25 = vpop.xlane.xlu1 %4217 }
 0x45d   :  { %5228 = vrot.lane.b32.xlu1 %v16519_v5, %s10671_s23  ;;  %v4255_v5 = vsel %vm3354_vm2, %v14002_v18, 0.0 }
 0x45f   :  { %v5082_v37 = vpop.permute.xlu1 %5081 }
 0x460   :  { %9661 = vmatprep.subr.mxu1 %v5082_v37 }
 0x461   :  { %5226 = vrot.lane.b32.xlu1 %v16520_v32, %s10671_s23  ;;  %9662 = vmatpush3.msra.mxu1 %v5082_v37 }
 0x462   :  { %v13978_v17 = vpop.xlane.xlu0 %4214 }
 0x463   :  { %v5235_v43 = vpop.permute.xlu1 %5234 }
 0x465   :  { %5075 = vrot.lane.b32.xlu0 %v16521_v51, %s10671_s23 }
 0x466   :  { %v5237_v15 = vpop.permute.xlu0 %5236 }
 0x467   :  { %9687 = vmatprep.subr.mxu0 %v5237_v15 }
 0x468   :  { %9688 = vmatpush3.msra.mxu0 %v5237_v15  ;;  %v16527_v15 = vld [vmem:[#allocation12_spill] sm:$0xff] }
 0x469   :  { %5073 = vrot.lane.b32.xlu0 %v16522_v48, %s10671_s23  ;;  %9689 = vmatprep.subr.mxu0 %v5235_v43 }
 0x46a   :  { %9690 = vmatpush3.msra.mxu0 %v5235_v43 }
 0x485   :  { %4235 = vadd.xlane.f32.xlu1 %v4234_v26  ;;  %v3786_v26 = vsub.f32 %v16533_v36, %v13506_v39 }
 0x488   :  { %4232 = vadd.xlane.f32.xlu0 %v4231_v31  ;;  %v3943_v31 = vmul.f32 1.442695, %v3777_v29 }
 0x489   :  { %4259 = vadd.xlane.f32.xlu1 %v4258_v47  ;;  %v16534_v47 = vld [vmem:[#allocation159_spill] sm:$0xff] }
 0x48a   :  { %10249 = vpow2.f32 %v3943_v31  ;;  %v16537_v31 = vld [vmem:[#allocation8_spill] sm:$0xff] }
 0x48c   :  { %4256 = vadd.xlane.f32.xlu0 %v4255_v5  ;;  %v3785_v5 = vsub.f32 %v16534_v47, %v13449_v4 }
 0x494   :  { %v14008_v37 = vpop.xlane.xlu1 %4223 }
 0x497   :  { %v14010_v32 = vpop.xlane.xlu0 %4220 }
 0x498   :  { %v14012_v51 = vpop.xlane.xlu1 %4247 }
 0x49a   :  { %5224 = vrot.lane.b32.xlu1 %v16527_v15, %s10671_s23  ;;  %v3961_v15 = vmul.f32 1.442695, %v3786_v26 }
 0x49b   :  { %v14016_v43 = vpop.xlane.xlu0 %4244 }
 0x49c   :  { %v5233_v48 = vpop.permute.xlu1 %5232  ;;  %10251 = vpow2.f32 %v3961_v15  ;;  %v16539_v15 = vld [vmem:[#allocation154_spill] sm:$0xff] }
 0x49d   :  { %9691 = vmatprep.subr.mxu0 %v5233_v48 }
 0x49e   :  { %5222 = vrot.lane.b32.xlu1 %v16528_v6, %s10671_s23  ;;  %9692 = vmatpush3.msra.mxu0 %v5233_v48  ;;  %v3959_v48 = vmul.f32 1.442695, %v3785_v5  ;;  %v14032_v6 = vpop.eup %10247  ;;  %v16538_v5 = vld [vmem:[#allocation9_spill] sm:$0xff] }
 0x49f   :  { %v5080_v58 = vpop.permute.xlu0 %5079  ;;  %v14034_v60 = vpop.eup %10249  ;;  %v4240_v14 = vsel %vm3354_vm2, %v14032_v6, 0.0 }
 0x4a0   :  { %v5231_v0 = vpop.permute.xlu1 %5230  ;;  %9663 = vmatprep.subr.mxu1 %v5080_v58  ;;  %10253 = vpow2.f32 %v3959_v48  ;;  %v4237_v39 = vsel %vm3354_vm2, %v14034_v60, 0.0  ;;  %v3788_v48 = vsub.f32 %v16539_v15, %v13409_v7 }
 0x4a1   :  { %9693 = vmatprep.subr.mxu0 %v5231_v0  ;;  %9664 = vmatpush3.msra.mxu1 %v5080_v58 }
 0x4a2   :  { %9694 = vmatpush3.msra.mxu0 %v5231_v0  ;;  %5071 = vrot.lane.b32.xlu0 %v16529_v20, %s10671_s23 }
 0x4a3   :  { %v5078_v22 = vpop.permute.xlu0 %5077 }
 0x4a4   :  { %9665 = vmatprep.subr.mxu1 %v5078_v22 }
 0x4a5   :  { %9666 = vmatpush3.msra.mxu1 %v5078_v22 }
 0x4a6   :  { %5069 = vrot.lane.b32.xlu0 %v16530_v23, %s10671_s23 }
 0x4a9   :  { %v14038_v58 = vpop.eup %10251 }
 0x4aa   :  { %v4264_v0 = vsel %vm3354_vm2, %v14038_v58, 0.0 }
 0x4ad   :  { %v14042_v4 = vpop.eup %10253 }
 0x4ae   :  { %v4261_v20 = vsel %vm3354_vm2, %v14042_v4, 0.0 }
 0x4c2   :  { %4241 = vadd.xlane.f32.xlu1 %v4240_v14  ;;  %v16540_v14 = vld [vmem:[#allocation148_spill] sm:$0xff] }
 0x4c5   :  { %4238 = vadd.xlane.f32.xlu0 %v4237_v39  ;;  %v3787_v39 = vsub.f32 %v16540_v14, %v13347_v35 }
 0x4c6   :  { %4265 = vadd.xlane.f32.xlu1 %v4264_v0  ;;  %v3965_v0 = vmul.f32 1.442695, %v3788_v48 }
 0x4c8   :  { %10255 = vpow2.f32 %v3965_v0 }
 0x4c9   :  { %4262 = vadd.xlane.f32.xlu0 %v4261_v20  ;;  %v16541_v20 = vld [vmem:[#allocation168_spill] sm:$0xff] }
 0x4d1   :  { %v14048_v22 = vpop.xlane.xlu1 %4229 }
 0x4d4   :  { %v14050_v23 = vpop.xlane.xlu0 %4226 }
 0x4d5   :  { %v14052_v55 = vpop.xlane.xlu1 %4253 }
 0x4d7   :  { %5542 = vrot.lane.b32.xlu1 %v16535_v56, %s10671_s23  ;;  %v3796_v56 = vsub.f32 %v16541_v20, %v13541_v8 }
 0x4d8   :  { %v14056_v45 = vpop.xlane.xlu0 %4250 }
 0x4d9   :  { %v5229_v29 = vpop.permute.xlu1 %5228 }
 0x4da   :  { %9695 = vmatprep.subr.mxu0 %v5229_v29 }
 0x4db   :  { %5540 = vrot.lane.b32.xlu1 %v16536_v27, %s10671_s23  ;;  %9696 = vmatpush3.msra.mxu0 %v5229_v29  ;;  %v3963_v29 = vmul.f32 1.442695, %v3787_v39  ;;  %v16542_v27 = vld [vmem:[#allocation163_spill] sm:$0xff] }
 0x4dc   :  { %v5076_v36 = vpop.permute.xlu0 %5075 }
 0x4dd   :  { %v5227_v26 = vpop.permute.xlu1 %5226  ;;  %9667 = vmatprep.subr.mxu1 %v5076_v36  ;;  %10257 = vpow2.f32 %v3963_v29 }
 0x4de   :  { %9697 = vmatprep.subr.mxu0 %v5227_v26  ;;  %9668 = vmatpush3.msra.mxu1 %v5076_v36  ;;  %v3795_v36 = vsub.f32 %v16542_v27, %v13489_v2 }
 0x4df   :  { %9698 = vmatpush3.msra.mxu0 %v5227_v26  ;;  %5389 = vrot.lane.b32.xlu0 %v16537_v31, %s10671_s23  ;;  %v3981_v26 = vmul.f32 1.442695, %v3796_v56 }
 0x4e0   :  { %v5074_v47 = vpop.permute.xlu0 %5073  ;;  %v3979_v31 = vmul.f32 1.442695, %v3795_v36 }
 0x4e1   :  { %9669 = vmatprep.subr.mxu1 %v5074_v47  ;;  %10259 = vpow2.f32 %v3981_v26  ;;  %v16546_v26 = vld [vmem:[#allocation7_spill] sm:$0xff] }
 0x4e2   :  { %9670 = vmatpush3.msra.mxu1 %v5074_v47  ;;  %10261 = vpow2.f32 %v3979_v31  ;;  %v14072_v47 = vpop.eup %10255 }
 0x4e3   :  { %5387 = vrot.lane.b32.xlu0 %v16538_v5, %s10671_s23  ;;  %v4270_v35 = vsel %vm3354_vm2, %v14072_v47, 0.0  ;;  %10263 = vrcp.f32 %v13826_v3  ;;  %v16543_v3 = vld [vmem:[#allocation52_spill] sm:$0xff] }
 0x4e4   :  { %10265 = vrcp.f32 %v13858_v46 }
 0x4e5   :  { %10267 = vrcp.f32 %v13756_v12 }
 0x4e6   :  { %10269 = vrcp.f32 %v13766_v28 }
 0x4e7   :  { %10271 = vrcp.f32 %v13830_v42 }
 0x4e8   :  { %10273 = vrcp.f32 %v13928_v52 }
 0x4e9   :  { %10275 = vrcp.f32 %v13780_v24 }
 0x4ea   :  { %v14074_v7 = vpop.eup %10257  ;;  %10277 = vrcp.f32 %v13786_v11 }
 0x4eb   :  { %v4267_v8 = vsel %vm3354_vm2, %v14074_v7, 0.0  ;;  %10279 = vrcp.f32 %v13910_v59  ;;  %v16544_v59 = vld [vmem:[#allocation53_spill] sm:$0xff] }
 0x4ec   :  { %10281 = vrcp.f32 %v13978_v17  ;;  %v16545_v17 = vld [vmem:[#allocation6_spill] sm:$0xff] }
 0x4ed   :  { %10283 = vrcp.f32 %v13804_v16 }
 0x4ee   :  { %v14078_v5 = vpop.eup %10259  ;;  %10285 = vrcp.f32 %v13810_v38 }
 0x4ef   :  { %v14082_v2 = vpop.eup %10261  ;;  %v4294_v15 = vsel %vm3354_vm2, %v14078_v5, 0.0  ;;  %10287 = vrcp.f32 %v13972_v25 }
 0x4f0   :  { %v4291_v48 = vsel %vm3354_vm2, %v14082_v2, 0.0  ;;  %v10264_v12 = vpop.eup %10263  ;;  %10289 = vrcp.f32 %v14016_v43 }
 0x4f1   :  { %v10266_v24 = vpop.eup %10265  ;;  %10291 = vrcp.f32 %v13824_v1  ;;  %v4660_v38 = vmul.f32 %v10264_v12, %v13425_v44  ;;  %v16551_v12 = vld [vmem:[#allocation139_spill] sm:$0xff] }
 0x4f2   :  { %v10268_v46 = vpop.eup %10267  ;;  %10293 = vrcp.f32 %v14010_v32  ;;  %v4661_v43 = vmul.f32 %v10266_v24, %v13532_v40 }
 0x4f3   :  { %v10270_v52 = vpop.eup %10269  ;;  %v4652_v29 = vmul.f32 %v10268_v46, %v13216_v21 }
 0x4f4   :  { %v10272_v25 = vpop.eup %10271  ;;  %v4653_v27 = vmul.f32 %v10270_v52, %v13237_v57  ;;  %v16548_v57 = vld [vmem:[#allocation147_spill] sm:$0xff]  ;;  %v16554_v52 = vld [vmem:[#allocation153_spill] sm:$0xff] }
 0x4f5   :  { %v10274_v20 = vpop.eup %10273  ;;  %v4662_v32 = vmul.f32 %v10272_v25, %v13445_v61  ;;  %v16555_v25 = vld [vmem:[#allocation118_spill] sm:$0xff] }
 0x4f6   :  { %v10276_v56 = vpop.eup %10275  ;;  %v4663_v40 = vmul.f32 %v10274_v20, %v13726_v10  ;;  %v16552_v10 = vld [vmem:[#allocation261_spill] sm:$0xff] }
 0x4f7   :  { %v10278_v44 = vpop.eup %10277 }
 0x4f8   :  { %v10280_v36 = vpop.eup %10279 }
 0x4f9   :  { %v10282_v31 = vpop.eup %10281 }
 0x4fa   :  { %v10284_v21 = vpop.eup %10283 }
 0x4ff   :  { %4271 = vadd.xlane.f32.xlu1 %v4270_v35  ;;  %v16547_v35 = vld [vmem:[#allocation113_spill] sm:$0xff] }
 0x500   :  { %v4654_v61 = vmul.f32 %v10276_v56, %v16547_v35  ;;  %v16557_v56 = vld [vmem:[#allocation172_spill] sm:$0xff]  ;;  %v16561_v35 = vld [vmem:[#allocation167_spill] sm:$0xff] }
 0x502   :  { %4268 = vadd.xlane.f32.xlu0 %v4267_v8  ;;  %v10286_v8 = vpop.eup %10285 }
 0x503   :  { %4295 = vadd.xlane.f32.xlu1 %v4294_v15  ;;  %v16549_v15 = vld [vmem:[#allocation158_spill] sm:$0xff]  ;;  %v10288_v24 = vpop.eup %10287 }
 0x504   :  { %v10290_v46 = vpop.eup %10289 }
 0x506   :  { %4292 = vadd.xlane.f32.xlu0 %v4291_v48  ;;  %v3790_v48 = vsub.f32 %v16549_v15, %v16548_v57  ;;  %v16562_v57 = vld [vmem:[#allocation136_spill] sm:$0xff] }
 0x508   :  { %v3969_v20 = vmul.f32 1.442695, %v3790_v48 }
 0x50a   :  { %10295 = vpow2.f32 %v3969_v20 }
 0x50e   :  { %v14092_v14 = vpop.xlane.xlu1 %4235 }
 0x511   :  { %v14097_v39 = vpop.xlane.xlu0 %4232 }
 0x512   :  { %v14100_v0 = vpop.xlane.xlu1 %4259 }
 0x514   :  { %5538 = vrot.lane.b32.xlu1 %v16543_v3, %s10671_s23  ;;  %v16550_v3 = vld [vmem:[#allocation240_spill] sm:$0xff] }
 0x515   :  { %v14107_v42 = vpop.xlane.xlu0 %4256 }
 0x516   :  { %v5225_v28 = vpop.permute.xlu1 %5224 }
 0x517   :  { %9699 = vmatprep.subr.mxu0 %v5225_v28 }
 0x518   :  { %5536 = vrot.lane.b32.xlu1 %v16544_v59, %s10671_s23  ;;  %9700 = vmatpush3.msra.mxu0 %v5225_v28  ;;  %v4664_v28 = vmul.f32 %v10280_v36, %v16550_v3  ;;  %v4655_v59 = vmul.f32 %v10278_v44, %v16551_v12  ;;  %v16558_v44 = vld [vmem:[#allocation258_spill] sm:$0xff] }
 0x519   :  { %v5072_v11 = vpop.permute.xlu0 %5071 }
 0x51a   :  { %v5223_v16 = vpop.permute.xlu1 %5222  ;;  %9671 = vmatprep.subr.mxu1 %v5072_v11 }
 0x51b   :  { %9701 = vmatprep.subr.mxu0 %v5223_v16  ;;  %9672 = vmatpush3.msra.mxu1 %v5072_v11  ;;  %v4665_v11 = vmul.f32 %v10282_v31, %v16552_v10 }
 0x51c   :  { %9702 = vmatpush3.msra.mxu0 %v5223_v16  ;;  %5385 = vrot.lane.b32.xlu0 %v16545_v17, %s10671_s23  ;;  %v16553_v16 = vld [vmem:[#allocation119_spill] sm:$0xff]  ;;  %v4656_v17 = vmul.f32 %v10284_v21, %v16555_v25  ;;  %v16560_v21 = vld [vmem:[#allocation210_spill] sm:$0xff] }
 0x51d   :  { %9704 = vmatmul.mubr.msk.f32.vlgmr.msra.gmra.mxu0 %vm3354_vm2, %v4660_v38  ;;  %v5070_v1 = vpop.permute.xlu0 %5069  ;;  %v3789_v38 = vsub.f32 %v16554_v52, %v16553_v16 }
 0x51e   :  { %9706 = vmatprep.mubr.msk.f32.mxu0 %vm3354_vm2, %v4661_v43  ;;  %9673 = vmatprep.subr.mxu1 %v5070_v1  ;;  %v10292_v43 = vpop.eup %10291 }
 0x51f   :  { %9674 = vmatpush3.msra.mxu1 %v5070_v1  ;;  %v16556_v1 = vld [vmem:[#allocation219_spill] sm:$0xff]  ;;  %v3967_v31 = vmul.f32 1.442695, %v3789_v38  ;;  %v4658_v15 = vmul.f32 %v10292_v43, %v16562_v57  ;;  %v16563_v38 = vld [vmem:[#allocation44_spill] sm:$0xff]  ;;  %v16564_v43 = vld [vmem:[#allocation45_spill] sm:$0xff] }
 0x520   :  { %5383 = vrot.lane.b32.xlu0 %v16546_v26, %s10671_s23  ;;  %9676 = vmatmul.mubr.msk.f32.vlgmr.msra.gmra.mxu1 %vm3354_vm2, %v4652_v29  ;;  %v3798_v29 = vsub.f32 %v16557_v56, %v16556_v1  ;;  %v10294_v26 = vpop.eup %10293  ;;  %v16565_v56 = vld [vmem:[#allocation4_spill] sm:$0xff] }
 0x521   :  { %9707 = vmatmul.mubr.msk.f32.gmra.mxu0 %vm3354_vm2, %v4662_v32  ;;  %9678 = vmatprep.mubr.msk.f32.mxu1 %vm3354_vm2, %v4653_v27  ;;  %v4666_v32 = vmul.f32 %v10288_v24, %v16558_v44  ;;  %v16559_v27 = vld [vmem:[#allocation134_spill] sm:$0xff]  ;;  %10297 = vpow2.f32 %v3967_v31  ;;  %v14160_v3 = vpop.eup %10295  ;;  %v16566_v44 = vld [vmem:[#allocation5_spill] sm:$0xff] }
 0x522   :  { %9709 = vmatprep.mubr.msk.f32.mxu0 %vm3354_vm2, %v4663_v40  ;;  %v4657_v36 = vmul.f32 %v10286_v8, %v16559_v27  ;;  %v4675_v40 = vmul.f32 %v10290_v46, %v13882_v50  ;;  %v3985_v48 = vmul.f32 1.442695, %v3798_v29  ;;  %v4667_v8 = vmul.f32 %v10294_v26, %v13870_v19  ;;  %v16568_v27 = vld [vmem:[#allocation162_spill] sm:$0xff]  ;;  %v16569_v26 = vld [vmem:[#allocation131_spill] sm:$0xff] }
 0x523   :  { %v4276_v12 = vsel %vm3354_vm2, %v14160_v3, 0.0 }
 0x524   :  { %9679 = vmatmul.mubr.msk.f32.gmra.mxu1 %vm3354_vm2, %v4654_v61  ;;  %v3797_v61 = vsub.f32 %v16561_v35, %v16560_v21  ;;  %10299 = vpow2.f32 %v3985_v48  ;;  %v16571_v35 = vld [vmem:[#allocation226_spill] sm:$0xff]  ;;  %v16573_v48 = vld [vmem:[#allocation216_spill] sm:$0xff] }
 0x525   :  { %9710 = vmatmul.mubr.msk.f32.gmra.mxu0 %vm3354_vm2, %v4664_v28  ;;  %9681 = vmatprep.mubr.msk.f32.mxu1 %vm3354_vm2, %v4655_v59 }
 0x526   :  { %9712 = vmatprep.mubr.msk.f32.mxu0 %vm3354_vm2, %v4665_v11  ;;  %v3983_v50 = vmul.f32 1.442695, %v3797_v61  ;;  %v16572_v61 = vld [vmem:[#allocation176_spill] sm:$0xff] }
 0x527   :  { %v3800_v57 = vsub.f32 %v16572_v61, %v16571_v35  ;;  %v16578_v35 = vld [vmem:[#allocation2_spill] sm:$0xff] }
 0x528   :  { %9682 = vmatmul.mubr.msk.f32.gmra.mxu1 %vm3354_vm2, %v4656_v17  ;;  %10301 = vpow2.f32 %v3983_v50 }
 0x529   :  { %9713 = vmatmul.mubr.msk.f32.gmra.mxu0 %vm3354_vm2, %v4666_v32  ;;  %9684 = vmatprep.mubr.msk.f32.mxu1 %vm3354_vm2, %v4657_v36  ;;  %v16567_v32 = vld [vmem:[#allocation151_spill] sm:$0xff] }
 0x52a   :  { %9759 = vmatprep.mubr.msk.f32.mxu0 %vm3354_vm2, %v4675_v40  ;;  %v3792_v36 = vsub.f32 %v16568_v27, %v16567_v32  ;;  %v16570_v40 = vld [vmem:[#allocation157_spill] sm:$0xff]  ;;  %v16576_v27 = vld [vmem:[#allocation36_spill] sm:$0xff] }
 0x52b   :  { %v3791_v31 = vsub.f32 %v16570_v40, %v16569_v26  ;;  %v16577_v40 = vld [vmem:[#allocation37_spill] sm:$0xff] }
 0x52c   :  { %9685 = vmatmul.mubr.msk.f32.gmra.mxu1 %vm3354_vm2, %v4658_v15  ;;  %v3973_v21 = vmul.f32 1.442695, %v3792_v36 }
 0x52d   :  { %9731 = vmatprep.mubr.msk.f32.mxu1 %vm3354_vm2, %v4667_v8  ;;  %v3971_v15 = vmul.f32 1.442695, %v3791_v31  ;;  %v16574_v8 = vld [vmem:[#allocation171_spill] sm:$0xff] }
 0x52e   :  { %v14162_v28 = vpop.eup %10297  ;;  %v3799_v50 = vsub.f32 %v16574_v8, %v16573_v48  ;;  %10303 = vpow2.f32 %v3973_v21  ;;  %v16581_v48 = vld [vmem:[#allocation166_spill] sm:$0xff] }
 0x52f   :  { %v4273_v19 = vsel %vm3354_vm2, %v14162_v28, 0.0  ;;  %10305 = vpow2.f32 %v3971_v15  ;;  %v16580_v15 = vld [vmem:[#allocation209_spill] sm:$0xff] }
 0x530   :  { %v3794_v8 = vsub.f32 %v16581_v48, %v16580_v15 }
 0x531   :  { %v14166_v59 = vpop.eup %10299 }
 0x532   :  { %v4300_v10 = vsel %vm3354_vm2, %v14166_v59, 0.0 }
 0x535   :  { %v14170_v24 = vpop.eup %10301 }
 0x536   :  { %v4297_v11 = vsel %vm3354_vm2, %v14170_v24, 0.0 }
 0x53c   :  { %4277 = vadd.xlane.f32.xlu1 %v4276_v12  ;;  %v3989_v12 = vmul.f32 1.442695, %v3800_v57  ;;  %v16579_v57 = vld [vmem:[#allocation3_spill] sm:$0xff] }
 0x53e   :  { %10307 = vpow2.f32 %v3989_v12  ;;  %v16583_v12 = vld [vmem:[#allocation161_spill] sm:$0xff] }
 0x53f   :  { %4274 = vadd.xlane.f32.xlu0 %v4273_v19  ;;  %v3987_v19 = vmul.f32 1.442695, %v3799_v50  ;;  %v16582_v50 = vld [vmem:[#allocation145_spill] sm:$0xff] }
 0x540   :  { %4301 = vadd.xlane.f32.xlu1 %v4300_v10  ;;  %v14200_v10 = vpop.eup %10303 }
 0x541   :  { %10309 = vpow2.f32 %v3987_v19  ;;  %16575 = vst [vmem:[#allocation25_spill] sm:$0xff] %v14200_v10  ;;  %v3793_v19 = vsub.f32 %v16583_v12, %v16582_v50 }
 0x543   :  { %4298 = vadd.xlane.f32.xlu0 %v4297_v11  ;;  %v14202_v11 = vpop.eup %10305 }
 0x54b   :  { %v14176_v46 = vpop.xlane.xlu1 %4241 }
 0x54e   :  { %v14178_v16 = vpop.xlane.xlu0 %4238 }
 0x54f   :  { %v14180_v52 = vpop.xlane.xlu1 %4265 }
 0x551   :  { %5534 = vrot.lane.b32.xlu1 %v16563_v38, %s10671_s23  ;;  %v4282_v38 = vsel %vm3354_vm2, %v14200_v10, 0.0  ;;  %v16603_v10 = vld [vmem:[#allocation179_spill] sm:$0xff] }
 0x552   :  { %v14184_v25 = vpop.xlane.xlu0 %4262 }
 0x553   :  { %v5543_v17 = vpop.permute.xlu1 %5542 }
 0x554   :  { %9743 = vmatprep.subr.mxu0 %v5543_v17 }
 0x555   :  { %5532 = vrot.lane.b32.xlu1 %v16564_v43, %s10671_s23  ;;  %9744 = vmatpush3.msra.mxu0 %v5543_v17  ;;  %v14206_v17 = vpop.eup %10307  ;;  %v4279_v43 = vsel %vm3354_vm2, %v14202_v11, 0.0 }
 0x556   :  { %v5390_v20 = vpop.permute.xlu0 %5389 }
 0x557   :  { %v5541_v1 = vpop.permute.xlu1 %5540  ;;  %9715 = vmatprep.subr.mxu1 %v5390_v20 }
 0x558   :  { %9745 = vmatprep.subr.mxu0 %v5541_v1  ;;  %9716 = vmatpush3.msra.mxu1 %v5390_v20  ;;  %v14210_v20 = vpop.eup %10309 }
 0x559   :  { %9746 = vmatpush3.msra.mxu0 %v5541_v1  ;;  %5381 = vrot.lane.b32.xlu0 %v16565_v56, %s10671_s23  ;;  %v4306_v1 = vsel %vm3354_vm2, %v14206_v17, 0.0  ;;  %v4303_v56 = vsel %vm3354_vm2, %v14210_v20, 0.0 }
 0x55a   :  { %v5388_v29 = vpop.permute.xlu0 %5387 }
 0x55b   :  { %9717 = vmatprep.subr.mxu1 %v5388_v29 }
 0x55c   :  { %9718 = vmatpush3.msra.mxu1 %v5388_v29 }
 0x55d   :  { %5379 = vrot.lane.b32.xlu0 %v16566_v44, %s10671_s23 }
 0x579   :  { %4283 = vadd.xlane.f32.xlu1 %v4282_v38  ;;  %v3977_v38 = vmul.f32 1.442695, %v3794_v8 }
 0x57b   :  { %10311 = vpow2.f32 %v3977_v38 }
 0x57c   :  { %4280 = vadd.xlane.f32.xlu0 %v4279_v43  ;;  %v16584_v43 = vld [vmem:[#allocation233_spill] sm:$0xff] }
 0x57d   :  { %4307 = vadd.xlane.f32.xlu1 %v4306_v1  ;;  %v16585_v1 = vld [vmem:[#allocation180_spill] sm:$0xff] }
 0x580   :  { %4304 = vadd.xlane.f32.xlu0 %v4303_v56  ;;  %v3802_v56 = vsub.f32 %v16585_v1, %v16584_v43 }
 0x588   :  { %v14216_v29 = vpop.xlane.xlu1 %4271 }
 0x58b   :  { %v14218_v44 = vpop.xlane.xlu0 %4268 }
 0x58c   :  { %v14220_v32 = vpop.xlane.xlu1 %4295 }
 0x58e   :  { %5530 = vrot.lane.b32.xlu1 %v16576_v27, %s10671_s23  ;;  %v3975_v27 = vmul.f32 1.442695, %v3793_v19 }
 0x58f   :  { %v14224_v36 = vpop.xlane.xlu0 %4292 }
 0x590   :  { %v5539_v26 = vpop.permute.xlu1 %5538  ;;  %10313 = vpow2.f32 %v3975_v27 }
 0x591   :  { %9747 = vmatprep.subr.mxu0 %v5539_v26 }
 0x592   :  { %5528 = vrot.lane.b32.xlu1 %v16577_v40, %s10671_s23  ;;  %9748 = vmatpush3.msra.mxu0 %v5539_v26  ;;  %v16586_v26 = vld [vmem:[#allocation223_spill] sm:$0xff] }
 0x593   :  { %v5386_v31 = vpop.permute.xlu0 %5385  ;;  %v16587_v40 = vld [vmem:[#allocation175_spill] sm:$0xff] }
 0x594   :  { %v5537_v21 = vpop.permute.xlu1 %5536  ;;  %9719 = vmatprep.subr.mxu1 %v5386_v31 }
 0x595   :  { %9749 = vmatprep.subr.mxu0 %v5537_v21  ;;  %9720 = vmatpush3.msra.mxu1 %v5386_v31  ;;  %v3801_v31 = vsub.f32 %v16587_v40, %v16586_v26  ;;  %v16593_v40 = vld [vmem:[#allocation65_spill] sm:$0xff] }
 0x596   :  { %9750 = vmatpush3.msra.mxu0 %v5537_v21  ;;  %5377 = vrot.lane.b32.xlu0 %v16578_v35, %s10671_s23  ;;  %v3993_v21 = vmul.f32 1.442695, %v3802_v56  ;;  %v16592_v56 = vld [vmem:[#allocation64_spill] sm:$0xff] }
 0x597   :  { %v5384_v61 = vpop.permute.xlu0 %5383  ;;  %v3991_v35 = vmul.f32 1.442695, %v3801_v31 }
 0x598   :  { %9721 = vmatprep.subr.mxu1 %v5384_v61  ;;  %10315 = vpow2.f32 %v3993_v21 }
 0x599   :  { %9722 = vmatpush3.msra.mxu1 %v5384_v61  ;;  %10317 = vpow2.f32 %v3991_v35  ;;  %v14240_v61 = vpop.eup %10311  ;;  %v16594_v35 = vld [vmem:[#allocation62_spill] sm:$0xff] }
 0x59a   :  { %5375 = vrot.lane.b32.xlu0 %v16579_v57, %s10671_s23  ;;  %16588 = vst [vmem:[#allocation126_spill] sm:$0xff] %v14240_v61  ;;  %v4288_v15 = vsel %vm3354_vm2, %v14240_v61, 0.0  ;;  %v16600_v61 = vld [vmem:[#allocation241_spill] sm:$0xff] }
 0x59d   :  { %v14242_v57 = vpop.eup %10313 }
 0x59e   :  { %16589 = vst [vmem:[#allocation127_spill] sm:$0xff] %v14242_v57  ;;  %v4285_v8 = vsel %vm3354_vm2, %v14242_v57, 0.0  ;;  %v16601_v57 = vld [vmem:[#allocation184_spill] sm:$0xff] }
 0x5a5   :  { %v14246_v48 = vpop.eup %10315 }
 0x5a6   :  { %16590 = vst [vmem:[#allocation156_spill] sm:$0xff] %v14246_v48  ;;  %v14250_v50 = vpop.eup %10317  ;;  %v4312_v12 = vsel %vm3354_vm2, %v14246_v48, 0.0  ;;  %v16602_v48 = vld [vmem:[#allocation231_spill] sm:$0xff] }
 0x5a7   :  { %16591 = vst [vmem:[#allocation150_spill] sm:$0xff] %v14250_v50  ;;  %v4309_v19 = vsel %vm3354_vm2, %v14250_v50, 0.0 }
 0x5b6   :  { %4289 = vadd.xlane.f32.xlu1 %v4288_v15 }
 0x5b9   :  { %4286 = vadd.xlane.f32.xlu0 %v4285_v8  ;;  %v16595_v8 = vld [vmem:[#allocation63_spill] sm:$0xff] }
 0x5ba   :  { %4313 = vadd.xlane.f32.xlu1 %v4312_v12  ;;  %v16596_v12 = vld [vmem:[#allocation215_spill] sm:$0xff] }
 0x5bd   :  { %4310 = vadd.xlane.f32.xlu0 %v4309_v19  ;;  %v16597_v19 = vld [vmem:[#allocation170_spill] sm:$0xff] }
 0x5c5   :  { %v14256_v38 = vpop.xlane.xlu1 %4277 }
 0x5c8   :  { %v14258_v43 = vpop.xlane.xlu0 %4274 }
 0x5c9   :  { %v14260_v1 = vpop.xlane.xlu1 %4301 }
 0x5cb   :  { %5848 = vrot.lane.b32.xlu1 %v16592_v56, %s10671_s23  ;;  %v3804_v56 = vsub.f32 %v16597_v19, %v16596_v12 }
 0x5cc   :  { %v14264_v27 = vpop.xlane.xlu0 %4298 }
 0x5cd   :  { %v5535_v26 = vpop.permute.xlu1 %5534  ;;  %v3997_v30 = vmul.f32 1.442695, %v3804_v56 }
 0x5ce   :  { %9751 = vmatprep.subr.mxu0 %v5535_v26 }
 0x5cf   :  { %5846 = vrot.lane.b32.xlu1 %v16593_v40, %s10671_s23  ;;  %9752 = vmatpush3.msra.mxu0 %v5535_v26  ;;  %v16598_v40 = vld [vmem:[#allocation206_spill] sm:$0xff]  ;;  %v16599_v26 = vld [vmem:[#allocation165_spill] sm:$0xff]  ;;  %10319 = vpow2.f32 %v3997_v30 }
 0x5d0   :  { %v5382_v31 = vpop.permute.xlu0 %5381  ;;  %v3803_v41 = vsub.f32 %v16599_v26, %v16598_v40 }
 0x5d1   :  { %v5533_v21 = vpop.permute.xlu1 %5532  ;;  %9723 = vmatprep.subr.mxu1 %v5382_v31 }
 0x5d2   :  { %9753 = vmatprep.subr.mxu0 %v5533_v21  ;;  %9724 = vmatpush3.msra.mxu1 %v5382_v31  ;;  %v3812_v31 = vsub.f32 %v16601_v57, %v16600_v61 }
 0x5d3   :  { %9754 = vmatpush3.msra.mxu0 %v5533_v21  ;;  %5695 = vrot.lane.b32.xlu0 %v16594_v35, %s10671_s23  ;;  %v3995_v21 = vmul.f32 1.442695, %v3803_v41  ;;  %v3811_v35 = vsub.f32 %v16603_v10, %v16602_v48 }
 0x5d4   :  { %v5380_v15 = vpop.permute.xlu0 %5379  ;;  %v4013_v50 = vmul.f32 1.442695, %v3812_v31 }
 0x5d5   :  { %9725 = vmatprep.subr.mxu1 %v5380_v15  ;;  %10321 = vpow2.f32 %v3995_v21 }
 0x5d6   :  { %9726 = vmatpush3.msra.mxu1 %v5380_v15  ;;  %v4011_v15 = vmul.f32 1.442695, %v3811_v35  ;;  %10323 = vpow2.f32 %v4013_v50 }
 0x5d7   :  { %5693 = vrot.lane.b32.xlu0 %v16595_v8, %s10671_s23 }
 0x5d8   :  { %10325 = vpow2.f32 %v4011_v15  ;;  %v16607_v15 = vld [vmem:[#allocation55_spill] sm:$0xff] }
 0x5d9   :  { %10327 = vrcp.f32 %v14012_v51 }
 0x5da   :  { %10329 = vrcp.f32 %v14056_v45 }
 0x5db   :  { %10331 = vrcp.f32 %v14008_v37  ;;  %v16604_v37 = vld [vmem:[#allocation56_spill] sm:$0xff] }
 0x5dc   :  { %v14280_v8 = vpop.eup %10319  ;;  %10333 = vrcp.f32 %v14050_v23 }
 0x5dd   :  { %v4318_v19 = vsel %vm3354_vm2, %v14280_v8, 0.0  ;;  %10335 = vrcp.f32 %v14052_v55  ;;  %v16605_v55 = vld [vmem:[#allocation57_spill] sm:$0xff] }
 0x5de   :  { %10337 = vrcp.f32 %v14107_v42 }
 0x5df   :  { %10339 = vrcp.f32 %v14048_v22 }
 0x5e0   :  { %10341 = vrcp.f32 %v14097_v39 }
 0x5e1   :  { %10343 = vrcp.f32 %v14100_v0 }
 0x5e2   :  { %v14282_v12 = vpop.eup %10321  ;;  %10345 = vrcp.f32 %v14184_v25  ;;  %v16606_v25 = vld [vmem:[#allocation54_spill] sm:$0xff] }
 0x5e3   :  { %v14286_v56 = vpop.eup %10323  ;;  %v4315_v41 = vsel %vm3354_vm2, %v14282_v12, 0.0  ;;  %10347 = vrcp.f32 %v14092_v14 }
 0x5e4   :  { %v4342_v30 = vsel %vm3354_vm2, %v14286_v56, 0.0  ;;  %10349 = vrcp.f32 %v14178_v16 }
 0x5e5   :  { %v14290_v10 = vpop.eup %10325  ;;  %10351 = vrcp.f32 %v14180_v52 }
 0x5e6   :  { %v4339_v61 = vsel %vm3354_vm2, %v14290_v10, 0.0  ;;  %v10328_v23 = vpop.eup %10327  ;;  %10353 = vrcp.f32 %v14224_v36 }
 0x5e7   :  { %v10330_v45 = vpop.eup %10329  ;;  %10355 = vrcp.f32 %v14176_v46  ;;  %v4676_v16 = vmul.f32 %v10328_v23, %v13876_v62 }
 0x5e8   :  { %v10332_v0 = vpop.eup %10331  ;;  %10357 = vrcp.f32 %v14218_v44  ;;  %v4677_v36 = vmul.f32 %v10330_v45, %v13966_v13  ;;  %v16610_v45 = vld [vmem:[#allocation212_spill] sm:$0xff] }
 0x5e9   :  { %v10334_v42 = vpop.eup %10333  ;;  %v4668_v31 = vmul.f32 %v10332_v0, %v13866_v54 }
 0x5ea   :  { %v10336_v52 = vpop.eup %10335  ;;  %v4669_v21 = vmul.f32 %v10334_v42, %v13958_v63  ;;  %v16608_v63 = vld [vmem:[#allocation222_spill] sm:$0xff]  ;;  %v16613_v42 = vld [vmem:[#allocation188_spill] sm:$0xff] }
 0x5eb   :  { %v10338_v40 = vpop.eup %10337  ;;  %v4678_v44 = vmul.f32 %v10336_v52, %v13962_v33 }
 0x5ec   :  { %v10340_v26 = vpop.eup %10339  ;;  %v4679_v13 = vmul.f32 %v10338_v40, %v14002_v18 }
 0x5ed   :  { %v10342_v62 = vpop.eup %10341  ;;  %v4670_v33 = vmul.f32 %v10340_v26, %v13956_v9  ;;  %v16611_v9 = vld [vmem:[#allocation169_spill] sm:$0xff] }
 0x5ee   :  { %v10344_v35 = vpop.eup %10343 }
 0x5f3   :  { %4319 = vadd.xlane.f32.xlu1 %v4318_v19  ;;  %v10346_v19 = vpop.eup %10345 }
 0x5f4   :  { %v10348_v54 = vpop.eup %10347  ;;  %v4681_v18 = vmul.f32 %v10346_v19, %v14042_v4 }
 0x5f5   :  { %v4672_v0 = vmul.f32 %v10348_v54, %v13992_v49  ;;  %v16614_v49 = vld [vmem:[#allocation238_spill] sm:$0xff] }
 0x5f6   :  { %4316 = vadd.xlane.f32.xlu0 %v4315_v41  ;;  %v10350_v41 = vpop.eup %10349 }
 0x5f7   :  { %4343 = vadd.xlane.f32.xlu1 %v4342_v30  ;;  %v16609_v30 = vld [vmem:[#allocation174_spill] sm:$0xff]  ;;  %v10352_v23 = vpop.eup %10351  ;;  %v4673_v4 = vmul.f32 %v10350_v41, %v14034_v60  ;;  %v16616_v41 = vld [vmem:[#allocation48_spill] sm:$0xff] }
 0x5f8   :  { %v4682_v52 = vmul.f32 %v10352_v23, %v14038_v58  ;;  %v16618_v23 = vld [vmem:[#allocation46_spill] sm:$0xff] }
 0x5fa   :  { %4340 = vadd.xlane.f32.xlu0 %v4339_v61  ;;  %v3806_v61 = vsub.f32 %v16609_v30, %v16608_v63 }
 0x602   :  { %v14300_v57 = vpop.xlane.xlu1 %4283 }
 0x605   :  { %v14305_v48 = vpop.xlane.xlu0 %4280 }
 0x606   :  { %v14308_v50 = vpop.xlane.xlu1 %4307 }
 0x608   :  { %5844 = vrot.lane.b32.xlu1 %v16604_v37, %s10671_s23  ;;  %v4680_v37 = vmul.f32 %v10344_v35, %v13998_v53 }
 0x609   :  { %v14315_v51 = vpop.xlane.xlu0 %4304 }
 0x60a   :  { %v5531_v22 = vpop.permute.xlu1 %5530 }
 0x60b   :  { %9755 = vmatprep.subr.mxu0 %v5531_v22 }
 0x60c   :  { %5842 = vrot.lane.b32.xlu1 %v16605_v55, %s10671_s23  ;;  %9756 = vmatpush3.msra.mxu0 %v5531_v22  ;;  %v4671_v22 = vmul.f32 %v10342_v62, %v13994_v34  ;;  %v10354_v55 = vpop.eup %10353  ;;  %v16612_v34 = vld [vmem:[#allocation247_spill] sm:$0xff] }
 0x60d   :  { %v5378_v39 = vpop.permute.xlu0 %5377  ;;  %v10356_v53 = vpop.eup %10355 }
 0x60e   :  { %v5529_v14 = vpop.permute.xlu1 %5528  ;;  %9727 = vmatprep.subr.mxu1 %v5378_v39 }
 0x60f   :  { %9757 = vmatprep.subr.mxu0 %v5529_v14  ;;  %9728 = vmatpush3.msra.mxu1 %v5378_v39  ;;  %v3805_v39 = vsub.f32 %v16611_v9, %v16610_v45  ;;  %v16620_v45 = vld [vmem:[#allocation230_spill] sm:$0xff] }
 0x610   :  { %9758 = vmatpush3.msra.mxu0 %v5529_v14  ;;  %5691 = vrot.lane.b32.xlu0 %v16606_v25, %s10671_s23  ;;  %v4001_v14 = vmul.f32 1.442695, %v3806_v61  ;;  %v10358_v25 = vpop.eup %10357  ;;  %v16617_v61 = vld [vmem:[#allocation49_spill] sm:$0xff]  ;;  %v16621_v9 = vld [vmem:[#allocation178_spill] sm:$0xff] }
 0x611   :  { %9760 = vmatmul.mubr.msk.f32.vlgmr.msra.gmra.mxu0 %vm3354_vm2, %v4676_v16  ;;  %v5376_v46 = vpop.permute.xlu0 %5375  ;;  %v3814_v16 = vsub.f32 %v16613_v42, %v16612_v34  ;;  %v3999_v40 = vmul.f32 1.442695, %v3805_v39  ;;  %v4683_v60 = vmul.f32 %v10358_v25, %v14074_v7  ;;  %v3808_v39 = vsub.f32 %v16621_v9, %v16620_v45  ;;  %v16624_v42 = vld [vmem:[#allocation251_spill] sm:$0xff]  ;;  %v16626_v25 = vld [vmem:[#allocation245_spill] sm:$0xff]  ;;  %v16630_v45 = vld [vmem:[#allocation38_spill] sm:$0xff] }
 0x612   :  { %9762 = vmatprep.mubr.msk.f32.mxu0 %vm3354_vm2, %v4677_v36  ;;  %9729 = vmatprep.subr.mxu1 %v5376_v46  ;;  %v4691_v36 = vmul.f32 %v10354_v55, %v14082_v2  ;;  %10359 = vpow2.f32 %v4001_v14  ;;  %v16619_v55 = vld [vmem:[#allocation47_spill] sm:$0xff] }
 0x613   :  { %9730 = vmatpush3.msra.mxu1 %v5376_v46  ;;  %v16615_v46 = vld [vmem:[#allocation183_spill] sm:$0xff]  ;;  %v4017_v58 = vmul.f32 1.442695, %v3814_v16  ;;  %10361 = vpow2.f32 %v3999_v40  ;;  %v4005_v34 = vmul.f32 1.442695, %v3808_v39  ;;  %v16625_v16 = vld [vmem:[#allocation192_spill] sm:$0xff] }
 0x614   :  { %5689 = vrot.lane.b32.xlu0 %v16607_v15, %s10671_s23  ;;  %9732 = vmatmul.mubr.msk.f32.vlgmr.msra.gmra.mxu1 %vm3354_vm2, %v4668_v31  ;;  %v3813_v26 = vsub.f32 %v16615_v46, %v16614_v49  ;;  %v4674_v31 = vmul.f32 %v10356_v53, %v14032_v6  ;;  %v16623_v53 = vld [vmem:[#allocation173_spill] sm:$0xff]  ;;  %v16631_v39 = vld [vmem:[#allocation39_spill] sm:$0xff] }
 0x615   :  { %9763 = vmatmul.mubr.msk.f32.gmra.mxu0 %vm3354_vm2, %v4678_v44  ;;  %9734 = vmatprep.mubr.msk.f32.mxu1 %vm3354_vm2, %v4669_v21  ;;  %10363 = vpow2.f32 %v4017_v58 }
 0x616   :  { %9765 = vmatprep.mubr.msk.f32.mxu0 %vm3354_vm2, %v4679_v13  ;;  %v4015_v2 = vmul.f32 1.442695, %v3813_v26 }
 0x618   :  { %9735 = vmatmul.mubr.msk.f32.gmra.mxu1 %vm3354_vm2, %v4670_v33  ;;  %10365 = vpow2.f32 %v4015_v2 }
 0x619   :  { %9766 = vmatmul.mubr.msk.f32.gmra.mxu0 %vm3354_vm2, %v4680_v37  ;;  %9737 = vmatprep.mubr.msk.f32.mxu1 %vm3354_vm2, %v4671_v22  ;;  %10367 = vpow2.f32 %v4005_v34  ;;  %v16634_v34 = vld [vmem:[#allocation227_spill] sm:$0xff] }
 0x61a   :  { %9768 = vmatprep.mubr.msk.f32.mxu0 %vm3354_vm2, %v4681_v18 }
 0x61c   :  { %9738 = vmatmul.mubr.msk.f32.gmra.mxu1 %vm3354_vm2, %v4672_v0  ;;  %v16622_v0 = vld [vmem:[#allocation220_spill] sm:$0xff] }
 0x61d   :  { %9769 = vmatmul.mubr.msk.f32.gmra.mxu0 %vm3354_vm2, %v4682_v52  ;;  %9740 = vmatprep.mubr.msk.f32.mxu1 %vm3354_vm2, %v4673_v4  ;;  %v3807_v14 = vsub.f32 %v16623_v53, %v16622_v0  ;;  %v3816_v52 = vsub.f32 %v16625_v16, %v16624_v42  ;;  %v16632_v0 = vld [vmem:[#allocation237_spill] sm:$0xff]  ;;  %v16633_v53 = vld [vmem:[#allocation182_spill] sm:$0xff] }
 0x61e   :  { %9815 = vmatprep.mubr.msk.f32.mxu0 %vm3354_vm2, %v4691_v36  ;;  %v16627_v36 = vld [vmem:[#allocation187_spill] sm:$0xff]  ;;  %v16635_v42 = vld [vmem:[#allocation177_spill] sm:$0xff] }
 0x61f   :  { %v14368_v62 = vpop.eup %10359  ;;  %v4003_v4 = vmul.f32 1.442695, %v3807_v14  ;;  %v3815_v40 = vsub.f32 %v16627_v36, %v16626_v25  ;;  %v4021_v49 = vmul.f32 1.442695, %v3816_v52  ;;  %v3810_v14 = vsub.f32 %v16633_v53, %v16632_v0  ;;  %v16637_v25 = vld [vmem:[#allocation195_spill] sm:$0xff] }
 0x620   :  { %9741 = vmatmul.mubr.msk.f32.gmra.mxu1 %vm3354_vm2, %v4674_v31  ;;  %v14370_v44 = vpop.eup %10361  ;;  %v4324_v21 = vsel %vm3354_vm2, %v14368_v62, 0.0  ;;  %v3809_v16 = vsub.f32 %v16635_v42, %v16634_v34 }
 0x621   :  { %9787 = vmatprep.mubr.msk.f32.mxu1 %vm3354_vm2, %v4683_v60  ;;  %v4321_v7 = vsel %vm3354_vm2, %v14370_v44, 0.0  ;;  %10369 = vpow2.f32 %v4003_v4  ;;  %v4019_v46 = vmul.f32 1.442695, %v3815_v40  ;;  %v4009_v52 = vmul.f32 1.442695, %v3810_v14  ;;  %v16636_v4 = vld [vmem:[#allocation13_spill] sm:$0xff] }
 0x622   :  { %v14374_v6 = vpop.eup %10363  ;;  %10371 = vpow2.f32 %v4021_v49  ;;  %v3818_v36 = vsub.f32 %v16637_v25, %v16636_v4  ;;  %v4007_v40 = vmul.f32 1.442695, %v3809_v16  ;;  %v16638_v49 = vld [vmem:[#allocation250_spill] sm:$0xff]  ;;  %v16641_v16 = vld [vmem:[#allocation87_spill] sm:$0xff]  ;;  %v16642_v25 = vld [vmem:[#allocation32_spill] sm:$0xff] }
 0x623   :  { %v4348_v15 = vsel %vm3354_vm2, %v14374_v6, 0.0  ;;  %10373 = vpow2.f32 %v4019_v46  ;;  %v16639_v46 = vld [vmem:[#allocation191_spill] sm:$0xff]  ;;  %v16640_v14 = vld [vmem:[#allocation86_spill] sm:$0xff] }
 0x624   :  { %10375 = vpow2.f32 %v4009_v52 }
 0x625   :  { %v14378_v35 = vpop.eup %10365  ;;  %10377 = vpow2.f32 %v4007_v40  ;;  %v16643_v40 = vld [vmem:[#allocation33_spill] sm:$0xff] }
 0x626   :  { %v4345_v13 = vsel %vm3354_vm2, %v14378_v35, 0.0  ;;  %v14408_v26 = vpop.eup %10367 }
 0x627   :  { %v4330_v58 = vsel %vm3354_vm2, %v14408_v26, 0.0 }
 0x62e   :  { %v14410_v31 = vpop.eup %10369 }
 0x62f   :  { %v14414_v60 = vpop.eup %10371  ;;  %v4327_v2 = vsel %vm3354_vm2, %v14410_v31, 0.0 }
 0x630   :  { %4325 = vadd.xlane.f32.xlu1 %v4324_v21  ;;  %v14418_v21 = vpop.eup %10373 }
 0x633   :  { %4322 = vadd.xlane.f32.xlu0 %v4321_v7  ;;  %v4354_v7 = vsel %vm3354_vm2, %v14414_v60, 0.0 }
 0x634   :  { %4349 = vadd.xlane.f32.xlu1 %v4348_v15  ;;  %v4351_v15 = vsel %vm3354_vm2, %v14418_v21, 0.0 }
 0x637   :  { %4346 = vadd.xlane.f32.xlu0 %v4345_v13 }
 0x63f   :  { %v14384_v19 = vpop.xlane.xlu1 %4289 }
 0x642   :  { %v14386_v54 = vpop.xlane.xlu0 %4286 }
 0x643   :  { %v14388_v33 = vpop.xlane.xlu1 %4313 }
 0x645   :  { %5840 = vrot.lane.b32.xlu1 %v16616_v41, %s10671_s23 }
 0x646   :  { %v14392_v63 = vpop.xlane.xlu0 %4310 }
 0x647   :  { %v5849_v30 = vpop.permute.xlu1 %5848 }
 0x648   :  { %9799 = vmatprep.subr.mxu0 %v5849_v30 }
 0x649   :  { %5838 = vrot.lane.b32.xlu1 %v16617_v61, %s10671_s23  ;;  %9800 = vmatpush3.msra.mxu0 %v5849_v30  ;;  %v16628_v61 = vld [vmem:[#allocation40_spill] sm:$0xff] }
 0x64a   :  { %v5696_v37 = vpop.permute.xlu0 %5695 }
 0x64b   :  { %v5847_v22 = vpop.permute.xlu1 %5846  ;;  %9771 = vmatprep.subr.mxu1 %v5696_v37 }
 0x64c   :  { %9801 = vmatprep.subr.mxu0 %v5847_v22  ;;  %9772 = vmatpush3.msra.mxu1 %v5696_v37 }
 0x64d   :  { %9802 = vmatpush3.msra.mxu0 %v5847_v22  ;;  %5687 = vrot.lane.b32.xlu0 %v16618_v23, %s10671_s23  ;;  %v16629_v23 = vld [vmem:[#allocation41_spill] sm:$0xff] }
 0x64e   :  { %v5694_v18 = vpop.permute.xlu0 %5693 }
 0x64f   :  { %9773 = vmatprep.subr.mxu1 %v5694_v18 }
 0x650   :  { %9774 = vmatpush3.msra.mxu1 %v5694_v18 }
 0x651   :  { %5685 = vrot.lane.b32.xlu0 %v16619_v55, %s10671_s23 }
 0x66d   :  { %4331 = vadd.xlane.f32.xlu1 %v4330_v58  ;;  %v3817_v58 = vsub.f32 %v16639_v46, %v16638_v49  ;;  %v16644_v49 = vld [vmem:[#allocation244_spill] sm:$0xff]  ;;  %v16645_v46 = vld [vmem:[#allocation186_spill] sm:$0xff] }
 0x670   :  { %4328 = vadd.xlane.f32.xlu0 %v4327_v2  ;;  %v4025_v2 = vmul.f32 1.442695, %v3818_v36 }
 0x671   :  { %4355 = vadd.xlane.f32.xlu1 %v4354_v7  ;;  %v4023_v7 = vmul.f32 1.442695, %v3817_v58  ;;  %v3820_v58 = vsub.f32 %v16645_v46, %v16644_v49 }
 0x672   :  { %10379 = vpow2.f32 %v4025_v2  ;;  %v16646_v2 = vld [vmem:[#allocation234_spill] sm:$0xff] }
 0x673   :  { %10381 = vpow2.f32 %v4023_v7  ;;  %v16647_v7 = vld [vmem:[#allocation181_spill] sm:$0xff] }
 0x674   :  { %4352 = vadd.xlane.f32.xlu0 %v4351_v15  ;;  %v14448_v15 = vpop.eup %10375 }
 0x67c   :  { %v14424_v13 = vpop.xlane.xlu1 %4319 }
 0x67f   :  { %v14426_v41 = vpop.xlane.xlu0 %4316 }
 0x680   :  { %v14428_v30 = vpop.xlane.xlu1 %4343 }
 0x682   :  { %5836 = vrot.lane.b32.xlu1 %v16628_v61, %s10671_s23  ;;  %v14450_v61 = vpop.eup %10377 }
 0x683   :  { %v14432_v37 = vpop.xlane.xlu0 %4340 }
 0x684   :  { %v5845_v22 = vpop.permute.xlu1 %5844 }
 0x685   :  { %9803 = vmatprep.subr.mxu0 %v5845_v22 }
 0x686   :  { %5834 = vrot.lane.b32.xlu1 %v16629_v23, %s10671_s23  ;;  %9804 = vmatpush3.msra.mxu0 %v5845_v22  ;;  %v4336_v22 = vsel %vm3354_vm2, %v14448_v15, 0.0  ;;  %v14454_v23 = vpop.eup %10379 }
 0x687   :  { %v5692_v18 = vpop.permute.xlu0 %5691 }
 0x688   :  { %v5843_v55 = vpop.permute.xlu1 %5842  ;;  %9775 = vmatprep.subr.mxu1 %v5692_v18 }
 0x689   :  { %9805 = vmatprep.subr.mxu0 %v5843_v55  ;;  %9776 = vmatpush3.msra.mxu1 %v5692_v18  ;;  %v4333_v18 = vsel %vm3354_vm2, %v14450_v61, 0.0 }
 0x68a   :  { %9806 = vmatpush3.msra.mxu0 %v5843_v55  ;;  %5683 = vrot.lane.b32.xlu0 %v16630_v45, %s10671_s23  ;;  %v14458_v55 = vpop.eup %10381  ;;  %v4360_v45 = vsel %vm3354_vm2, %v14454_v23, 0.0 }
 0x68b   :  { %v5690_v9 = vpop.permute.xlu0 %5689 }
 0x68c   :  { %9777 = vmatprep.subr.mxu1 %v5690_v9 }
 0x68d   :  { %9778 = vmatpush3.msra.mxu1 %v5690_v9  ;;  %v4357_v9 = vsel %vm3354_vm2, %v14458_v55, 0.0 }
 0x68e   :  { %5681 = vrot.lane.b32.xlu0 %v16631_v39, %s10671_s23 }
 0x6aa   :  { %4337 = vadd.xlane.f32.xlu1 %v4336_v22  ;;  %v3819_v22 = vsub.f32 %v16647_v7, %v16646_v2 }
 0x6ad   :  { %4334 = vadd.xlane.f32.xlu0 %v4333_v18  ;;  %v4029_v18 = vmul.f32 1.442695, %v3820_v58 }
 0x6ae   :  { %4361 = vadd.xlane.f32.xlu1 %v4360_v45  ;;  %v16648_v45 = vld [vmem:[#allocation142_spill] sm:$0xff] }
 0x6af   :  { %10383 = vpow2.f32 %v4029_v18 }
 0x6b1   :  { %4358 = vadd.xlane.f32.xlu0 %v4357_v9  ;;  %v16649_v9 = vld [vmem:[#allocation199_spill] sm:$0xff] }
 0x6b9   :  { %v14464_v39 = vpop.xlane.xlu1 %4325 }
 0x6bc   :  { %v14466_v0 = vpop.xlane.xlu0 %4322 }
 0x6bd   :  { %v14468_v53 = vpop.xlane.xlu1 %4349 }
 0x6bf   :  { %6154 = vrot.lane.b32.xlu1 %v16640_v14, %s10671_s23  ;;  %v3828_v14 = vsub.f32 %v16649_v9, %v16648_v45 }
 0x6c0   :  { %v14472_v34 = vpop.xlane.xlu0 %4346 }
 0x6c1   :  { %v5841_v42 = vpop.permute.xlu1 %5840 }
 0x6c2   :  { %9807 = vmatprep.subr.mxu0 %v5841_v42 }
 0x6c3   :  { %6152 = vrot.lane.b32.xlu1 %v16641_v16, %s10671_s23  ;;  %9808 = vmatpush3.msra.mxu0 %v5841_v42  ;;  %v4027_v42 = vmul.f32 1.442695, %v3819_v22  ;;  %v16650_v16 = vld [vmem:[#allocation254_spill] sm:$0xff] }
 0x6c4   :  { %v5688_v52 = vpop.permute.xlu0 %5687 }
 0x6c5   :  { %v5839_v4 = vpop.permute.xlu1 %5838  ;;  %9779 = vmatprep.subr.mxu1 %v5688_v52  ;;  %10385 = vpow2.f32 %v4027_v42 }
 0x6c6   :  { %9809 = vmatprep.subr.mxu0 %v5839_v4  ;;  %9780 = vmatpush3.msra.mxu1 %v5688_v52  ;;  %v16651_v52 = vld [vmem:[#allocation197_spill] sm:$0xff] }
 0x6c7   :  { %9810 = vmatpush3.msra.mxu0 %v5839_v4  ;;  %6001 = vrot.lane.b32.xlu0 %v16642_v25, %s10671_s23  ;;  %v3827_v4 = vsub.f32 %v16651_v52, %v16650_v16  ;;  %v4045_v25 = vmul.f32 1.442695, %v3828_v14 }
 0x6c8   :  { %v5686_v36 = vpop.permute.xlu0 %5685 }
 0x6c9   :  { %9781 = vmatprep.subr.mxu1 %v5686_v36  ;;  %10387 = vpow2.f32 %v4045_v25 }
 0x6ca   :  { %9782 = vmatpush3.msra.mxu1 %v5686_v36  ;;  %v4043_v36 = vmul.f32 1.442695, %v3827_v4 }
 0x6cb   :  { %5999 = vrot.lane.b32.xlu0 %v16643_v40, %s10671_s23  ;;  %v14488_v40 = vpop.eup %10383 }
 0x6cc   :  { %10389 = vpow2.f32 %v4043_v36  ;;  %v4366_v46 = vsel %vm3354_vm2, %v14488_v40, 0.0  ;;  %v16655_v36 = vld [vmem:[#allocation27_spill] sm:$0xff] }
 0x6cd   :  { %10391 = vrcp.f32 %v14220_v32 }
 0x6ce   :  { %10393 = vrcp.f32 %v14264_v27 }
 0x6cf   :  { %10395 = vrcp.f32 %v14216_v29  ;;  %v16652_v29 = vld [vmem:[#allocation80_spill] sm:$0xff] }
 0x6d0   :  { %10397 = vrcp.f32 %v14258_v43 }
 0x6d1   :  { %10399 = vrcp.f32 %v14260_v1  ;;  %v16653_v1 = vld [vmem:[#allocation81_spill] sm:$0xff] }
 0x6d2   :  { %v14490_v49 = vpop.eup %10385  ;;  %10401 = vrcp.f32 %v14315_v51 }
 0x6d3   :  { %v4363_v2 = vsel %vm3354_vm2, %v14490_v49, 0.0  ;;  %10403 = vrcp.f32 %v14256_v38 }
 0x6d4   :  { %10405 = vrcp.f32 %v14305_v48 }
 0x6d5   :  { %10407 = vrcp.f32 %v14308_v50 }
 0x6d6   :  { %v14494_v58 = vpop.eup %10387  ;;  %10409 = vrcp.f32 %v14392_v63  ;;  %v16654_v63 = vld [vmem:[#allocation26_spill] sm:$0xff] }
 0x6d7   :  { %v4390_v22 = vsel %vm3354_vm2, %v14494_v58, 0.0  ;;  %10411 = vrcp.f32 %v14300_v57 }
 0x6d8   :  { %10413 = vrcp.f32 %v14386_v54 }
 0x6d9   :  { %v14498_v7 = vpop.eup %10389  ;;  %10415 = vrcp.f32 %v14388_v33 }
 0x6da   :  { %v4387_v18 = vsel %vm3354_vm2, %v14498_v7, 0.0  ;;  %v10392_v43 = vpop.eup %10391  ;;  %10417 = vrcp.f32 %v14432_v37 }
 0x6db   :  { %v10394_v27 = vpop.eup %10393  ;;  %10419 = vrcp.f32 %v14384_v19  ;;  %v4692_v54 = vmul.f32 %v10392_v43, %v14078_v5 }
 0x6dc   :  { %v10396_v50 = vpop.eup %10395  ;;  %10421 = vrcp.f32 %v14426_v41  ;;  %v4693_v37 = vmul.f32 %v10394_v27, %v14170_v24 }
 0x6dd   :  { %v10398_v51 = vpop.eup %10397  ;;  %v4684_v52 = vmul.f32 %v10396_v50, %v14072_v47 }
 0x6de   :  { %v10400_v33 = vpop.eup %10399  ;;  %v4685_v4 = vmul.f32 %v10398_v51, %v14162_v28  ;;  %v16656_v28 = vld [vmem:[#allocation249_spill] sm:$0xff] }
 0x6df   :  { %v10402_v42 = vpop.eup %10401  ;;  %v4694_v41 = vmul.f32 %v10400_v33, %v14166_v59  ;;  %v16663_v33 = vld [vmem:[#allocation115_spill] sm:$0xff] }
 0x6e0   :  { %v10404_v16 = vpop.eup %10403  ;;  %v4695_v24 = vmul.f32 %v10402_v42, %v14210_v20  ;;  %v16658_v20 = vld [vmem:[#allocation150_spill] sm:$0xff] }
 0x6e1   :  { %v10406_v5 = vpop.eup %10405  ;;  %v4686_v59 = vmul.f32 %v10404_v16, %v14160_v3  ;;  %v16660_v3 = vld [vmem:[#allocation185_spill] sm:$0xff] }
 0x6e2   :  { %v10408_v25 = vpop.eup %10407 }
 0x6e7   :  { %4367 = vadd.xlane.f32.xlu1 %v4366_v46  ;;  %v10410_v46 = vpop.eup %10409 }
 0x6e8   :  { %v10412_v47 = vpop.eup %10411 }
 0x6ea   :  { %4364 = vadd.xlane.f32.xlu0 %v4363_v2  ;;  %v10414_v2 = vpop.eup %10413 }
 0x6eb   :  { %4391 = vadd.xlane.f32.xlu1 %v4390_v22  ;;  %v16657_v22 = vld [vmem:[#allocation190_spill] sm:$0xff]  ;;  %v10416_v43 = vpop.eup %10415 }
 0x6ec   :  { %v10418_v27 = vpop.eup %10417 }
 0x6ee   :  { %4388 = vadd.xlane.f32.xlu0 %v4387_v18  ;;  %v3822_v18 = vsub.f32 %v16657_v22, %v16656_v28 }
 0x6f6   :  { %v14508_v45 = vpop.xlane.xlu1 %4331 }
 0x6f9   :  { %v14513_v9 = vpop.xlane.xlu0 %4328 }
 0x6fa   :  { %v14516_v14 = vpop.xlane.xlu1 %4355 }
 0x6fc   :  { %6150 = vrot.lane.b32.xlu1 %v16652_v29, %s10671_s23  ;;  %v4696_v29 = vmul.f32 %v10408_v25, %v14206_v17  ;;  %v10420_v17 = vpop.eup %10419  ;;  %v16667_v25 = vld [vmem:[#allocation201_spill] sm:$0xff] }
 0x6fd   :  { %v14523_v32 = vpop.xlane.xlu0 %4352 }
 0x6fe   :  { %v5837_v38 = vpop.permute.xlu1 %5836 }
 0x6ff   :  { %9811 = vmatprep.subr.mxu0 %v5837_v38 }
 0x700   :  { %6148 = vrot.lane.b32.xlu1 %v16653_v1, %s10671_s23  ;;  %9812 = vmatpush3.msra.mxu0 %v5837_v38  ;;  %v4687_v38 = vmul.f32 %v10406_v5, %v14202_v11  ;;  %v4697_v1 = vmul.f32 %v10410_v46, %v16658_v20  ;;  %v16662_v11 = vld [vmem:[#allocation257_spill] sm:$0xff]  ;;  %v4707_v5 = vmul.f32 %v10418_v27, %v14290_v10 }
 0x701   :  { %v5684_v48 = vpop.permute.xlu0 %5683 }
 0x702   :  { %v5835_v57 = vpop.permute.xlu1 %5834  ;;  %9783 = vmatprep.subr.mxu1 %v5684_v48 }
 0x703   :  { %9813 = vmatprep.subr.mxu0 %v5835_v57  ;;  %9784 = vmatpush3.msra.mxu1 %v5684_v48  ;;  %v16659_v48 = vld [vmem:[#allocation242_spill] sm:$0xff] }
 0x704   :  { %9814 = vmatpush3.msra.mxu0 %v5835_v57  ;;  %5997 = vrot.lane.b32.xlu0 %v16654_v63, %s10671_s23  ;;  %v3821_v50 = vsub.f32 %v16660_v3, %v16659_v48  ;;  %v16661_v57 = vld [vmem:[#allocation25_spill] sm:$0xff]  ;;  %v3830_v63 = vsub.f32 %v16663_v33, %v16662_v11  ;;  %v16669_v48 = vld [vmem:[#allocation74_spill] sm:$0xff] }
 0x705   :  { %9816 = vmatmul.mubr.msk.f32.vlgmr.msra.gmra.mxu0 %vm3354_vm2, %v4692_v54  ;;  %v5682_v19 = vpop.permute.xlu0 %5681  ;;  %v4688_v51 = vmul.f32 %v10412_v47, %v16661_v57  ;;  %v4033_v54 = vmul.f32 1.442695, %v3822_v18  ;;  %v16670_v57 = vld [vmem:[#allocation75_spill] sm:$0xff]  ;;  %v16672_v33 = vld [vmem:[#allocation22_spill] sm:$0xff] }
 0x706   :  { %9818 = vmatprep.mubr.msk.f32.mxu0 %vm3354_vm2, %v4693_v37  ;;  %9785 = vmatprep.subr.mxu1 %v5682_v19  ;;  %v16664_v37 = vld [vmem:[#allocation156_spill] sm:$0xff]  ;;  %v4049_v47 = vmul.f32 1.442695, %v3830_v63  ;;  %v16673_v63 = vld [vmem:[#allocation253_spill] sm:$0xff] }
 0x707   :  { %9786 = vmatpush3.msra.mxu1 %v5682_v19  ;;  %v4698_v42 = vmul.f32 %v10416_v43, %v16664_v37  ;;  %v16665_v19 = vld [vmem:[#allocation127_spill] sm:$0xff]  ;;  %10423 = vpow2.f32 %v4033_v54  ;;  %v16671_v54 = vld [vmem:[#allocation21_spill] sm:$0xff]  ;;  %v16674_v37 = vld [vmem:[#allocation194_spill] sm:$0xff] }
 0x708   :  { %5995 = vrot.lane.b32.xlu0 %v16655_v36, %s10671_s23  ;;  %9788 = vmatmul.mubr.msk.f32.vlgmr.msra.gmra.mxu1 %vm3354_vm2, %v4684_v52  ;;  %v4689_v16 = vmul.f32 %v10414_v2, %v16665_v19  ;;  %v10422_v52 = vpop.eup %10421  ;;  %v16675_v19 = vld [vmem:[#allocation248_spill] sm:$0xff] }
 0x709   :  { %9819 = vmatmul.mubr.msk.f32.gmra.mxu0 %vm3354_vm2, %v4694_v41  ;;  %9790 = vmatprep.mubr.msk.f32.mxu1 %vm3354_vm2, %v4685_v4  ;;  %v4031_v41 = vmul.f32 1.442695, %v3821_v50  ;;  %v16666_v4 = vld [vmem:[#allocation140_spill] sm:$0xff] }
 0x70a   :  { %9821 = vmatprep.mubr.msk.f32.mxu0 %vm3354_vm2, %v4695_v24  ;;  %v3829_v36 = vsub.f32 %v16667_v25, %v16666_v4  ;;  %v16668_v24 = vld [vmem:[#allocation126_spill] sm:$0xff]  ;;  %v16678_v4 = vld [vmem:[#allocation124_spill] sm:$0xff] }
 0x70b   :  { %v4690_v46 = vmul.f32 %v10420_v17, %v16668_v24  ;;  %10425 = vpow2.f32 %v4031_v41  ;;  %v16677_v41 = vld [vmem:[#allocation263_spill] sm:$0xff]  ;;  %v16679_v24 = vld [vmem:[#allocation260_spill] sm:$0xff] }
 0x70c   :  { %9791 = vmatmul.mubr.msk.f32.gmra.mxu1 %vm3354_vm2, %v4686_v59  ;;  %v4699_v59 = vmul.f32 %v10422_v52, %v14282_v12  ;;  %v4047_v10 = vmul.f32 1.442695, %v3829_v36  ;;  %10427 = vpow2.f32 %v4049_v47  ;;  %v3832_v25 = vsub.f32 %v16678_v4, %v16677_v41  ;;  %v16685_v41 = vld [vmem:[#allocation15_spill] sm:$0xff]  ;;  %v16686_v4 = vld [vmem:[#allocation30_spill] sm:$0xff] }
 0x70d   :  { %9822 = vmatmul.mubr.msk.f32.gmra.mxu0 %vm3354_vm2, %v4696_v29  ;;  %9793 = vmatprep.mubr.msk.f32.mxu1 %vm3354_vm2, %v4687_v38 }
 0x70e   :  { %9824 = vmatprep.mubr.msk.f32.mxu0 %vm3354_vm2, %v4697_v1  ;;  %10429 = vpow2.f32 %v4047_v10 }
 0x710   :  { %9794 = vmatmul.mubr.msk.f32.gmra.mxu1 %vm3354_vm2, %v4688_v51 }
 0x711   :  { %9825 = vmatmul.mubr.msk.f32.gmra.mxu0 %vm3354_vm2, %v4698_v42  ;;  %9796 = vmatprep.mubr.msk.f32.mxu1 %vm3354_vm2, %v4689_v16  ;;  %v3824_v42 = vsub.f32 %v16674_v37, %v16673_v63  ;;  %v16676_v16 = vld [vmem:[#allocation189_spill] sm:$0xff] }
 0x712   :  { %9871 = vmatprep.mubr.msk.f32.mxu0 %vm3354_vm2, %v4707_v5  ;;  %v3823_v52 = vsub.f32 %v16676_v16, %v16675_v19 }
 0x713   :  { %v4037_v5 = vmul.f32 1.442695, %v3824_v42  ;;  %v16683_v42 = vld [vmem:[#allocation69_spill] sm:$0xff] }
 0x714   :  { %9797 = vmatmul.mubr.msk.f32.gmra.mxu1 %vm3354_vm2, %v4690_v46  ;;  %v14576_v2 = vpop.eup %10423  ;;  %v4035_v36 = vmul.f32 1.442695, %v3823_v52  ;;  %v16680_v46 = vld [vmem:[#allocation203_spill] sm:$0xff]  ;;  %v16684_v52 = vld [vmem:[#allocation14_spill] sm:$0xff] }
 0x715   :  { %9843 = vmatprep.mubr.msk.f32.mxu1 %vm3354_vm2, %v4699_v59  ;;  %v4372_v22 = vsel %vm3354_vm2, %v14576_v2, 0.0  ;;  %v3831_v47 = vsub.f32 %v16680_v46, %v16679_v24  ;;  %10431 = vpow2.f32 %v4037_v5  ;;  %v4053_v59 = vmul.f32 1.442695, %v3832_v25  ;;  %v16687_v25 = vld [vmem:[#allocation196_spill] sm:$0xff]  ;;  %v16689_v46 = vld [vmem:[#allocation193_spill] sm:$0xff] }
 0x716   :  { %10433 = vpow2.f32 %v4035_v36  ;;  %v3826_v36 = vsub.f32 %v16687_v25, %v16686_v4  ;;  %v16688_v24 = vld [vmem:[#allocation252_spill] sm:$0xff] }
 0x717   :  { %v4051_v10 = vmul.f32 1.442695, %v3831_v47  ;;  %10435 = vpow2.f32 %v4053_v59  ;;  %v3825_v47 = vsub.f32 %v16689_v46, %v16688_v24 }
 0x718   :  { %v14578_v28 = vpop.eup %10425  ;;  %v4041_v59 = vmul.f32 1.442695, %v3826_v36 }
 0x719   :  { %v14582_v18 = vpop.eup %10427  ;;  %v4369_v12 = vsel %vm3354_vm2, %v14578_v28, 0.0  ;;  %10437 = vpow2.f32 %v4051_v10  ;;  %v16690_v10 = vld [vmem:[#allocation35_spill] sm:$0xff] }
 0x71a   :  { %v4396_v38 = vsel %vm3354_vm2, %v14582_v18, 0.0  ;;  %10439 = vpow2.f32 %v4041_v59 }
 0x71b   :  { %v14586_v29 = vpop.eup %10429 }
 0x71c   :  { %v4393_v43 = vsel %vm3354_vm2, %v14586_v29, 0.0 }
 0x724   :  { %4373 = vadd.xlane.f32.xlu1 %v4372_v22  ;;  %v14616_v22 = vpop.eup %10431 }
 0x725   :  { %16681 = vst [vmem:[#allocation19_spill] sm:$0xff] %v14616_v22 }
 0x727   :  { %4370 = vadd.xlane.f32.xlu0 %v4369_v12  ;;  %v14618_v12 = vpop.eup %10433 }
 0x728   :  { %4397 = vadd.xlane.f32.xlu1 %v4396_v38  ;;  %v4378_v38 = vsel %vm3354_vm2, %v14616_v22, 0.0  ;;  %v16709_v22 = vld [vmem:[#allocation149_spill] sm:$0xff] }
 0x72b   :  { %4394 = vadd.xlane.f32.xlu0 %v4393_v43  ;;  %v14622_v43 = vpop.eup %10435 }
 0x733   :  { %v14592_v20 = vpop.xlane.xlu1 %4337 }
 0x736   :  { %v14594_v1 = vpop.xlane.xlu0 %4334 }
 0x737   :  { %v14596_v27 = vpop.xlane.xlu1 %4361 }
 0x739   :  { %6146 = vrot.lane.b32.xlu1 %v16669_v48, %s10671_s23  ;;  %v4375_v48 = vsel %vm3354_vm2, %v14618_v12, 0.0 }
 0x73a   :  { %v14600_v3 = vpop.xlane.xlu0 %4358 }
 0x73b   :  { %v6155_v50 = vpop.permute.xlu1 %6154 }
 0x73c   :  { %9855 = vmatprep.subr.mxu0 %v6155_v50 }
 0x73d   :  { %6144 = vrot.lane.b32.xlu1 %v16670_v57, %s10671_s23  ;;  %9856 = vmatpush3.msra.mxu0 %v6155_v50  ;;  %v14626_v50 = vpop.eup %10437  ;;  %v4402_v57 = vsel %vm3354_vm2, %v14622_v43, 0.0 }
 0x73e   :  { %v6002_v51 = vpop.permute.xlu0 %6001 }
 0x73f   :  { %v6153_v17 = vpop.permute.xlu1 %6152  ;;  %9827 = vmatprep.subr.mxu1 %v6002_v51 }
 0x740   :  { %9857 = vmatprep.subr.mxu0 %v6153_v17  ;;  %9828 = vmatpush3.msra.mxu1 %v6002_v51  ;;  %v4399_v51 = vsel %vm3354_vm2, %v14626_v50, 0.0 }
 0x741   :  { %9858 = vmatpush3.msra.mxu0 %v6153_v17  ;;  %5993 = vrot.lane.b32.xlu0 %v16671_v54, %s10671_s23 }
 0x742   :  { %v6000_v11 = vpop.permute.xlu0 %5999 }
 0x743   :  { %9829 = vmatprep.subr.mxu1 %v6000_v11 }
 0x744   :  { %9830 = vmatpush3.msra.mxu1 %v6000_v11 }
 0x745   :  { %5991 = vrot.lane.b32.xlu0 %v16672_v33, %s10671_s23  ;;  %v16682_v33 = vld [vmem:[#allocation68_spill] sm:$0xff] }
 0x761   :  { %4379 = vadd.xlane.f32.xlu1 %v4378_v38  ;;  %v16691_v38 = vld [vmem:[#allocation135_spill] sm:$0xff] }
 0x764   :  { %4376 = vadd.xlane.f32.xlu0 %v4375_v48  ;;  %v3834_v48 = vsub.f32 %v16691_v38, %v16690_v10  ;;  %v16698_v10 = vld [vmem:[#allocation90_spill] sm:$0xff] }
 0x765   :  { %4403 = vadd.xlane.f32.xlu1 %v4402_v57  ;;  %v4039_v57 = vmul.f32 1.442695, %v3825_v47 }
 0x767   :  { %10441 = vpow2.f32 %v4039_v57  ;;  %v16699_v57 = vld [vmem:[#allocation91_spill] sm:$0xff] }
 0x768   :  { %4400 = vadd.xlane.f32.xlu0 %v4399_v51  ;;  %v16692_v51 = vld [vmem:[#allocation265_spill] sm:$0xff] }
 0x770   :  { %v14632_v17 = vpop.xlane.xlu1 %4367 }
 0x773   :  { %v14634_v54 = vpop.xlane.xlu0 %4364 }
 0x774   :  { %v14636_v11 = vpop.xlane.xlu1 %4391 }
 0x776   :  { %6142 = vrot.lane.b32.xlu1 %v16682_v33, %s10671_s23  ;;  %v16693_v33 = vld [vmem:[#allocation133_spill] sm:$0xff] }
 0x777   :  { %v14640_v63 = vpop.xlane.xlu0 %4388 }
 0x778   :  { %v6151_v37 = vpop.permute.xlu1 %6150 }
 0x779   :  { %9859 = vmatprep.subr.mxu0 %v6151_v37 }
 0x77a   :  { %6140 = vrot.lane.b32.xlu1 %v16683_v42, %s10671_s23  ;;  %9860 = vmatpush3.msra.mxu0 %v6151_v37  ;;  %v3833_v37 = vsub.f32 %v16693_v33, %v16692_v51  ;;  %v4057_v42 = vmul.f32 1.442695, %v3834_v48 }
 0x77b   :  { %v5998_v19 = vpop.permute.xlu0 %5997 }
 0x77c   :  { %v6149_v16 = vpop.permute.xlu1 %6148  ;;  %9831 = vmatprep.subr.mxu1 %v5998_v19  ;;  %10443 = vpow2.f32 %v4057_v42 }
 0x77d   :  { %9861 = vmatprep.subr.mxu0 %v6149_v16  ;;  %9832 = vmatpush3.msra.mxu1 %v5998_v19  ;;  %v4055_v19 = vmul.f32 1.442695, %v3833_v37  ;;  %v16700_v37 = vld [vmem:[#allocation88_spill] sm:$0xff] }
 0x77e   :  { %9862 = vmatpush3.msra.mxu0 %v6149_v16  ;;  %5989 = vrot.lane.b32.xlu0 %v16684_v52, %s10671_s23  ;;  %v14656_v16 = vpop.eup %10439 }
 0x77f   :  { %v5996_v5 = vpop.permute.xlu0 %5995  ;;  %10445 = vpow2.f32 %v4055_v19  ;;  %16694 = vst [vmem:[#allocation23_spill] sm:$0xff] %v14656_v16  ;;  %v14658_v52 = vpop.eup %10441  ;;  %v16701_v19 = vld [vmem:[#allocation89_spill] sm:$0xff] }
 0x780   :  { %9833 = vmatprep.subr.mxu1 %v5996_v5  ;;  %16695 = vst [vmem:[#allocation18_spill] sm:$0xff] %v14658_v52  ;;  %v4381_v4 = vsel %vm3354_vm2, %v14658_v52, 0.0  ;;  %v16707_v52 = vld [vmem:[#allocation204_spill] sm:$0xff] }
 0x781   :  { %9834 = vmatpush3.msra.mxu1 %v5996_v5  ;;  %v4384_v5 = vsel %vm3354_vm2, %v14656_v16, 0.0  ;;  %v16706_v16 = vld [vmem:[#allocation152_spill] sm:$0xff] }
 0x782   :  { %5987 = vrot.lane.b32.xlu0 %v16685_v41, %s10671_s23 }
 0x789   :  { %v14662_v41 = vpop.eup %10443 }
 0x78a   :  { %16696 = vst [vmem:[#allocation20_spill] sm:$0xff] %v14662_v41  ;;  %v4408_v36 = vsel %vm3354_vm2, %v14662_v41, 0.0  ;;  %v16708_v41 = vld [vmem:[#allocation120_spill] sm:$0xff] }
 0x78c   :  { %v14666_v25 = vpop.eup %10445 }
 0x78d   :  { %16697 = vst [vmem:[#allocation130_spill] sm:$0xff] %v14666_v25  ;;  %v4405_v24 = vsel %vm3354_vm2, %v14666_v25, 0.0 }
 0x79e   :  { %4385 = vadd.xlane.f32.xlu1 %v4384_v5  ;;  %v16702_v5 = vld [vmem:[#allocation10_spill] sm:$0xff] }
 0x7a1   :  { %4382 = vadd.xlane.f32.xlu0 %v4381_v4  ;;  %v16703_v4 = vld [vmem:[#allocation200_spill] sm:$0xff] }
 0x7a2   :  { %4409 = vadd.xlane.f32.xlu1 %v4408_v36  ;;  %v3836_v36 = vsub.f32 %v16703_v4, %v16702_v5 }
 0x7a5   :  { %4406 = vadd.xlane.f32.xlu0 %v4405_v24  ;;  %v16704_v24 = vld [vmem:[#allocation255_spill] sm:$0xff] }
 0x7ad   :  { %v14672_v46 = vpop.xlane.xlu1 %4373 }
 0x7b0   :  { %v14674_v47 = vpop.xlane.xlu0 %4370 }
 0x7b1   :  { %v14676_v59 = vpop.xlane.xlu1 %4397 }
 0x7b3   :  { %6460 = vrot.lane.b32.xlu1 %v16698_v10, %s10671_s23  ;;  %v16705_v10 = vld [vmem:[#allocation198_spill] sm:$0xff] }
 0x7b4   :  { %v14680_v38 = vpop.xlane.xlu0 %4394 }
 0x7b5   :  { %v6147_v48 = vpop.permute.xlu1 %6146 }
 0x7b6   :  { %9863 = vmatprep.subr.mxu0 %v6147_v48 }
 0x7b7   :  { %6458 = vrot.lane.b32.xlu1 %v16699_v57, %s10671_s23  ;;  %9864 = vmatpush3.msra.mxu0 %v6147_v48  ;;  %v3835_v48 = vsub.f32 %v16705_v10, %v16704_v24  ;;  %v4061_v57 = vmul.f32 1.442695, %v3836_v36 }
 0x7b8   :  { %v5994_v51 = vpop.permute.xlu0 %5993 }
 0x7b9   :  { %v6145_v33 = vpop.permute.xlu1 %6144  ;;  %9835 = vmatprep.subr.mxu1 %v5994_v51  ;;  %10447 = vpow2.f32 %v4061_v57 }
 0x7ba   :  { %9865 = vmatprep.subr.mxu0 %v6145_v33  ;;  %9836 = vmatpush3.msra.mxu1 %v5994_v51  ;;  %v3844_v51 = vsub.f32 %v16707_v52, %v16706_v16 }
 0x7bb   :  { %9866 = vmatpush3.msra.mxu0 %v6145_v33  ;;  %6307 = vrot.lane.b32.xlu0 %v16700_v37, %s10671_s23  ;;  %v4059_v33 = vmul.f32 1.442695, %v3835_v48  ;;  %v3843_v37 = vsub.f32 %v16709_v22, %v16708_v41 }
 0x7bc   :  { %v5992_v42 = vpop.permute.xlu0 %5991  ;;  %v4077_v25 = vmul.f32 1.442695, %v3844_v51 }
 0x7bd   :  { %9837 = vmatprep.subr.mxu1 %v5992_v42  ;;  %10449 = vpow2.f32 %v4059_v33 }
 0x7be   :  { %9838 = vmatpush3.msra.mxu1 %v5992_v42  ;;  %v4075_v42 = vmul.f32 1.442695, %v3843_v37  ;;  %10451 = vpow2.f32 %v4077_v25 }
 0x7bf   :  { %6305 = vrot.lane.b32.xlu0 %v16701_v19, %s10671_s23 }
 0x7c0   :  { %10453 = vpow2.f32 %v4075_v42  ;;  %v16713_v42 = vld [vmem:[#allocation83_spill] sm:$0xff] }
 0x7c1   :  { %10455 = vrcp.f32 %v14428_v30 }
 0x7c2   :  { %10457 = vrcp.f32 %v14472_v34 }
 0x7c3   :  { %10459 = vrcp.f32 %v14424_v13  ;;  %v16710_v13 = vld [vmem:[#allocation84_spill] sm:$0xff] }
 0x7c4   :  { %10461 = vrcp.f32 %v14466_v0 }
 0x7c5   :  { %10463 = vrcp.f32 %v14468_v53  ;;  %v16711_v53 = vld [vmem:[#allocation85_spill] sm:$0xff] }
 0x7c6   :  { %v14696_v19 = vpop.eup %10447  ;;  %10465 = vrcp.f32 %v14523_v32 }
 0x7c7   :  { %v4414_v4 = vsel %vm3354_vm2, %v14696_v19, 0.0  ;;  %10467 = vrcp.f32 %v14464_v39 }
 0x7c8   :  { %10469 = vrcp.f32 %v14513_v9 }
 0x7c9   :  { %10471 = vrcp.f32 %v14516_v14 }
 0x7ca   :  { %v14698_v5 = vpop.eup %10449  ;;  %10473 = vrcp.f32 %v14600_v3  ;;  %v16712_v3 = vld [vmem:[#allocation82_spill] sm:$0xff] }
 0x7cb   :  { %v14702_v36 = vpop.eup %10451  ;;  %v4411_v16 = vsel %vm3354_vm2, %v14698_v5, 0.0  ;;  %10475 = vrcp.f32 %v14508_v45 }
 0x7cc   :  { %v4438_v52 = vsel %vm3354_vm2, %v14702_v36, 0.0  ;;  %10477 = vrcp.f32 %v14594_v1 }
 0x7cd   :  { %v14706_v22 = vpop.eup %10453  ;;  %10479 = vrcp.f32 %v14596_v27 }
 0x7ce   :  { %v4435_v41 = vsel %vm3354_vm2, %v14706_v22, 0.0  ;;  %v10456_v0 = vpop.eup %10455  ;;  %10481 = vrcp.f32 %v14640_v63 }
 0x7cf   :  { %v10458_v34 = vpop.eup %10457  ;;  %10483 = vrcp.f32 %v14592_v20  ;;  %v4708_v1 = vmul.f32 %v10456_v0, %v14286_v56 }
 0x7d0   :  { %v10460_v14 = vpop.eup %10459  ;;  %10485 = vrcp.f32 %v14634_v54  ;;  %v4709_v63 = vmul.f32 %v10458_v34, %v14378_v35  ;;  %v16716_v34 = vld [vmem:[#allocation256_spill] sm:$0xff] }
 0x7d1   :  { %v10462_v32 = vpop.eup %10461  ;;  %v4700_v51 = vmul.f32 %v10460_v14, %v14280_v8 }
 0x7d2   :  { %v10464_v27 = vpop.eup %10463  ;;  %v4701_v33 = vmul.f32 %v10462_v32, %v14370_v44  ;;  %v16714_v44 = vld [vmem:[#allocation259_spill] sm:$0xff]  ;;  %v16719_v32 = vld [vmem:[#allocation213_spill] sm:$0xff] }
 0x7d3   :  { %v10466_v48 = vpop.eup %10465  ;;  %v4710_v54 = vmul.f32 %v10464_v27, %v14374_v6 }
 0x7d4   :  { %v10468_v57 = vpop.eup %10467  ;;  %v4711_v35 = vmul.f32 %v10466_v48, %v14418_v21 }
 0x7d5   :  { %v10470_v56 = vpop.eup %10469  ;;  %v4702_v6 = vmul.f32 %v10468_v57, %v14368_v62  ;;  %v16717_v62 = vld [vmem:[#allocation202_spill] sm:$0xff] }
 0x7d6   :  { %v10472_v37 = vpop.eup %10471 }
 0x7db   :  { %4415 = vadd.xlane.f32.xlu1 %v4414_v4  ;;  %v10474_v4 = vpop.eup %10473 }
 0x7dc   :  { %v10476_v8 = vpop.eup %10475  ;;  %v4713_v21 = vmul.f32 %v10474_v4, %v14458_v55 }
 0x7dd   :  { %v4704_v14 = vmul.f32 %v10476_v8, %v14408_v26  ;;  %v16720_v26 = vld [vmem:[#allocation146_spill] sm:$0xff] }
 0x7de   :  { %4412 = vadd.xlane.f32.xlu0 %v4411_v16  ;;  %v10478_v16 = vpop.eup %10477 }
 0x7df   :  { %4439 = vadd.xlane.f32.xlu1 %v4438_v52  ;;  %v16715_v52 = vld [vmem:[#allocation110_spill] sm:$0xff]  ;;  %v10480_v0 = vpop.eup %10479  ;;  %v4705_v55 = vmul.f32 %v10478_v16, %v14450_v61 }
 0x7e0   :  { %v4714_v27 = vmul.f32 %v10480_v0, %v14454_v23  ;;  %v16722_v16 = vld [vmem:[#allocation78_spill] sm:$0xff]  ;;  %v16724_v0 = vld [vmem:[#allocation76_spill] sm:$0xff] }
 0x7e2   :  { %4436 = vadd.xlane.f32.xlu0 %v4435_v41  ;;  %v3838_v41 = vsub.f32 %v16715_v52, %v16714_v44 }
 0x7ea   :  { %v14716_v25 = vpop.xlane.xlu1 %4379 }
 0x7ed   :  { %v14721_v24 = vpop.xlane.xlu0 %4376 }
 0x7ee   :  { %v14724_v10 = vpop.xlane.xlu1 %4403 }
 0x7f0   :  { %6456 = vrot.lane.b32.xlu1 %v16710_v13, %s10671_s23  ;;  %v4712_v13 = vmul.f32 %v10472_v37, %v14414_v60 }
 0x7f1   :  { %v14731_v30 = vpop.xlane.xlu0 %4400 }
 0x7f2   :  { %v6143_v39 = vpop.permute.xlu1 %6142 }
 0x7f3   :  { %9867 = vmatprep.subr.mxu0 %v6143_v39 }
 0x7f4   :  { %6454 = vrot.lane.b32.xlu1 %v16711_v53, %s10671_s23  ;;  %9868 = vmatpush3.msra.mxu0 %v6143_v39  ;;  %v4703_v39 = vmul.f32 %v10470_v56, %v14410_v31  ;;  %v10482_v53 = vpop.eup %10481  ;;  %v16718_v31 = vld [vmem:[#allocation269_spill] sm:$0xff] }
 0x7f5   :  { %v5990_v9 = vpop.permute.xlu0 %5989  ;;  %v10484_v60 = vpop.eup %10483 }
 0x7f6   :  { %v6141_v45 = vpop.permute.xlu1 %6140  ;;  %9839 = vmatprep.subr.mxu1 %v5990_v9 }
 0x7f7   :  { %9869 = vmatprep.subr.mxu0 %v6141_v45  ;;  %9840 = vmatpush3.msra.mxu1 %v5990_v9  ;;  %v3837_v9 = vsub.f32 %v16717_v62, %v16716_v34  ;;  %v16726_v34 = vld [vmem:[#allocation264_spill] sm:$0xff]  ;;  %v16727_v62 = vld [vmem:[#allocation137_spill] sm:$0xff] }
 0x7f8   :  { %9870 = vmatpush3.msra.mxu0 %v6141_v45  ;;  %6303 = vrot.lane.b32.xlu0 %v16712_v3, %s10671_s23  ;;  %v4065_v45 = vmul.f32 1.442695, %v3838_v41  ;;  %v10486_v3 = vpop.eup %10485  ;;  %v16723_v41 = vld [vmem:[#allocation79_spill] sm:$0xff] }
 0x7f9   :  { %9872 = vmatmul.mubr.msk.f32.vlgmr.msra.gmra.mxu0 %vm3354_vm2, %v4708_v1  ;;  %v5988_v20 = vpop.permute.xlu0 %5987  ;;  %v3846_v1 = vsub.f32 %v16719_v32, %v16718_v31  ;;  %v4063_v48 = vmul.f32 1.442695, %v3837_v9  ;;  %v4715_v61 = vmul.f32 %v10486_v3, %v14490_v49  ;;  %v3840_v9 = vsub.f32 %v16727_v62, %v16726_v34  ;;  %v16730_v32 = vld [vmem:[#allocation273_spill] sm:$0xff]  ;;  %v16732_v3 = vld [vmem:[#allocation268_spill] sm:$0xff]  ;;  %v16736_v34 = vld [vmem:[#allocation70_spill] sm:$0xff] }
 0x7fa   :  { %9874 = vmatprep.mubr.msk.f32.mxu0 %vm3354_vm2, %v4709_v63  ;;  %9841 = vmatprep.subr.mxu1 %v5988_v20  ;;  %v4723_v63 = vmul.f32 %v10482_v53, %v14498_v7  ;;  %10487 = vpow2.f32 %v4065_v45  ;;  %v16725_v53 = vld [vmem:[#allocation77_spill] sm:$0xff] }
 0x7fb   :  { %9842 = vmatpush3.msra.mxu1 %v5988_v20  ;;  %v16721_v20 = vld [vmem:[#allocation205_spill] sm:$0xff]  ;;  %v4081_v23 = vmul.f32 1.442695, %v3846_v1  ;;  %10489 = vpow2.f32 %v4063_v48  ;;  %v4069_v31 = vmul.f32 1.442695, %v3840_v9  ;;  %v16737_v9 = vld [vmem:[#allocation71_spill] sm:$0xff] }
 0x7fc   :  { %6301 = vrot.lane.b32.xlu0 %v16713_v42, %s10671_s23  ;;  %9844 = vmatmul.mubr.msk.f32.vlgmr.msra.gmra.mxu1 %vm3354_vm2, %v4700_v51  ;;  %v3845_v57 = vsub.f32 %v16721_v20, %v16720_v26  ;;  %v4706_v51 = vmul.f32 %v10484_v60, %v14448_v15  ;;  %v16729_v60 = vld [vmem:[#allocation114_spill] sm:$0xff]  ;;  %v16731_v1 = vld [vmem:[#allocation221_spill] sm:$0xff] }
 0x7fd   :  { %9875 = vmatmul.mubr.msk.f32.gmra.mxu0 %vm3354_vm2, %v4710_v54  ;;  %9846 = vmatprep.mubr.msk.f32.mxu1 %vm3354_vm2, %v4701_v33  ;;  %10491 = vpow2.f32 %v4081_v23 }
 0x7fe   :  { %9877 = vmatprep.mubr.msk.f32.mxu0 %vm3354_vm2, %v4711_v35  ;;  %v4079_v7 = vmul.f32 1.442695, %v3845_v57 }
 0x800   :  { %9847 = vmatmul.mubr.msk.f32.gmra.mxu1 %vm3354_vm2, %v4702_v6  ;;  %10493 = vpow2.f32 %v4079_v7 }
 0x801   :  { %9878 = vmatmul.mubr.msk.f32.gmra.mxu0 %vm3354_vm2, %v4712_v13  ;;  %9849 = vmatprep.mubr.msk.f32.mxu1 %vm3354_vm2, %v4703_v39  ;;  %10495 = vpow2.f32 %v4069_v31  ;;  %v16740_v31 = vld [vmem:[#allocation31_spill] sm:$0xff] }
 0x802   :  { %9880 = vmatprep.mubr.msk.f32.mxu0 %vm3354_vm2, %v4713_v21 }
 0x804   :  { %9850 = vmatmul.mubr.msk.f32.gmra.mxu1 %vm3354_vm2, %v4704_v14  ;;  %v16728_v14 = vld [vmem:[#allocation262_spill] sm:$0xff] }
 0x805   :  { %9881 = vmatmul.mubr.msk.f32.gmra.mxu0 %vm3354_vm2, %v4714_v27  ;;  %9852 = vmatprep.mubr.msk.f32.mxu1 %vm3354_vm2, %v4705_v55  ;;  %v3839_v45 = vsub.f32 %v16729_v60, %v16728_v14  ;;  %v3848_v27 = vsub.f32 %v16731_v1, %v16730_v32  ;;  %v16738_v14 = vld [vmem:[#allocation34_spill] sm:$0xff]  ;;  %v16739_v60 = vld [vmem:[#allocation143_spill] sm:$0xff] }
 0x806   :  { %9927 = vmatprep.mubr.msk.f32.mxu0 %vm3354_vm2, %v4723_v63  ;;  %v16733_v63 = vld [vmem:[#allocation211_spill] sm:$0xff]  ;;  %v16741_v32 = vld [vmem:[#allocation138_spill] sm:$0xff] }
 0x807   :  { %v14784_v56 = vpop.eup %10487  ;;  %v4067_v55 = vmul.f32 1.442695, %v3839_v45  ;;  %v3847_v48 = vsub.f32 %v16733_v63, %v16732_v3  ;;  %v4085_v26 = vmul.f32 1.442695, %v3848_v27  ;;  %v3842_v45 = vsub.f32 %v16739_v60, %v16738_v14  ;;  %v16743_v3 = vld [vmem:[#allocation228_spill] sm:$0xff] }
 0x808   :  { %9853 = vmatmul.mubr.msk.f32.gmra.mxu1 %vm3354_vm2, %v4706_v51  ;;  %v14786_v54 = vpop.eup %10489  ;;  %v4420_v33 = vsel %vm3354_vm2, %v14784_v56, 0.0  ;;  %v3841_v1 = vsub.f32 %v16741_v32, %v16740_v31 }
 0x809   :  { %9899 = vmatprep.mubr.msk.f32.mxu1 %vm3354_vm2, %v4715_v61  ;;  %v4417_v49 = vsel %vm3354_vm2, %v14786_v54, 0.0  ;;  %10497 = vpow2.f32 %v4067_v55  ;;  %v4083_v20 = vmul.f32 1.442695, %v3847_v48  ;;  %v4073_v27 = vmul.f32 1.442695, %v3842_v45  ;;  %v16742_v55 = vld [vmem:[#allocation277_spill] sm:$0xff] }
 0x80a   :  { %v14790_v15 = vpop.eup %10491  ;;  %10499 = vpow2.f32 %v4085_v26  ;;  %v3850_v63 = vsub.f32 %v16743_v3, %v16742_v55  ;;  %v4071_v48 = vmul.f32 1.442695, %v3841_v1  ;;  %v16744_v26 = vld [vmem:[#allocation272_spill] sm:$0xff]  ;;  %v16746_v45 = vld [vmem:[#allocation111_spill] sm:$0xff]  ;;  %v16748_v3 = vld [vmem:[#allocation66_spill] sm:$0xff] }
 0x80b   :  { %v4444_v42 = vsel %vm3354_vm2, %v14790_v15, 0.0  ;;  %10501 = vpow2.f32 %v4083_v20  ;;  %v16745_v20 = vld [vmem:[#allocation218_spill] sm:$0xff]  ;;  %v16747_v1 = vld [vmem:[#allocation112_spill] sm:$0xff] }
 0x80c   :  { %10503 = vpow2.f32 %v4073_v27 }
 0x80d   :  { %v14794_v37 = vpop.eup %10493  ;;  %10505 = vpow2.f32 %v4071_v48  ;;  %v16749_v48 = vld [vmem:[#allocation67_spill] sm:$0xff] }
 0x80e   :  { %v4441_v35 = vsel %vm3354_vm2, %v14794_v37, 0.0  ;;  %v14824_v57 = vpop.eup %10495 }
 0x80f   :  { %v4426_v23 = vsel %vm3354_vm2, %v14824_v57, 0.0 }
 0x816   :  { %v14826_v51 = vpop.eup %10497 }
 0x817   :  { %v14830_v61 = vpop.eup %10499  ;;  %v4423_v7 = vsel %vm3354_vm2, %v14826_v51, 0.0 }
 0x818   :  { %4421 = vadd.xlane.f32.xlu1 %v4420_v33  ;;  %v14834_v33 = vpop.eup %10501 }
 0x81b   :  { %4418 = vadd.xlane.f32.xlu0 %v4417_v49  ;;  %v4450_v49 = vsel %vm3354_vm2, %v14830_v61, 0.0 }
 0x81c   :  { %4445 = vadd.xlane.f32.xlu1 %v4444_v42  ;;  %v4447_v42 = vsel %vm3354_vm2, %v14834_v33, 0.0 }
 0x81f   :  { %4442 = vadd.xlane.f32.xlu0 %v4441_v35 }
 0x827   :  { %v14800_v4 = vpop.xlane.xlu1 %4385 }
 0x82a   :  { %v14802_v8 = vpop.xlane.xlu0 %4382 }
 0x82b   :  { %v14804_v6 = vpop.xlane.xlu1 %4409 }
 0x82d   :  { %6452 = vrot.lane.b32.xlu1 %v16722_v16, %s10671_s23 }
 0x82e   :  { %v14808_v44 = vpop.xlane.xlu0 %4406 }
 0x82f   :  { %v6461_v52 = vpop.permute.xlu1 %6460 }
 0x830   :  { %9911 = vmatprep.subr.mxu0 %v6461_v52 }
 0x831   :  { %6450 = vrot.lane.b32.xlu1 %v16723_v41, %s10671_s23  ;;  %9912 = vmatpush3.msra.mxu0 %v6461_v52  ;;  %v16734_v41 = vld [vmem:[#allocation72_spill] sm:$0xff] }
 0x832   :  { %v6308_v13 = vpop.permute.xlu0 %6307 }
 0x833   :  { %v6459_v39 = vpop.permute.xlu1 %6458  ;;  %9883 = vmatprep.subr.mxu1 %v6308_v13 }
 0x834   :  { %9913 = vmatprep.subr.mxu0 %v6459_v39  ;;  %9884 = vmatpush3.msra.mxu1 %v6308_v13 }
 0x835   :  { %9914 = vmatpush3.msra.mxu0 %v6459_v39  ;;  %6299 = vrot.lane.b32.xlu0 %v16724_v0, %s10671_s23  ;;  %v16735_v0 = vld [vmem:[#allocation73_spill] sm:$0xff] }
 0x836   :  { %v6306_v21 = vpop.permute.xlu0 %6305 }
 0x837   :  { %9885 = vmatprep.subr.mxu1 %v6306_v21 }
 0x838   :  { %9886 = vmatpush3.msra.mxu1 %v6306_v21 }
 0x839   :  { %6297 = vrot.lane.b32.xlu0 %v16725_v53, %s10671_s23 }
 0x855   :  { %4427 = vadd.xlane.f32.xlu1 %v4426_v23  ;;  %v3849_v23 = vsub.f32 %v16745_v20, %v16744_v26  ;;  %v16750_v26 = vld [vmem:[#allocation266_spill] sm:$0xff]  ;;  %v16751_v20 = vld [vmem:[#allocation207_spill] sm:$0xff] }
 0x858   :  { %4424 = vadd.xlane.f32.xlu0 %v4423_v7  ;;  %v4089_v7 = vmul.f32 1.442695, %v3850_v63 }
 0x859   :  { %4451 = vadd.xlane.f32.xlu1 %v4450_v49  ;;  %v4087_v49 = vmul.f32 1.442695, %v3849_v23  ;;  %v3852_v23 = vsub.f32 %v16751_v20, %v16750_v26 }
 0x85a   :  { %10507 = vpow2.f32 %v4089_v7  ;;  %v16752_v7 = vld [vmem:[#allocation123_spill] sm:$0xff] }
 0x85b   :  { %10509 = vpow2.f32 %v4087_v49  ;;  %v16753_v49 = vld [vmem:[#allocation125_spill] sm:$0xff] }
 0x85c   :  { %4448 = vadd.xlane.f32.xlu0 %v4447_v42  ;;  %v14864_v42 = vpop.eup %10503 }
 0x864   :  { %v14840_v35 = vpop.xlane.xlu1 %4415 }
 0x867   :  { %v14842_v16 = vpop.xlane.xlu0 %4412 }
 0x868   :  { %v14844_v52 = vpop.xlane.xlu1 %4439 }
 0x86a   :  { %6448 = vrot.lane.b32.xlu1 %v16734_v41, %s10671_s23  ;;  %v14866_v41 = vpop.eup %10505 }
 0x86b   :  { %v14848_v13 = vpop.xlane.xlu0 %4436 }
 0x86c   :  { %v6457_v39 = vpop.permute.xlu1 %6456 }
 0x86d   :  { %9915 = vmatprep.subr.mxu0 %v6457_v39 }
 0x86e   :  { %6446 = vrot.lane.b32.xlu1 %v16735_v0, %s10671_s23  ;;  %9916 = vmatpush3.msra.mxu0 %v6457_v39  ;;  %v4432_v39 = vsel %vm3354_vm2, %v14864_v42, 0.0  ;;  %v14870_v0 = vpop.eup %10507 }
 0x86f   :  { %v6304_v21 = vpop.permute.xlu0 %6303 }
 0x870   :  { %v6455_v53 = vpop.permute.xlu1 %6454  ;;  %9887 = vmatprep.subr.mxu1 %v6304_v21 }
 0x871   :  { %9917 = vmatprep.subr.mxu0 %v6455_v53  ;;  %9888 = vmatpush3.msra.mxu1 %v6304_v21  ;;  %v4429_v21 = vsel %vm3354_vm2, %v14866_v41, 0.0 }
 0x872   :  { %9918 = vmatpush3.msra.mxu0 %v6455_v53  ;;  %6295 = vrot.lane.b32.xlu0 %v16736_v34, %s10671_s23  ;;  %v14874_v53 = vpop.eup %10509  ;;  %v4456_v34 = vsel %vm3354_vm2, %v14870_v0, 0.0 }
 0x873   :  { %v6302_v62 = vpop.permute.xlu0 %6301 }
 0x874   :  { %9889 = vmatprep.subr.mxu1 %v6302_v62 }
 0x875   :  { %9890 = vmatpush3.msra.mxu1 %v6302_v62  ;;  %v4453_v62 = vsel %vm3354_vm2, %v14874_v53, 0.0 }
 0x876   :  { %6293 = vrot.lane.b32.xlu0 %v16737_v9, %s10671_s23 }
 0x892   :  { %4433 = vadd.xlane.f32.xlu1 %v4432_v39  ;;  %v3851_v39 = vsub.f32 %v16753_v49, %v16752_v7 }
 0x895   :  { %4430 = vadd.xlane.f32.xlu0 %v4429_v21  ;;  %v4093_v21 = vmul.f32 1.442695, %v3852_v23 }
 0x896   :  { %4457 = vadd.xlane.f32.xlu1 %v4456_v34  ;;  %v16754_v34 = vld [vmem:[#allocation281_spill] sm:$0xff] }
 0x897   :  { %10511 = vpow2.f32 %v4093_v21 }
 0x899   :  { %4454 = vadd.xlane.f32.xlu0 %v4453_v62  ;;  %v16755_v62 = vld [vmem:[#allocation235_spill] sm:$0xff] }
 0x8a1   :  { %v14880_v9 = vpop.xlane.xlu1 %4421 }
 0x8a4   :  { %v14882_v14 = vpop.xlane.xlu0 %4418 }
 0x8a5   :  { %v14884_v60 = vpop.xlane.xlu1 %4445 }
 0x8a7   :  { %6766 = vrot.lane.b32.xlu1 %v16746_v45, %s10671_s23  ;;  %v3860_v45 = vsub.f32 %v16755_v62, %v16754_v34 }
 0x8a8   :  { %v14888_v31 = vpop.xlane.xlu0 %4442 }
 0x8a9   :  { %v6453_v32 = vpop.permute.xlu1 %6452 }
 0x8aa   :  { %9919 = vmatprep.subr.mxu0 %v6453_v32 }
 0x8ab   :  { %6764 = vrot.lane.b32.xlu1 %v16747_v1, %s10671_s23  ;;  %9920 = vmatpush3.msra.mxu0 %v6453_v32  ;;  %v4091_v32 = vmul.f32 1.442695, %v3851_v39  ;;  %v16756_v1 = vld [vmem:[#allocation276_spill] sm:$0xff] }
 0x8ac   :  { %v6300_v27 = vpop.permute.xlu0 %6299 }
 0x8ad   :  { %v6451_v55 = vpop.permute.xlu1 %6450  ;;  %9891 = vmatprep.subr.mxu1 %v6300_v27  ;;  %10513 = vpow2.f32 %v4091_v32 }
 0x8ae   :  { %9921 = vmatprep.subr.mxu0 %v6451_v55  ;;  %9892 = vmatpush3.msra.mxu1 %v6300_v27  ;;  %v16757_v27 = vld [vmem:[#allocation225_spill] sm:$0xff] }
 0x8af   :  { %9922 = vmatpush3.msra.mxu0 %v6451_v55  ;;  %6613 = vrot.lane.b32.xlu0 %v16748_v3, %s10671_s23  ;;  %v3859_v55 = vsub.f32 %v16757_v27, %v16756_v1  ;;  %v4109_v3 = vmul.f32 1.442695, %v3860_v45 }
 0x8b0   :  { %v6298_v63 = vpop.permute.xlu0 %6297 }
 0x8b1   :  { %9893 = vmatprep.subr.mxu1 %v6298_v63  ;;  %10515 = vpow2.f32 %v4109_v3 }
 0x8b2   :  { %9894 = vmatpush3.msra.mxu1 %v6298_v63  ;;  %v4107_v63 = vmul.f32 1.442695, %v3859_v55 }
 0x8b3   :  { %6611 = vrot.lane.b32.xlu0 %v16749_v48, %s10671_s23  ;;  %v14904_v48 = vpop.eup %10511 }
 0x8b4   :  { %10517 = vpow2.f32 %v4107_v63  ;;  %16758 = vst [vmem:[#allocation132_spill] sm:$0xff] %v14904_v48  ;;  %v4462_v20 = vsel %vm3354_vm2, %v14904_v48, 0.0  ;;  %v16763_v63 = vld [vmem:[#allocation59_spill] sm:$0xff] }
 0x8b5   :  { %10519 = vrcp.f32 %v14636_v11 }
 0x8b6   :  { %10521 = vrcp.f32 %v14680_v38 }
 0x8b7   :  { %10523 = vrcp.f32 %v14632_v17  ;;  %v16760_v17 = vld [vmem:[#allocation104_spill] sm:$0xff] }
 0x8b8   :  { %10525 = vrcp.f32 %v14674_v47 }
 0x8b9   :  { %10527 = vrcp.f32 %v14676_v59  ;;  %v16761_v59 = vld [vmem:[#allocation105_spill] sm:$0xff] }
 0x8ba   :  { %v14906_v26 = vpop.eup %10513  ;;  %10529 = vrcp.f32 %v14731_v30 }
 0x8bb   :  { %v4459_v7 = vsel %vm3354_vm2, %v14906_v26, 0.0  ;;  %10531 = vrcp.f32 %v14672_v46 }
 0x8bc   :  { %10533 = vrcp.f32 %v14721_v24 }
 0x8bd   :  { %10535 = vrcp.f32 %v14724_v10 }
 0x8be   :  { %v14910_v23 = vpop.eup %10515  ;;  %10537 = vrcp.f32 %v14808_v44  ;;  %v16762_v44 = vld [vmem:[#allocation58_spill] sm:$0xff] }
 0x8bf   :  { %16759 = vst [vmem:[#allocation160_spill] sm:$0xff] %v14910_v23  ;;  %v4486_v39 = vsel %vm3354_vm2, %v14910_v23, 0.0  ;;  %10539 = vrcp.f32 %v14716_v25  ;;  %v16822_v23 = vld [vmem:[#allocation129_spill] sm:$0xff] }
 0x8c0   :  { %10541 = vrcp.f32 %v14802_v8 }
 0x8c1   :  { %v14914_v49 = vpop.eup %10517  ;;  %10543 = vrcp.f32 %v14804_v6 }
 0x8c2   :  { %v4483_v21 = vsel %vm3354_vm2, %v14914_v49, 0.0  ;;  %v10520_v47 = vpop.eup %10519  ;;  %10545 = vrcp.f32 %v14848_v13 }
 0x8c3   :  { %v10522_v38 = vpop.eup %10521  ;;  %10547 = vrcp.f32 %v14800_v4  ;;  %v4724_v8 = vmul.f32 %v10520_v47, %v14494_v58 }
 0x8c4   :  { %v10524_v10 = vpop.eup %10523  ;;  %10549 = vrcp.f32 %v14842_v16  ;;  %v4725_v13 = vmul.f32 %v10522_v38, %v14586_v29 }
 0x8c5   :  { %v10526_v30 = vpop.eup %10525  ;;  %v4716_v27 = vmul.f32 %v10524_v10, %v14488_v40 }
 0x8c6   :  { %v10528_v6 = vpop.eup %10527  ;;  %v4717_v55 = vmul.f32 %v10526_v30, %v14578_v28  ;;  %v16764_v28 = vld [vmem:[#allocation271_spill] sm:$0xff] }
 0x8c7   :  { %v10530_v32 = vpop.eup %10529  ;;  %v4726_v16 = vmul.f32 %v10528_v6, %v14582_v18  ;;  %v16771_v6 = vld [vmem:[#allocation239_spill] sm:$0xff] }
 0x8c8   :  { %v10532_v1 = vpop.eup %10531  ;;  %v4727_v29 = vmul.f32 %v10530_v32, %v14626_v50  ;;  %v16766_v50 = vld [vmem:[#allocation130_spill] sm:$0xff] }
 0x8c9   :  { %v10534_v58 = vpop.eup %10533  ;;  %v4718_v18 = vmul.f32 %v10532_v1, %v14576_v2  ;;  %v16768_v2 = vld [vmem:[#allocation208_spill] sm:$0xff] }
 0x8ca   :  { %v10536_v3 = vpop.eup %10535 }
 0x8cf   :  { %4463 = vadd.xlane.f32.xlu1 %v4462_v20  ;;  %v10538_v20 = vpop.eup %10537 }
 0x8d0   :  { %v10540_v40 = vpop.eup %10539 }
 0x8d2   :  { %4460 = vadd.xlane.f32.xlu0 %v4459_v7  ;;  %v10542_v7 = vpop.eup %10541 }
 0x8d3   :  { %4487 = vadd.xlane.f32.xlu1 %v4486_v39  ;;  %v16765_v39 = vld [vmem:[#allocation217_spill] sm:$0xff]  ;;  %v10544_v47 = vpop.eup %10543 }
 0x8d4   :  { %v10546_v38 = vpop.eup %10545 }
 0x8d6   :  { %4484 = vadd.xlane.f32.xlu0 %v4483_v21  ;;  %v3854_v21 = vsub.f32 %v16765_v39, %v16764_v28 }
 0x8de   :  { %v14924_v34 = vpop.xlane.xlu1 %4427 }
 0x8e1   :  { %v14929_v62 = vpop.xlane.xlu0 %4424 }
 0x8e2   :  { %v14932_v45 = vpop.xlane.xlu1 %4451 }
 0x8e4   :  { %6762 = vrot.lane.b32.xlu1 %v16760_v17, %s10671_s23  ;;  %v4728_v17 = vmul.f32 %v10536_v3, %v14622_v43  ;;  %v10548_v43 = vpop.eup %10547  ;;  %v16775_v3 = vld [vmem:[#allocation229_spill] sm:$0xff] }
 0x8e5   :  { %v14939_v11 = vpop.xlane.xlu0 %4448 }
 0x8e6   :  { %v6449_v46 = vpop.permute.xlu1 %6448 }
 0x8e7   :  { %9923 = vmatprep.subr.mxu0 %v6449_v46 }
 0x8e8   :  { %6760 = vrot.lane.b32.xlu1 %v16761_v59, %s10671_s23  ;;  %9924 = vmatpush3.msra.mxu0 %v6449_v46  ;;  %v4719_v46 = vmul.f32 %v10534_v58, %v14618_v12  ;;  %v4729_v59 = vmul.f32 %v10538_v20, %v16766_v50  ;;  %v16770_v12 = vld [vmem:[#allocation28_spill] sm:$0xff]  ;;  %v4739_v58 = vmul.f32 %v10546_v38, %v14706_v22  ;;  %v15008_v50 = vpop.f32.mrf.mxu0 }
 0x8e9   :  { %v6296_v24 = vpop.permute.xlu0 %6295  ;;  %16781 = vst [vmem:[#allocation16_spill] sm:$0xff] %v15008_v50 }
 0x8ea   :  { %v6447_v25 = vpop.permute.xlu1 %6446  ;;  %9895 = vmatprep.subr.mxu1 %v6296_v24  ;;  %v15012_v38 = vpop.f32.mrf.mxu0 }
 0x8eb   :  { %9925 = vmatprep.subr.mxu0 %v6447_v25  ;;  %9896 = vmatpush3.msra.mxu1 %v6296_v24  ;;  %v16767_v24 = vld [vmem:[#allocation267_spill] sm:$0xff]  ;;  %16782 = vst [vmem:[#allocation144_spill] sm:$0xff] %v15012_v38 }
 0x8ec   :  { %9926 = vmatpush3.msra.mxu0 %v6447_v25  ;;  %6609 = vrot.lane.b32.xlu0 %v16762_v44, %s10671_s23  ;;  %v3853_v10 = vsub.f32 %v16768_v2, %v16767_v24  ;;  %v16769_v25 = vld [vmem:[#allocation19_spill] sm:$0xff]  ;;  %v3862_v44 = vsub.f32 %v16771_v6, %v16770_v12  ;;  %v15014_v24 = vpop.f32.mrf.mxu0 }
 0x8ed   :  { %9928 = vmatmul.mubr.msk.f32.vlgmr.msra.gmra.mxu0 %vm3354_vm2, %v4724_v8  ;;  %v6294_v4 = vpop.permute.xlu0 %6293  ;;  %v4720_v30 = vmul.f32 %v10540_v40, %v16769_v25  ;;  %v4097_v8 = vmul.f32 1.442695, %v3854_v21  ;;  %16783 = vst [vmem:[#allocation141_spill] sm:$0xff] %v15014_v24  ;;  %v16784_v25 = vld [vmem:[#allocation98_spill] sm:$0xff]  ;;  %v16786_v12 = vld [vmem:[#allocation99_spill] sm:$0xff]  ;;  %v16810_v24 = vld [vmem:[#allocation92_spill] sm:$0xff] }
 0x8ee   :  { %9930 = vmatprep.mubr.msk.f32.mxu0 %vm3354_vm2, %v4725_v13  ;;  %9897 = vmatprep.subr.mxu1 %v6294_v4  ;;  %v16772_v13 = vld [vmem:[#allocation20_spill] sm:$0xff]  ;;  %v4113_v40 = vmul.f32 1.442695, %v3862_v44 }
 0x8ef   :  { %9898 = vmatpush3.msra.mxu1 %v6294_v4  ;;  %v4730_v32 = vmul.f32 %v10544_v47, %v16772_v13  ;;  %v16773_v4 = vld [vmem:[#allocation18_spill] sm:$0xff]  ;;  %10551 = vpow2.f32 %v4097_v8 }
 0x8f0   :  { %6607 = vrot.lane.b32.xlu0 %v16763_v63, %s10671_s23  ;;  %9900 = vmatmul.mubr.msk.f32.vlgmr.msra.gmra.mxu1 %vm3354_vm2, %v4716_v27  ;;  %v4721_v1 = vmul.f32 %v10542_v7, %v16773_v4  ;;  %v10550_v27 = vpop.eup %10549 }
 0x8f1   :  { %9931 = vmatmul.mubr.msk.f32.gmra.mxu0 %vm3354_vm2, %v4726_v16  ;;  %9902 = vmatprep.mubr.msk.f32.mxu1 %vm3354_vm2, %v4717_v55  ;;  %v4095_v16 = vmul.f32 1.442695, %v3853_v10  ;;  %v16774_v55 = vld [vmem:[#allocation278_spill] sm:$0xff] }
 0x8f2   :  { %9933 = vmatprep.mubr.msk.f32.mxu0 %vm3354_vm2, %v4727_v29  ;;  %v3861_v63 = vsub.f32 %v16775_v3, %v16774_v55  ;;  %v16776_v29 = vld [vmem:[#allocation23_spill] sm:$0xff]  ;;  %v16793_v55 = vld [vmem:[#allocation224_spill] sm:$0xff] }
 0x8f3   :  { %v4722_v20 = vmul.f32 %v10548_v43, %v16776_v29  ;;  %10553 = vpow2.f32 %v4095_v16  ;;  %v16792_v16 = vld [vmem:[#allocation275_spill] sm:$0xff]  ;;  %v16795_v29 = vld [vmem:[#allocation270_spill] sm:$0xff] }
 0x8f4   :  { %9903 = vmatmul.mubr.msk.f32.gmra.mxu1 %vm3354_vm2, %v4718_v18  ;;  %v4731_v18 = vmul.f32 %v10550_v27, %v14698_v5  ;;  %v4111_v22 = vmul.f32 1.442695, %v3861_v63  ;;  %10555 = vpow2.f32 %v4113_v40  ;;  %v16790_v27 = vld [vmem:[#allocation51_spill] sm:$0xff]  ;;  %v3856_v3 = vsub.f32 %v16793_v55, %v16792_v16 }
 0x8f5   :  { %9934 = vmatmul.mubr.msk.f32.gmra.mxu0 %vm3354_vm2, %v4728_v17  ;;  %9905 = vmatprep.mubr.msk.f32.mxu1 %vm3354_vm2, %v4719_v46 }
 0x8f6   :  { %9936 = vmatprep.mubr.msk.f32.mxu0 %vm3354_vm2, %v4729_v59  ;;  %10557 = vpow2.f32 %v4111_v22  ;;  %v16797_v22 = vld [vmem:[#allocation29_spill] sm:$0xff] }
 0x8f8   :  { %9906 = vmatmul.mubr.msk.f32.gmra.mxu1 %vm3354_vm2, %v4720_v30  ;;  %v15022_v30 = vpop.f32.mrf.mxu0 }
 0x8f9   :  { %9937 = vmatmul.mubr.msk.f32.gmra.mxu0 %vm3354_vm2, %v4730_v32  ;;  %9908 = vmatprep.mubr.msk.f32.mxu1 %vm3354_vm2, %v4721_v1  ;;  %16785 = vst [vmem:[#allocation164_spill] sm:$0xff] %v15022_v30  ;;  %v16788_v32 = vld [vmem:[#allocation50_spill] sm:$0xff] }
 0x8fa   :  { %9983 = vmatprep.mubr.msk.f32.mxu0 %vm3354_vm2, %v4739_v58  ;;  %v15028_v6 = vpop.f32.mrf.mxu0 }
 0x8fb   :  { %16787 = vst [vmem:[#allocation159_spill] sm:$0xff] %v15028_v6 }
 0x8fc   :  { %9909 = vmatmul.mubr.msk.f32.gmra.mxu1 %vm3354_vm2, %v4722_v20  ;;  %v14992_v7 = vpop.eup %10551  ;;  %v15032_v4 = vpop.f32.mrf.mxu0  ;;  %v16796_v20 = vld [vmem:[#allocation214_spill] sm:$0xff] }
 0x8fd   :  { %9955 = vmatprep.mubr.msk.f32.mxu1 %vm3354_vm2, %v4731_v18  ;;  %16777 = vst [vmem:[#allocation155_spill] sm:$0xff] %v14992_v7  ;;  %v4468_v39 = vsel %vm3354_vm2, %v14992_v7, 0.0  ;;  %16789 = vst [vmem:[#allocation60_spill] sm:$0xff] %v15032_v4  ;;  %v3855_v40 = vsub.f32 %v16796_v20, %v16795_v29  ;;  %v4101_v18 = vmul.f32 1.442695, %v3856_v3 }
 0x8fe   :  { %v15036_v58 = vpop.f32.mrf.mxu0 }
 0x8ff   :  { %16791 = vst [vmem:[#allocation61_spill] sm:$0xff] %v15036_v58  ;;  %10559 = vpow2.f32 %v4101_v18 }
 0x900   :  { %v14994_v28 = vpop.eup %10553  ;;  %v15040_v63 = vpop.f32.mrf.mxu0 }
 0x901   :  { %16778 = vst [vmem:[#allocation12_spill] sm:$0xff] %v14994_v28  ;;  %v14998_v21 = vpop.eup %10555  ;;  %v4465_v5 = vsel %vm3354_vm2, %v14994_v28, 0.0  ;;  %16794 = vst [vmem:[#allocation8_spill] sm:$0xff] %v15040_v63 }
 0x902   :  { %16779 = vst [vmem:[#allocation17_spill] sm:$0xff] %v14998_v21  ;;  %v4492_v46 = vsel %vm3354_vm2, %v14998_v21, 0.0 }
 0x903   :  { %v15002_v17 = vpop.eup %10557 }
 0x904   :  { %16780 = vst [vmem:[#allocation11_spill] sm:$0xff] %v15002_v17  ;;  %v4489_v47 = vsel %vm3354_vm2, %v15002_v17, 0.0 }
 0x90c   :  { %4469 = vadd.xlane.f32.xlu1 %v4468_v39  ;;  %v16798_v39 = vld [vmem:[#allocation243_spill] sm:$0xff]  ;;  %v15058_v55 = vpop.eup %10559 }
 0x90d   :  { %16801 = vst [vmem:[#allocation9_spill] sm:$0xff] %v15058_v55  ;;  %v4474_v20 = vsel %vm3354_vm2, %v15058_v55, 0.0 }
 0x90f   :  { %4466 = vadd.xlane.f32.xlu0 %v4465_v5  ;;  %v3864_v5 = vsub.f32 %v16798_v39, %v16797_v22 }
 0x910   :  { %4493 = vadd.xlane.f32.xlu1 %v4492_v46  ;;  %v15046_v46 = vpop.f32.mrf.mxu0 }
 0x913   :  { %4490 = vadd.xlane.f32.xlu0 %v4489_v47  ;;  %v4099_v47 = vmul.f32 1.442695, %v3855_v40 }
 0x915   :  { %10561 = vpow2.f32 %v4099_v47  ;;  %v15076_v47 = vpop.f32.mrf.mxu1 }
 0x91b   :  { %v15010_v59 = vpop.xlane.xlu1 %4433 }
 0x91e   :  { %v15016_v2 = vpop.xlane.xlu0 %4430 }
 0x91f   :  { %v15018_v10 = vpop.xlane.xlu1 %4457 }
 0x921   :  { %6758 = vrot.lane.b32.xlu1 %v16784_v25, %s10671_s23  ;;  %v16799_v25 = vld [vmem:[#allocation280_spill] sm:$0xff] }
 0x922   :  { %v15024_v43 = vpop.xlane.xlu0 %4454  ;;  %v15060_v3 = vpop.eup %10561 }
 0x923   :  { %v6767_v8 = vpop.permute.xlu1 %6766  ;;  %16802 = vst [vmem:[#allocation154_spill] sm:$0xff] %v15060_v3  ;;  %v4471_v18 = vsel %vm3354_vm2, %v15060_v3, 0.0  ;;  %v16813_v3 = vld [vmem:[#allocation93_spill] sm:$0xff] }
 0x924   :  { %9967 = vmatprep.subr.mxu0 %v6767_v8 }
 0x925   :  { %6756 = vrot.lane.b32.xlu1 %v16786_v12, %s10671_s23  ;;  %9968 = vmatpush3.msra.mxu0 %v6767_v8  ;;  %v16800_v8 = vld [vmem:[#allocation232_spill] sm:$0xff] }
 0x926   :  { %v6614_v44 = vpop.permute.xlu0 %6613  ;;  %v3863_v12 = vsub.f32 %v16800_v8, %v16799_v25 }
 0x927   :  { %v6765_v13 = vpop.permute.xlu1 %6764  ;;  %9939 = vmatprep.subr.mxu1 %v6614_v44 }
 0x928   :  { %9969 = vmatprep.subr.mxu0 %v6765_v13  ;;  %9940 = vmatpush3.msra.mxu1 %v6614_v44  ;;  %v4117_v44 = vmul.f32 1.442695, %v3864_v5 }
 0x929   :  { %9970 = vmatpush3.msra.mxu0 %v6765_v13  ;;  %6605 = vrot.lane.b32.xlu0 %v16788_v32, %s10671_s23  ;;  %v15050_v13 = vpop.f32.mrf.mxu0  ;;  %v4115_v32 = vmul.f32 1.442695, %v3863_v12 }
 0x92a   :  { %v6612_v1 = vpop.permute.xlu0 %6611  ;;  %10563 = vpow2.f32 %v4117_v44  ;;  %v15084_v44 = vpop.f32.mrf.mxu1 }
 0x92b   :  { %9941 = vmatprep.subr.mxu1 %v6612_v1  ;;  %10565 = vpow2.f32 %v4115_v32 }
 0x92c   :  { %9942 = vmatpush3.msra.mxu1 %v6612_v1  ;;  %v15052_v1 = vpop.f32.mrf.mxu0 }
 0x92d   :  { %6603 = vrot.lane.b32.xlu0 %v16790_v27, %s10671_s23 }
 0x92e   :  { %v15054_v27 = vpop.f32.mrf.mxu0 }
 0x930   :  { %v15056_v16 = vpop.f32.mrf.mxu0 }
 0x932   :  { %v15062_v29 = vpop.f32.mrf.mxu0 }
 0x934   :  { %v15072_v39 = vpop.f32.mrf.mxu0 }
 0x935   :  { %16805 = vst [vmem:[#allocation163_spill] sm:$0xff] %v15072_v39 }
 0x936   :  { %v15080_v8 = vpop.f32.mrf.mxu0 }
 0x937   :  { %v15066_v40 = vpop.eup %10563  ;;  %16806 = vst [vmem:[#allocation52_spill] sm:$0xff] %v15080_v8 }
 0x938   :  { %16803 = vst [vmem:[#allocation148_spill] sm:$0xff] %v15066_v40  ;;  %v15070_v22 = vpop.eup %10565  ;;  %v4498_v5 = vsel %vm3354_vm2, %v15066_v40, 0.0  ;;  %v15082_v12 = vpop.f32.mrf.mxu0  ;;  %v16816_v40 = vld [vmem:[#allocation42_spill] sm:$0xff] }
 0x939   :  { %16804 = vst [vmem:[#allocation168_spill] sm:$0xff] %v15070_v22  ;;  %v4495_v25 = vsel %vm3354_vm2, %v15070_v22, 0.0 }
 0x93a   :  { %v15086_v32 = vpop.f32.mrf.mxu0 }
 0x93c   :  { %v15092_v58 = vpop.f32.mrf.mxu0 }
 0x93e   :  { %v15100_v4 = vpop.f32.mrf.mxu0 }
 0x940   :  { %v15108_v38 = vpop.f32.mrf.mxu0 }
 0x941   :  { %16811 = vst [vmem:[#allocation113_spill] sm:$0xff] %v15108_v38  ;;  %v16828_v38 = vld [vmem:[#allocation24_spill] sm:$0xff] }
 0x942   :  { %v15114_v48 = vpop.f32.mrf.mxu0 }
 0x943   :  { %16814 = vst [vmem:[#allocation158_spill] sm:$0xff] %v15114_v48 }
 0x944   :  { %v15120_v21 = vpop.f32.mrf.mxu0 }
 0x945   :  { %16817 = vst [vmem:[#allocation139_spill] sm:$0xff] %v15120_v21 }
 0x949   :  { %4475 = vadd.xlane.f32.xlu1 %v4474_v20  ;;  %v15088_v20 = vpop.f32.mrf.mxu1 }
 0x94c   :  { %4472 = vadd.xlane.f32.xlu0 %v4471_v18 }
 0x94d   :  { %4499 = vadd.xlane.f32.xlu1 %v4498_v5  ;;  %v15094_v5 = vpop.f32.mrf.mxu1 }
 0x950   :  { %4496 = vadd.xlane.f32.xlu0 %v4495_v25  ;;  %v15102_v25 = vpop.f32.mrf.mxu1 }
 0x951   :  { %16809 = vst [vmem:[#allocation7_spill] sm:$0xff] %v15102_v25  ;;  %v16831_v25 = vld [vmem:[#allocation236_spill] sm:$0xff] }
 0x952   :  { %v15110_v55 = vpop.f32.mrf.mxu1 }
 0x953   :  { %16812 = vst [vmem:[#allocation147_spill] sm:$0xff] %v15110_v55 }
 0x958   :  { %v15090_v18 = vpop.xlane.xlu1 %4463 }
 0x959   :  { %16807 = vst [vmem:[#allocation53_spill] sm:$0xff] %v15090_v18  ;;  %v16825_v18 = vld [vmem:[#allocation128_spill] sm:$0xff] }
 0x95b   :  { %v15096_v63 = vpop.xlane.xlu0 %4460 }
 0x95c   :  { %v15098_v6 = vpop.xlane.xlu1 %4487 }
 0x95d   :  { %16808 = vst [vmem:[#allocation6_spill] sm:$0xff] %v15098_v6 }
 0x95e   :  { %6754 = vrot.lane.b32.xlu1 %v16810_v24, %s10671_s23  ;;  %v15116_v24 = vpop.f32.mrf.mxu1 }
 0x95f   :  { %v15106_v30 = vpop.xlane.xlu0 %4484  ;;  %16815 = vst [vmem:[#allocation240_spill] sm:$0xff] %v15116_v24  ;;  %v15130_v24 = vpop.f32.mrf.mxu0 }
 0x960   :  { %v6763_v50 = vpop.permute.xlu1 %6762  ;;  %16823 = vst [vmem:[#allocation153_spill] sm:$0xff] %v15130_v24 }
 0x961   :  { %9971 = vmatprep.subr.mxu0 %v6763_v50  ;;  %v15134_v8 = vpop.f32.mrf.mxu0 }
 0x962   :  { %6752 = vrot.lane.b32.xlu1 %v16813_v3, %s10671_s23  ;;  %9972 = vmatpush3.msra.mxu0 %v6763_v50  ;;  %v15122_v3 = vpop.f32.mrf.mxu1  ;;  %v16819_v50 = vld [vmem:[#allocation43_spill] sm:$0xff]  ;;  %16826 = vst [vmem:[#allocation118_spill] sm:$0xff] %v15134_v8 }
 0x963   :  { %v6610_v7 = vpop.permute.xlu0 %6609  ;;  %16818 = vst [vmem:[#allocation261_spill] sm:$0xff] %v15122_v3  ;;  %v16829_v3 = vld [vmem:[#allocation246_spill] sm:$0xff]  ;;  %v15142_v55 = vpop.f32.mrf.mxu0 }
 0x964   :  { %v6761_v28 = vpop.permute.xlu1 %6760  ;;  %9943 = vmatprep.subr.mxu1 %v6610_v7  ;;  %v15126_v17 = vpop.f32.mrf.mxu1  ;;  %v3866_v48 = vsub.f32 %v16829_v3, %v16828_v38  ;;  %16832 = vst [vmem:[#allocation172_spill] sm:$0xff] %v15142_v55 }
 0x965   :  { %9973 = vmatprep.subr.mxu0 %v6761_v28  ;;  %9944 = vmatpush3.msra.mxu1 %v6610_v7  ;;  %16820 = vst [vmem:[#allocation119_spill] sm:$0xff] %v15126_v17  ;;  %v16821_v7 = vld [vmem:[#allocation279_spill] sm:$0xff] }
 0x966   :  { %9974 = vmatpush3.msra.mxu0 %v6761_v28  ;;  %6601 = vrot.lane.b32.xlu0 %v16816_v40, %s10671_s23  ;;  %v3858_v39 = vsub.f32 %v16822_v23, %v16821_v7  ;;  %v16824_v28 = vld [vmem:[#allocation274_spill] sm:$0xff]  ;;  %v4121_v7 = vmul.f32 1.442695, %v3866_v48 }
 0x967   :  { %v6608_v22 = vpop.permute.xlu0 %6607  ;;  %v3857_v40 = vsub.f32 %v16825_v18, %v16824_v28  ;;  %v15146_v28 = vpop.f32.mrf.mxu0 }
 0x968   :  { %9945 = vmatprep.subr.mxu1 %v6608_v22  ;;  %v4105_v21 = vmul.f32 1.442695, %v3858_v39  ;;  %16834 = vst [vmem:[#allocation134_spill] sm:$0xff] %v15146_v28 }
 0x969   :  { %9946 = vmatpush3.msra.mxu1 %v6608_v22  ;;  %v15136_v22 = vpop.f32.mrf.mxu1  ;;  %v4103_v6 = vmul.f32 1.442695, %v3857_v40  ;;  %v15150_v39 = vpop.f32.mrf.mxu0 }
 0x96a   :  { %6599 = vrot.lane.b32.xlu0 %v16819_v50, %s10671_s23  ;;  %16827 = vst [vmem:[#allocation219_spill] sm:$0xff] %v15136_v22  ;;  %v16830_v50 = vld [vmem:[#allocation282_spill] sm:$0xff]  ;;  %10567 = vpow2.f32 %v4105_v21  ;;  %16836 = vst [vmem:[#allocation167_spill] sm:$0xff] %v15150_v39 }
 0x96b   :  { %v3865_v17 = vsub.f32 %v16831_v25, %v16830_v50  ;;  %v15144_v23 = vpop.f32.mrf.mxu1  ;;  %10569 = vpow2.f32 %v4103_v6  ;;  %v15154_v3 = vpop.f32.mrf.mxu0 }
 0x96c   :  { %16833 = vst [vmem:[#allocation258_spill] sm:$0xff] %v15144_v23  ;;  %10571 = vpow2.f32 %v4121_v7  ;;  %16838 = vst [vmem:[#allocation44_spill] sm:$0xff] %v15154_v3 }
 0x96d   :  { %v4119_v18 = vmul.f32 1.442695, %v3865_v17  ;;  %v15148_v8 = vpop.f32.mrf.mxu1  ;;  %v15160_v21 = vpop.f32.mrf.mxu0 }
 0x96e   :  { %16835 = vst [vmem:[#allocation210_spill] sm:$0xff] %v15148_v8  ;;  %16841 = vst [vmem:[#allocation5_spill] sm:$0xff] %v15160_v21 }
 0x96f   :  { %10573 = vpow2.f32 %v4119_v18  ;;  %v15152_v38 = vpop.f32.mrf.mxu1  ;;  %v9770_v7 = vpop.f32.mrf.mxu0 }
 0x970   :  { %16837 = vst [vmem:[#allocation136_spill] sm:$0xff] %v15152_v38  ;;  %10575 = vrcp.f32 %v14844_v52 }
 0x971   :  { %v15156_v25 = vpop.f32.mrf.mxu1  ;;  %v15180_v22 = vpop.f32.mrf.mxu0  ;;  %10577 = vrcp.f32 %v14888_v31 }
 0x972   :  { %16839 = vst [vmem:[#allocation45_spill] sm:$0xff] %v15156_v25  ;;  %10579 = vrcp.f32 %v14840_v35 }
 0x973   :  { %v15162_v48 = vpop.f32.mrf.mxu1  ;;  %v15184_v3 = vpop.f32.mrf.mxu0  ;;  %10581 = vrcp.f32 %v14882_v14 }
 0x974   :  { %16842 = vst [vmem:[#allocation151_spill] sm:$0xff] %v15162_v48  ;;  %16848 = vst [vmem:[#allocation216_spill] sm:$0xff] %v15184_v3  ;;  %v16858_v3 = vld [vmem:[#allocation121_spill] sm:$0xff]  ;;  %10583 = vrcp.f32 %v14884_v60 }
 0x975   :  { %v15170_v18 = vpop.f32.mrf.mxu1  ;;  %v15188_v28 = vpop.f32.mrf.mxu0  ;;  %10585 = vrcp.f32 %v14939_v11 }
 0x976   :  { %16845 = vst [vmem:[#allocation157_spill] sm:$0xff] %v15170_v18  ;;  %16850 = vst [vmem:[#allocation36_spill] sm:$0xff] %v15188_v28  ;;  %10587 = vrcp.f32 %v14880_v9 }
 0x977   :  { %v15158_v40 = vpop.eup %10567  ;;  %v15178_v8 = vpop.f32.mrf.mxu1  ;;  %10589 = vrcp.f32 %v14929_v62 }
 0x978   :  { %16840 = vst [vmem:[#allocation4_spill] sm:$0xff] %v15158_v40  ;;  %v15164_v17 = vpop.eup %10569  ;;  %v4480_v6 = vsel %vm3354_vm2, %v15158_v40, 0.0  ;;  %16847 = vst [vmem:[#allocation176_spill] sm:$0xff] %v15178_v8  ;;  %v15194_v48 = vpop.f32.mrf.mxu0  ;;  %10591 = vrcp.f32 %v14932_v45 }
 0x979   :  { %16843 = vst [vmem:[#allocation162_spill] sm:$0xff] %v15164_v17  ;;  %v15168_v50 = vpop.eup %10571  ;;  %v4477_v38 = vsel %vm3354_vm2, %v15164_v17, 0.0  ;;  %v15186_v21 = vpop.f32.mrf.mxu1  ;;  %16853 = vst [vmem:[#allocation3_spill] sm:$0xff] %v15194_v48  ;;  %v16861_v48 = vld [vmem:[#allocation108_spill] sm:$0xff]  ;;  %10593 = vrcp.f32 %v15024_v43 }
 0x97a   :  { %16844 = vst [vmem:[#allocation131_spill] sm:$0xff] %v15168_v50  ;;  %v4504_v23 = vsel %vm3354_vm2, %v15168_v50, 0.0  ;;  %16849 = vst [vmem:[#allocation171_spill] sm:$0xff] %v15186_v21  ;;  %v15202_v18 = vpop.f32.mrf.mxu0  ;;  %10595 = vrcp.f32 %v14924_v34 }
 0x97b   :  { %v15190_v39 = vpop.f32.mrf.mxu1  ;;  %16856 = vst [vmem:[#allocation145_spill] sm:$0xff] %v15202_v18  ;;  %10597 = vrcp.f32 %v15016_v2 }
 0x97c   :  { %v15174_v25 = vpop.eup %10573  ;;  %16851 = vst [vmem:[#allocation37_spill] sm:$0xff] %v15190_v39  ;;  %v15210_v21 = vpop.f32.mrf.mxu0  ;;  %10599 = vrcp.f32 %v15018_v10 }
 0x97d   :  { %16846 = vst [vmem:[#allocation226_spill] sm:$0xff] %v15174_v25  ;;  %v15196_v8 = vpop.f32.mrf.mxu1  ;;  %16859 = vst [vmem:[#allocation233_spill] sm:$0xff] %v15210_v21  ;;  %v16864_v21 = vld [vmem:[#allocation116_spill] sm:$0xff]  ;;  %v10576_v9 = vpop.eup %10575  ;;  %10601 = vrcp.f32 %v15106_v30 }
 0x97e   :  { %16854 = vst [vmem:[#allocation209_spill] sm:$0xff] %v15196_v8  ;;  %v15216_v18 = vpop.f32.mrf.mxu0  ;;  %v10578_v45 = vpop.eup %10577  ;;  %10603 = vrcp.f32 %v15010_v59  ;;  %v4740_v10 = vmul.f32 %v10576_v9, %v14702_v36 }
 0x97f   :  { %16862 = vst [vmem:[#allocation223_spill] sm:$0xff] %v15216_v18  ;;  %v16867_v18 = vld [vmem:[#allocation117_spill] sm:$0xff]  ;;  %v10580_v34 = vpop.eup %10579  ;;  %10605 = vrcp.f32 %v15096_v63 }
 0x980   :  { %v9826_v50 = vpop.f32.mrf.mxu0  ;;  %v10582_v2 = vpop.eup %10581 }
 0x981   :  { %v10584_v30 = vpop.eup %10583 }
 0x982   :  { %v4742_v63 = vmul.f32 %v10584_v30, %v14790_v15 }
 0x986   :  { %4481 = vadd.xlane.f32.xlu1 %v4480_v6  ;;  %v4501_v6 = vsel %vm3354_vm2, %v15174_v25, 0.0 }
 0x989   :  { %4478 = vadd.xlane.f32.xlu0 %v4477_v38 }
 0x98a   :  { %4505 = vadd.xlane.f32.xlu1 %v4504_v23 }
 0x98d   :  { %4502 = vadd.xlane.f32.xlu0 %v4501_v6  ;;  %v15204_v6 = vpop.f32.mrf.mxu1 }
 0x98e   :  { %16857 = vst [vmem:[#allocation161_spill] sm:$0xff] %v15204_v6 }
 0x98f   :  { %v15212_v17 = vpop.f32.mrf.mxu1 }
 0x990   :  { %16860 = vst [vmem:[#allocation180_spill] sm:$0xff] %v15212_v17 }
 0x991   :  { %v9798_v6 = vpop.f32.mrf.mxu1 }
 0x995   :  { %v15192_v38 = vpop.xlane.xlu1 %4469 }
 0x996   :  { %16852 = vst [vmem:[#allocation2_spill] sm:$0xff] %v15192_v38 }
 0x998   :  { %v15198_v23 = vpop.xlane.xlu0 %4466 }
 0x999   :  { %16855 = vst [vmem:[#allocation166_spill] sm:$0xff] %v15198_v23  ;;  %v15200_v40 = vpop.xlane.xlu1 %4493 }
 0x99b   :  { %7072 = vrot.lane.b32.xlu1 %v16858_v3, %s10671_s23  ;;  %v16863_v3 = vld [vmem:[#allocation109_spill] sm:$0xff] }
 0x99c   :  { %v15208_v28 = vpop.xlane.xlu0 %4490 }
 0x99d   :  { %v6759_v39 = vpop.permute.xlu1 %6758 }
 0x99e   :  { %9975 = vmatprep.subr.mxu0 %v6759_v39 }
 0x99f   :  { %7068 = vrot.lane.b32.xlu1 %v16861_v48, %s10671_s23  ;;  %9976 = vmatpush3.msra.mxu0 %v6759_v39  ;;  %v5825_v48 = vpop.f32.mrf.mxu1  ;;  %v16865_v39 = vld [vmem:[#allocation102_spill] sm:$0xff] }
 0x9a0   :  { %v6606_v8 = vpop.permute.xlu0 %6605 }
 0x9a1   :  { %v6757_v55 = vpop.permute.xlu1 %6756  ;;  %9947 = vmatprep.subr.mxu1 %v6606_v8  ;;  %v15224_v25 = vpop.f32.mrf.mxu1 }
 0x9a2   :  { %9977 = vmatprep.subr.mxu0 %v6757_v55  ;;  %9948 = vmatpush3.msra.mxu1 %v6606_v8  ;;  %16866 = vst [vmem:[#allocation175_spill] sm:$0xff] %v15224_v25  ;;  %v5978_v8 = vpop.f32.mrf.mxu0  ;;  %v16873_v25 = vld [vmem:[#allocation106_spill] sm:$0xff] }
 0x9a3   :  { %7066 = vrot.lane.b32.xlu1 %v16863_v3, %s10671_s23  ;;  %9978 = vmatpush3.msra.mxu0 %v6757_v55  ;;  %v16868_v3 = vld [vmem:[#allocation103_spill] sm:$0xff]  ;;  %v15230_v24 = vpop.f32.mrf.mxu1 }
 0x9a4   :  { %6919 = vrot.lane.b32.xlu0 %v16864_v21, %s10671_s23  ;;  %v6604_v17 = vpop.permute.xlu0 %6603  ;;  %v9873_v55 = vpop.f32.mrf.mxu0  ;;  %16869 = vst [vmem:[#allocation64_spill] sm:$0xff] %v15230_v24  ;;  %v16870_v21 = vld [vmem:[#allocation122_spill] sm:$0xff]  ;;  %v16876_v24 = vld [vmem:[#allocation107_spill] sm:$0xff] }
 0x9a5   :  { %9949 = vmatprep.subr.mxu1 %v6604_v17 }
 0x9a6   :  { %9950 = vmatpush3.msra.mxu1 %v6604_v17  ;;  %v16871_v17 = vld [vmem:[#allocation96_spill] sm:$0xff]  ;;  %v6254_v38 = vpop.f32.mrf.mxu0 }
 0x9a7   :  { %7064 = vrot.lane.b32.xlu1 %v16865_v39, %s10671_s23  ;;  %v15236_v39 = vpop.f32.mrf.mxu1 }
 0x9a8   :  { %6917 = vrot.lane.b32.xlu0 %v16867_v18, %s10671_s23  ;;  %16872 = vst [vmem:[#allocation65_spill] sm:$0xff] %v15236_v39  ;;  %v16874_v18 = vld [vmem:[#allocation97_spill] sm:$0xff]  ;;  %v9876_v23 = vpop.f32.mrf.mxu0  ;;  %v16878_v39 = vld [vmem:[#allocation100_spill] sm:$0xff] }
 0x9ab   :  { %7062 = vrot.lane.b32.xlu1 %v16868_v3, %s10671_s23  ;;  %v15242_v3 = vpop.f32.mrf.mxu1 }
 0x9ac   :  { %7070 = vrot.lane.b32.xlu0 %v16870_v21, %s10671_s23  ;;  %16875 = vst [vmem:[#allocation62_spill] sm:$0xff] %v15242_v3  ;;  %v6264_v21 = vpop.f32.mrf.mxu0  ;;  %v16880_v3 = vld [vmem:[#allocation101_spill] sm:$0xff] }
 0x9af   :  { %7060 = vrot.lane.b32.xlu1 %v16871_v17, %s10671_s23  ;;  %v15247_v17 = vpop.f32.mrf.mxu1 }
 0x9b0   :  { %6915 = vrot.lane.b32.xlu0 %v16873_v25, %s10671_s23  ;;  %16877 = vst [vmem:[#allocation63_spill] sm:$0xff] %v15247_v17  ;;  %v15252_v25 = vpop.f32.mrf.mxu0  ;;  %v16882_v17 = vld [vmem:[#allocation94_spill] sm:$0xff] }
 0x9b3   :  { %7058 = vrot.lane.b32.xlu1 %v16874_v18, %s10671_s23  ;;  %v15254_v18 = vpop.f32.mrf.mxu1 }
 0x9b4   :  { %6913 = vrot.lane.b32.xlu0 %v16876_v24, %s10671_s23  ;;  %16879 = vst [vmem:[#allocation215_spill] sm:$0xff] %v15254_v18  ;;  %v15259_v24 = vpop.f32.mrf.mxu0  ;;  %v16883_v18 = vld [vmem:[#allocation95_spill] sm:$0xff] }
 0x9b7   :  { %7273 = vrot.lane.b32.xlu1 %v9770_v7, %s10672_s2  ;;  %v15261_v7 = vpop.f32.mrf.mxu1 }
 0x9b8   :  { %6911 = vrot.lane.b32.xlu0 %v16878_v39, %s10671_s23  ;;  %16881 = vst [vmem:[#allocation170_spill] sm:$0xff] %v15261_v7 }
 0x9b9   :  { %v15268_v39 = vpop.f32.mrf.mxu1 }
 0x9bb   :  { %7401 = vrot.lane.b32.xlu1 %v9798_v6, %s10673_s16  ;;  %v15266_v6 = vpop.f32.mrf.mxu0 }
 0x9bc   :  { %6909 = vrot.lane.b32.xlu0 %v16880_v3, %s10671_s23  ;;  %v9901_v3 = vpop.f32.mrf.mxu1 }
 0x9bf   :  { %7529 = vrot.lane.b32.xlu1 %v9826_v50, %s10674_s1  ;;  %v15273_v50 = vpop.f32.mrf.mxu0 }
 0x9c0   :  { %6907 = vrot.lane.b32.xlu0 %v16882_v17, %s10671_s23 }
 0x9c1   :  { %v9929_v7 = vpop.f32.mrf.mxu0 }
 0x9c3   :  { %7277 = vrot.lane.b32.xlu1 %v9873_v55, %s10672_s2  ;;  %v6407_v55 = vpop.f32.mrf.mxu1  ;;  %v6560_v52 = vpop.f32.mrf.mxu0 }
 0x9c4   :  { %6905 = vrot.lane.b32.xlu0 %v16883_v18, %s10671_s23 }
 0x9c5   :  { %v9904_v17 = vpop.f32.mrf.mxu1  ;;  %v9932_v60 = vpop.f32.mrf.mxu0 }
 0x9c7   :  { %7405 = vrot.lane.b32.xlu1 %v9901_v3, %s10673_s16  ;;  %v6417_v31 = vpop.f32.mrf.mxu1  ;;  %v6570_v43 = vpop.f32.mrf.mxu0 }
 0x9c8   :  { %7271 = vrot.lane.b32.xlu0 %v15180_v22, %s10672_s2 }
 0x9cb   :  { %7533 = vrot.lane.b32.xlu1 %v9929_v7, %s10674_s1 }
 0x9cc   :  { %7399 = vrot.lane.b32.xlu0 %v5825_v48, %s10673_s16  ;;  %v4741_v48 = vmul.f32 %v10578_v45, %v14794_v37  ;;  %v4733_v37 = vmul.f32 %v10582_v2, %v14786_v54  ;;  %v16888_v45 = vld [vmem:[#allocation113_spill] sm:$0xff]  ;;  %v16891_v2 = vld [vmem:[#allocation166_spill] sm:$0xff] }
 0x9cf   :  { %7279 = vrot.lane.b32.xlu1 %v6264_v21, %s10672_s2  ;;  %v4732_v21 = vmul.f32 %v10580_v34, %v14696_v19 }
 0x9d0   :  { %7527 = vrot.lane.b32.xlu0 %v5978_v8, %s10674_s1  ;;  %v10586_v8 = vpop.eup %10585 }
 0x9d1   :  { %v10588_v59 = vpop.eup %10587  ;;  %v4743_v7 = vmul.f32 %v10586_v8, %v14834_v33 }
 0x9d2   :  { %v15284_v18 = vpop.xlane.xlu1 %4475  ;;  %v10590_v36 = vpop.eup %10589  ;;  %v4734_v15 = vmul.f32 %v10588_v59, %v14784_v56  ;;  %v16894_v59 = vld [vmem:[#allocation160_spill] sm:$0xff] }
 0x9d3   :  { %7281 = vrot.lane.b32.xlu1 %v9876_v23, %s10672_s2  ;;  %v4735_v33 = vmul.f32 %v10590_v36, %v14826_v51  ;;  %v16895_v36 = vld [vmem:[#allocation261_spill] sm:$0xff] }
 0x9d4   :  { %7275 = vrot.lane.b32.xlu0 %v6254_v38, %s10672_s2 }
 0x9d5   :  { %v15291_v22 = vpop.xlane.xlu0 %4472 }
 0x9d6   :  { %v15294_v35 = vpop.xlane.xlu1 %4499 }
 0x9d7   :  { %7407 = vrot.lane.b32.xlu1 %v6417_v31, %s10673_s16  ;;  %v9907_v31 = vpop.f32.mrf.mxu1 }
 0x9d8   :  { %7403 = vrot.lane.b32.xlu0 %v6407_v55, %s10673_s16 }
 0x9d9   :  { %v15301_v14 = vpop.xlane.xlu0 %4496 }
 0x9da   :  { %v6755_v11 = vpop.permute.xlu1 %6754 }
 0x9db   :  { %7409 = vrot.lane.b32.xlu1 %v9904_v17, %s10673_s16  ;;  %9979 = vmatprep.subr.mxu0 %v6755_v11 }
 0x9dc   :  { %7531 = vrot.lane.b32.xlu0 %v6560_v52, %s10674_s1  ;;  %9980 = vmatpush3.msra.mxu0 %v6755_v11  ;;  %v16886_v11 = vld [vmem:[#allocation6_spill] sm:$0xff] }
 0x9dd   :  { %v6602_v62 = vpop.permute.xlu0 %6601  ;;  %10607 = vrcp.f32 %v16886_v11  ;;  %v16908_v11 = vld [vmem:[#allocation172_spill] sm:$0xff] }
 0x9de   :  { %v6753_v38 = vpop.permute.xlu1 %6752  ;;  %9951 = vmatprep.subr.mxu1 %v6602_v62  ;;  %10609 = vrcp.f32 %v15208_v28  ;;  %v16889_v28 = vld [vmem:[#allocation52_spill] sm:$0xff] }
 0x9df   :  { %7535 = vrot.lane.b32.xlu1 %v6570_v43, %s10674_s1  ;;  %9981 = vmatprep.subr.mxu0 %v6753_v38  ;;  %10611 = vrcp.f32 %v15200_v40  ;;  %v16890_v40 = vld [vmem:[#allocation53_spill] sm:$0xff] }
 0x9e0   :  { %9952 = vmatpush3.msra.mxu1 %v6602_v62  ;;  %7243 = vrot.lane.b32.xlu0 %v15050_v13, %s10672_s2  ;;  %v10592_v13 = vpop.eup %10591  ;;  %10613 = vrcp.f32 %v15301_v14 }
 0x9e1   :  { %9982 = vmatpush3.msra.mxu0 %v6753_v38  ;;  %v6600_v23 = vpop.permute.xlu0 %6599  ;;  %v10594_v3 = vpop.eup %10593  ;;  %v4744_v54 = vmul.f32 %v10592_v13, %v14830_v61  ;;  %10615 = vrcp.f32 %v15294_v35 }
 0x9e2   :  { %9984 = vmatmul.mubr.msk.f32.vlgmr.msra.gmra.mxu0 %vm3354_vm2, %v4740_v10  ;;  %9953 = vmatprep.subr.mxu1 %v6600_v23  ;;  %v10596_v19 = vpop.eup %10595  ;;  %v4745_v17 = vmul.f32 %v10594_v3, %v14874_v53  ;;  %v16892_v10 = vld [vmem:[#allocation163_spill] sm:$0xff] }
 0x9e3   :  { %9986 = vmatprep.mubr.msk.f32.mxu0 %vm3354_vm2, %v4741_v48  ;;  %7537 = vrot.lane.b32.xlu1 %v9932_v60, %s10674_s1  ;;  %v4736_v56 = vmul.f32 %v10596_v19, %v14824_v57  ;;  %v6427_v60 = vpop.f32.mrf.mxu1  ;;  %v16893_v48 = vld [vmem:[#allocation2_spill] sm:$0xff] }
 0x9e4   :  { %9954 = vmatpush3.msra.mxu1 %v6600_v23  ;;  %7245 = vrot.lane.b32.xlu0 %v15046_v46, %s10672_s2  ;;  %v10598_v46 = vpop.eup %10597 }
 0x9e5   :  { %9956 = vmatmul.mubr.msk.f32.vlgmr.msra.gmra.mxu1 %vm3354_vm2, %v4732_v21  ;;  %v10600_v55 = vpop.eup %10599  ;;  %v4737_v53 = vmul.f32 %v10598_v46, %v14866_v41  ;;  %v16898_v46 = vld [vmem:[#allocation17_spill] sm:$0xff] }
 0x9e6   :  { %9987 = vmatmul.mubr.msk.f32.gmra.mxu0 %vm3354_vm2, %v4742_v63  ;;  %9958 = vmatprep.mubr.msk.f32.mxu1 %vm3354_vm2, %v4733_v37  ;;  %v10602_v52 = vpop.eup %10601  ;;  %v4746_v51 = vmul.f32 %v10600_v55, %v14870_v0  ;;  %v9935_v0 = vpop.f32.mrf.mxu0  ;;  %v16896_v37 = vld [vmem:[#allocation11_spill] sm:$0xff]  ;;  %v16899_v55 = vld [vmem:[#allocation168_spill] sm:$0xff] }
 0x9e7   :  { %9989 = vmatprep.mubr.msk.f32.mxu0 %vm3354_vm2, %v4743_v7  ;;  %7283 = vrot.lane.b32.xlu1 %v15259_v24, %s10672_s2  ;;  %v10604_v61 = vpop.eup %10603  ;;  %v4755_v24 = vmul.f32 %v10602_v52, %v14914_v49  ;;  %v7696_v7 = vld [vmem:[%s15887_s5 + $0x18] sm:$0xff] }
 0x9e8   :  { %7371 = vrot.lane.b32.xlu0 %v15084_v44, %s10673_s16  ;;  %v10606_v44 = vpop.eup %10605  ;;  %v4738_v57 = vmul.f32 %v10604_v61, %v14864_v42  ;;  %v6580_v49 = vpop.f32.mrf.mxu0 }
 0x9e9   :  { %9959 = vmatmul.mubr.msk.f32.gmra.mxu1 %vm3354_vm2, %v4734_v15  ;;  %v4747_v41 = vmul.f32 %v10606_v44, %v14906_v26  ;;  %v9910_v42 = vpop.f32.mrf.mxu1  ;;  %v16897_v15 = vld [vmem:[#allocation240_spill] sm:$0xff] }
 0x9ea   :  { %9990 = vmatmul.mubr.msk.f32.gmra.mxu0 %vm3354_vm2, %v4744_v54  ;;  %9961 = vmatprep.mubr.msk.f32.mxu1 %vm3354_vm2, %v4735_v33  ;;  %v10608_v35 = vpop.eup %10607  ;;  %v16901_v44 = vld [vmem:[#allocation148_spill] sm:$0xff] }
 0x9eb   :  { %9992 = vmatprep.mubr.msk.f32.mxu0 %vm3354_vm2, %v4745_v17  ;;  %7285 = vrot.lane.b32.xlu1 %v15252_v25, %s10672_s2  ;;  %v6437_v26 = vpop.f32.mrf.mxu1  ;;  %v10610_v30 = vpop.eup %10609  ;;  %v4756_v21 = vmul.f32 %v10608_v35, %v16894_v59 }
 0x9ec   :  { %7373 = vrot.lane.b32.xlu0 %v15076_v47, %s10673_s16  ;;  %v10612_v63 = vpop.eup %10611  ;;  %v4757_v13 = vmul.f32 %v10610_v30, %v16896_v37  ;;  %v16913_v30 = vld [vmem:[#allocation157_spill] sm:$0xff]  ;;  %v16916_v37 = vld [vmem:[#allocation151_spill] sm:$0xff] }
 0x9ed   :  { %9962 = vmatmul.mubr.msk.f32.gmra.mxu1 %vm3354_vm2, %v4736_v56  ;;  %v10614_v3 = vpop.eup %10613  ;;  %v4758_v54 = vmul.f32 %v10612_v63, %v16898_v46  ;;  %v16917_v46 = vld [vmem:[#allocation176_spill] sm:$0xff] }
 0x9ee   :  { %9993 = vmatmul.mubr.msk.f32.gmra.mxu0 %vm3354_vm2, %v4746_v51  ;;  %9964 = vmatprep.mubr.msk.f32.mxu1 %vm3354_vm2, %v4737_v53  ;;  %v10616_v33 = vpop.eup %10615  ;;  %v4759_v17 = vmul.f32 %v10614_v3, %v16899_v55  ;;  %v16900_v53 = vld [vmem:[#allocation153_spill] sm:$0xff]  ;;  %v16918_v55 = vld [vmem:[#allocation36_spill] sm:$0xff] }
 0x9ef   :  { %10039 = vmatprep.mubr.msk.f32.mxu0 %vm3354_vm2, %v4755_v24  ;;  %7411 = vrot.lane.b32.xlu1 %v6427_v60, %s10673_s16  ;;  %v4760_v24 = vmul.f32 %v10616_v33, %v16901_v44 }
 0x9f0   :  { %7499 = vrot.lane.b32.xlu0 %v15086_v32, %s10674_s1 }
 0x9f1   :  { %9965 = vmatmul.mubr.msk.f32.gmra.mxu1 %vm3354_vm2, %v4738_v57  ;;  %v16902_v57 = vld [vmem:[#allocation226_spill] sm:$0xff] }
 0x9f2   :  { %10011 = vmatprep.mubr.msk.f32.mxu1 %vm3354_vm2, %v4747_v41 }
 0x9f3   :  { %7413 = vrot.lane.b32.xlu1 %v9907_v31, %s10673_s16 }
 0x9f4   :  { %7501 = vrot.lane.b32.xlu0 %v15082_v12, %s10674_s1 }
 0x9f7   :  { %7539 = vrot.lane.b32.xlu1 %v6580_v49, %s10674_s1 }
 0x9f8   :  { %7247 = vrot.lane.b32.xlu0 %v15054_v27, %s10672_s2 }
 0x9fb   :  { %7541 = vrot.lane.b32.xlu1 %v9935_v0, %s10674_s1  ;;  %v7694_v0 = vld [vmem:[%s15887_s5 + $0x8] sm:$0xff] }
 0x9fc   :  { %7249 = vrot.lane.b32.xlu0 %v15052_v1, %s10672_s2  ;;  %v9938_v1 = vpop.f32.mrf.mxu0 }
 0x9fe   :  { %v6590_v27 = vpop.f32.mrf.mxu0 }
 0x9ff   :  { %7287 = vrot.lane.b32.xlu1 %v15273_v50, %s10672_s2 }
 0xa00   :  { %7375 = vrot.lane.b32.xlu0 %v15094_v5, %s10673_s16 }
 0xa03   :  { %7289 = vrot.lane.b32.xlu1 %v15266_v6, %s10672_s2 }
 0xa04   :  { %7377 = vrot.lane.b32.xlu0 %v15088_v20, %s10673_s16 }
 0xa07   :  { %7415 = vrot.lane.b32.xlu1 %v6437_v26, %s10673_s16 }
 0xa08   :  { %7503 = vrot.lane.b32.xlu0 %v15100_v4, %s10674_s1 }
 0xa0b   :  { %7417 = vrot.lane.b32.xlu1 %v9910_v42, %s10673_s16  ;;  %v16903_v42 = vld [vmem:[#allocation132_spill] sm:$0xff] }
 0xa0c   :  { %7505 = vrot.lane.b32.xlu0 %v15092_v58, %s10674_s1  ;;  %v16884_v58 = vld [vmem:[#allocation147_spill] sm:$0xff] }
 0xa0f   :  { %7543 = vrot.lane.b32.xlu1 %v6590_v27, %s10674_s1  ;;  %v15384_v47 = vpop.xlane.xlu1 %4481 }
 0xa10   :  { %7251 = vrot.lane.b32.xlu0 %v15062_v29, %s10672_s2  ;;  %v16885_v29 = vld [vmem:[#allocation7_spill] sm:$0xff] }
 0xa12   :  { %v15388_v12 = vpop.xlane.xlu0 %4478 }
 0xa13   :  { %7545 = vrot.lane.b32.xlu1 %v9938_v1, %s10674_s1  ;;  %v4506_v32 = vpop.xlane.xlu1 %4505 }
 0xa14   :  { %7253 = vrot.lane.b32.xlu0 %v15056_v16, %s10672_s2  ;;  %v16887_v16 = vld [vmem:[#allocation158_spill] sm:$0xff] }
 0xa16   :  { %v4503_v4 = vpop.xlane.xlu0 %4502 }
 0xa17   :  { %v7073_v20 = vpop.permute.xlu1 %7072  ;;  %10617 = vrcp.f32 %v4503_v4  ;;  %v16906_v4 = vld [vmem:[#allocation12_spill] sm:$0xff] }
 0xa18   :  { %7379 = vrot.lane.b32.xlu0 %v16884_v58, %s10673_s16  ;;  %10023 = vmatprep.subr.mxu0 %v7073_v20  ;;  %10619 = vrcp.f32 %v16890_v40 }
 0xa19   :  { %10024 = vmatpush3.msra.mxu0 %v7073_v20  ;;  %10621 = vrcp.f32 %v16891_v2  ;;  %v16911_v2 = vld [vmem:[#allocation118_spill] sm:$0xff] }
 0xa1a   :  { %v6920_v5 = vpop.permute.xlu0 %6919  ;;  %10623 = vrcp.f32 %v4506_v32 }
 0xa1b   :  { %v7069_v25 = vpop.permute.xlu1 %7068  ;;  %9995 = vmatprep.subr.mxu1 %v6920_v5  ;;  %10625 = vrcp.f32 %v16893_v48 }
 0xa1c   :  { %7381 = vrot.lane.b32.xlu0 %v16885_v29, %s10673_s16  ;;  %9996 = vmatpush3.msra.mxu1 %v6920_v5  ;;  %10627 = vrcp.f32 %v15291_v22  ;;  %v16907_v29 = vld [vmem:[#allocation155_spill] sm:$0xff] }
 0xa1d   :  { %10629 = vrcp.f32 %v15284_v18  ;;  %v7695_v18 = vld [vmem:[%s15887_s5 + $0x10] sm:$0xff] }
 0xa1e   :  { %v6918_v6 = vpop.permute.xlu0 %6917  ;;  %10631 = vrcp.f32 %v15388_v12  ;;  %v16905_v12 = vld [vmem:[#allocation131_spill] sm:$0xff] }
 0xa1f   :  { %v7067_v50 = vpop.permute.xlu1 %7066  ;;  %9997 = vmatprep.subr.mxu1 %v6918_v6  ;;  %10633 = vrcp.f32 %v15384_v47  ;;  %v16904_v47 = vld [vmem:[#allocation139_spill] sm:$0xff] }
 0xa20   :  { %7507 = vrot.lane.b32.xlu0 %v16887_v16, %s10674_s1  ;;  %9998 = vmatpush3.msra.mxu1 %v6918_v6  ;;  %v16909_v16 = vld [vmem:[#allocation154_spill] sm:$0xff] }
 0xa22   :  { %v7071_v9 = vpop.permute.xlu0 %7070 }
 0xa23   :  { %v7065_v62 = vpop.permute.xlu1 %7064  ;;  %10025 = vmatprep.subr.mxu0 %v7071_v9 }
 0xa24   :  { %7509 = vrot.lane.b32.xlu0 %v16888_v45, %s10674_s1  ;;  %10026 = vmatpush3.msra.mxu0 %v7071_v9  ;;  %v10618_v52 = vpop.eup %10617 }
 0xa25   :  { %10027 = vmatprep.subr.mxu0 %v7069_v25  ;;  %v10620_v56 = vpop.eup %10619  ;;  %v4761_v41 = vmul.f32 %v10618_v52, %v16902_v57 }
 0xa26   :  { %v6916_v43 = vpop.permute.xlu0 %6915  ;;  %10028 = vmatpush3.msra.mxu0 %v7069_v25  ;;  %v10622_v51 = vpop.eup %10621  ;;  %v4748_v26 = vmul.f32 %v10620_v56, %v16903_v42 }
 0xa27   :  { %v7063_v38 = vpop.permute.xlu1 %7062  ;;  %9999 = vmatprep.subr.mxu1 %v6916_v43  ;;  %10029 = vmatprep.subr.mxu0 %v7067_v50  ;;  %v10624_v60 = vpop.eup %10623  ;;  %v4749_v20 = vmul.f32 %v10622_v51, %v16906_v4 }
 0xa28   :  { %7255 = vrot.lane.b32.xlu0 %v16889_v28, %s10672_s2  ;;  %10000 = vmatpush3.msra.mxu1 %v6916_v43  ;;  %v10626_v27 = vpop.eup %10625  ;;  %v4762_v32 = vmul.f32 %v10624_v60, %v16905_v12  ;;  %v16910_v28 = vld [vmem:[#allocation9_spill] sm:$0xff] }
 0xa29   :  { %10030 = vmatpush3.msra.mxu0 %v7067_v50  ;;  %v10628_v58 = vpop.eup %10627  ;;  %v4750_v6 = vmul.f32 %v10626_v27, %v16907_v29  ;;  %v16925_v12 = vld [vmem:[#allocation65_spill] sm:$0xff] }
 0xa2a   :  { %10031 = vmatprep.subr.mxu0 %v7065_v62  ;;  %v6914_v34 = vpop.permute.xlu0 %6913  ;;  %v10630_v50 = vpop.eup %10629  ;;  %v4751_v9 = vmul.f32 %v10628_v58, %v16909_v16 }
 0xa2b   :  { %10032 = vmatpush3.msra.mxu0 %v7065_v62  ;;  %v7061_v14 = vpop.permute.xlu1 %7060  ;;  %10001 = vmatprep.subr.mxu1 %v6914_v34  ;;  %v7693_v62 = vld [vmem:[%s15887_s5] sm:$0xff]  ;;  %v10632_v45 = vpop.eup %10631  ;;  %v4752_v40 = vmul.f32 %v10630_v50, %v16910_v28  ;;  %v16927_v50 = vld [vmem:[#allocation37_spill] sm:$0xff]  ;;  %v16930_v28 = vld [vmem:[#allocation16_spill] sm:$0xff] }
 0xa2c   :  { %7257 = vrot.lane.b32.xlu0 %v16892_v10, %s10672_s2  ;;  %10033 = vmatprep.subr.mxu0 %v7063_v38 }
 0xa2d   :  { %10002 = vmatpush3.msra.mxu1 %v6914_v34  ;;  %10034 = vmatpush3.msra.mxu0 %v7063_v38  ;;  %v10634_v34 = vpop.eup %10633 }
 0xa2e   :  { %10035 = vmatprep.subr.mxu0 %v7061_v14  ;;  %v6912_v23 = vpop.permute.xlu0 %6911 }
 0xa2f   :  { %10036 = vmatpush3.msra.mxu0 %v7061_v14  ;;  %v7059_v8 = vpop.permute.xlu1 %7058  ;;  %10003 = vmatprep.subr.mxu1 %v6912_v23  ;;  %v16912_v14 = vld [vmem:[#allocation162_spill] sm:$0xff] }
 0xa30   :  { %7383 = vrot.lane.b32.xlu0 %v16895_v36, %s10673_s16  ;;  %10037 = vmatprep.subr.mxu0 %v7059_v8  ;;  %v4753_v10 = vmul.f32 %v10632_v45, %v16912_v14  ;;  %v16915_v36 = vld [vmem:[#allocation171_spill] sm:$0xff] }
 0xa31   :  { %10004 = vmatpush3.msra.mxu1 %v6912_v23  ;;  %10038 = vmatpush3.msra.mxu0 %v7059_v8  ;;  %v16914_v8 = vld [vmem:[#allocation4_spill] sm:$0xff] }
 0xa32   :  { %10040 = vmatmul.mubr.msk.f32.vlgmr.msra.gmra.mxu0 %vm3354_vm2, %v4756_v21  ;;  %v6910_v19 = vpop.permute.xlu0 %6909  ;;  %10051 = vmatprep.subr.mxu0 %v7696_v7  ;;  %v4754_v59 = vmul.f32 %v10634_v34, %v16914_v8  ;;  %v16933_v8 = vld [vmem:[#allocation215_spill] sm:$0xff] }
 0xa33   :  { %10042 = vmatprep.mubr.msk.f32.mxu0 %vm3354_vm2, %v4757_v13  ;;  %v15424_v22 = vpop.permute.xlu1 %7273  ;;  %10005 = vmatprep.subr.mxu1 %v6910_v19 }
 0xa34   :  { %7385 = vrot.lane.b32.xlu0 %v16897_v15, %s10673_s16  ;;  %10006 = vmatpush3.msra.mxu1 %v6910_v19  ;;  %v7610_v13 = vsel %vm873_vm1, %v16916_v37, %v15424_v22  ;;  %v16919_v22 = vld [vmem:[#allocation64_spill] sm:$0xff] }
 0xa35   :  { %10052 = vmatpush3.msra.mxu0 %v7696_v7 }
 0xa36   :  { %10043 = vmatmul.mubr.msk.f32.gmra.mxu0 %vm3354_vm2, %v4758_v54  ;;  %v6908_v31 = vpop.permute.xlu0 %6907  ;;  %10053 = vmatprep.subr.mxu0 %v7695_v18 }
 0xa37   :  { %10045 = vmatprep.mubr.msk.f32.mxu0 %vm3354_vm2, %v4759_v17  ;;  %v15437_v61 = vpop.permute.xlu1 %7401  ;;  %10007 = vmatprep.subr.mxu1 %v6908_v31 }
 0xa38   :  { %7511 = vrot.lane.b32.xlu0 %v16900_v53, %s10674_s1  ;;  %10008 = vmatpush3.msra.mxu1 %v6908_v31  ;;  %v7643_v3 = vsel %vm7627_vm3, %v7610_v13, %v15437_v61  ;;  %v16934_v13 = vld [vmem:[#allocation44_spill] sm:$0xff] }
 0xa39   :  { %10054 = vmatpush3.msra.mxu0 %v7695_v18 }
 0xa3a   :  { %10046 = vmatmul.mubr.msk.f32.gmra.mxu0 %vm3354_vm2, %v4760_v24  ;;  %v6906_v49 = vpop.permute.xlu0 %6905  ;;  %10055 = vmatprep.subr.mxu0 %v7694_v0  ;;  %v16921_v24 = vld [vmem:[#allocation216_spill] sm:$0xff] }
 0xa3b   :  { %10048 = vmatprep.mubr.msk.f32.mxu0 %vm3354_vm2, %v4761_v41  ;;  %v7530_v1 = vpop.permute.xlu1 %7529  ;;  %10009 = vmatprep.subr.mxu1 %v6906_v49  ;;  %v16922_v41 = vld [vmem:[#allocation167_spill] sm:$0xff] }
 0xa3c   :  { %7513 = vrot.lane.b32.xlu0 %v16904_v47, %s10674_s1  ;;  %10010 = vmatpush3.msra.mxu1 %v6906_v49  ;;  %v7676_v15 = vsel %vm7660_vm4, %v7643_v3, %v7530_v1  ;;  %v16924_v47 = vld [vmem:[#allocation134_spill] sm:$0xff] }
 0xa3d   :  { %10012 = vmatmul.mubr.msk.f32.vlgmr.msra.gmra.mxu1 %vm3354_vm2, %v4748_v26  ;;  %10107 = vmatprep.subr.mxu1 %v7696_v7 }
 0xa3e   :  { %10049 = vmatmul.mubr.msk.f32.gmra.mxu0 %vm3354_vm2, %v4762_v32  ;;  %v7272_v5 = vpop.permute.xlu0 %7271  ;;  %10014 = vmatprep.mubr.msk.f32.mxu1 %vm3354_vm2, %v4749_v20 }
 0xa3f   :  { %v7278_v25 = vpop.permute.xlu1 %7277  ;;  %10111 = vmatpush3.msra.mxu1 %v7696_v7  ;;  %10056 = vmatpush3.msra.mxu0 %v7694_v0  ;;  %v7609_v23 = vsel %vm873_vm1, %v16913_v30, %v7272_v5 }
 0xa40   :  { %7259 = vrot.lane.b32.xlu0 %v16908_v11, %s10672_s2  ;;  %10108 = vmatprep.subr.mxu1 %v7695_v18  ;;  %v16928_v11 = vld [vmem:[#allocation144_spill] sm:$0xff] }
 0xa41   :  { %10015 = vmatmul.mubr.msk.f32.gmra.mxu1 %vm3354_vm2, %v4750_v6  ;;  %10057 = vmatprep.subr.mxu0 %v7693_v62 }
 0xa42   :  { %v7400_v43 = vpop.permute.xlu0 %7399  ;;  %10017 = vmatprep.mubr.msk.f32.mxu1 %vm3354_vm2, %v4751_v9  ;;  %10112 = vmatpush3.msra.mxu1 %v7695_v18  ;;  %v16920_v18 = vld [vmem:[#allocation175_spill] sm:$0xff] }
 0xa43   :  { %v7406_v38 = vpop.permute.xlu1 %7405  ;;  %10109 = vmatprep.subr.mxu1 %v7694_v0  ;;  %10058 = vmatpush3.msra.mxu0 %v7693_v62  ;;  %v7642_v21 = vsel %vm7627_vm3, %v7609_v23, %v7400_v43  ;;  %v7612_v52 = vsel %vm873_vm1, %v16920_v18, %v7278_v25  ;;  %v16926_v25 = vld [vmem:[#allocation209_spill] sm:$0xff]  ;;  %v16938_v18 = vld [vmem:[#allocation164_spill] sm:$0xff] }
 0xa44   :  { %7261 = vrot.lane.b32.xlu0 %v16911_v2, %s10672_s2  ;;  %10113 = vmatpush3.msra.mxu1 %v7694_v0  ;;  %v7645_v61 = vsel %vm7627_vm3, %v7612_v52, %v7406_v38  ;;  %v16923_v0 = vld [vmem:[#allocation62_spill] sm:$0xff]  ;;  %v16929_v38 = vld [vmem:[#allocation145_spill] sm:$0xff] }
 0xa45   :  { %10018 = vmatmul.mubr.msk.f32.gmra.mxu1 %vm3354_vm2, %v4752_v40  ;;  %10110 = vmatprep.subr.mxu1 %v7693_v62 }
 0xa46   :  { %v7528_v35 = vpop.permute.xlu0 %7527  ;;  %10020 = vmatprep.mubr.msk.f32.mxu1 %vm3354_vm2, %v4753_v10  ;;  %10114 = vmatpush3.msra.mxu1 %v7693_v62 }
 0xa47   :  { %v7534_v48 = vpop.permute.xlu1 %7533  ;;  %v7675_v63 = vsel %vm7660_vm4, %v7642_v21, %v7528_v35  ;;  %v16931_v35 = vld [vmem:[#allocation3_spill] sm:$0xff] }
 0xa48   :  { %7387 = vrot.lane.b32.xlu0 %v16915_v36, %s10673_s16  ;;  %v7678_v44 = vsel %vm7660_vm4, %v7645_v61, %v7534_v48  ;;  %v16932_v48 = vld [vmem:[#allocation5_spill] sm:$0xff] }
 0xa49   :  { %10021 = vmatmul.mubr.msk.f32.gmra.mxu1 %vm3354_vm2, %v4754_v59 }
 0xa4a   :  { %v7276_v7 = vpop.permute.xlu0 %7275  ;;  %10080 = vmatprep.mubr.msk.f32.mxu1 %vm71_vm0, %v7675_v63 }
 0xa4b   :  { %v7280_v19 = vpop.permute.xlu1 %7279  ;;  %v7611_v17 = vsel %vm873_vm1, %v16919_v22, %v7276_v7  ;;  %v16935_v7 = vld [vmem:[#allocation63_spill] sm:$0xff] }
 0xa4c   :  { %7389 = vrot.lane.b32.xlu0 %v16917_v46, %s10673_s16  ;;  %v7613_v49 = vsel %vm873_vm1, %v16923_v0, %v7280_v19 }
 0xa4d   :  { %10081 = vmatmul.mubr.msk.f32.vlgmr.msra.gmra.mxu1 %vm71_vm0, %v7676_v15 }
 0xa4e   :  { %v7404_v54 = vpop.permute.xlu0 %7403 }
 0xa4f   :  { %v7282_v33 = vpop.permute.xlu1 %7281  ;;  %v7644_v31 = vsel %vm7627_vm3, %v7611_v17, %v7404_v54  ;;  %v16937_v17 = vld [vmem:[#allocation161_spill] sm:$0xff] }
 0xa50   :  { %7515 = vrot.lane.b32.xlu0 %v16918_v55, %s10674_s1  ;;  %v7614_v32 = vsel %vm873_vm1, %v16925_v12, %v7282_v33  ;;  %v16936_v33 = vld [vmem:[#allocation180_spill] sm:$0xff] }
 0xa52   :  { %v7532_v56 = vpop.permute.xlu0 %7531 }
 0xa53   :  { %v7677_v51 = vsel %vm7660_vm4, %v7644_v31, %v7532_v56  ;;  %v7408_v53 = vpop.permute.xlu1 %7407 }
 0xa54   :  { %7517 = vrot.lane.b32.xlu0 %v16921_v24, %s10674_s1  ;;  %10083 = vmatprep.mubr.msk.f32.mxu1 %vm71_vm0, %v7677_v51  ;;  %v7646_v26 = vsel %vm7627_vm3, %v7613_v49, %v7408_v53  ;;  %v16939_v53 = vld [vmem:[#allocation223_spill] sm:$0xff]  ;;  %v16941_v49 = vld [vmem:[#allocation233_spill] sm:$0xff] }
 0xa55   :  { %10084 = vmatmul.mubr.msk.f32.gmra.mxu1 %vm71_vm0, %v7678_v44  ;;  %v16940_v44 = vld [vmem:[#allocation141_spill] sm:$0xff] }
 0xa56   :  { %v7244_v60 = vpop.permute.xlu0 %7243 }
 0xa57   :  { %v7410_v57 = vpop.permute.xlu1 %7409  ;;  %v7595_v16 = vsel %vm873_vm1, %v16928_v11, %v7244_v60 }
 0xa58   :  { %7263 = vrot.lane.b32.xlu0 %v16922_v41, %s10672_s2  ;;  %v7647_v20 = vsel %vm7627_vm3, %v7614_v32, %v7410_v57 }
 0xa5a   :  { %v7246_v42 = vpop.permute.xlu0 %7245 }
 0xa5b   :  { %v7536_v1 = vpop.permute.xlu1 %7535  ;;  %v7596_v40 = vsel %vm873_vm1, %v16930_v28, %v7246_v42 }
 0xa5c   :  { %v7679_v27 = vsel %vm7660_vm4, %v7646_v26, %v7536_v1  ;;  %7265 = vrot.lane.b32.xlu0 %v16924_v47, %s10672_s2 }
 0xa5d   :  { %10086 = vmatprep.mubr.msk.f32.mxu1 %vm71_vm0, %v7679_v27 }
 0xa5e   :  { %v7372_v4 = vpop.permute.xlu0 %7371 }
 0xa5f   :  { %v7538_v58 = vpop.permute.xlu1 %7537  ;;  %v7628_v9 = vsel %vm7627_vm3, %v7595_v16, %v7372_v4  ;;  %v16942_v4 = vld [vmem:[#allocation170_spill] sm:$0xff] }
 0xa60   :  { %v7680_v5 = vsel %vm7660_vm4, %v7647_v20, %v7538_v58  ;;  %7391 = vrot.lane.b32.xlu0 %v16926_v25, %s10673_s16 }
 0xa61   :  { %10087 = vmatmul.mubr.msk.f32.gmra.mxu1 %vm71_vm0, %v7680_v5 }
 0xa62   :  { %v7374_v29 = vpop.permute.xlu0 %7373 }
 0xa63   :  { %v7284_v6 = vpop.permute.xlu1 %7283  ;;  %v7629_v34 = vsel %vm7627_vm3, %v7596_v40, %v7374_v29 }
 0xa64   :  { %7393 = vrot.lane.b32.xlu0 %v16927_v50, %s10673_s16  ;;  %v7615_v59 = vsel %vm873_vm1, %v16933_v8, %v7284_v6  ;;  %v16943_v6 = vld [vmem:[#allocation60_spill] sm:$0xff] }
 0xa66   :  { %v7500_v62 = vpop.permute.xlu0 %7499 }
 0xa67   :  { %v7661_v45 = vsel %vm7660_vm4, %v7628_v9, %v7500_v62  ;;  %v7286_v43 = vpop.permute.xlu1 %7285  ;;  %v16944_v62 = vld [vmem:[#allocation159_spill] sm:$0xff] }
 0xa68   :  { %7519 = vrot.lane.b32.xlu0 %v16929_v38, %s10674_s1  ;;  %10059 = vmatprep.mubr.msk.f32.mxu0 %vm71_vm0, %v7661_v45  ;;  %v7616_v3 = vsel %vm873_vm1, %v16935_v7, %v7286_v43 }
 0xa6a   :  { %v7502_v2 = vpop.permute.xlu0 %7501 }
 0xa6b   :  { %v7662_v14 = vsel %vm7660_vm4, %v7629_v34, %v7502_v2  ;;  %v7412_v10 = vpop.permute.xlu1 %7411 }
 0xa6c   :  { %7521 = vrot.lane.b32.xlu0 %v16931_v35, %s10674_s1  ;;  %10060 = vmatmul.mubr.msk.f32.vlgmr.msra.gmra.mxu0 %vm71_vm0, %v7662_v14  ;;  %v7648_v36 = vsel %vm7627_vm3, %v7615_v59, %v7412_v10 }
 0xa6e   :  { %v7248_v30 = vpop.permute.xlu0 %7247 }
 0xa6f   :  { %v7414_v23 = vpop.permute.xlu1 %7413  ;;  %v7597_v52 = vsel %vm873_vm1, %v16938_v18, %v7248_v30  ;;  %v16945_v30 = vld [vmem:[#allocation8_spill] sm:$0xff] }
 0xa70   :  { %7267 = vrot.lane.b32.xlu0 %v16932_v48, %s10672_s2  ;;  %v7649_v15 = vsel %vm7627_vm3, %v7616_v3, %v7414_v23 }
 0xa72   :  { %v7250_v21 = vpop.permute.xlu0 %7249 }
 0xa73   :  { %v7540_v63 = vpop.permute.xlu1 %7539  ;;  %v7598_v24 = vsel %vm873_vm1, %v16940_v44, %v7250_v21  ;;  %v16946_v21 = vld [vmem:[#allocation61_spill] sm:$0xff] }
 0xa74   :  { %v7681_v37 = vsel %vm7660_vm4, %v7648_v36, %v7540_v63  ;;  %7269 = vrot.lane.b32.xlu0 %v16934_v13, %s10672_s2 }
 0xa75   :  { %10089 = vmatprep.mubr.msk.f32.mxu1 %vm71_vm0, %v7681_v37 }
 0xa76   :  { %v7376_v19 = vpop.permute.xlu0 %7375 }
 0xa77   :  { %v7542_v46 = vpop.permute.xlu1 %7541  ;;  %v7630_v31 = vsel %vm7627_vm3, %v7597_v52, %v7376_v19 }
 0xa78   :  { %v7682_v54 = vsel %vm7660_vm4, %v7649_v15, %v7542_v46  ;;  %7395 = vrot.lane.b32.xlu0 %v16936_v33, %s10673_s16  ;;  %v16947_v46 = vld [vmem:[#allocation219_spill] sm:$0xff] }
 0xa79   :  { %10090 = vmatmul.mubr.msk.f32.gmra.mxu1 %vm71_vm0, %v7682_v54 }
 0xa7a   :  { %v7378_v55 = vpop.permute.xlu0 %7377 }
 0xa7b   :  { %v7288_v22 = vpop.permute.xlu1 %7287  ;;  %v7631_v60 = vsel %vm7627_vm3, %v7598_v24, %v7378_v55  ;;  %v16949_v24 = vld [vmem:[#allocation210_spill] sm:$0xff] }
 0xa7c   :  { %7397 = vrot.lane.b32.xlu0 %v16937_v17, %s10673_s16  ;;  %v7617_v1 = vsel %vm873_vm1, %v15268_v39, %v7288_v22  ;;  %v16948_v17 = vld [vmem:[#allocation119_spill] sm:$0xff] }
 0xa7e   :  { %v7504_v56 = vpop.permute.xlu0 %7503 }
 0xa7f   :  { %v7663_v61 = vsel %vm7660_vm4, %v7630_v31, %v7504_v56  ;;  %v7290_v51 = vpop.permute.xlu1 %7289 }
 0xa80   :  { %7523 = vrot.lane.b32.xlu0 %v16939_v53, %s10674_s1  ;;  %10062 = vmatprep.mubr.msk.f32.mxu0 %vm71_vm0, %v7663_v61  ;;  %v7618_v20 = vsel %vm873_vm1, %v16942_v4, %v7290_v51 }
 0xa82   :  { %v7506_v57 = vpop.permute.xlu0 %7505 }
 0xa83   :  { %v7664_v41 = vsel %vm7660_vm4, %v7631_v60, %v7506_v57  ;;  %v7416_v0 = vpop.permute.xlu1 %7415 }
 0xa84   :  { %7525 = vrot.lane.b32.xlu0 %v16941_v49, %s10674_s1  ;;  %10063 = vmatmul.mubr.msk.f32.gmra.mxu0 %vm71_vm0, %v7664_v41  ;;  %v7650_v47 = vsel %vm7627_vm3, %v7617_v1, %v7416_v0 }
 0xa86   :  { %v7252_v42 = vpop.permute.xlu0 %7251 }
 0xa87   :  { %v7418_v26 = vpop.permute.xlu1 %7417  ;;  %v7599_v50 = vsel %vm873_vm1, %v16943_v6, %v7252_v42  ;;  %v16950_v42 = vld [vmem:[#allocation258_spill] sm:$0xff] }
 0xa88   :  { %v7651_v5 = vsel %vm7627_vm3, %v7618_v20, %v7418_v26 }
 0xa8a   :  { %v7254_v27 = vpop.permute.xlu0 %7253 }
 0xa8b   :  { %v7544_v12 = vpop.permute.xlu1 %7543  ;;  %v7600_v45 = vsel %vm873_vm1, %v16944_v62, %v7254_v27 }
 0xa8c   :  { %v7683_v32 = vsel %vm7660_vm4, %v7650_v47, %v7544_v12 }
 0xa8d   :  { %10092 = vmatprep.mubr.msk.f32.mxu1 %vm71_vm0, %v7683_v32 }
 0xa8e   :  { %v7380_v58 = vpop.permute.xlu0 %7379 }
 0xa8f   :  { %v7546_v25 = vpop.permute.xlu1 %7545  ;;  %v7632_v11 = vsel %vm7627_vm3, %v7599_v50, %v7380_v58 }
 0xa90   :  { %v7684_v29 = vsel %vm7660_vm4, %v7651_v5, %v7546_v25 }
 0xa91   :  { %10093 = vmatmul.mubr.msk.f32.gmra.mxu1 %vm71_vm0, %v7684_v29 }
 0xa92   :  { %v7382_v39 = vpop.permute.xlu0 %7381 }
 0xa93   :  { %v7633_v43 = vsel %vm7627_vm3, %v7600_v45, %v7382_v39 }
 0xa96   :  { %v7508_v16 = vpop.permute.xlu0 %7507 }
 0xa97   :  { %v7665_v9 = vsel %vm7660_vm4, %v7632_v11, %v7508_v16  ;;  %v16951_v16 = vld [vmem:[#allocation45_spill] sm:$0xff] }
 0xa98   :  { %10065 = vmatprep.mubr.msk.f32.mxu0 %vm71_vm0, %v7665_v9 }
 0xa9a   :  { %v7510_v38 = vpop.permute.xlu0 %7509 }
 0xa9b   :  { %v7666_v28 = vsel %vm7660_vm4, %v7633_v43, %v7510_v38 }
 0xa9c   :  { %10066 = vmatmul.mubr.msk.f32.gmra.mxu0 %vm71_vm0, %v7666_v28 }
 0xa9e   :  { %v7256_v40 = vpop.permute.xlu0 %7255 }
 0xa9f   :  { %v7601_v23 = vsel %vm873_vm1, %v16945_v30, %v7256_v40  ;;  %v16952_v40 = vld [vmem:[#allocation136_spill] sm:$0xff] }
 0xaa2   :  { %v9985_v34 = vpop.f32.mrf.mxu0  ;;  %v7258_v2 = vpop.permute.xlu0 %7257 }
 0xaa3   :  { %v7602_v36 = vsel %vm873_vm1, %v16946_v21, %v7258_v2 }
 0xaa4   :  { %v6866_v14 = vpop.f32.mrf.mxu0 }
 0xaa5   :  { %7291 = vrot.lane.b32.xlu1 %v6866_v14, %s10672_s2  ;;  %v15612_v0 = vpop.f32.mrf.mxu1 }
 0xaa6   :  { %v7384_v10 = vpop.permute.xlu0 %7383  ;;  %v9988_v5 = vpop.f32.mrf.mxu0 }
 0xaa7   :  { %v7634_v48 = vsel %vm7627_vm3, %v7601_v23, %v7384_v10  ;;  %v15619_v47 = vpop.f32.mrf.mxu1 }
 0xaa8   :  { %v6876_v39 = vpop.f32.mrf.mxu0 }
 0xaa9   :  { %7293 = vrot.lane.b32.xlu1 %v9985_v34, %s10672_s2  ;;  %v15623_v4 = vpop.f32.mrf.mxu1 }
 0xaaa   :  { %v7386_v35 = vpop.permute.xlu0 %7385  ;;  %v15631_v11 = vpop.f32.mrf.mxu0 }
 0xaab   :  { %v7635_v63 = vsel %vm7627_vm3, %v7602_v36, %v7386_v35  ;;  %v15625_v58 = vpop.f32.mrf.mxu1 }
 0xaac   :  { %v6886_v28 = vpop.f32.mrf.mxu0 }
 0xaad   :  { %v15627_v29 = vpop.f32.mrf.mxu1 }
 0xaae   :  { %v7512_v8 = vpop.permute.xlu0 %7511  ;;  %v15647_v30 = vpop.f32.mrf.mxu0 }
 0xaaf   :  { %v7667_v59 = vsel %vm7660_vm4, %v7634_v48, %v7512_v8  ;;  %v15629_v50 = vpop.f32.mrf.mxu1 }
 0xab0   :  { %10068 = vmatprep.mubr.msk.f32.mxu0 %vm71_vm0, %v7667_v59  ;;  %v15650_v8 = vpop.f32.mrf.mxu0 }
 0xab1   :  { %v15636_v43 = vpop.f32.mrf.mxu1 }
 0xab2   :  { %v7514_v37 = vpop.permute.xlu0 %7513 }
 0xab3   :  { %v7668_v13 = vsel %vm7660_vm4, %v7635_v63, %v7514_v37  ;;  %v15643_v10 = vpop.f32.mrf.mxu1 }
 0xab4   :  { %10069 = vmatmul.mubr.msk.f32.gmra.mxu0 %vm71_vm0, %v7668_v13 }
 0xab6   :  { %v7260_v7 = vpop.permute.xlu0 %7259 }
 0xab7   :  { %v7603_v54 = vsel %vm873_vm1, %v16947_v46, %v7260_v7 }
 0xaba   :  { %v7262_v3 = vpop.permute.xlu0 %7261 }
 0xabb   :  { %v7604_v18 = vsel %vm873_vm1, %v16948_v17, %v7262_v3 }
 0xabe   :  { %v7388_v19 = vpop.permute.xlu0 %7387 }
 0xabf   :  { %v7636_v33 = vsel %vm7627_vm3, %v7603_v54, %v7388_v19  ;;  %v15657_v19 = vld [vmem:[%s15888_s6] ss:$0 sm:$0xff] }
 0xac2   :  { %v7390_v15 = vpop.permute.xlu0 %7389 }
 0xac3   :  { %v7637_v52 = vsel %vm7627_vm3, %v7604_v18, %v7390_v15 }
 0xac6   :  { %v7516_v55 = vpop.permute.xlu0 %7515 }
 0xac7   :  { %v7669_v22 = vsel %vm7660_vm4, %v7636_v33, %v7516_v55 }
 0xac8   :  { %10071 = vmatprep.mubr.msk.f32.mxu0 %vm71_vm0, %v7669_v22 }
 0xaca   :  { %v7518_v31 = vpop.permute.xlu0 %7517 }
 0xacb   :  { %v7670_v56 = vsel %vm7660_vm4, %v7637_v52, %v7518_v31 }
 0xacc   :  { %10072 = vmatmul.mubr.msk.f32.gmra.mxu0 %vm71_vm0, %v7670_v56 }
 0xace   :  { %v7264_v61 = vpop.permute.xlu0 %7263 }
 0xacf   :  { %v7605_v60 = vsel %vm873_vm1, %v16949_v24, %v7264_v61 }
 0xad2   :  { %v7266_v51 = vpop.permute.xlu0 %7265 }
 0xad3   :  { %v7606_v26 = vsel %vm873_vm1, %v16950_v42, %v7266_v51 }
 0xad6   :  { %v7392_v53 = vpop.permute.xlu0 %7391 }
 0xad7   :  { %v7638_v57 = vsel %vm7627_vm3, %v7605_v60, %v7392_v53 }
 0xada   :  { %v7394_v44 = vpop.permute.xlu0 %7393 }
 0xadb   :  { %v7639_v1 = vsel %vm7627_vm3, %v7606_v26, %v7394_v44 }
 0xade   :  { %v7520_v41 = vpop.permute.xlu0 %7519 }
 0xadf   :  { %v7671_v49 = vsel %vm7660_vm4, %v7638_v57, %v7520_v41 }
 0xae0   :  { %10074 = vmatprep.mubr.msk.f32.mxu0 %vm71_vm0, %v7671_v49 }
 0xae2   :  { %v7522_v27 = vpop.permute.xlu0 %7521 }
 0xae3   :  { %v7672_v12 = vsel %vm7660_vm4, %v7639_v1, %v7522_v27 }
 0xae4   :  { %10075 = vmatmul.mubr.msk.f32.gmra.mxu0 %vm71_vm0, %v7672_v12 }
 0xae6   :  { %v7268_v32 = vpop.permute.xlu0 %7267 }
 0xae7   :  { %v7607_v9 = vsel %vm873_vm1, %v16951_v16, %v7268_v32 }
 0xaea   :  { %v7270_v20 = vpop.permute.xlu0 %7269 }
 0xaeb   :  { %v7608_v34 = vsel %vm873_vm1, %v16952_v40, %v7270_v20 }
 0xaee   :  { %v7396_v25 = vpop.permute.xlu0 %7395 }
 0xaef   :  { %v7640_v62 = vsel %vm7627_vm3, %v7607_v9, %v7396_v25 }
 0xaf2   :  { %v7398_v6 = vpop.permute.xlu0 %7397  ;;  %v10041_v21 = vpop.f32.mrf.mxu0 }
 0xaf3   :  { %v7641_v2 = vsel %vm7627_vm3, %v7608_v34, %v7398_v6 }
 0xaf4   :  { %v7172_v37 = vpop.f32.mrf.mxu0 }
 0xaf6   :  { %v7524_v45 = vpop.permute.xlu0 %7523  ;;  %v10044_v22 = vpop.f32.mrf.mxu0 }
 0xaf7   :  { %v7673_v38 = vsel %vm7660_vm4, %v7640_v62, %v7524_v45 }
 0xaf8   :  { %10077 = vmatprep.mubr.msk.f32.mxu0 %vm71_vm0, %v7673_v38  ;;  %v7182_v31 = vpop.f32.mrf.mxu0 }
 0xafa   :  { %v7526_v14 = vpop.permute.xlu0 %7525  ;;  %v10047_v56 = vpop.f32.mrf.mxu0 }
 0xafb   :  { %v7674_v35 = vsel %vm7660_vm4, %v7641_v2, %v7526_v14 }
 0xafc   :  { %10078 = vmatmul.mubr.msk.f32.gmra.mxu0 %vm71_vm0, %v7674_v35  ;;  %v7192_v51 = vpop.f32.mrf.mxu0 }
 0xafd   :  { %v10013_v23 = vpop.f32.mrf.mxu1 }
 0xafe   :  { %v10050_v60 = vpop.f32.mrf.mxu0 }
 0xaff   :  { %v7019_v48 = vpop.f32.mrf.mxu1 }
 0xb00   :  { %7419 = vrot.lane.b32.xlu1 %v7019_v48, %s10673_s16  ;;  %v7202_v57 = vpop.f32.mrf.mxu0 }
 0xb01   :  { %v10016_v59 = vpop.f32.mrf.mxu1 }
 0xb03   :  { %v7029_v36 = vpop.f32.mrf.mxu1 }
 0xb04   :  { %7421 = vrot.lane.b32.xlu1 %v10013_v23, %s10673_s16 }
 0xb05   :  { %v10019_v63 = vpop.f32.mrf.mxu1 }
 0xb07   :  { %v7039_v13 = vpop.f32.mrf.mxu1 }
 0xb08   :  { %7547 = vrot.lane.b32.xlu1 %v7172_v37, %s10674_s1 }
 0xb09   :  { %v10022_v7 = vpop.f32.mrf.mxu1 }
 0xb0b   :  { %v7049_v3 = vpop.f32.mrf.mxu1 }
 0xb0c   :  { %7549 = vrot.lane.b32.xlu1 %v10041_v21, %s10674_s1 }
 0xb0d   :  { %v10082_v15 = vpop.f32.mrf.mxu1 }
 0xb0e   :  { %v7942_v46 = vadd.f32 %v10082_v15, %v15657_v19 }
 0xb0f   :  { %v7936_v54 = vpop.f32.mrf.mxu1 }
 0xb10   :  { %8040 = vst.msk [vmem:[%s15889_s7 + $0x78] sm:$0xff] %vm71_vm0, %v7942_v46  ;;  %v7937_v33 = vadd.f32 %v15657_v19, %v7936_v54  ;;  %7295 = vrot.lane.b32.xlu1 %v6876_v39, %s10672_s2 }
 0xb12   :  { %8039 = vst.msk [vmem:[%s15889_s7 + $0x70] sm:$0xff] %vm71_vm0, %v7937_v33 }
 0xb14   :  { %7297 = vrot.lane.b32.xlu1 %v9988_v5, %s10672_s2 }
 0xb15   :  { %v10085_v55 = vpop.f32.mrf.mxu1 }
 0xb16   :  { %v7952_v17 = vadd.f32 %v10085_v55, %v15657_v19 }
 0xb17   :  { %v7946_v18 = vpop.f32.mrf.mxu1  ;;  %v7292_v40 = vpop.permute.xlu1 %7291 }
 0xb18   :  { %8042 = vst.msk [vmem:[%s15889_s7 + $0x88] sm:$0xff] %vm71_vm0, %v7952_v17  ;;  %v7947_v52 = vadd.f32 %v15657_v19, %v7946_v18  ;;  %7423 = vrot.lane.b32.xlu1 %v7029_v36, %s10673_s16 }
 0xb1a   :  { %8041 = vst.msk [vmem:[%s15889_s7 + $0x80] sm:$0xff] %vm71_vm0, %v7947_v52 }
 0xb1b   :  { %v7294_v34 = vpop.permute.xlu1 %7293 }
 0xb1c   :  { %7425 = vrot.lane.b32.xlu1 %v10016_v59, %s10673_s16 }
 0xb20   :  { %7551 = vrot.lane.b32.xlu1 %v7182_v31, %s10674_s1 }
 0xb21   :  { %v10088_v61 = vpop.f32.mrf.mxu1 }
 0xb22   :  { %v7962_v53 = vadd.f32 %v10088_v61, %v15657_v19 }
 0xb23   :  { %v7956_v44 = vpop.f32.mrf.mxu1 }
 0xb24   :  { %8044 = vst.msk [vmem:[%s15889_s7 + $0x98] sm:$0xff] %vm71_vm0, %v7962_v53  ;;  %v7957_v24 = vadd.f32 %v15657_v19, %v7956_v44  ;;  %7553 = vrot.lane.b32.xlu1 %v10044_v22, %s10674_s1 }
 0xb26   :  { %8043 = vst.msk [vmem:[%s15889_s7 + $0x90] sm:$0xff] %vm71_vm0, %v7957_v24 }
 0xb28   :  { %7299 = vrot.lane.b32.xlu1 %v6886_v28, %s10672_s2 }
 0xb2c   :  { %7301 = vrot.lane.b32.xlu1 %v15631_v11, %s10672_s2  ;;  %v10061_v41 = vpop.f32.mrf.mxu0 }
 0xb2d   :  { %v7872_v49 = vadd.f32 %v10061_v41, %v15657_v19 }
 0xb2e   :  { %v7866_v42 = vpop.f32.mrf.mxu0 }
 0xb2f   :  { %8026 = vst.msk [vmem:[%s15889_s7 + $0x8] sm:$0xff] %vm71_vm0, %v7872_v49  ;;  %v7867_v26 = vadd.f32 %v15657_v19, %v7866_v42 }
 0xb30   :  { %7427 = vrot.lane.b32.xlu1 %v7039_v13, %s10673_s16 }
 0xb31   :  { %8025 = vst.msk [vmem:[%s15889_s7] sm:$0xff] %vm71_vm0, %v7867_v26 }
 0xb34   :  { %7429 = vrot.lane.b32.xlu1 %v10019_v63, %s10673_s16  ;;  %v7620_v63 = vsel %vm873_vm1, %v15612_v0, %v7294_v34 }
 0xb38   :  { %7555 = vrot.lane.b32.xlu1 %v7192_v51, %s10674_s1 }
 0xb39   :  { %v10091_v1 = vpop.f32.mrf.mxu1 }
 0xb3a   :  { %v7972_v27 = vadd.f32 %v10091_v1, %v15657_v19 }
 0xb3b   :  { %v7966_v12 = vpop.f32.mrf.mxu1 }
 0xb3c   :  { %8046 = vst.msk [vmem:[%s15889_s7 + $0xa8] sm:$0xff] %vm71_vm0, %v7972_v27  ;;  %v7967_v32 = vadd.f32 %v15657_v19, %v7966_v12  ;;  %7557 = vrot.lane.b32.xlu1 %v10047_v56, %s10674_s1 }
 0xb3e   :  { %8045 = vst.msk [vmem:[%s15889_s7 + $0xa0] sm:$0xff] %vm71_vm0, %v7967_v32 }
 0xb40   :  { %7303 = vrot.lane.b32.xlu1 %v15650_v8, %s10672_s2  ;;  %v7619_v8 = vsel %vm873_vm1, %v15619_v47, %v7292_v40 }
 0xb44   :  { %7305 = vrot.lane.b32.xlu1 %v15647_v30, %s10672_s2  ;;  %v10064_v20 = vpop.f32.mrf.mxu0 }
 0xb45   :  { %v7882_v5 = vadd.f32 %v10064_v20, %v15657_v19 }
 0xb46   :  { %v7876_v25 = vpop.f32.mrf.mxu0 }
 0xb47   :  { %8028 = vst.msk [vmem:[%s15889_s7 + $0x18] sm:$0xff] %vm71_vm0, %v7882_v5  ;;  %v7877_v39 = vadd.f32 %v15657_v19, %v7876_v25 }
 0xb48   :  { %7431 = vrot.lane.b32.xlu1 %v7049_v3, %s10673_s16 }
 0xb49   :  { %8027 = vst.msk [vmem:[%s15889_s7 + $0x10] sm:$0xff] %vm71_vm0, %v7877_v39 }
 0xb4c   :  { %7433 = vrot.lane.b32.xlu1 %v10022_v7, %s10673_s16 }
 0xb50   :  { %7559 = vrot.lane.b32.xlu1 %v7202_v57, %s10674_s1 }
 0xb51   :  { %v10094_v6 = vpop.f32.mrf.mxu1 }
 0xb52   :  { %v7982_v11 = vadd.f32 %v10094_v6, %v15657_v19 }
 0xb53   :  { %v7976_v16 = vpop.f32.mrf.mxu1 }
 0xb54   :  { %8048 = vst.msk [vmem:[%s15889_s7 + $0xb8] sm:$0xff] %vm71_vm0, %v7982_v11  ;;  %v7977_v9 = vadd.f32 %v15657_v19, %v7976_v16  ;;  %7561 = vrot.lane.b32.xlu1 %v10050_v60, %s10674_s1 }
 0xb56   :  { %8047 = vst.msk [vmem:[%s15889_s7 + $0xb0] sm:$0xff] %vm71_vm0, %v7977_v9 }
 0xb5c   :  { %v10067_v62 = vpop.f32.mrf.mxu0 }
 0xb5d   :  { %v7892_v45 = vadd.f32 %v10067_v62, %v15657_v19 }
 0xb5e   :  { %v7886_v38 = vpop.f32.mrf.mxu0 }
 0xb5f   :  { %8030 = vst.msk [vmem:[%s15889_s7 + $0x28] sm:$0xff] %vm71_vm0, %v7892_v45  ;;  %v7887_v28 = vadd.f32 %v15657_v19, %v7886_v38 }
 0xb61   :  { %8029 = vst.msk [vmem:[%s15889_s7 + $0x20] sm:$0xff] %vm71_vm0, %v7887_v28 }
 0xb72   :  { %v7420_v2 = vpop.permute.xlu1 %7419 }
 0xb73   :  { %v7652_v59 = vsel %vm7627_vm3, %v7619_v8, %v7420_v2 }
 0xb74   :  { %v10070_v14 = vpop.f32.mrf.mxu0 }
 0xb75   :  { %v7902_v35 = vadd.f32 %v10070_v14, %v15657_v19 }
 0xb76   :  { %v7896_v30 = vpop.f32.mrf.mxu0  ;;  %v7422_v23 = vpop.permute.xlu1 %7421 }
 0xb77   :  { %8032 = vst.msk [vmem:[%s15889_s7 + $0x38] sm:$0xff] %vm71_vm0, %v7902_v35  ;;  %v7897_v48 = vadd.f32 %v15657_v19, %v7896_v30  ;;  %v7653_v37 = vsel %vm7627_vm3, %v7620_v63, %v7422_v23 }
 0xb79   :  { %8031 = vst.msk [vmem:[%s15889_s7 + $0x30] sm:$0xff] %vm71_vm0, %v7897_v48 }
 0xb7a   :  { %v7548_v21 = vpop.permute.xlu1 %7547 }
 0xb7b   :  { %v7685_v36 = vsel %vm7660_vm4, %v7652_v59, %v7548_v21 }
 0xb7c   :  { %10095 = vmatprep.mubr.msk.f32.mxu1 %vm71_vm0, %v7685_v36 }
 0xb7e   :  { %v7550_v13 = vpop.permute.xlu1 %7549 }
 0xb7f   :  { %v7686_v47 = vsel %vm7660_vm4, %v7653_v37, %v7550_v13 }
 0xb80   :  { %10096 = vmatmul.mubr.msk.f32.gmra.mxu1 %vm71_vm0, %v7686_v47 }
 0xb82   :  { %v7296_v7 = vpop.permute.xlu1 %7295 }
 0xb83   :  { %v7621_v22 = vsel %vm873_vm1, %v15625_v58, %v7296_v7 }
 0xb86   :  { %v7298_v3 = vpop.permute.xlu1 %7297 }
 0xb87   :  { %v7622_v31 = vsel %vm873_vm1, %v15623_v4, %v7298_v3 }
 0xb8a   :  { %v7424_v15 = vpop.permute.xlu1 %7423 }
 0xb8b   :  { %v7654_v17 = vsel %vm7627_vm3, %v7621_v22, %v7424_v15 }
 0xb8c   :  { %v10073_v46 = vpop.f32.mrf.mxu0 }
 0xb8d   :  { %v7912_v54 = vadd.f32 %v10073_v46, %v15657_v19 }
 0xb8e   :  { %v7906_v33 = vpop.f32.mrf.mxu0  ;;  %v7426_v55 = vpop.permute.xlu1 %7425 }
 0xb8f   :  { %8034 = vst.msk [vmem:[%s15889_s7 + $0x48] sm:$0xff] %vm71_vm0, %v7912_v54  ;;  %v7907_v0 = vadd.f32 %v15657_v19, %v7906_v33  ;;  %v7655_v56 = vsel %vm7627_vm3, %v7622_v31, %v7426_v55 }
 0xb91   :  { %8033 = vst.msk [vmem:[%s15889_s7 + $0x40] sm:$0xff] %vm71_vm0, %v7907_v0 }
 0xb92   :  { %v7552_v18 = vpop.permute.xlu1 %7551 }
 0xb93   :  { %v7687_v52 = vsel %vm7660_vm4, %v7654_v17, %v7552_v18 }
 0xb94   :  { %10098 = vmatprep.mubr.msk.f32.mxu1 %vm71_vm0, %v7687_v52 }
 0xb96   :  { %v7554_v61 = vpop.permute.xlu1 %7553 }
 0xb97   :  { %v7688_v58 = vsel %vm7660_vm4, %v7655_v56, %v7554_v61 }
 0xb98   :  { %10099 = vmatmul.mubr.msk.f32.gmra.mxu1 %vm71_vm0, %v7688_v58 }
 0xb9a   :  { %v7300_v51 = vpop.permute.xlu1 %7299 }
 0xb9b   :  { %v7623_v49 = vsel %vm873_vm1, %v15629_v50, %v7300_v51 }
 0xb9e   :  { %v7302_v53 = vpop.permute.xlu1 %7301 }
 0xb9f   :  { %v7624_v27 = vsel %vm873_vm1, %v15627_v29, %v7302_v53 }
 0xba2   :  { %v7428_v44 = vpop.permute.xlu1 %7427 }
 0xba3   :  { %v7656_v42 = vsel %vm7627_vm3, %v7623_v49, %v7428_v44 }
 0xba4   :  { %v10076_v24 = vpop.f32.mrf.mxu0 }
 0xba5   :  { %v7922_v60 = vadd.f32 %v10076_v24, %v15657_v19 }
 0xba6   :  { %v7916_v57 = vpop.f32.mrf.mxu0  ;;  %v7430_v41 = vpop.permute.xlu1 %7429 }
 0xba7   :  { %8036 = vst.msk [vmem:[%s15889_s7 + $0x58] sm:$0xff] %vm71_vm0, %v7922_v60  ;;  %v7917_v4 = vadd.f32 %v15657_v19, %v7916_v57  ;;  %v7657_v12 = vsel %vm7627_vm3, %v7624_v27, %v7430_v41 }
 0xba9   :  { %8035 = vst.msk [vmem:[%s15889_s7 + $0x50] sm:$0xff] %vm71_vm0, %v7917_v4 }
 0xbaa   :  { %v7556_v26 = vpop.permute.xlu1 %7555 }
 0xbab   :  { %v7689_v1 = vsel %vm7660_vm4, %v7656_v42, %v7556_v26 }
 0xbac   :  { %10101 = vmatprep.mubr.msk.f32.mxu1 %vm71_vm0, %v7689_v1 }
 0xbae   :  { %v7558_v32 = vpop.permute.xlu1 %7557 }
 0xbaf   :  { %v7690_v50 = vsel %vm7660_vm4, %v7657_v12, %v7558_v32 }
 0xbb0   :  { %10102 = vmatmul.mubr.msk.f32.gmra.mxu1 %vm71_vm0, %v7690_v50 }
 0xbb2   :  { %v7304_v20 = vpop.permute.xlu1 %7303 }
 0xbb3   :  { %v7625_v9 = vsel %vm873_vm1, %v15643_v10, %v7304_v20 }
 0xbb6   :  { %v7306_v5 = vpop.permute.xlu1 %7305 }
 0xbb7   :  { %v7626_v28 = vsel %vm873_vm1, %v15636_v43, %v7306_v5 }
 0xbba   :  { %v7432_v25 = vpop.permute.xlu1 %7431 }
 0xbbb   :  { %v7658_v62 = vsel %vm7627_vm3, %v7625_v9, %v7432_v25 }
 0xbbc   :  { %v10079_v39 = vpop.f32.mrf.mxu0 }
 0xbbd   :  { %v7932_v6 = vadd.f32 %v10079_v39, %v15657_v19 }
 0xbbe   :  { %v7926_v11 = vpop.f32.mrf.mxu0  ;;  %v7434_v16 = vpop.permute.xlu1 %7433 }
 0xbbf   :  { %8038 = vst.msk [vmem:[%s15889_s7 + $0x68] sm:$0xff] %vm71_vm0, %v7932_v6  ;;  %v7927_v29 = vadd.f32 %v15657_v19, %v7926_v11  ;;  %v7659_v40 = vsel %vm7627_vm3, %v7626_v28, %v7434_v16 }
 0xbc1   :  { %8037 = vst.msk [vmem:[%s15889_s7 + $0x60] sm:$0xff] %vm71_vm0, %v7927_v29 }
 0xbc2   :  { %v7560_v45 = vpop.permute.xlu1 %7559 }
 0xbc3   :  { %v7691_v38 = vsel %vm7660_vm4, %v7658_v62, %v7560_v45 }
 0xbc4   :  { %10104 = vmatprep.mubr.msk.f32.mxu1 %vm71_vm0, %v7691_v38 }
 0xbc6   :  { %v7562_v34 = vpop.permute.xlu1 %7561 }
 0xbc7   :  { %v7692_v10 = vsel %vm7660_vm4, %v7659_v40, %v7562_v34 }
 0xbc8   :  { %10105 = vmatmul.mubr.msk.f32.gmra.mxu1 %vm71_vm0, %v7692_v10 }
 0xc40   :  { %v10097_v2 = vpop.f32.mrf.mxu1 }
 0xc41   :  { %v7992_v14 = vadd.f32 %v10097_v2, %v15657_v19 }
 0xc42   :  { %v7986_v35 = vpop.f32.mrf.mxu1 }
 0xc43   :  { %8050 = vst.msk [vmem:[%s15889_s7 + $0xc8] sm:$0xff] %vm71_vm0, %v7992_v14  ;;  %v7987_v30 = vadd.f32 %v15657_v19, %v7986_v35 }
 0xc45   :  { %8049 = vst.msk [vmem:[%s15889_s7 + $0xc0] sm:$0xff] %vm71_vm0, %v7987_v30 }
 0xc58   :  { %v10100_v43 = vpop.f32.mrf.mxu1 }
 0xc59   :  { %v8002_v23 = vadd.f32 %v10100_v43, %v15657_v19 }
 0xc5a   :  { %v7996_v48 = vpop.f32.mrf.mxu1 }
 0xc5b   :  { %8052 = vst.msk [vmem:[%s15889_s7 + $0xd8] sm:$0xff] %vm71_vm0, %v8002_v23  ;;  %v7997_v8 = vadd.f32 %v15657_v19, %v7996_v48 }
 0xc5d   :  { %8051 = vst.msk [vmem:[%s15889_s7 + $0xd0] sm:$0xff] %vm71_vm0, %v7997_v8 }
 0xc70   :  { %v10103_v59 = vpop.f32.mrf.mxu1 }
 0xc71   :  { %v8012_v21 = vadd.f32 %v10103_v59, %v15657_v19 }
 0xc72   :  { %v8006_v36 = vpop.f32.mrf.mxu1 }
 0xc73   :  { %8054 = vst.msk [vmem:[%s15889_s7 + $0xe8] sm:$0xff] %vm71_vm0, %v8012_v21  ;;  %v8007_v63 = vadd.f32 %v15657_v19, %v8006_v36 }
 0xc75   :  { %8053 = vst.msk [vmem:[%s15889_s7 + $0xe0] sm:$0xff] %vm71_vm0, %v8007_v63 }
 0xc88   :  { %v10106_v37 = vpop.f32.mrf.mxu1 }
 0xc89   :  { %v8022_v13 = vadd.f32 %v10106_v37, %v15657_v19 }
 0xc8a   :  { %v8016_v47 = vpop.f32.mrf.mxu1 }
 0xc8b   :  { %8056 = vst.msk [vmem:[%s15889_s7 + $0xf8] sm:$0xff] %vm71_vm0, %v8022_v13  ;;  %v8017_v7 = vadd.f32 %v15657_v19, %v8016_v47 }
 0xc8d   :  { %8055 = vst.msk [vmem:[%s15889_s7 + $0xf0] sm:$0xff] %vm71_vm0, %v8017_v7 }

</bundles_post_ra>
